<compile_context>
chip_gen: v6e
topology: v6e:2x2x1
jax: 0.10.0
libtpu: 0.0.40
codegen_flags: <defaults>
</compile_context>

<pallas_src>
import jax
import jax.numpy as jnp
from jax.experimental import pallas as pl
from jax.experimental.pallas import tpu as pltpu


# Flip to True on v6e / v7x to feed the MXU bf16 operands (accumulation and the
# elementwise epilogue stay f32).  Default False keeps the strict 1e-4 self-check.
USE_BF16_MATMUL = False


# ============================================================================
# Fused whole-network kernel (primary path)
# ============================================================================
def _make_fused_kernel(n_blocks, use_im2col):
    """One grid step == one image: stem conv -> residual tower -> pooled heads."""

    def kernel(x_ref, stem_w_ref, stem_b_ref, blk_w_ref, blk_b_ref,
               wp_ref, bp_ref, wv_ref, bv_ref, p_ref, v_ref, pad_ref):
        H, W, Cbuf = x_ref.shape[1], x_ref.shape[2], x_ref.shape[3]
        C = stem_w_ref.shape[1]          # n_kernel
        HW = H * W

        def conv(w, b):
            # 3x3 "SAME" conv over the zero-haloed VMEM scratch; folded-BN bias added.
            if use_im2col:
                taps = [pad_ref[kh:kh + H, kw:kw + W, :].reshape(HW, Cbuf)
                        for kh in range(3) for kw in range(3)]
                patches = jnp.concatenate(taps, axis=-1)           # (HW, 9*Cbuf)
                acc = jnp.dot(patches.astype(w.dtype), w,
                              preferred_element_type=jnp.float32)
            else:
                acc = jnp.zeros((HW, w.shape[-1]), jnp.float32)
                for kh in range(3):
                    for kw in range(3):
                        t = kh * 3 + kw
                        patch = pad_ref[kh:kh + H, kw:kw + W, :].reshape(HW, Cbuf)
                        acc += jnp.dot(patch.astype(w.dtype),
                                       w[t * Cbuf:(t + 1) * Cbuf, :],
                                       preferred_element_type=jnp.float32)
            return acc + b                                         # (HW, Cout) f32

        # Zero the halo (and any channel padding) once, then stage the input image.
        pad_ref[...] = jnp.zeros(pad_ref.shape, pad_ref.dtype)
        pad_ref[1:H + 1, 1:W + 1, :] = x_ref[0]

        # Stem: conv + folded BN + ReLU.
        y = jnp.maximum(conv(stem_w_ref[...], stem_b_ref[...]), 0.0)

        # Residual tower, fully VMEM resident (n_blocks is static).
        for bi in range(n_blocks):
            residual = y
            pad_ref[1:H + 1, 1:W + 1, 0:C] = y.reshape(H, W, C)
            y = jnp.maximum(conv(blk_w_ref[bi, 0], blk_b_ref[bi, 0]), 0.0)
            pad_ref[1:H + 1, 1:W + 1, 0:C] = y.reshape(H, W, C)
            y = jnp.maximum(conv(blk_w_ref[bi, 1], blk_b_ref[bi, 1]) + residual, 0.0)

        # Head: global average pool + policy softmax + value tanh.
        pooled = jnp.mean(y, axis=0, keepdims=True)                # (1, C)
        logits = jnp.dot(pooled, wp_ref[...],
                         preferred_element_type=jnp.float32) + bp_ref[...]
        m = jnp.max(logits, axis=-1, keepdims=True)
        e = jnp.exp(logits - m)
        p = e / jnp.sum(e, axis=-1, keepdims=True)
        val = jnp.tanh(jnp.dot(pooled, wv_ref[...],
                               preferred_element_type=jnp.float32) + bv_ref[...])
        p_ref[...] = p.reshape(1, 1, -1)
        v_ref[...] = val.reshape(1, 1, 1)

    return kernel


def _pack_conv_weight(w_hwio, cbuf, dtype):
    """HWIO (3,3,Cin,Cout), BN-scale already folded -> flat (9*cbuf, Cout)."""
    _, _, cin, cout = w_hwio.shape
    if cin < cbuf:
        w_hwio = jnp.concatenate(
            [w_hwio, jnp.zeros((3, 3, cbuf - cin, cout), w_hwio.dtype)], axis=2)
    return w_hwio.reshape(9 * cbuf, cout).astype(dtype)


def _forward_fused(params, x_nhwc, use_im2col):
    N, H, W, Cin = x_nhwc.shape
    stem_w, stem_b = params["stem"]
    C = stem_w.shape[-1]
    A = params["wp"].shape[-1]
    blocks = params["blocks"]
    n_blocks = len(blocks)
    Cbuf = max(Cin, C)
    cdt = jnp.bfloat16 if USE_BF16_MATMUL else jnp.float32

    x = x_nhwc
    if Cin < Cbuf:                       # one-time channel pad of the input only
        x = jnp.concatenate(
            [x, jnp.zeros((N, H, W, Cbuf - Cin), x.dtype)], axis=-1)

    stem_w2 = _pack_conv_weight(stem_w, Cbuf, cdt)
    if n_blocks > 0:
        blk_w = jnp.stack([jnp.stack([_pack_conv_weight(w1, Cbuf, cdt),
                                      _pack_conv_weight(w2, Cbuf, cdt)])
                           for (w1, b1, w2, b2) in blocks])
        blk_b = jnp.stack([jnp.stack([b1, b2]) for (w1, b1, w2, b2) in blocks])
    else:                                # dummy operands keep the signature fixed
        blk_w = jnp.zeros((1, 2, 9 * Cbuf, C), cdt)
        blk_b = jnp.zeros((1, 2, 1, C), jnp.float32)

    kernel = _make_fused_kernel(n_blocks, use_im2col)
    p3, v3 = pl.pallas_call(
        kernel,
        out_shape=(jax.ShapeDtypeStruct((N, 1, A), jnp.float32),
                   jax.ShapeDtypeStruct((N, 1, 1), jnp.float32)),
        grid=(N,),
        in_specs=[
            pl.BlockSpec((1, H, W, Cbuf), lambda n: (n, 0, 0, 0)),
            pl.BlockSpec(stem_w2.shape, lambda n: (0, 0)),
            pl.BlockSpec(stem_b.shape, lambda n: (0, 0)),
            pl.BlockSpec(blk_w.shape, lambda n: (0, 0, 0, 0)),
            pl.BlockSpec(blk_b.shape, lambda n: (0, 0, 0, 0)),
            pl.BlockSpec(params["wp"].shape, lambda n: (0, 0)),
            pl.BlockSpec(params["bp"].shape, lambda n: (0, 0)),
            pl.BlockSpec(params["wv"].shape, lambda n: (0, 0)),
            pl.BlockSpec(params["bv"].shape, lambda n: (0, 0)),
        ],
        out_specs=(pl.BlockSpec((1, 1, A), lambda n: (n, 0, 0)),
                   pl.BlockSpec((1, 1, 1), lambda n: (n, 0, 0))),
        scratch_shapes=[pltpu.VMEM((H + 2, W + 2, Cbuf), jnp.float32)],
        compiler_params=pltpu.CompilerParams(
            dimension_semantics=("parallel",)),
    )(x, stem_w2, stem_b, blk_w, blk_b,
      params["wp"], params["bp"], params["wv"], params["bv"])
    return p3[:, 0, :], v3[:, 0, :]


# ============================================================================
# Fallback path: proven per-layer kernels (BN pre-folded into weights)
# ============================================================================
def _layer_kernel(x_ref, w_ref, b_ref, o_ref):
    H, W, Cout = o_ref.shape[1], o_ref.shape[2], o_ref.shape[3]
    Cin = x_ref.shape[3]
    acc = jnp.zeros((H * W, Cout), jnp.float32)
    for kh in range(3):
        for kw in range(3):
            patch = x_ref[0, kh:kh + H, kw:kw + W, :].reshape(H * W, Cin)
            acc += jnp.dot(patch, w_ref[kh, kw], preferred_element_type=jnp.float32)
    o_ref[...] = jnp.maximum(acc + b_ref[...], 0.0).reshape(1, H, W, Cout)


def _layer_res_kernel(x_ref, w_ref, b_ref, r_ref, o_ref):
    H, W, Cout = o_ref.shape[1], o_ref.shape[2], o_ref.shape[3]
    Cin = x_ref.shape[3]
    acc = jnp.zeros((H * W, Cout), jnp.float32)
    for kh in range(3):
        for kw in range(3):
            patch = x_ref[0, kh:kh + H, kw:kw + W, :].reshape(H * W, Cin)
            acc += jnp.dot(patch, w_ref[kh, kw], preferred_element_type=jnp.float32)
    y = acc + b_ref[...] + r_ref[0].reshape(H * W, Cout)
    o_ref[...] = jnp.maximum(y, 0.0).reshape(1, H, W, Cout)


def _conv_layer(x, w, b, residual=None):
    N, H, W, Cin = x.shape
    Cout = w.shape[-1]
    xp = jnp.pad(x, ((0, 0), (1, 1), (1, 1), (0, 0)))
    in_specs = [
        pl.BlockSpec((1, H + 2, W + 2, Cin), lambda n: (n, 0, 0, 0)),
        pl.BlockSpec((3, 3, Cin, Cout), lambda n: (0, 0, 0, 0)),
        pl.BlockSpec((1, Cout), lambda n: (0, 0)),
    ]
    args = [xp, w, b]
    kernel = _layer_kernel
    if residual is not None:
        in_specs.append(pl.BlockSpec((1, H, W, Cout), lambda n: (n, 0, 0, 0)))
        args.append(residual)
        kernel = _layer_res_kernel
    return pl.pallas_call(
        kernel,
        out_shape=jax.ShapeDtypeStruct((N, H, W, Cout), jnp.float32),
        grid=(N,),
        in_specs=in_specs,
        out_specs=pl.BlockSpec((1, H, W, Cout), lambda n: (n, 0, 0, 0)),
        compiler_params=pltpu.CompilerParams(dimension_semantics=("parallel",)),
    )(*args)


def _head_kernel(x_ref, wp_ref, bp_ref, wv_ref, bv_ref, p_ref, v_ref):
    pooled = jnp.mean(x_ref[...], axis=(1, 2))           # (N, C)
    logits = jnp.dot(pooled, wp_ref[...],
                     preferred_element_type=jnp.float32) + bp_ref[...]
    m = jnp.max(logits, axis=-1, keepdims=True)
    e = jnp.exp(logits - m)
    p_ref[...] = e / jnp.sum(e, axis=-1, keepdims=True)
    v_ref[...] = jnp.tanh(jnp.dot(pooled, wv_ref[...],
                                  preferred_element_type=jnp.float32) + bv_ref[...])


def _head(x, wp, bp, wv, bv):
    N, H, W, C = x.shape
    A = wp.shape[-1]
    return pl.pallas_call(
        _head_kernel,
        out_shape=(jax.ShapeDtypeStruct((N, A), jnp.float32),
                   jax.ShapeDtypeStruct((N, 1), jnp.float32)),
        grid=(1,),
        in_specs=[
            pl.BlockSpec((N, H, W, C), lambda i: (0, 0, 0, 0)),
            pl.BlockSpec((C, A), lambda i: (0, 0)),
            pl.BlockSpec((1, A), lambda i: (0, 0)),
            pl.BlockSpec((C, 1), lambda i: (0, 0)),
            pl.BlockSpec((1, 1), lambda i: (0, 0)),
        ],
        out_specs=(pl.BlockSpec((N, A), lambda i: (0, 0)),
                   pl.BlockSpec((N, 1), lambda i: (0, 0))),
    )(x, wp, bp, wv, bv)


def _forward_layered(params, x_nhwc):
    w, b = params["stem"]
    x = _conv_layer(x_nhwc, w, b)
    for (w1, b1, w2, b2) in params["blocks"]:
        r = x
        x = _conv_layer(x, w1, b1)
        x = _conv_layer(x, w2, b2, residual=r)
    return _head(x, params["wp"], params["bp"], params["wv"], params["bv"])


# ============================================================================
# Public forward (NCHW input, eval-mode BN) with graceful impl fallback
# ============================================================================
def _run_impl(params, x_nhwc, impl):
    if impl == "fused_im2col":
        return _forward_fused(params, x_nhwc, use_im2col=True)
    if impl == "fused_taps":
        return _forward_fused(params, x_nhwc, use_im2col=False)
    if impl == "layered":
        return _forward_layered(params, x_nhwc)
    raise ValueError(f"unknown impl: {impl}")


def network_forward(params, x_nchw, impl="auto"):
    """Forward pass matching the PyTorch Network (eval mode).  x_nchw: (N,C,H,W)."""
    x = jnp.transpose(x_nchw, (0, 2, 3, 1)).astype(jnp.float32)   # NHWC
    if impl != "auto":
        return _run_impl(params, x, impl)
    last_err = None
    for cand in ("fused_im2col", "fused_taps", "layered"):
        try:
            out = _run_impl(params, x, cand)
            jax.block_until_ready(out)
            return out
        except Exception as e:           # lowering unsupported -> try next impl
            last_err = e
    raise last_err


# ============================================================================
# Parameters (BN folded at prep time) and pure-JAX reference
# ============================================================================
def init_params(key, n_residual_block, n_kernel, state_dim, n_actions):
    n_conv = 1 + 2 * n_residual_block
    ks = jax.random.split(key, 5 * n_conv + 4)
    it = iter(ks)

    def folded_conv(cin, cout):
        w = jax.random.normal(next(it), (3, 3, cin, cout), jnp.float32) * 0.1
        gamma = 1.0 + 0.1 * jax.random.normal(next(it), (cout,), jnp.float32)
        beta = 0.1 * jax.random.normal(next(it), (cout,), jnp.float32)
        mean = 0.1 * jax.random.normal(next(it), (cout,), jnp.float32)
        var = jnp.abs(jax.random.normal(next(it), (cout,), jnp.float32)) + 0.5
        scale = gamma / jnp.sqrt(var + 1e-5)
        # Fold eval-mode BatchNorm into the conv weight + a per-channel bias.
        return w * scale, (beta - mean * scale)[None, :]

    params = {"stem": folded_conv(state_dim, n_kernel), "blocks": []}
    for _ in range(n_residual_block):
        w1, b1 = folded_conv(n_kernel, n_kernel)
        w2, b2 = folded_conv(n_kernel, n_kernel)
        params["blocks"].append((w1, b1, w2, b2))

    params["wp"] = jax.random.normal(next(it), (n_kernel, n_actions),
                                     jnp.float32) * 0.1
    params["bp"] = jax.random.normal(next(it), (1, n_actions), jnp.float32) * 0.1
    params["wv"] = jax.random.normal(next(it), (n_kernel, 1), jnp.float32) * 0.1
    params["bv"] = jax.random.normal(next(it), (1, 1), jnp.float32) * 0.1
    return params


def reference_forward(params, x_nchw):
    x = jnp.transpose(x_nchw, (0, 2, 3, 1)).astype(jnp.float32)

    def conv(x, w, b, residual=None):
        y = jax.lax.conv_general_dilated(
            x, w, window_strides=(1, 1), padding="SAME",
            dimension_numbers=("NHWC", "HWIO", "NHWC")) + b[0]
        if residual is not None:
            y = y + residual
        return jnp.maximum(y, 0.0)

    w, b = params["stem"]
    x = conv(x, w, b)
    for (w1, b1, w2, b2) in params["blocks"]:
        r = x
        x = conv(x, w1, b1)
        x = conv(x, w2, b2, residual=r)
    pooled = jnp.mean(x, axis=(1, 2))
    p = jax.nn.softmax(pooled @ params["wp"] + params["bp"][0], axis=-1)
    v = jnp.tanh(pooled @ params["wv"] + params["bv"][0])
    return p, v


if __name__ == "__main__":
    N_RESIDUAL_BLOCK = 2
    N_KERNEL = 32
    STATE_DIM = 4
    N_ACTIONS = 8
    BATCH, H, W = 2, 8, 8

    key = jax.random.PRNGKey(0)
    kx, kp = jax.random.split(key)
    x = jax.random.normal(kx, (BATCH, STATE_DIM, H, W), jnp.float32)  # NCHW input
    params = init_params(kp, N_RESIDUAL_BLOCK, N_KERNEL, STATE_DIM, N_ACTIONS)

    p, v = network_forward(params, x)
    p, v = jax.block_until_ready((p, v))

    p_ref, v_ref = reference_forward(params, x)
    tol = 3e-2 if USE_BF16_MATMUL else 1e-4
    assert p.shape == (BATCH, N_ACTIONS) and v.shape == (BATCH, 1)
    assert jnp.allclose(p, p_ref, atol=tol, rtol=tol), "policy mismatch"
    assert jnp.allclose(v, v_ref, atol=tol, rtol=tol), "value mismatch"

    print("KERNEL_OK")
</pallas_src>

<mosaic_0001>
module attributes {stable_mosaic.version = 11 : i64} {
  func.func @kernel(%arg0: i32, %arg1: memref<1x8x8x32xf32, #tpu.memory_space<vmem>>, %arg2: memref<288x32xf32, #tpu.memory_space<vmem>>, %arg3: memref<1x32xf32, #tpu.memory_space<vmem>>, %arg4: memref<2x2x288x32xf32, #tpu.memory_space<vmem>>, %arg5: memref<2x2x1x32xf32, #tpu.memory_space<vmem>>, %arg6: memref<32x8xf32, #tpu.memory_space<vmem>>, %arg7: memref<1x8xf32, #tpu.memory_space<vmem>>, %arg8: memref<32x1xf32, #tpu.memory_space<vmem>>, %arg9: memref<1x1xf32, #tpu.memory_space<vmem>>, %arg10: memref<1x1x8xf32, #tpu.memory_space<vmem>>, %arg11: memref<1x1x1xf32, #tpu.memory_space<vmem>>, %arg12: memref<10x10x32xf32, #tpu.memory_space<vmem>>) attributes {dimension_semantics = [#tpu.dimension_semantics<parallel>], iteration_bounds = array<i64: 2>, scalar_prefetch = 0 : i64, scratch_operands = 1 : i64, tpu.core_type = #tpu.core_type<tc>, window_params = [{transform_indices = @transform_0, window_bounds = array<i64: 1, 8, 8, 32>}, {pipeline_mode = #tpu.pipeline_mode<synchronous>, transform_indices = @transform_1, window_bounds = array<i64: 288, 32>}, {pipeline_mode = #tpu.pipeline_mode<synchronous>, transform_indices = @transform_2, window_bounds = array<i64: 1, 32>}, {pipeline_mode = #tpu.pipeline_mode<synchronous>, transform_indices = @transform_3, window_bounds = array<i64: 2, 2, 288, 32>}, {pipeline_mode = #tpu.pipeline_mode<synchronous>, transform_indices = @transform_4, window_bounds = array<i64: 2, 2, 1, 32>}, {pipeline_mode = #tpu.pipeline_mode<synchronous>, transform_indices = @transform_5, window_bounds = array<i64: 32, 8>}, {pipeline_mode = #tpu.pipeline_mode<synchronous>, transform_indices = @transform_6, window_bounds = array<i64: 1, 8>}, {pipeline_mode = #tpu.pipeline_mode<synchronous>, transform_indices = @transform_7, window_bounds = array<i64: 32, 1>}, {pipeline_mode = #tpu.pipeline_mode<synchronous>, transform_indices = @transform_8, window_bounds = array<i64: 1, 1>}, {transform_indices = @transform_9, window_bounds = array<i64: 1, 1, 8>}, {transform_indices = @transform_10, window_bounds = array<i64: 1, 1, 1>}]} {
    %cst = arith.constant 0.000000e+00 : f32
    %0 = vector.broadcast %cst : f32 to vector<10x10x32xf32>
    %c0 = arith.constant 0 : index
    %c0_0 = arith.constant 0 : index
    %c0_1 = arith.constant 0 : index
    %1 = vector.load %arg12[%c0, %c0_0, %c0_1] : memref<10x10x32xf32, #tpu.memory_space<vmem>>, vector<10x10x32xf32>
    tpu.vector_store %arg12[%c0, %c0_0, %c0_1], %0 {strides = array<i32>} : memref<10x10x32xf32, #tpu.memory_space<vmem>>, vector<10x10x32xf32>,
    %c0_2 = arith.constant 0 : index
    %c0_3 = arith.constant 0 : index
    %c0_4 = arith.constant 0 : index
    %c0_5 = arith.constant 0 : index
    %2 = vector.load %arg1[%c0_2, %c0_3, %c0_4, %c0_5] : memref<1x8x8x32xf32, #tpu.memory_space<vmem>>, vector<1x8x8x32xf32>
    %3 = vector.shape_cast %2 : vector<1x8x8x32xf32> to vector<8x8x32xf32>
    %c1 = arith.constant 1 : index
    %c1_6 = arith.constant 1 : index
    %c0_7 = arith.constant 0 : index
    %4 = vector.load %arg12[%c1, %c1_6, %c0_7] : memref<10x10x32xf32, #tpu.memory_space<vmem>>, vector<8x8x32xf32>
    tpu.vector_store %arg12[%c1, %c1_6, %c0_7], %3 {strides = array<i32>} : memref<10x10x32xf32, #tpu.memory_space<vmem>>, vector<8x8x32xf32>,
    %c0_8 = arith.constant 0 : index
    %c0_9 = arith.constant 0 : index
    %5 = vector.load %arg2[%c0_8, %c0_9] : memref<288x32xf32, #tpu.memory_space<vmem>>, vector<288x32xf32>
    %c0_10 = arith.constant 0 : index
    %c0_11 = arith.constant 0 : index
    %6 = vector.load %arg3[%c0_10, %c0_11] : memref<1x32xf32, #tpu.memory_space<vmem>>, vector<1x32xf32>
    %c0_12 = arith.constant 0 : index
    %c0_13 = arith.constant 0 : index
    %c0_14 = arith.constant 0 : index
    %7 = vector.load %arg12[%c0_12, %c0_13, %c0_14] : memref<10x10x32xf32, #tpu.memory_space<vmem>>, vector<8x8x32xf32>
    %8 = vector.shape_cast %7 : vector<8x8x32xf32> to vector<64x32xf32>
    %c0_15 = arith.constant 0 : index
    %c1_16 = arith.constant 1 : index
    %c0_17 = arith.constant 0 : index
    %9 = vector.load %arg12[%c0_15, %c1_16, %c0_17] : memref<10x10x32xf32, #tpu.memory_space<vmem>>, vector<8x8x32xf32>
    %10 = vector.shape_cast %9 : vector<8x8x32xf32> to vector<64x32xf32>
    %c0_18 = arith.constant 0 : index
    %c2 = arith.constant 2 : index
    %c0_19 = arith.constant 0 : index
    %11 = vector.load %arg12[%c0_18, %c2, %c0_19] : memref<10x10x32xf32, #tpu.memory_space<vmem>>, vector<8x8x32xf32>
    %12 = vector.shape_cast %11 : vector<8x8x32xf32> to vector<64x32xf32>
    %c1_20 = arith.constant 1 : index
    %c0_21 = arith.constant 0 : index
    %c0_22 = arith.constant 0 : index
    %13 = vector.load %arg12[%c1_20, %c0_21, %c0_22] : memref<10x10x32xf32, #tpu.memory_space<vmem>>, vector<8x8x32xf32>
    %14 = vector.shape_cast %13 : vector<8x8x32xf32> to vector<64x32xf32>
    %c1_23 = arith.constant 1 : index
    %c1_24 = arith.constant 1 : index
    %c0_25 = arith.constant 0 : index
    %15 = vector.load %arg12[%c1_23, %c1_24, %c0_25] : memref<10x10x32xf32, #tpu.memory_space<vmem>>, vector<8x8x32xf32>
    %16 = vector.shape_cast %15 : vector<8x8x32xf32> to vector<64x32xf32>
    %c1_26 = arith.constant 1 : index
    %c2_27 = arith.constant 2 : index
    %c0_28 = arith.constant 0 : index
    %17 = vector.load %arg12[%c1_26, %c2_27, %c0_28] : memref<10x10x32xf32, #tpu.memory_space<vmem>>, vector<8x8x32xf32>
    %18 = vector.shape_cast %17 : vector<8x8x32xf32> to vector<64x32xf32>
    %c2_29 = arith.constant 2 : index
    %c0_30 = arith.constant 0 : index
    %c0_31 = arith.constant 0 : index
    %19 = vector.load %arg12[%c2_29, %c0_30, %c0_31] : memref<10x10x32xf32, #tpu.memory_space<vmem>>, vector<8x8x32xf32>
    %20 = vector.shape_cast %19 : vector<8x8x32xf32> to vector<64x32xf32>
    %c2_32 = arith.constant 2 : index
    %c1_33 = arith.constant 1 : index
    %c0_34 = arith.constant 0 : index
    %21 = vector.load %arg12[%c2_32, %c1_33, %c0_34] : memref<10x10x32xf32, #tpu.memory_space<vmem>>, vector<8x8x32xf32>
    %22 = vector.shape_cast %21 : vector<8x8x32xf32> to vector<64x32xf32>
    %c2_35 = arith.constant 2 : index
    %c2_36 = arith.constant 2 : index
    %c0_37 = arith.constant 0 : index
    %23 = vector.load %arg12[%c2_35, %c2_36, %c0_37] : memref<10x10x32xf32, #tpu.memory_space<vmem>>, vector<8x8x32xf32>
    %24 = vector.shape_cast %23 : vector<8x8x32xf32> to vector<64x32xf32>
    %25 = tpu.concatenate %8, %10, %12, %14, %16, %18, %20, %22, %24 in 1 : vector<64x32xf32>, vector<64x32xf32>, vector<64x32xf32>, vector<64x32xf32>, vector<64x32xf32>, vector<64x32xf32>, vector<64x32xf32>, vector<64x32xf32>, vector<64x32xf32> -> vector<64x288xf32>
    %cst_38 = arith.constant dense<0.000000e+00> : vector<64x32xf32>
    %26 = tpu.matmul %25, %5, %cst_38 {dimension_numbers = #tpu.dot_dimension_numbers<[1], [0], [0], [1], [0, 0, 1, 1], [], []>} : vector<64x288xf32>, vector<288x32xf32>, vector<64x32xf32> -> vector<64x32xf32>
    %27 = vector.broadcast %6 : vector<1x32xf32> to vector<64x32xf32>
    %28 = arith.addf %26, %27 : vector<64x32xf32>
    %cst_39 = arith.constant 0.000000e+00 : f32
    %29 = vector.broadcast %cst_39 : f32 to vector<64x32xf32>
    %30 = arith.maximumf %28, %29 : vector<64x32xf32>
    %31 = vector.shape_cast %30 : vector<64x32xf32> to vector<8x8x32xf32>
    %c1_40 = arith.constant 1 : index
    %c1_41 = arith.constant 1 : index
    %c0_42 = arith.constant 0 : index
    %32 = vector.load %arg12[%c1_40, %c1_41, %c0_42] : memref<10x10x32xf32, #tpu.memory_space<vmem>>, vector<8x8x32xf32>
    tpu.vector_store %arg12[%c1_40, %c1_41, %c0_42], %31 {strides = array<i32>} : memref<10x10x32xf32, #tpu.memory_space<vmem>>, vector<8x8x32xf32>,
    %c0_43 = arith.constant 0 : index
    %c0_44 = arith.constant 0 : index
    %c0_45 = arith.constant 0 : index
    %c0_46 = arith.constant 0 : index
    %33 = vector.load %arg4[%c0_43, %c0_44, %c0_45, %c0_46] : memref<2x2x288x32xf32, #tpu.memory_space<vmem>>, vector<1x1x288x32xf32>
    %34 = vector.shape_cast %33 : vector<1x1x288x32xf32> to vector<288x32xf32>
    %c0_47 = arith.constant 0 : index
    %c0_48 = arith.constant 0 : index
    %c0_49 = arith.constant 0 : index
    %c0_50 = arith.constant 0 : index
    %35 = vector.load %arg5[%c0_47, %c0_48, %c0_49, %c0_50] : memref<2x2x1x32xf32, #tpu.memory_space<vmem>>, vector<1x1x1x32xf32>
    %36 = vector.shape_cast %35 : vector<1x1x1x32xf32> to vector<1x32xf32>
    %c0_51 = arith.constant 0 : index
    %c0_52 = arith.constant 0 : index
    %c0_53 = arith.constant 0 : index
    %37 = vector.load %arg12[%c0_51, %c0_52, %c0_53] : memref<10x10x32xf32, #tpu.memory_space<vmem>>, vector<8x8x32xf32>
    %38 = vector.shape_cast %37 : vector<8x8x32xf32> to vector<64x32xf32>
    %c0_54 = arith.constant 0 : index
    %c1_55 = arith.constant 1 : index
    %c0_56 = arith.constant 0 : index
    %39 = vector.load %arg12[%c0_54, %c1_55, %c0_56] : memref<10x10x32xf32, #tpu.memory_space<vmem>>, vector<8x8x32xf32>
    %40 = vector.shape_cast %39 : vector<8x8x32xf32> to vector<64x32xf32>
    %c0_57 = arith.constant 0 : index
    %c2_58 = arith.constant 2 : index
    %c0_59 = arith.constant 0 : index
    %41 = vector.load %arg12[%c0_57, %c2_58, %c0_59] : memref<10x10x32xf32, #tpu.memory_space<vmem>>, vector<8x8x32xf32>
    %42 = vector.shape_cast %41 : vector<8x8x32xf32> to vector<64x32xf32>
    %c1_60 = arith.constant 1 : index
    %c0_61 = arith.constant 0 : index
    %c0_62 = arith.constant 0 : index
    %43 = vector.load %arg12[%c1_60, %c0_61, %c0_62] : memref<10x10x32xf32, #tpu.memory_space<vmem>>, vector<8x8x32xf32>
    %44 = vector.shape_cast %43 : vector<8x8x32xf32> to vector<64x32xf32>
    %c1_63 = arith.constant 1 : index
    %c1_64 = arith.constant 1 : index
    %c0_65 = arith.constant 0 : index
    %45 = vector.load %arg12[%c1_63, %c1_64, %c0_65] : memref<10x10x32xf32, #tpu.memory_space<vmem>>, vector<8x8x32xf32>
    %46 = vector.shape_cast %45 : vector<8x8x32xf32> to vector<64x32xf32>
    %c1_66 = arith.constant 1 : index
    %c2_67 = arith.constant 2 : index
    %c0_68 = arith.constant 0 : index
    %47 = vector.load %arg12[%c1_66, %c2_67, %c0_68] : memref<10x10x32xf32, #tpu.memory_space<vmem>>, vector<8x8x32xf32>
    %48 = vector.shape_cast %47 : vector<8x8x32xf32> to vector<64x32xf32>
    %c2_69 = arith.constant 2 : index
    %c0_70 = arith.constant 0 : index
    %c0_71 = arith.constant 0 : index
    %49 = vector.load %arg12[%c2_69, %c0_70, %c0_71] : memref<10x10x32xf32, #tpu.memory_space<vmem>>, vector<8x8x32xf32>
    %50 = vector.shape_cast %49 : vector<8x8x32xf32> to vector<64x32xf32>
    %c2_72 = arith.constant 2 : index
    %c1_73 = arith.constant 1 : index
    %c0_74 = arith.constant 0 : index
    %51 = vector.load %arg12[%c2_72, %c1_73, %c0_74] : memref<10x10x32xf32, #tpu.memory_space<vmem>>, vector<8x8x32xf32>
    %52 = vector.shape_cast %51 : vector<8x8x32xf32> to vector<64x32xf32>
    %c2_75 = arith.constant 2 : index
    %c2_76 = arith.constant 2 : index
    %c0_77 = arith.constant 0 : index
    %53 = vector.load %arg12[%c2_75, %c2_76, %c0_77] : memref<10x10x32xf32, #tpu.memory_space<vmem>>, vector<8x8x32xf32>
    %54 = vector.shape_cast %53 : vector<8x8x32xf32> to vector<64x32xf32>
    %55 = tpu.concatenate %38, %40, %42, %44, %46, %48, %50, %52, %54 in 1 : vector<64x32xf32>, vector<64x32xf32>, vector<64x32xf32>, vector<64x32xf32>, vector<64x32xf32>, vector<64x32xf32>, vector<64x32xf32>, vector<64x32xf32>, vector<64x32xf32> -> vector<64x288xf32>
    %cst_78 = arith.constant dense<0.000000e+00> : vector<64x32xf32>
    %56 = tpu.matmul %55, %34, %cst_78 {dimension_numbers = #tpu.dot_dimension_numbers<[1], [0], [0], [1], [0, 0, 1, 1], [], []>} : vector<64x288xf32>, vector<288x32xf32>, vector<64x32xf32> -> vector<64x32xf32>
    %57 = vector.broadcast %36 : vector<1x32xf32> to vector<64x32xf32>
    %58 = arith.addf %56, %57 : vector<64x32xf32>
    %cst_79 = arith.constant 0.000000e+00 : f32
    %59 = vector.broadcast %cst_79 : f32 to vector<64x32xf32>
    %60 = arith.maximumf %58, %59 : vector<64x32xf32>
    %61 = vector.shape_cast %60 : vector<64x32xf32> to vector<8x8x32xf32>
    %c1_80 = arith.constant 1 : index
    %c1_81 = arith.constant 1 : index
    %c0_82 = arith.constant 0 : index
    %62 = vector.load %arg12[%c1_80, %c1_81, %c0_82] : memref<10x10x32xf32, #tpu.memory_space<vmem>>, vector<8x8x32xf32>
    tpu.vector_store %arg12[%c1_80, %c1_81, %c0_82], %61 {strides = array<i32>} : memref<10x10x32xf32, #tpu.memory_space<vmem>>, vector<8x8x32xf32>,
    %c0_83 = arith.constant 0 : index
    %c1_84 = arith.constant 1 : index
    %c0_85 = arith.constant 0 : index
    %c0_86 = arith.constant 0 : index
    %63 = vector.load %arg4[%c0_83, %c1_84, %c0_85, %c0_86] : memref<2x2x288x32xf32, #tpu.memory_space<vmem>>, vector<1x1x288x32xf32>
    %64 = vector.shape_cast %63 : vector<1x1x288x32xf32> to vector<288x32xf32>
    %c0_87 = arith.constant 0 : index
    %c1_88 = arith.constant 1 : index
    %c0_89 = arith.constant 0 : index
    %c0_90 = arith.constant 0 : index
    %65 = vector.load %arg5[%c0_87, %c1_88, %c0_89, %c0_90] : memref<2x2x1x32xf32, #tpu.memory_space<vmem>>, vector<1x1x1x32xf32>
    %66 = vector.shape_cast %65 : vector<1x1x1x32xf32> to vector<1x32xf32>
    %c0_91 = arith.constant 0 : index
    %c0_92 = arith.constant 0 : index
    %c0_93 = arith.constant 0 : index
    %67 = vector.load %arg12[%c0_91, %c0_92, %c0_93] : memref<10x10x32xf32, #tpu.memory_space<vmem>>, vector<8x8x32xf32>
    %68 = vector.shape_cast %67 : vector<8x8x32xf32> to vector<64x32xf32>
    %c0_94 = arith.constant 0 : index
    %c1_95 = arith.constant 1 : index
    %c0_96 = arith.constant 0 : index
    %69 = vector.load %arg12[%c0_94, %c1_95, %c0_96] : memref<10x10x32xf32, #tpu.memory_space<vmem>>, vector<8x8x32xf32>
    %70 = vector.shape_cast %69 : vector<8x8x32xf32> to vector<64x32xf32>
    %c0_97 = arith.constant 0 : index
    %c2_98 = arith.constant 2 : index
    %c0_99 = arith.constant 0 : index
    %71 = vector.load %arg12[%c0_97, %c2_98, %c0_99] : memref<10x10x32xf32, #tpu.memory_space<vmem>>, vector<8x8x32xf32>
    %72 = vector.shape_cast %71 : vector<8x8x32xf32> to vector<64x32xf32>
    %c1_100 = arith.constant 1 : index
    %c0_101 = arith.constant 0 : index
    %c0_102 = arith.constant 0 : index
    %73 = vector.load %arg12[%c1_100, %c0_101, %c0_102] : memref<10x10x32xf32, #tpu.memory_space<vmem>>, vector<8x8x32xf32>
    %74 = vector.shape_cast %73 : vector<8x8x32xf32> to vector<64x32xf32>
    %c1_103 = arith.constant 1 : index
    %c1_104 = arith.constant 1 : index
    %c0_105 = arith.constant 0 : index
    %75 = vector.load %arg12[%c1_103, %c1_104, %c0_105] : memref<10x10x32xf32, #tpu.memory_space<vmem>>, vector<8x8x32xf32>
    %76 = vector.shape_cast %75 : vector<8x8x32xf32> to vector<64x32xf32>
    %c1_106 = arith.constant 1 : index
    %c2_107 = arith.constant 2 : index
    %c0_108 = arith.constant 0 : index
    %77 = vector.load %arg12[%c1_106, %c2_107, %c0_108] : memref<10x10x32xf32, #tpu.memory_space<vmem>>, vector<8x8x32xf32>
    %78 = vector.shape_cast %77 : vector<8x8x32xf32> to vector<64x32xf32>
    %c2_109 = arith.constant 2 : index
    %c0_110 = arith.constant 0 : index
    %c0_111 = arith.constant 0 : index
    %79 = vector.load %arg12[%c2_109, %c0_110, %c0_111] : memref<10x10x32xf32, #tpu.memory_space<vmem>>, vector<8x8x32xf32>
    %80 = vector.shape_cast %79 : vector<8x8x32xf32> to vector<64x32xf32>
    %c2_112 = arith.constant 2 : index
    %c1_113 = arith.constant 1 : index
    %c0_114 = arith.constant 0 : index
    %81 = vector.load %arg12[%c2_112, %c1_113, %c0_114] : memref<10x10x32xf32, #tpu.memory_space<vmem>>, vector<8x8x32xf32>
    %82 = vector.shape_cast %81 : vector<8x8x32xf32> to vector<64x32xf32>
    %c2_115 = arith.constant 2 : index
    %c2_116 = arith.constant 2 : index
    %c0_117 = arith.constant 0 : index
    %83 = vector.load %arg12[%c2_115, %c2_116, %c0_117] : memref<10x10x32xf32, #tpu.memory_space<vmem>>, vector<8x8x32xf32>
    %84 = vector.shape_cast %83 : vector<8x8x32xf32> to vector<64x32xf32>
    %85 = tpu.concatenate %68, %70, %72, %74, %76, %78, %80, %82, %84 in 1 : vector<64x32xf32>, vector<64x32xf32>, vector<64x32xf32>, vector<64x32xf32>, vector<64x32xf32>, vector<64x32xf32>, vector<64x32xf32>, vector<64x32xf32>, vector<64x32xf32> -> vector<64x288xf32>
    %cst_118 = arith.constant dense<0.000000e+00> : vector<64x32xf32>
    %86 = tpu.matmul %85, %64, %cst_118 {dimension_numbers = #tpu.dot_dimension_numbers<[1], [0], [0], [1], [0, 0, 1, 1], [], []>} : vector<64x288xf32>, vector<288x32xf32>, vector<64x32xf32> -> vector<64x32xf32>
    %87 = vector.broadcast %66 : vector<1x32xf32> to vector<64x32xf32>
    %88 = arith.addf %86, %87 : vector<64x32xf32>
    %89 = arith.addf %88, %30 : vector<64x32xf32>
    %cst_119 = arith.constant 0.000000e+00 : f32
    %90 = vector.broadcast %cst_119 : f32 to vector<64x32xf32>
    %91 = arith.maximumf %89, %90 : vector<64x32xf32>
    %92 = vector.shape_cast %91 : vector<64x32xf32> to vector<8x8x32xf32>
    %c1_120 = arith.constant 1 : index
    %c1_121 = arith.constant 1 : index
    %c0_122 = arith.constant 0 : index
    %93 = vector.load %arg12[%c1_120, %c1_121, %c0_122] : memref<10x10x32xf32, #tpu.memory_space<vmem>>, vector<8x8x32xf32>
    tpu.vector_store %arg12[%c1_120, %c1_121, %c0_122], %92 {strides = array<i32>} : memref<10x10x32xf32, #tpu.memory_space<vmem>>, vector<8x8x32xf32>,
    %c1_123 = arith.constant 1 : index
    %c0_124 = arith.constant 0 : index
    %c0_125 = arith.constant 0 : index
    %c0_126 = arith.constant 0 : index
    %94 = vector.load %arg4[%c1_123, %c0_124, %c0_125, %c0_126] : memref<2x2x288x32xf32, #tpu.memory_space<vmem>>, vector<1x1x288x32xf32>
    %95 = vector.shape_cast %94 : vector<1x1x288x32xf32> to vector<288x32xf32>
    %c1_127 = arith.constant 1 : index
    %c0_128 = arith.constant 0 : index
    %c0_129 = arith.constant 0 : index
    %c0_130 = arith.constant 0 : index
    %96 = vector.load %arg5[%c1_127, %c0_128, %c0_129, %c0_130] : memref<2x2x1x32xf32, #tpu.memory_space<vmem>>, vector<1x1x1x32xf32>
    %97 = vector.shape_cast %96 : vector<1x1x1x32xf32> to vector<1x32xf32>
    %c0_131 = arith.constant 0 : index
    %c0_132 = arith.constant 0 : index
    %c0_133 = arith.constant 0 : index
    %98 = vector.load %arg12[%c0_131, %c0_132, %c0_133] : memref<10x10x32xf32, #tpu.memory_space<vmem>>, vector<8x8x32xf32>
    %99 = vector.shape_cast %98 : vector<8x8x32xf32> to vector<64x32xf32>
    %c0_134 = arith.constant 0 : index
    %c1_135 = arith.constant 1 : index
    %c0_136 = arith.constant 0 : index
    %100 = vector.load %arg12[%c0_134, %c1_135, %c0_136] : memref<10x10x32xf32, #tpu.memory_space<vmem>>, vector<8x8x32xf32>
    %101 = vector.shape_cast %100 : vector<8x8x32xf32> to vector<64x32xf32>
    %c0_137 = arith.constant 0 : index
    %c2_138 = arith.constant 2 : index
    %c0_139 = arith.constant 0 : index
    %102 = vector.load %arg12[%c0_137, %c2_138, %c0_139] : memref<10x10x32xf32, #tpu.memory_space<vmem>>, vector<8x8x32xf32>
    %103 = vector.shape_cast %102 : vector<8x8x32xf32> to vector<64x32xf32>
    %c1_140 = arith.constant 1 : index
    %c0_141 = arith.constant 0 : index
    %c0_142 = arith.constant 0 : index
    %104 = vector.load %arg12[%c1_140, %c0_141, %c0_142] : memref<10x10x32xf32, #tpu.memory_space<vmem>>, vector<8x8x32xf32>
    %105 = vector.shape_cast %104 : vector<8x8x32xf32> to vector<64x32xf32>
    %c1_143 = arith.constant 1 : index
    %c1_144 = arith.constant 1 : index
    %c0_145 = arith.constant 0 : index
    %106 = vector.load %arg12[%c1_143, %c1_144, %c0_145] : memref<10x10x32xf32, #tpu.memory_space<vmem>>, vector<8x8x32xf32>
    %107 = vector.shape_cast %106 : vector<8x8x32xf32> to vector<64x32xf32>
    %c1_146 = arith.constant 1 : index
    %c2_147 = arith.constant 2 : index
    %c0_148 = arith.constant 0 : index
    %108 = vector.load %arg12[%c1_146, %c2_147, %c0_148] : memref<10x10x32xf32, #tpu.memory_space<vmem>>, vector<8x8x32xf32>
    %109 = vector.shape_cast %108 : vector<8x8x32xf32> to vector<64x32xf32>
    %c2_149 = arith.constant 2 : index
    %c0_150 = arith.constant 0 : index
    %c0_151 = arith.constant 0 : index
    %110 = vector.load %arg12[%c2_149, %c0_150, %c0_151] : memref<10x10x32xf32, #tpu.memory_space<vmem>>, vector<8x8x32xf32>
    %111 = vector.shape_cast %110 : vector<8x8x32xf32> to vector<64x32xf32>
    %c2_152 = arith.constant 2 : index
    %c1_153 = arith.constant 1 : index
    %c0_154 = arith.constant 0 : index
    %112 = vector.load %arg12[%c2_152, %c1_153, %c0_154] : memref<10x10x32xf32, #tpu.memory_space<vmem>>, vector<8x8x32xf32>
    %113 = vector.shape_cast %112 : vector<8x8x32xf32> to vector<64x32xf32>
    %c2_155 = arith.constant 2 : index
    %c2_156 = arith.constant 2 : index
    %c0_157 = arith.constant 0 : index
    %114 = vector.load %arg12[%c2_155, %c2_156, %c0_157] : memref<10x10x32xf32, #tpu.memory_space<vmem>>, vector<8x8x32xf32>
    %115 = vector.shape_cast %114 : vector<8x8x32xf32> to vector<64x32xf32>
    %116 = tpu.concatenate %99, %101, %103, %105, %107, %109, %111, %113, %115 in 1 : vector<64x32xf32>, vector<64x32xf32>, vector<64x32xf32>, vector<64x32xf32>, vector<64x32xf32>, vector<64x32xf32>, vector<64x32xf32>, vector<64x32xf32>, vector<64x32xf32> -> vector<64x288xf32>
    %cst_158 = arith.constant dense<0.000000e+00> : vector<64x32xf32>
    %117 = tpu.matmul %116, %95, %cst_158 {dimension_numbers = #tpu.dot_dimension_numbers<[1], [0], [0], [1], [0, 0, 1, 1], [], []>} : vector<64x288xf32>, vector<288x32xf32>, vector<64x32xf32> -> vector<64x32xf32>
    %118 = vector.broadcast %97 : vector<1x32xf32> to vector<64x32xf32>
    %119 = arith.addf %117, %118 : vector<64x32xf32>
    %cst_159 = arith.constant 0.000000e+00 : f32
    %120 = vector.broadcast %cst_159 : f32 to vector<64x32xf32>
    %121 = arith.maximumf %119, %120 : vector<64x32xf32>
    %122 = vector.shape_cast %121 : vector<64x32xf32> to vector<8x8x32xf32>
    %c1_160 = arith.constant 1 : index
    %c1_161 = arith.constant 1 : index
    %c0_162 = arith.constant 0 : index
    %123 = vector.load %arg12[%c1_160, %c1_161, %c0_162] : memref<10x10x32xf32, #tpu.memory_space<vmem>>, vector<8x8x32xf32>
    tpu.vector_store %arg12[%c1_160, %c1_161, %c0_162], %122 {strides = array<i32>} : memref<10x10x32xf32, #tpu.memory_space<vmem>>, vector<8x8x32xf32>,
    %c1_163 = arith.constant 1 : index
    %c1_164 = arith.constant 1 : index
    %c0_165 = arith.constant 0 : index
    %c0_166 = arith.constant 0 : index
    %124 = vector.load %arg4[%c1_163, %c1_164, %c0_165, %c0_166] : memref<2x2x288x32xf32, #tpu.memory_space<vmem>>, vector<1x1x288x32xf32>
    %125 = vector.shape_cast %124 : vector<1x1x288x32xf32> to vector<288x32xf32>
    %c1_167 = arith.constant 1 : index
    %c1_168 = arith.constant 1 : index
    %c0_169 = arith.constant 0 : index
    %c0_170 = arith.constant 0 : index
    %126 = vector.load %arg5[%c1_167, %c1_168, %c0_169, %c0_170] : memref<2x2x1x32xf32, #tpu.memory_space<vmem>>, vector<1x1x1x32xf32>
    %127 = vector.shape_cast %126 : vector<1x1x1x32xf32> to vector<1x32xf32>
    %c0_171 = arith.constant 0 : index
    %c0_172 = arith.constant 0 : index
    %c0_173 = arith.constant 0 : index
    %128 = vector.load %arg12[%c0_171, %c0_172, %c0_173] : memref<10x10x32xf32, #tpu.memory_space<vmem>>, vector<8x8x32xf32>
    %129 = vector.shape_cast %128 : vector<8x8x32xf32> to vector<64x32xf32>
    %c0_174 = arith.constant 0 : index
    %c1_175 = arith.constant 1 : index
    %c0_176 = arith.constant 0 : index
    %130 = vector.load %arg12[%c0_174, %c1_175, %c0_176] : memref<10x10x32xf32, #tpu.memory_space<vmem>>, vector<8x8x32xf32>
    %131 = vector.shape_cast %130 : vector<8x8x32xf32> to vector<64x32xf32>
    %c0_177 = arith.constant 0 : index
    %c2_178 = arith.constant 2 : index
    %c0_179 = arith.constant 0 : index
    %132 = vector.load %arg12[%c0_177, %c2_178, %c0_179] : memref<10x10x32xf32, #tpu.memory_space<vmem>>, vector<8x8x32xf32>
    %133 = vector.shape_cast %132 : vector<8x8x32xf32> to vector<64x32xf32>
    %c1_180 = arith.constant 1 : index
    %c0_181 = arith.constant 0 : index
    %c0_182 = arith.constant 0 : index
    %134 = vector.load %arg12[%c1_180, %c0_181, %c0_182] : memref<10x10x32xf32, #tpu.memory_space<vmem>>, vector<8x8x32xf32>
    %135 = vector.shape_cast %134 : vector<8x8x32xf32> to vector<64x32xf32>
    %c1_183 = arith.constant 1 : index
    %c1_184 = arith.constant 1 : index
    %c0_185 = arith.constant 0 : index
    %136 = vector.load %arg12[%c1_183, %c1_184, %c0_185] : memref<10x10x32xf32, #tpu.memory_space<vmem>>, vector<8x8x32xf32>
    %137 = vector.shape_cast %136 : vector<8x8x32xf32> to vector<64x32xf32>
    %c1_186 = arith.constant 1 : index
    %c2_187 = arith.constant 2 : index
    %c0_188 = arith.constant 0 : index
    %138 = vector.load %arg12[%c1_186, %c2_187, %c0_188] : memref<10x10x32xf32, #tpu.memory_space<vmem>>, vector<8x8x32xf32>
    %139 = vector.shape_cast %138 : vector<8x8x32xf32> to vector<64x32xf32>
    %c2_189 = arith.constant 2 : index
    %c0_190 = arith.constant 0 : index
    %c0_191 = arith.constant 0 : index
    %140 = vector.load %arg12[%c2_189, %c0_190, %c0_191] : memref<10x10x32xf32, #tpu.memory_space<vmem>>, vector<8x8x32xf32>
    %141 = vector.shape_cast %140 : vector<8x8x32xf32> to vector<64x32xf32>
    %c2_192 = arith.constant 2 : index
    %c1_193 = arith.constant 1 : index
    %c0_194 = arith.constant 0 : index
    %142 = vector.load %arg12[%c2_192, %c1_193, %c0_194] : memref<10x10x32xf32, #tpu.memory_space<vmem>>, vector<8x8x32xf32>
    %143 = vector.shape_cast %142 : vector<8x8x32xf32> to vector<64x32xf32>
    %c2_195 = arith.constant 2 : index
    %c2_196 = arith.constant 2 : index
    %c0_197 = arith.constant 0 : index
    %144 = vector.load %arg12[%c2_195, %c2_196, %c0_197] : memref<10x10x32xf32, #tpu.memory_space<vmem>>, vector<8x8x32xf32>
    %145 = vector.shape_cast %144 : vector<8x8x32xf32> to vector<64x32xf32>
    %146 = tpu.concatenate %129, %131, %133, %135, %137, %139, %141, %143, %145 in 1 : vector<64x32xf32>, vector<64x32xf32>, vector<64x32xf32>, vector<64x32xf32>, vector<64x32xf32>, vector<64x32xf32>, vector<64x32xf32>, vector<64x32xf32>, vector<64x32xf32> -> vector<64x288xf32>
    %cst_198 = arith.constant dense<0.000000e+00> : vector<64x32xf32>
    %147 = tpu.matmul %146, %125, %cst_198 {dimension_numbers = #tpu.dot_dimension_numbers<[1], [0], [0], [1], [0, 0, 1, 1], [], []>} : vector<64x288xf32>, vector<288x32xf32>, vector<64x32xf32> -> vector<64x32xf32>
    %148 = vector.broadcast %127 : vector<1x32xf32> to vector<64x32xf32>
    %149 = arith.addf %147, %148 : vector<64x32xf32>
    %150 = arith.addf %149, %91 : vector<64x32xf32>
    %cst_199 = arith.constant 0.000000e+00 : f32
    %151 = vector.broadcast %cst_199 : f32 to vector<64x32xf32>
    %152 = arith.maximumf %150, %151 : vector<64x32xf32>
    %cst_200 = arith.constant dense<0.000000e+00> : vector<32xf32>
    %153 = vector.multi_reduction <add>, %152, %cst_200 [0] : vector<64x32xf32> to vector<32xf32>
    %154 = vector.shape_cast %153 : vector<32xf32> to vector<1x32xf32>
    %cst_201 = arith.constant 6.400000e+01 : f32
    %155 = vector.broadcast %cst_201 : f32 to vector<1x32xf32>
    %156 = arith.divf %154, %155 : vector<1x32xf32>
    %c0_202 = arith.constant 0 : index
    %c0_203 = arith.constant 0 : index
    %157 = vector.load %arg6[%c0_202, %c0_203] : memref<32x8xf32, #tpu.memory_space<vmem>>, vector<32x8xf32>
    %cst_204 = arith.constant dense<0.000000e+00> : vector<1x8xf32>
    %158 = tpu.matmul %156, %157, %cst_204 {dimension_numbers = #tpu.dot_dimension_numbers<[1], [0], [0], [1], [0, 0, 1, 1], [], []>} : vector<1x32xf32>, vector<32x8xf32>, vector<1x8xf32> -> vector<1x8xf32>
    %c0_205 = arith.constant 0 : index
    %c0_206 = arith.constant 0 : index
    %159 = vector.load %arg7[%c0_205, %c0_206] : memref<1x8xf32, #tpu.memory_space<vmem>>, vector<1x8xf32>
    %160 = arith.addf %158, %159 : vector<1x8xf32>
    %cst_207 = arith.constant dense<0xFF800000> : vector<1xf32>
    %161 = vector.multi_reduction <maximumf>, %160, %cst_207 [1] : vector<1x8xf32> to vector<1xf32>
    %162 = vector.shape_cast %161 : vector<1xf32> to vector<1x1xf32>
    %163 = vector.broadcast %162 : vector<1x1xf32> to vector<1x8xf32>
    %164 = arith.subf %160, %163 : vector<1x8xf32>
    %165 = math.exp %164 : vector<1x8xf32>
    %cst_208 = arith.constant dense<0.000000e+00> : vector<1xf32>
    %166 = vector.multi_reduction <add>, %165, %cst_208 [1] : vector<1x8xf32> to vector<1xf32>
    %167 = vector.shape_cast %166 : vector<1xf32> to vector<1x1xf32>
    %168 = vector.broadcast %167 : vector<1x1xf32> to vector<1x8xf32>
    %169 = arith.divf %165, %168 : vector<1x8xf32>
    %c0_209 = arith.constant 0 : index
    %c0_210 = arith.constant 0 : index
    %170 = vector.load %arg8[%c0_209, %c0_210] : memref<32x1xf32, #tpu.memory_space<vmem>>, vector<32x1xf32>
    %cst_211 = arith.constant dense<0.000000e+00> : vector<1x1xf32>
    %171 = tpu.matmul %156, %170, %cst_211 {dimension_numbers = #tpu.dot_dimension_numbers<[1], [0], [0], [1], [0, 0, 1, 1], [], []>} : vector<1x32xf32>, vector<32x1xf32>, vector<1x1xf32> -> vector<1x1xf32>
    %c0_212 = arith.constant 0 : index
    %c0_213 = arith.constant 0 : index
    %172 = vector.load %arg9[%c0_212, %c0_213] : memref<1x1xf32, #tpu.memory_space<vmem>>, vector<1x1xf32>
    %173 = arith.addf %171, %172 : vector<1x1xf32>
    %174 = math.tanh %173 : vector<1x1xf32>
    %175 = vector.shape_cast %169 : vector<1x8xf32> to vector<1x1x8xf32>
    %c0_214 = arith.constant 0 : index
    %c0_215 = arith.constant 0 : index
    %c0_216 = arith.constant 0 : index
    %176 = vector.load %arg10[%c0_214, %c0_215, %c0_216] : memref<1x1x8xf32, #tpu.memory_space<vmem>>, vector<1x1x8xf32>
    tpu.vector_store %arg10[%c0_214, %c0_215, %c0_216], %175 {strides = array<i32>} : memref<1x1x8xf32, #tpu.memory_space<vmem>>, vector<1x1x8xf32>,
    %177 = vector.shape_cast %174 : vector<1x1xf32> to vector<1x1x1xf32>
    %c0_217 = arith.constant 0 : index
    %c0_218 = arith.constant 0 : index
    %c0_219 = arith.constant 0 : index
    %178 = vector.load %arg11[%c0_217, %c0_218, %c0_219] : memref<1x1x1xf32, #tpu.memory_space<vmem>>, vector<1x1x1xf32>
    tpu.vector_store %arg11[%c0_217, %c0_218, %c0_219], %177 {strides = array<i32>} : memref<1x1x1xf32, #tpu.memory_space<vmem>>, vector<1x1x1xf32>,
    return
  }
  func.func @transform_0(%arg0: i32) -> (i32, i32, i32, i32) {
    %c0_i32 = arith.constant 0 : i32
    %c0_i32_0 = arith.constant 0 : i32
    %c0_i32_1 = arith.constant 0 : i32
    %c0_i32_2 = arith.constant 0 : i32
    return %arg0, %c0_i32, %c0_i32_0, %c0_i32_1 : i32, i32, i32, i32
  }
  func.func @transform_1(%arg0: i32) -> (i32, i32) {
    %c0_i32 = arith.constant 0 : i32
    %c0_i32_0 = arith.constant 0 : i32
    %c0_i32_1 = arith.constant 0 : i32
    return %c0_i32, %c0_i32_0 : i32, i32
  }
  func.func @transform_2(%arg0: i32) -> (i32, i32) {
    %c0_i32 = arith.constant 0 : i32
    %c0_i32_0 = arith.constant 0 : i32
    %c0_i32_1 = arith.constant 0 : i32
    return %c0_i32, %c0_i32_0 : i32, i32
  }
  func.func @transform_3(%arg0: i32) -> (i32, i32, i32, i32) {
    %c0_i32 = arith.constant 0 : i32
    %c0_i32_0 = arith.constant 0 : i32
    %c0_i32_1 = arith.constant 0 : i32
    %c0_i32_2 = arith.constant 0 : i32
    %c0_i32_3 = arith.constant 0 : i32
    return %c0_i32, %c0_i32_0, %c0_i32_1, %c0_i32_2 : i32, i32, i32, i32
  }
  func.func @transform_4(%arg0: i32) -> (i32, i32, i32, i32) {
    %c0_i32 = arith.constant 0 : i32
    %c0_i32_0 = arith.constant 0 : i32
    %c0_i32_1 = arith.constant 0 : i32
    %c0_i32_2 = arith.constant 0 : i32
    %c0_i32_3 = arith.constant 0 : i32
    return %c0_i32, %c0_i32_0, %c0_i32_1, %c0_i32_2 : i32, i32, i32, i32
  }
  func.func @transform_5(%arg0: i32) -> (i32, i32) {
    %c0_i32 = arith.constant 0 : i32
    %c0_i32_0 = arith.constant 0 : i32
    %c0_i32_1 = arith.constant 0 : i32
    return %c0_i32, %c0_i32_0 : i32, i32
  }
  func.func @transform_6(%arg0: i32) -> (i32, i32) {
    %c0_i32 = arith.constant 0 : i32
    %c0_i32_0 = arith.constant 0 : i32
    %c0_i32_1 = arith.constant 0 : i32
    return %c0_i32, %c0_i32_0 : i32, i32
  }
  func.func @transform_7(%arg0: i32) -> (i32, i32) {
    %c0_i32 = arith.constant 0 : i32
    %c0_i32_0 = arith.constant 0 : i32
    %c0_i32_1 = arith.constant 0 : i32
    return %c0_i32, %c0_i32_0 : i32, i32
  }
  func.func @transform_8(%arg0: i32) -> (i32, i32) {
    %c0_i32 = arith.constant 0 : i32
    %c0_i32_0 = arith.constant 0 : i32
    %c0_i32_1 = arith.constant 0 : i32
    return %c0_i32, %c0_i32_0 : i32, i32
  }
  func.func @transform_9(%arg0: i32) -> (i32, i32, i32) {
    %c0_i32 = arith.constant 0 : i32
    %c0_i32_0 = arith.constant 0 : i32
    %c0_i32_1 = arith.constant 0 : i32
    return %arg0, %c0_i32, %c0_i32_0 : i32, i32, i32
  }
  func.func @transform_10(%arg0: i32) -> (i32, i32, i32) {
    %c0_i32 = arith.constant 0 : i32
    %c0_i32_0 = arith.constant 0 : i32
    %c0_i32_1 = arith.constant 0 : i32
    return %arg0, %c0_i32, %c0_i32_0 : i32, i32, i32
  }
}

module attributes {stable_mosaic.version = 11 : i64} {
  func.func @kernel(%arg0: i32, %arg1: memref<1x8x8x32xf32, #tpu.memory_space<vmem>>, %arg2: memref<288x32xf32, #tpu.memory_space<vmem>>, %arg3: memref<1x32xf32, #tpu.memory_space<vmem>>, %arg4: memref<2x2x288x32xf32, #tpu.memory_space<vmem>>, %arg5: memref<2x2x1x32xf32, #tpu.memory_space<vmem>>, %arg6: memref<32x8xf32, #tpu.memory_space<vmem>>, %arg7: memref<1x8xf32, #tpu.memory_space<vmem>>, %arg8: memref<32x1xf32, #tpu.memory_space<vmem>>, %arg9: memref<1x1xf32, #tpu.memory_space<vmem>>, %arg10: memref<1x1x8xf32, #tpu.memory_space<vmem>>, %arg11: memref<1x1x1xf32, #tpu.memory_space<vmem>>, %arg12: memref<10x10x32xf32, #tpu.memory_space<vmem>>) attributes {dimension_semantics = [#tpu.dimension_semantics<parallel>], iteration_bounds = array<i64: 2>, scalar_prefetch = 0 : i64, scratch_operands = 1 : i64, tpu.core_type = #tpu.core_type<tc>, window_params = [{transform_indices = @transform_0, window_bounds = array<i64: 1, 8, 8, 32>}, {pipeline_mode = #tpu.pipeline_mode<synchronous>, transform_indices = @transform_1, window_bounds = array<i64: 288, 32>}, {pipeline_mode = #tpu.pipeline_mode<synchronous>, transform_indices = @transform_2, window_bounds = array<i64: 1, 32>}, {pipeline_mode = #tpu.pipeline_mode<synchronous>, transform_indices = @transform_3, window_bounds = array<i64: 2, 2, 288, 32>}, {pipeline_mode = #tpu.pipeline_mode<synchronous>, transform_indices = @transform_4, window_bounds = array<i64: 2, 2, 1, 32>}, {pipeline_mode = #tpu.pipeline_mode<synchronous>, transform_indices = @transform_5, window_bounds = array<i64: 32, 8>}, {pipeline_mode = #tpu.pipeline_mode<synchronous>, transform_indices = @transform_6, window_bounds = array<i64: 1, 8>}, {pipeline_mode = #tpu.pipeline_mode<synchronous>, transform_indices = @transform_7, window_bounds = array<i64: 32, 1>}, {pipeline_mode = #tpu.pipeline_mode<synchronous>, transform_indices = @transform_8, window_bounds = array<i64: 1, 1>}, {transform_indices = @transform_9, window_bounds = array<i64: 1, 1, 8>}, {transform_indices = @transform_10, window_bounds = array<i64: 1, 1, 1>}]} {
    %cst = arith.constant 0.000000e+00 : f32
    %0 = vector.broadcast %cst : f32 to vector<10x10x32xf32>
    %c0 = arith.constant 0 : index
    %c0_0 = arith.constant 0 : index
    %c0_1 = arith.constant 0 : index
    %1 = vector.load %arg12[%c0, %c0_0, %c0_1] : memref<10x10x32xf32, #tpu.memory_space<vmem>>, vector<10x10x32xf32>
    tpu.vector_store %arg12[%c0, %c0_0, %c0_1], %0 {strides = array<i32>} : memref<10x10x32xf32, #tpu.memory_space<vmem>>, vector<10x10x32xf32>,
    %c0_2 = arith.constant 0 : index
    %c0_3 = arith.constant 0 : index
    %c0_4 = arith.constant 0 : index
    %c0_5 = arith.constant 0 : index
    %2 = vector.load %arg1[%c0_2, %c0_3, %c0_4, %c0_5] : memref<1x8x8x32xf32, #tpu.memory_space<vmem>>, vector<1x8x8x32xf32>
    %3 = vector.shape_cast %2 : vector<1x8x8x32xf32> to vector<8x8x32xf32>
    %c1 = arith.constant 1 : index
    %c1_6 = arith.constant 1 : index
    %c0_7 = arith.constant 0 : index
    %4 = vector.load %arg12[%c1, %c1_6, %c0_7] : memref<10x10x32xf32, #tpu.memory_space<vmem>>, vector<8x8x32xf32>
    tpu.vector_store %arg12[%c1, %c1_6, %c0_7], %3 {strides = array<i32>} : memref<10x10x32xf32, #tpu.memory_space<vmem>>, vector<8x8x32xf32>,
    %c0_8 = arith.constant 0 : index
    %c0_9 = arith.constant 0 : index
    %5 = vector.load %arg2[%c0_8, %c0_9] : memref<288x32xf32, #tpu.memory_space<vmem>>, vector<288x32xf32>
    %c0_10 = arith.constant 0 : index
    %c0_11 = arith.constant 0 : index
    %6 = vector.load %arg3[%c0_10, %c0_11] : memref<1x32xf32, #tpu.memory_space<vmem>>, vector<1x32xf32>
    %cst_12 = arith.constant 0.000000e+00 : f32
    %7 = vector.broadcast %cst_12 : f32 to vector<64x32xf32>
    %c0_13 = arith.constant 0 : index
    %c0_14 = arith.constant 0 : index
    %c0_15 = arith.constant 0 : index
    %8 = vector.load %arg12[%c0_13, %c0_14, %c0_15] : memref<10x10x32xf32, #tpu.memory_space<vmem>>, vector<8x8x32xf32>
    %9 = vector.shape_cast %8 : vector<8x8x32xf32> to vector<64x32xf32>
    %10 = vector.extract_strided_slice %5 {offsets = [0, 0], sizes = [32, 32], strides = [1, 1]} : vector<288x32xf32> to vector<32x32xf32>
    %cst_16 = arith.constant dense<0.000000e+00> : vector<64x32xf32>
    %11 = tpu.matmul %9, %10, %cst_16 {dimension_numbers = #tpu.dot_dimension_numbers<[1], [0], [0], [1], [0, 0, 1, 1], [], []>} : vector<64x32xf32>, vector<32x32xf32>, vector<64x32xf32> -> vector<64x32xf32>
    %12 = arith.addf %7, %11 : vector<64x32xf32>
    %c0_17 = arith.constant 0 : index
    %c1_18 = arith.constant 1 : index
    %c0_19 = arith.constant 0 : index
    %13 = vector.load %arg12[%c0_17, %c1_18, %c0_19] : memref<10x10x32xf32, #tpu.memory_space<vmem>>, vector<8x8x32xf32>
    %14 = vector.shape_cast %13 : vector<8x8x32xf32> to vector<64x32xf32>
    %15 = vector.extract_strided_slice %5 {offsets = [32, 0], sizes = [32, 32], strides = [1, 1]} : vector<288x32xf32> to vector<32x32xf32>
    %cst_20 = arith.constant dense<0.000000e+00> : vector<64x32xf32>
    %16 = tpu.matmul %14, %15, %cst_20 {dimension_numbers = #tpu.dot_dimension_numbers<[1], [0], [0], [1], [0, 0, 1, 1], [], []>} : vector<64x32xf32>, vector<32x32xf32>, vector<64x32xf32> -> vector<64x32xf32>
    %17 = arith.addf %12, %16 : vector<64x32xf32>
    %c0_21 = arith.constant 0 : index
    %c2 = arith.constant 2 : index
    %c0_22 = arith.constant 0 : index
    %18 = vector.load %arg12[%c0_21, %c2, %c0_22] : memref<10x10x32xf32, #tpu.memory_space<vmem>>, vector<8x8x32xf32>
    %19 = vector.shape_cast %18 : vector<8x8x32xf32> to vector<64x32xf32>
    %20 = vector.extract_strided_slice %5 {offsets = [64, 0], sizes = [32, 32], strides = [1, 1]} : vector<288x32xf32> to vector<32x32xf32>
    %cst_23 = arith.constant dense<0.000000e+00> : vector<64x32xf32>
    %21 = tpu.matmul %19, %20, %cst_23 {dimension_numbers = #tpu.dot_dimension_numbers<[1], [0], [0], [1], [0, 0, 1, 1], [], []>} : vector<64x32xf32>, vector<32x32xf32>, vector<64x32xf32> -> vector<64x32xf32>
    %22 = arith.addf %17, %21 : vector<64x32xf32>
    %c1_24 = arith.constant 1 : index
    %c0_25 = arith.constant 0 : index
    %c0_26 = arith.constant 0 : index
    %23 = vector.load %arg12[%c1_24, %c0_25, %c0_26] : memref<10x10x32xf32, #tpu.memory_space<vmem>>, vector<8x8x32xf32>
    %24 = vector.shape_cast %23 : vector<8x8x32xf32> to vector<64x32xf32>
    %25 = vector.extract_strided_slice %5 {offsets = [96, 0], sizes = [32, 32], strides = [1, 1]} : vector<288x32xf32> to vector<32x32xf32>
    %cst_27 = arith.constant dense<0.000000e+00> : vector<64x32xf32>
    %26 = tpu.matmul %24, %25, %cst_27 {dimension_numbers = #tpu.dot_dimension_numbers<[1], [0], [0], [1], [0, 0, 1, 1], [], []>} : vector<64x32xf32>, vector<32x32xf32>, vector<64x32xf32> -> vector<64x32xf32>
    %27 = arith.addf %22, %26 : vector<64x32xf32>
    %c1_28 = arith.constant 1 : index
    %c1_29 = arith.constant 1 : index
    %c0_30 = arith.constant 0 : index
    %28 = vector.load %arg12[%c1_28, %c1_29, %c0_30] : memref<10x10x32xf32, #tpu.memory_space<vmem>>, vector<8x8x32xf32>
    %29 = vector.shape_cast %28 : vector<8x8x32xf32> to vector<64x32xf32>
    %30 = vector.extract_strided_slice %5 {offsets = [128, 0], sizes = [32, 32], strides = [1, 1]} : vector<288x32xf32> to vector<32x32xf32>
    %cst_31 = arith.constant dense<0.000000e+00> : vector<64x32xf32>
    %31 = tpu.matmul %29, %30, %cst_31 {dimension_numbers = #tpu.dot_dimension_numbers<[1], [0], [0], [1], [0, 0, 1, 1], [], []>} : vector<64x32xf32>, vector<32x32xf32>, vector<64x32xf32> -> vector<64x32xf32>
    %32 = arith.addf %27, %31 : vector<64x32xf32>
    %c1_32 = arith.constant 1 : index
    %c2_33 = arith.constant 2 : index
    %c0_34 = arith.constant 0 : index
    %33 = vector.load %arg12[%c1_32, %c2_33, %c0_34] : memref<10x10x32xf32, #tpu.memory_space<vmem>>, vector<8x8x32xf32>
    %34 = vector.shape_cast %33 : vector<8x8x32xf32> to vector<64x32xf32>
    %35 = vector.extract_strided_slice %5 {offsets = [160, 0], sizes = [32, 32], strides = [1, 1]} : vector<288x32xf32> to vector<32x32xf32>
    %cst_35 = arith.constant dense<0.000000e+00> : vector<64x32xf32>
    %36 = tpu.matmul %34, %35, %cst_35 {dimension_numbers = #tpu.dot_dimension_numbers<[1], [0], [0], [1], [0, 0, 1, 1], [], []>} : vector<64x32xf32>, vector<32x32xf32>, vector<64x32xf32> -> vector<64x32xf32>
    %37 = arith.addf %32, %36 : vector<64x32xf32>
    %c2_36 = arith.constant 2 : index
    %c0_37 = arith.constant 0 : index
    %c0_38 = arith.constant 0 : index
    %38 = vector.load %arg12[%c2_36, %c0_37, %c0_38] : memref<10x10x32xf32, #tpu.memory_space<vmem>>, vector<8x8x32xf32>
    %39 = vector.shape_cast %38 : vector<8x8x32xf32> to vector<64x32xf32>
    %40 = vector.extract_strided_slice %5 {offsets = [192, 0], sizes = [32, 32], strides = [1, 1]} : vector<288x32xf32> to vector<32x32xf32>
    %cst_39 = arith.constant dense<0.000000e+00> : vector<64x32xf32>
    %41 = tpu.matmul %39, %40, %cst_39 {dimension_numbers = #tpu.dot_dimension_numbers<[1], [0], [0], [1], [0, 0, 1, 1], [], []>} : vector<64x32xf32>, vector<32x32xf32>, vector<64x32xf32> -> vector<64x32xf32>
    %42 = arith.addf %37, %41 : vector<64x32xf32>
    %c2_40 = arith.constant 2 : index
    %c1_41 = arith.constant 1 : index
    %c0_42 = arith.constant 0 : index
    %43 = vector.load %arg12[%c2_40, %c1_41, %c0_42] : memref<10x10x32xf32, #tpu.memory_space<vmem>>, vector<8x8x32xf32>
    %44 = vector.shape_cast %43 : vector<8x8x32xf32> to vector<64x32xf32>
    %45 = vector.extract_strided_slice %5 {offsets = [224, 0], sizes = [32, 32], strides = [1, 1]} : vector<288x32xf32> to vector<32x32xf32>
    %cst_43 = arith.constant dense<0.000000e+00> : vector<64x32xf32>
    %46 = tpu.matmul %44, %45, %cst_43 {dimension_numbers = #tpu.dot_dimension_numbers<[1], [0], [0], [1], [0, 0, 1, 1], [], []>} : vector<64x32xf32>, vector<32x32xf32>, vector<64x32xf32> -> vector<64x32xf32>
    %47 = arith.addf %42, %46 : vector<64x32xf32>
    %c2_44 = arith.constant 2 : index
    %c2_45 = arith.constant 2 : index
    %c0_46 = arith.constant 0 : index
    %48 = vector.load %arg12[%c2_44, %c2_45, %c0_46] : memref<10x10x32xf32, #tpu.memory_space<vmem>>, vector<8x8x32xf32>
    %49 = vector.shape_cast %48 : vector<8x8x32xf32> to vector<64x32xf32>
    %50 = vector.extract_strided_slice %5 {offsets = [256, 0], sizes = [32, 32], strides = [1, 1]} : vector<288x32xf32> to vector<32x32xf32>
    %cst_47 = arith.constant dense<0.000000e+00> : vector<64x32xf32>
    %51 = tpu.matmul %49, %50, %cst_47 {dimension_numbers = #tpu.dot_dimension_numbers<[1], [0], [0], [1], [0, 0, 1, 1], [], []>} : vector<64x32xf32>, vector<32x32xf32>, vector<64x32xf32> -> vector<64x32xf32>
    %52 = arith.addf %47, %51 : vector<64x32xf32>
    %53 = vector.broadcast %6 : vector<1x32xf32> to vector<64x32xf32>
    %54 = arith.addf %52, %53 : vector<64x32xf32>
    %cst_48 = arith.constant 0.000000e+00 : f32
    %55 = vector.broadcast %cst_48 : f32 to vector<64x32xf32>
    %56 = arith.maximumf %54, %55 : vector<64x32xf32>
    %57 = vector.shape_cast %56 : vector<64x32xf32> to vector<8x8x32xf32>
    %c1_49 = arith.constant 1 : index
    %c1_50 = arith.constant 1 : index
    %c0_51 = arith.constant 0 : index
    %58 = vector.load %arg12[%c1_49, %c1_50, %c0_51] : memref<10x10x32xf32, #tpu.memory_space<vmem>>, vector<8x8x32xf32>
    tpu.vector_store %arg12[%c1_49, %c1_50, %c0_51], %57 {strides = array<i32>} : memref<10x10x32xf32, #tpu.memory_space<vmem>>, vector<8x8x32xf32>,
    %c0_52 = arith.constant 0 : index
    %c0_53 = arith.constant 0 : index
    %c0_54 = arith.constant 0 : index
    %c0_55 = arith.constant 0 : index
    %59 = vector.load %arg4[%c0_52, %c0_53, %c0_54, %c0_55] : memref<2x2x288x32xf32, #tpu.memory_space<vmem>>, vector<1x1x288x32xf32>
    %60 = vector.shape_cast %59 : vector<1x1x288x32xf32> to vector<288x32xf32>
    %c0_56 = arith.constant 0 : index
    %c0_57 = arith.constant 0 : index
    %c0_58 = arith.constant 0 : index
    %c0_59 = arith.constant 0 : index
    %61 = vector.load %arg5[%c0_56, %c0_57, %c0_58, %c0_59] : memref<2x2x1x32xf32, #tpu.memory_space<vmem>>, vector<1x1x1x32xf32>
    %62 = vector.shape_cast %61 : vector<1x1x1x32xf32> to vector<1x32xf32>
    %cst_60 = arith.constant 0.000000e+00 : f32
    %63 = vector.broadcast %cst_60 : f32 to vector<64x32xf32>
    %c0_61 = arith.constant 0 : index
    %c0_62 = arith.constant 0 : index
    %c0_63 = arith.constant 0 : index
    %64 = vector.load %arg12[%c0_61, %c0_62, %c0_63] : memref<10x10x32xf32, #tpu.memory_space<vmem>>, vector<8x8x32xf32>
    %65 = vector.shape_cast %64 : vector<8x8x32xf32> to vector<64x32xf32>
    %66 = vector.extract_strided_slice %60 {offsets = [0, 0], sizes = [32, 32], strides = [1, 1]} : vector<288x32xf32> to vector<32x32xf32>
    %cst_64 = arith.constant dense<0.000000e+00> : vector<64x32xf32>
    %67 = tpu.matmul %65, %66, %cst_64 {dimension_numbers = #tpu.dot_dimension_numbers<[1], [0], [0], [1], [0, 0, 1, 1], [], []>} : vector<64x32xf32>, vector<32x32xf32>, vector<64x32xf32> -> vector<64x32xf32>
    %68 = arith.addf %63, %67 : vector<64x32xf32>
    %c0_65 = arith.constant 0 : index
    %c1_66 = arith.constant 1 : index
    %c0_67 = arith.constant 0 : index
    %69 = vector.load %arg12[%c0_65, %c1_66, %c0_67] : memref<10x10x32xf32, #tpu.memory_space<vmem>>, vector<8x8x32xf32>
    %70 = vector.shape_cast %69 : vector<8x8x32xf32> to vector<64x32xf32>
    %71 = vector.extract_strided_slice %60 {offsets = [32, 0], sizes = [32, 32], strides = [1, 1]} : vector<288x32xf32> to vector<32x32xf32>
    %cst_68 = arith.constant dense<0.000000e+00> : vector<64x32xf32>
    %72 = tpu.matmul %70, %71, %cst_68 {dimension_numbers = #tpu.dot_dimension_numbers<[1], [0], [0], [1], [0, 0, 1, 1], [], []>} : vector<64x32xf32>, vector<32x32xf32>, vector<64x32xf32> -> vector<64x32xf32>
    %73 = arith.addf %68, %72 : vector<64x32xf32>
    %c0_69 = arith.constant 0 : index
    %c2_70 = arith.constant 2 : index
    %c0_71 = arith.constant 0 : index
    %74 = vector.load %arg12[%c0_69, %c2_70, %c0_71] : memref<10x10x32xf32, #tpu.memory_space<vmem>>, vector<8x8x32xf32>
    %75 = vector.shape_cast %74 : vector<8x8x32xf32> to vector<64x32xf32>
    %76 = vector.extract_strided_slice %60 {offsets = [64, 0], sizes = [32, 32], strides = [1, 1]} : vector<288x32xf32> to vector<32x32xf32>
    %cst_72 = arith.constant dense<0.000000e+00> : vector<64x32xf32>
    %77 = tpu.matmul %75, %76, %cst_72 {dimension_numbers = #tpu.dot_dimension_numbers<[1], [0], [0], [1], [0, 0, 1, 1], [], []>} : vector<64x32xf32>, vector<32x32xf32>, vector<64x32xf32> -> vector<64x32xf32>
    %78 = arith.addf %73, %77 : vector<64x32xf32>
    %c1_73 = arith.constant 1 : index
    %c0_74 = arith.constant 0 : index
    %c0_75 = arith.constant 0 : index
    %79 = vector.load %arg12[%c1_73, %c0_74, %c0_75] : memref<10x10x32xf32, #tpu.memory_space<vmem>>, vector<8x8x32xf32>
    %80 = vector.shape_cast %79 : vector<8x8x32xf32> to vector<64x32xf32>
    %81 = vector.extract_strided_slice %60 {offsets = [96, 0], sizes = [32, 32], strides = [1, 1]} : vector<288x32xf32> to vector<32x32xf32>
    %cst_76 = arith.constant dense<0.000000e+00> : vector<64x32xf32>
    %82 = tpu.matmul %80, %81, %cst_76 {dimension_numbers = #tpu.dot_dimension_numbers<[1], [0], [0], [1], [0, 0, 1, 1], [], []>} : vector<64x32xf32>, vector<32x32xf32>, vector<64x32xf32> -> vector<64x32xf32>
    %83 = arith.addf %78, %82 : vector<64x32xf32>
    %c1_77 = arith.constant 1 : index
    %c1_78 = arith.constant 1 : index
    %c0_79 = arith.constant 0 : index
    %84 = vector.load %arg12[%c1_77, %c1_78, %c0_79] : memref<10x10x32xf32, #tpu.memory_space<vmem>>, vector<8x8x32xf32>
    %85 = vector.shape_cast %84 : vector<8x8x32xf32> to vector<64x32xf32>
    %86 = vector.extract_strided_slice %60 {offsets = [128, 0], sizes = [32, 32], strides = [1, 1]} : vector<288x32xf32> to vector<32x32xf32>
    %cst_80 = arith.constant dense<0.000000e+00> : vector<64x32xf32>
    %87 = tpu.matmul %85, %86, %cst_80 {dimension_numbers = #tpu.dot_dimension_numbers<[1], [0], [0], [1], [0, 0, 1, 1], [], []>} : vector<64x32xf32>, vector<32x32xf32>, vector<64x32xf32> -> vector<64x32xf32>
    %88 = arith.addf %83, %87 : vector<64x32xf32>
    %c1_81 = arith.constant 1 : index
    %c2_82 = arith.constant 2 : index
    %c0_83 = arith.constant 0 : index
    %89 = vector.load %arg12[%c1_81, %c2_82, %c0_83] : memref<10x10x32xf32, #tpu.memory_space<vmem>>, vector<8x8x32xf32>
    %90 = vector.shape_cast %89 : vector<8x8x32xf32> to vector<64x32xf32>
    %91 = vector.extract_strided_slice %60 {offsets = [160, 0], sizes = [32, 32], strides = [1, 1]} : vector<288x32xf32> to vector<32x32xf32>
    %cst_84 = arith.constant dense<0.000000e+00> : vector<64x32xf32>
    %92 = tpu.matmul %90, %91, %cst_84 {dimension_numbers = #tpu.dot_dimension_numbers<[1], [0], [0], [1], [0, 0, 1, 1], [], []>} : vector<64x32xf32>, vector<32x32xf32>, vector<64x32xf32> -> vector<64x32xf32>
    %93 = arith.addf %88, %92 : vector<64x32xf32>
    %c2_85 = arith.constant 2 : index
    %c0_86 = arith.constant 0 : index
    %c0_87 = arith.constant 0 : index
    %94 = vector.load %arg12[%c2_85, %c0_86, %c0_87] : memref<10x10x32xf32, #tpu.memory_space<vmem>>, vector<8x8x32xf32>
    %95 = vector.shape_cast %94 : vector<8x8x32xf32> to vector<64x32xf32>
    %96 = vector.extract_strided_slice %60 {offsets = [192, 0], sizes = [32, 32], strides = [1, 1]} : vector<288x32xf32> to vector<32x32xf32>
    %cst_88 = arith.constant dense<0.000000e+00> : vector<64x32xf32>
    %97 = tpu.matmul %95, %96, %cst_88 {dimension_numbers = #tpu.dot_dimension_numbers<[1], [0], [0], [1], [0, 0, 1, 1], [], []>} : vector<64x32xf32>, vector<32x32xf32>, vector<64x32xf32> -> vector<64x32xf32>
    %98 = arith.addf %93, %97 : vector<64x32xf32>
    %c2_89 = arith.constant 2 : index
    %c1_90 = arith.constant 1 : index
    %c0_91 = arith.constant 0 : index
    %99 = vector.load %arg12[%c2_89, %c1_90, %c0_91] : memref<10x10x32xf32, #tpu.memory_space<vmem>>, vector<8x8x32xf32>
    %100 = vector.shape_cast %99 : vector<8x8x32xf32> to vector<64x32xf32>
    %101 = vector.extract_strided_slice %60 {offsets = [224, 0], sizes = [32, 32], strides = [1, 1]} : vector<288x32xf32> to vector<32x32xf32>
    %cst_92 = arith.constant dense<0.000000e+00> : vector<64x32xf32>
    %102 = tpu.matmul %100, %101, %cst_92 {dimension_numbers = #tpu.dot_dimension_numbers<[1], [0], [0], [1], [0, 0, 1, 1], [], []>} : vector<64x32xf32>, vector<32x32xf32>, vector<64x32xf32> -> vector<64x32xf32>
    %103 = arith.addf %98, %102 : vector<64x32xf32>
    %c2_93 = arith.constant 2 : index
    %c2_94 = arith.constant 2 : index
    %c0_95 = arith.constant 0 : index
    %104 = vector.load %arg12[%c2_93, %c2_94, %c0_95] : memref<10x10x32xf32, #tpu.memory_space<vmem>>, vector<8x8x32xf32>
    %105 = vector.shape_cast %104 : vector<8x8x32xf32> to vector<64x32xf32>
    %106 = vector.extract_strided_slice %60 {offsets = [256, 0], sizes = [32, 32], strides = [1, 1]} : vector<288x32xf32> to vector<32x32xf32>
    %cst_96 = arith.constant dense<0.000000e+00> : vector<64x32xf32>
    %107 = tpu.matmul %105, %106, %cst_96 {dimension_numbers = #tpu.dot_dimension_numbers<[1], [0], [0], [1], [0, 0, 1, 1], [], []>} : vector<64x32xf32>, vector<32x32xf32>, vector<64x32xf32> -> vector<64x32xf32>
    %108 = arith.addf %103, %107 : vector<64x32xf32>
    %109 = vector.broadcast %62 : vector<1x32xf32> to vector<64x32xf32>
    %110 = arith.addf %108, %109 : vector<64x32xf32>
    %cst_97 = arith.constant 0.000000e+00 : f32
    %111 = vector.broadcast %cst_97 : f32 to vector<64x32xf32>
    %112 = arith.maximumf %110, %111 : vector<64x32xf32>
    %113 = vector.shape_cast %112 : vector<64x32xf32> to vector<8x8x32xf32>
    %c1_98 = arith.constant 1 : index
    %c1_99 = arith.constant 1 : index
    %c0_100 = arith.constant 0 : index
    %114 = vector.load %arg12[%c1_98, %c1_99, %c0_100] : memref<10x10x32xf32, #tpu.memory_space<vmem>>, vector<8x8x32xf32>
    tpu.vector_store %arg12[%c1_98, %c1_99, %c0_100], %113 {strides = array<i32>} : memref<10x10x32xf32, #tpu.memory_space<vmem>>, vector<8x8x32xf32>,
    %c0_101 = arith.constant 0 : index
    %c1_102 = arith.constant 1 : index
    %c0_103 = arith.constant 0 : index
    %c0_104 = arith.constant 0 : index
    %115 = vector.load %arg4[%c0_101, %c1_102, %c0_103, %c0_104] : memref<2x2x288x32xf32, #tpu.memory_space<vmem>>, vector<1x1x288x32xf32>
    %116 = vector.shape_cast %115 : vector<1x1x288x32xf32> to vector<288x32xf32>
    %c0_105 = arith.constant 0 : index
    %c1_106 = arith.constant 1 : index
    %c0_107 = arith.constant 0 : index
    %c0_108 = arith.constant 0 : index
    %117 = vector.load %arg5[%c0_105, %c1_106, %c0_107, %c0_108] : memref<2x2x1x32xf32, #tpu.memory_space<vmem>>, vector<1x1x1x32xf32>
    %118 = vector.shape_cast %117 : vector<1x1x1x32xf32> to vector<1x32xf32>
    %cst_109 = arith.constant 0.000000e+00 : f32
    %119 = vector.broadcast %cst_109 : f32 to vector<64x32xf32>
    %c0_110 = arith.constant 0 : index
    %c0_111 = arith.constant 0 : index
    %c0_112 = arith.constant 0 : index
    %120 = vector.load %arg12[%c0_110, %c0_111, %c0_112] : memref<10x10x32xf32, #tpu.memory_space<vmem>>, vector<8x8x32xf32>
    %121 = vector.shape_cast %120 : vector<8x8x32xf32> to vector<64x32xf32>
    %122 = vector.extract_strided_slice %116 {offsets = [0, 0], sizes = [32, 32], strides = [1, 1]} : vector<288x32xf32> to vector<32x32xf32>
    %cst_113 = arith.constant dense<0.000000e+00> : vector<64x32xf32>
    %123 = tpu.matmul %121, %122, %cst_113 {dimension_numbers = #tpu.dot_dimension_numbers<[1], [0], [0], [1], [0, 0, 1, 1], [], []>} : vector<64x32xf32>, vector<32x32xf32>, vector<64x32xf32> -> vector<64x32xf32>
    %124 = arith.addf %119, %123 : vector<64x32xf32>
    %c0_114 = arith.constant 0 : index
    %c1_115 = arith.constant 1 : index
    %c0_116 = arith.constant 0 : index
    %125 = vector.load %arg12[%c0_114, %c1_115, %c0_116] : memref<10x10x32xf32, #tpu.memory_space<vmem>>, vector<8x8x32xf32>
    %126 = vector.shape_cast %125 : vector<8x8x32xf32> to vector<64x32xf32>
    %127 = vector.extract_strided_slice %116 {offsets = [32, 0], sizes = [32, 32], strides = [1, 1]} : vector<288x32xf32> to vector<32x32xf32>
    %cst_117 = arith.constant dense<0.000000e+00> : vector<64x32xf32>
    %128 = tpu.matmul %126, %127, %cst_117 {dimension_numbers = #tpu.dot_dimension_numbers<[1], [0], [0], [1], [0, 0, 1, 1], [], []>} : vector<64x32xf32>, vector<32x32xf32>, vector<64x32xf32> -> vector<64x32xf32>
    %129 = arith.addf %124, %128 : vector<64x32xf32>
    %c0_118 = arith.constant 0 : index
    %c2_119 = arith.constant 2 : index
    %c0_120 = arith.constant 0 : index
    %130 = vector.load %arg12[%c0_118, %c2_119, %c0_120] : memref<10x10x32xf32, #tpu.memory_space<vmem>>, vector<8x8x32xf32>
    %131 = vector.shape_cast %130 : vector<8x8x32xf32> to vector<64x32xf32>
    %132 = vector.extract_strided_slice %116 {offsets = [64, 0], sizes = [32, 32], strides = [1, 1]} : vector<288x32xf32> to vector<32x32xf32>
    %cst_121 = arith.constant dense<0.000000e+00> : vector<64x32xf32>
    %133 = tpu.matmul %131, %132, %cst_121 {dimension_numbers = #tpu.dot_dimension_numbers<[1], [0], [0], [1], [0, 0, 1, 1], [], []>} : vector<64x32xf32>, vector<32x32xf32>, vector<64x32xf32> -> vector<64x32xf32>
    %134 = arith.addf %129, %133 : vector<64x32xf32>
    %c1_122 = arith.constant 1 : index
    %c0_123 = arith.constant 0 : index
    %c0_124 = arith.constant 0 : index
    %135 = vector.load %arg12[%c1_122, %c0_123, %c0_124] : memref<10x10x32xf32, #tpu.memory_space<vmem>>, vector<8x8x32xf32>
    %136 = vector.shape_cast %135 : vector<8x8x32xf32> to vector<64x32xf32>
    %137 = vector.extract_strided_slice %116 {offsets = [96, 0], sizes = [32, 32], strides = [1, 1]} : vector<288x32xf32> to vector<32x32xf32>
    %cst_125 = arith.constant dense<0.000000e+00> : vector<64x32xf32>
    %138 = tpu.matmul %136, %137, %cst_125 {dimension_numbers = #tpu.dot_dimension_numbers<[1], [0], [0], [1], [0, 0, 1, 1], [], []>} : vector<64x32xf32>, vector<32x32xf32>, vector<64x32xf32> -> vector<64x32xf32>
    %139 = arith.addf %134, %138 : vector<64x32xf32>
    %c1_126 = arith.constant 1 : index
    %c1_127 = arith.constant 1 : index
    %c0_128 = arith.constant 0 : index
    %140 = vector.load %arg12[%c1_126, %c1_127, %c0_128] : memref<10x10x32xf32, #tpu.memory_space<vmem>>, vector<8x8x32xf32>
    %141 = vector.shape_cast %140 : vector<8x8x32xf32> to vector<64x32xf32>
    %142 = vector.extract_strided_slice %116 {offsets = [128, 0], sizes = [32, 32], strides = [1, 1]} : vector<288x32xf32> to vector<32x32xf32>
    %cst_129 = arith.constant dense<0.000000e+00> : vector<64x32xf32>
    %143 = tpu.matmul %141, %142, %cst_129 {dimension_numbers = #tpu.dot_dimension_numbers<[1], [0], [0], [1], [0, 0, 1, 1], [], []>} : vector<64x32xf32>, vector<32x32xf32>, vector<64x32xf32> -> vector<64x32xf32>
    %144 = arith.addf %139, %143 : vector<64x32xf32>
    %c1_130 = arith.constant 1 : index
    %c2_131 = arith.constant 2 : index
    %c0_132 = arith.constant 0 : index
    %145 = vector.load %arg12[%c1_130, %c2_131, %c0_132] : memref<10x10x32xf32, #tpu.memory_space<vmem>>, vector<8x8x32xf32>
    %146 = vector.shape_cast %145 : vector<8x8x32xf32> to vector<64x32xf32>
    %147 = vector.extract_strided_slice %116 {offsets = [160, 0], sizes = [32, 32], strides = [1, 1]} : vector<288x32xf32> to vector<32x32xf32>
    %cst_133 = arith.constant dense<0.000000e+00> : vector<64x32xf32>
    %148 = tpu.matmul %146, %147, %cst_133 {dimension_numbers = #tpu.dot_dimension_numbers<[1], [0], [0], [1], [0, 0, 1, 1], [], []>} : vector<64x32xf32>, vector<32x32xf32>, vector<64x32xf32> -> vector<64x32xf32>
    %149 = arith.addf %144, %148 : vector<64x32xf32>
    %c2_134 = arith.constant 2 : index
    %c0_135 = arith.constant 0 : index
    %c0_136 = arith.constant 0 : index
    %150 = vector.load %arg12[%c2_134, %c0_135, %c0_136] : memref<10x10x32xf32, #tpu.memory_space<vmem>>, vector<8x8x32xf32>
    %151 = vector.shape_cast %150 : vector<8x8x32xf32> to vector<64x32xf32>
    %152 = vector.extract_strided_slice %116 {offsets = [192, 0], sizes = [32, 32], strides = [1, 1]} : vector<288x32xf32> to vector<32x32xf32>
    %cst_137 = arith.constant dense<0.000000e+00> : vector<64x32xf32>
    %153 = tpu.matmul %151, %152, %cst_137 {dimension_numbers = #tpu.dot_dimension_numbers<[1], [0], [0], [1], [0, 0, 1, 1], [], []>} : vector<64x32xf32>, vector<32x32xf32>, vector<64x32xf32> -> vector<64x32xf32>
    %154 = arith.addf %149, %153 : vector<64x32xf32>
    %c2_138 = arith.constant 2 : index
    %c1_139 = arith.constant 1 : index
    %c0_140 = arith.constant 0 : index
    %155 = vector.load %arg12[%c2_138, %c1_139, %c0_140] : memref<10x10x32xf32, #tpu.memory_space<vmem>>, vector<8x8x32xf32>
    %156 = vector.shape_cast %155 : vector<8x8x32xf32> to vector<64x32xf32>
    %157 = vector.extract_strided_slice %116 {offsets = [224, 0], sizes = [32, 32], strides = [1, 1]} : vector<288x32xf32> to vector<32x32xf32>
    %cst_141 = arith.constant dense<0.000000e+00> : vector<64x32xf32>
    %158 = tpu.matmul %156, %157, %cst_141 {dimension_numbers = #tpu.dot_dimension_numbers<[1], [0], [0], [1], [0, 0, 1, 1], [], []>} : vector<64x32xf32>, vector<32x32xf32>, vector<64x32xf32> -> vector<64x32xf32>
    %159 = arith.addf %154, %158 : vector<64x32xf32>
    %c2_142 = arith.constant 2 : index
    %c2_143 = arith.constant 2 : index
    %c0_144 = arith.constant 0 : index
    %160 = vector.load %arg12[%c2_142, %c2_143, %c0_144] : memref<10x10x32xf32, #tpu.memory_space<vmem>>, vector<8x8x32xf32>
    %161 = vector.shape_cast %160 : vector<8x8x32xf32> to vector<64x32xf32>
    %162 = vector.extract_strided_slice %116 {offsets = [256, 0], sizes = [32, 32], strides = [1, 1]} : vector<288x32xf32> to vector<32x32xf32>
    %cst_145 = arith.constant dense<0.000000e+00> : vector<64x32xf32>
    %163 = tpu.matmul %161, %162, %cst_145 {dimension_numbers = #tpu.dot_dimension_numbers<[1], [0], [0], [1], [0, 0, 1, 1], [], []>} : vector<64x32xf32>, vector<32x32xf32>, vector<64x32xf32> -> vector<64x32xf32>
    %164 = arith.addf %159, %163 : vector<64x32xf32>
    %165 = vector.broadcast %118 : vector<1x32xf32> to vector<64x32xf32>
    %166 = arith.addf %164, %165 : vector<64x32xf32>
    %167 = arith.addf %166, %56 : vector<64x32xf32>
    %cst_146 = arith.constant 0.000000e+00 : f32
    %168 = vector.broadcast %cst_146 : f32 to vector<64x32xf32>
    %169 = arith.maximumf %167, %168 : vector<64x32xf32>
    %170 = vector.shape_cast %169 : vector<64x32xf32> to vector<8x8x32xf32>
    %c1_147 = arith.constant 1 : index
    %c1_148 = arith.constant 1 : index
    %c0_149 = arith.constant 0 : index
    %171 = vector.load %arg12[%c1_147, %c1_148, %c0_149] : memref<10x10x32xf32, #tpu.memory_space<vmem>>, vector<8x8x32xf32>
    tpu.vector_store %arg12[%c1_147, %c1_148, %c0_149], %170 {strides = array<i32>} : memref<10x10x32xf32, #tpu.memory_space<vmem>>, vector<8x8x32xf32>,
    %c1_150 = arith.constant 1 : index
    %c0_151 = arith.constant 0 : index
    %c0_152 = arith.constant 0 : index
    %c0_153 = arith.constant 0 : index
    %172 = vector.load %arg4[%c1_150, %c0_151, %c0_152, %c0_153] : memref<2x2x288x32xf32, #tpu.memory_space<vmem>>, vector<1x1x288x32xf32>
    %173 = vector.shape_cast %172 : vector<1x1x288x32xf32> to vector<288x32xf32>
    %c1_154 = arith.constant 1 : index
    %c0_155 = arith.constant 0 : index
    %c0_156 = arith.constant 0 : index
    %c0_157 = arith.constant 0 : index
    %174 = vector.load %arg5[%c1_154, %c0_155, %c0_156, %c0_157] : memref<2x2x1x32xf32, #tpu.memory_space<vmem>>, vector<1x1x1x32xf32>
    %175 = vector.shape_cast %174 : vector<1x1x1x32xf32> to vector<1x32xf32>
    %cst_158 = arith.constant 0.000000e+00 : f32
    %176 = vector.broadcast %cst_158 : f32 to vector<64x32xf32>
    %c0_159 = arith.constant 0 : index
    %c0_160 = arith.constant 0 : index
    %c0_161 = arith.constant 0 : index
    %177 = vector.load %arg12[%c0_159, %c0_160, %c0_161] : memref<10x10x32xf32, #tpu.memory_space<vmem>>, vector<8x8x32xf32>
    %178 = vector.shape_cast %177 : vector<8x8x32xf32> to vector<64x32xf32>
    %179 = vector.extract_strided_slice %173 {offsets = [0, 0], sizes = [32, 32], strides = [1, 1]} : vector<288x32xf32> to vector<32x32xf32>
    %cst_162 = arith.constant dense<0.000000e+00> : vector<64x32xf32>
    %180 = tpu.matmul %178, %179, %cst_162 {dimension_numbers = #tpu.dot_dimension_numbers<[1], [0], [0], [1], [0, 0, 1, 1], [], []>} : vector<64x32xf32>, vector<32x32xf32>, vector<64x32xf32> -> vector<64x32xf32>
    %181 = arith.addf %176, %180 : vector<64x32xf32>
    %c0_163 = arith.constant 0 : index
    %c1_164 = arith.constant 1 : index
    %c0_165 = arith.constant 0 : index
    %182 = vector.load %arg12[%c0_163, %c1_164, %c0_165] : memref<10x10x32xf32, #tpu.memory_space<vmem>>, vector<8x8x32xf32>
    %183 = vector.shape_cast %182 : vector<8x8x32xf32> to vector<64x32xf32>
    %184 = vector.extract_strided_slice %173 {offsets = [32, 0], sizes = [32, 32], strides = [1, 1]} : vector<288x32xf32> to vector<32x32xf32>
    %cst_166 = arith.constant dense<0.000000e+00> : vector<64x32xf32>
    %185 = tpu.matmul %183, %184, %cst_166 {dimension_numbers = #tpu.dot_dimension_numbers<[1], [0], [0], [1], [0, 0, 1, 1], [], []>} : vector<64x32xf32>, vector<32x32xf32>, vector<64x32xf32> -> vector<64x32xf32>
    %186 = arith.addf %181, %185 : vector<64x32xf32>
    %c0_167 = arith.constant 0 : index
    %c2_168 = arith.constant 2 : index
    %c0_169 = arith.constant 0 : index
    %187 = vector.load %arg12[%c0_167, %c2_168, %c0_169] : memref<10x10x32xf32, #tpu.memory_space<vmem>>, vector<8x8x32xf32>
    %188 = vector.shape_cast %187 : vector<8x8x32xf32> to vector<64x32xf32>
    %189 = vector.extract_strided_slice %173 {offsets = [64, 0], sizes = [32, 32], strides = [1, 1]} : vector<288x32xf32> to vector<32x32xf32>
    %cst_170 = arith.constant dense<0.000000e+00> : vector<64x32xf32>
    %190 = tpu.matmul %188, %189, %cst_170 {dimension_numbers = #tpu.dot_dimension_numbers<[1], [0], [0], [1], [0, 0, 1, 1], [], []>} : vector<64x32xf32>, vector<32x32xf32>, vector<64x32xf32> -> vector<64x32xf32>
    %191 = arith.addf %186, %190 : vector<64x32xf32>
    %c1_171 = arith.constant 1 : index
    %c0_172 = arith.constant 0 : index
    %c0_173 = arith.constant 0 : index
    %192 = vector.load %arg12[%c1_171, %c0_172, %c0_173] : memref<10x10x32xf32, #tpu.memory_space<vmem>>, vector<8x8x32xf32>
    %193 = vector.shape_cast %192 : vector<8x8x32xf32> to vector<64x32xf32>
    %194 = vector.extract_strided_slice %173 {offsets = [96, 0], sizes = [32, 32], strides = [1, 1]} : vector<288x32xf32> to vector<32x32xf32>
    %cst_174 = arith.constant dense<0.000000e+00> : vector<64x32xf32>
    %195 = tpu.matmul %193, %194, %cst_174 {dimension_numbers = #tpu.dot_dimension_numbers<[1], [0], [0], [1], [0, 0, 1, 1], [], []>} : vector<64x32xf32>, vector<32x32xf32>, vector<64x32xf32> -> vector<64x32xf32>
    %196 = arith.addf %191, %195 : vector<64x32xf32>
    %c1_175 = arith.constant 1 : index
    %c1_176 = arith.constant 1 : index
    %c0_177 = arith.constant 0 : index
    %197 = vector.load %arg12[%c1_175, %c1_176, %c0_177] : memref<10x10x32xf32, #tpu.memory_space<vmem>>, vector<8x8x32xf32>
    %198 = vector.shape_cast %197 : vector<8x8x32xf32> to vector<64x32xf32>
    %199 = vector.extract_strided_slice %173 {offsets = [128, 0], sizes = [32, 32], strides = [1, 1]} : vector<288x32xf32> to vector<32x32xf32>
    %cst_178 = arith.constant dense<0.000000e+00> : vector<64x32xf32>
    %200 = tpu.matmul %198, %199, %cst_178 {dimension_numbers = #tpu.dot_dimension_numbers<[1], [0], [0], [1], [0, 0, 1, 1], [], []>} : vector<64x32xf32>, vector<32x32xf32>, vector<64x32xf32> -> vector<64x32xf32>
    %201 = arith.addf %196, %200 : vector<64x32xf32>
    %c1_179 = arith.constant 1 : index
    %c2_180 = arith.constant 2 : index
    %c0_181 = arith.constant 0 : index
    %202 = vector.load %arg12[%c1_179, %c2_180, %c0_181] : memref<10x10x32xf32, #tpu.memory_space<vmem>>, vector<8x8x32xf32>
    %203 = vector.shape_cast %202 : vector<8x8x32xf32> to vector<64x32xf32>
    %204 = vector.extract_strided_slice %173 {offsets = [160, 0], sizes = [32, 32], strides = [1, 1]} : vector<288x32xf32> to vector<32x32xf32>
    %cst_182 = arith.constant dense<0.000000e+00> : vector<64x32xf32>
    %205 = tpu.matmul %203, %204, %cst_182 {dimension_numbers = #tpu.dot_dimension_numbers<[1], [0], [0], [1], [0, 0, 1, 1], [], []>} : vector<64x32xf32>, vector<32x32xf32>, vector<64x32xf32> -> vector<64x32xf32>
    %206 = arith.addf %201, %205 : vector<64x32xf32>
    %c2_183 = arith.constant 2 : index
    %c0_184 = arith.constant 0 : index
    %c0_185 = arith.constant 0 : index
    %207 = vector.load %arg12[%c2_183, %c0_184, %c0_185] : memref<10x10x32xf32, #tpu.memory_space<vmem>>, vector<8x8x32xf32>
    %208 = vector.shape_cast %207 : vector<8x8x32xf32> to vector<64x32xf32>
    %209 = vector.extract_strided_slice %173 {offsets = [192, 0], sizes = [32, 32], strides = [1, 1]} : vector<288x32xf32> to vector<32x32xf32>
    %cst_186 = arith.constant dense<0.000000e+00> : vector<64x32xf32>
    %210 = tpu.matmul %208, %209, %cst_186 {dimension_numbers = #tpu.dot_dimension_numbers<[1], [0], [0], [1], [0, 0, 1, 1], [], []>} : vector<64x32xf32>, vector<32x32xf32>, vector<64x32xf32> -> vector<64x32xf32>
    %211 = arith.addf %206, %210 : vector<64x32xf32>
    %c2_187 = arith.constant 2 : index
    %c1_188 = arith.constant 1 : index
    %c0_189 = arith.constant 0 : index
    %212 = vector.load %arg12[%c2_187, %c1_188, %c0_189] : memref<10x10x32xf32, #tpu.memory_space<vmem>>, vector<8x8x32xf32>
    %213 = vector.shape_cast %212 : vector<8x8x32xf32> to vector<64x32xf32>
    %214 = vector.extract_strided_slice %173 {offsets = [224, 0], sizes = [32, 32], strides = [1, 1]} : vector<288x32xf32> to vector<32x32xf32>
    %cst_190 = arith.constant dense<0.000000e+00> : vector<64x32xf32>
    %215 = tpu.matmul %213, %214, %cst_190 {dimension_numbers = #tpu.dot_dimension_numbers<[1], [0], [0], [1], [0, 0, 1, 1], [], []>} : vector<64x32xf32>, vector<32x32xf32>, vector<64x32xf32> -> vector<64x32xf32>
    %216 = arith.addf %211, %215 : vector<64x32xf32>
    %c2_191 = arith.constant 2 : index
    %c2_192 = arith.constant 2 : index
    %c0_193 = arith.constant 0 : index
    %217 = vector.load %arg12[%c2_191, %c2_192, %c0_193] : memref<10x10x32xf32, #tpu.memory_space<vmem>>, vector<8x8x32xf32>
    %218 = vector.shape_cast %217 : vector<8x8x32xf32> to vector<64x32xf32>
    %219 = vector.extract_strided_slice %173 {offsets = [256, 0], sizes = [32, 32], strides = [1, 1]} : vector<288x32xf32> to vector<32x32xf32>
    %cst_194 = arith.constant dense<0.000000e+00> : vector<64x32xf32>
    %220 = tpu.matmul %218, %219, %cst_194 {dimension_numbers = #tpu.dot_dimension_numbers<[1], [0], [0], [1], [0, 0, 1, 1], [], []>} : vector<64x32xf32>, vector<32x32xf32>, vector<64x32xf32> -> vector<64x32xf32>
    %221 = arith.addf %216, %220 : vector<64x32xf32>
    %222 = vector.broadcast %175 : vector<1x32xf32> to vector<64x32xf32>
    %223 = arith.addf %221, %222 : vector<64x32xf32>
    %cst_195 = arith.constant 0.000000e+00 : f32
    %224 = vector.broadcast %cst_195 : f32 to vector<64x32xf32>
    %225 = arith.maximumf %223, %224 : vector<64x32xf32>
    %226 = vector.shape_cast %225 : vector<64x32xf32> to vector<8x8x32xf32>
    %c1_196 = arith.constant 1 : index
    %c1_197 = arith.constant 1 : index
    %c0_198 = arith.constant 0 : index
    %227 = vector.load %arg12[%c1_196, %c1_197, %c0_198] : memref<10x10x32xf32, #tpu.memory_space<vmem>>, vector<8x8x32xf32>
    tpu.vector_store %arg12[%c1_196, %c1_197, %c0_198], %226 {strides = array<i32>} : memref<10x10x32xf32, #tpu.memory_space<vmem>>, vector<8x8x32xf32>,
    %c1_199 = arith.constant 1 : index
    %c1_200 = arith.constant 1 : index
    %c0_201 = arith.constant 0 : index
    %c0_202 = arith.constant 0 : index
    %228 = vector.load %arg4[%c1_199, %c1_200, %c0_201, %c0_202] : memref<2x2x288x32xf32, #tpu.memory_space<vmem>>, vector<1x1x288x32xf32>
    %229 = vector.shape_cast %228 : vector<1x1x288x32xf32> to vector<288x32xf32>
    %c1_203 = arith.constant 1 : index
    %c1_204 = arith.constant 1 : index
    %c0_205 = arith.constant 0 : index
    %c0_206 = arith.constant 0 : index
    %230 = vector.load %arg5[%c1_203, %c1_204, %c0_205, %c0_206] : memref<2x2x1x32xf32, #tpu.memory_space<vmem>>, vector<1x1x1x32xf32>
    %231 = vector.shape_cast %230 : vector<1x1x1x32xf32> to vector<1x32xf32>
    %cst_207 = arith.constant 0.000000e+00 : f32
    %232 = vector.broadcast %cst_207 : f32 to vector<64x32xf32>
    %c0_208 = arith.constant 0 : index
    %c0_209 = arith.constant 0 : index
    %c0_210 = arith.constant 0 : index
    %233 = vector.load %arg12[%c0_208, %c0_209, %c0_210] : memref<10x10x32xf32, #tpu.memory_space<vmem>>, vector<8x8x32xf32>
    %234 = vector.shape_cast %233 : vector<8x8x32xf32> to vector<64x32xf32>
    %235 = vector.extract_strided_slice %229 {offsets = [0, 0], sizes = [32, 32], strides = [1, 1]} : vector<288x32xf32> to vector<32x32xf32>
    %cst_211 = arith.constant dense<0.000000e+00> : vector<64x32xf32>
    %236 = tpu.matmul %234, %235, %cst_211 {dimension_numbers = #tpu.dot_dimension_numbers<[1], [0], [0], [1], [0, 0, 1, 1], [], []>} : vector<64x32xf32>, vector<32x32xf32>, vector<64x32xf32> -> vector<64x32xf32>
    %237 = arith.addf %232, %236 : vector<64x32xf32>
    %c0_212 = arith.constant 0 : index
    %c1_213 = arith.constant 1 : index
    %c0_214 = arith.constant 0 : index
    %238 = vector.load %arg12[%c0_212, %c1_213, %c0_214] : memref<10x10x32xf32, #tpu.memory_space<vmem>>, vector<8x8x32xf32>
    %239 = vector.shape_cast %238 : vector<8x8x32xf32> to vector<64x32xf32>
    %240 = vector.extract_strided_slice %229 {offsets = [32, 0], sizes = [32, 32], strides = [1, 1]} : vector<288x32xf32> to vector<32x32xf32>
    %cst_215 = arith.constant dense<0.000000e+00> : vector<64x32xf32>
    %241 = tpu.matmul %239, %240, %cst_215 {dimension_numbers = #tpu.dot_dimension_numbers<[1], [0], [0], [1], [0, 0, 1, 1], [], []>} : vector<64x32xf32>, vector<32x32xf32>, vector<64x32xf32> -> vector<64x32xf32>
    %242 = arith.addf %237, %241 : vector<64x32xf32>
    %c0_216 = arith.constant 0 : index
    %c2_217 = arith.constant 2 : index
    %c0_218 = arith.constant 0 : index
    %243 = vector.load %arg12[%c0_216, %c2_217, %c0_218] : memref<10x10x32xf32, #tpu.memory_space<vmem>>, vector<8x8x32xf32>
    %244 = vector.shape_cast %243 : vector<8x8x32xf32> to vector<64x32xf32>
    %245 = vector.extract_strided_slice %229 {offsets = [64, 0], sizes = [32, 32], strides = [1, 1]} : vector<288x32xf32> to vector<32x32xf32>
    %cst_219 = arith.constant dense<0.000000e+00> : vector<64x32xf32>
    %246 = tpu.matmul %244, %245, %cst_219 {dimension_numbers = #tpu.dot_dimension_numbers<[1], [0], [0], [1], [0, 0, 1, 1], [], []>} : vector<64x32xf32>, vector<32x32xf32>, vector<64x32xf32> -> vector<64x32xf32>
    %247 = arith.addf %242, %246 : vector<64x32xf32>
    %c1_220 = arith.constant 1 : index
    %c0_221 = arith.constant 0 : index
    %c0_222 = arith.constant 0 : index
    %248 = vector.load %arg12[%c1_220, %c0_221, %c0_222] : memref<10x10x32xf32, #tpu.memory_space<vmem>>, vector<8x8x32xf32>
    %249 = vector.shape_cast %248 : vector<8x8x32xf32> to vector<64x32xf32>
    %250 = vector.extract_strided_slice %229 {offsets = [96, 0], sizes = [32, 32], strides = [1, 1]} : vector<288x32xf32> to vector<32x32xf32>
    %cst_223 = arith.constant dense<0.000000e+00> : vector<64x32xf32>
    %251 = tpu.matmul %249, %250, %cst_223 {dimension_numbers = #tpu.dot_dimension_numbers<[1], [0], [0], [1], [0, 0, 1, 1], [], []>} : vector<64x32xf32>, vector<32x32xf32>, vector<64x32xf32> -> vector<64x32xf32>
    %252 = arith.addf %247, %251 : vector<64x32xf32>
    %c1_224 = arith.constant 1 : index
    %c1_225 = arith.constant 1 : index
    %c0_226 = arith.constant 0 : index
    %253 = vector.load %arg12[%c1_224, %c1_225, %c0_226] : memref<10x10x32xf32, #tpu.memory_space<vmem>>, vector<8x8x32xf32>
    %254 = vector.shape_cast %253 : vector<8x8x32xf32> to vector<64x32xf32>
    %255 = vector.extract_strided_slice %229 {offsets = [128, 0], sizes = [32, 32], strides = [1, 1]} : vector<288x32xf32> to vector<32x32xf32>
    %cst_227 = arith.constant dense<0.000000e+00> : vector<64x32xf32>
    %256 = tpu.matmul %254, %255, %cst_227 {dimension_numbers = #tpu.dot_dimension_numbers<[1], [0], [0], [1], [0, 0, 1, 1], [], []>} : vector<64x32xf32>, vector<32x32xf32>, vector<64x32xf32> -> vector<64x32xf32>
    %257 = arith.addf %252, %256 : vector<64x32xf32>
    %c1_228 = arith.constant 1 : index
    %c2_229 = arith.constant 2 : index
    %c0_230 = arith.constant 0 : index
    %258 = vector.load %arg12[%c1_228, %c2_229, %c0_230] : memref<10x10x32xf32, #tpu.memory_space<vmem>>, vector<8x8x32xf32>
    %259 = vector.shape_cast %258 : vector<8x8x32xf32> to vector<64x32xf32>
    %260 = vector.extract_strided_slice %229 {offsets = [160, 0], sizes = [32, 32], strides = [1, 1]} : vector<288x32xf32> to vector<32x32xf32>
    %cst_231 = arith.constant dense<0.000000e+00> : vector<64x32xf32>
    %261 = tpu.matmul %259, %260, %cst_231 {dimension_numbers = #tpu.dot_dimension_numbers<[1], [0], [0], [1], [0, 0, 1, 1], [], []>} : vector<64x32xf32>, vector<32x32xf32>, vector<64x32xf32> -> vector<64x32xf32>
    %262 = arith.addf %257, %261 : vector<64x32xf32>
    %c2_232 = arith.constant 2 : index
    %c0_233 = arith.constant 0 : index
    %c0_234 = arith.constant 0 : index
    %263 = vector.load %arg12[%c2_232, %c0_233, %c0_234] : memref<10x10x32xf32, #tpu.memory_space<vmem>>, vector<8x8x32xf32>
    %264 = vector.shape_cast %263 : vector<8x8x32xf32> to vector<64x32xf32>
    %265 = vector.extract_strided_slice %229 {offsets = [192, 0], sizes = [32, 32], strides = [1, 1]} : vector<288x32xf32> to vector<32x32xf32>
    %cst_235 = arith.constant dense<0.000000e+00> : vector<64x32xf32>
    %266 = tpu.matmul %264, %265, %cst_235 {dimension_numbers = #tpu.dot_dimension_numbers<[1], [0], [0], [1], [0, 0, 1, 1], [], []>} : vector<64x32xf32>, vector<32x32xf32>, vector<64x32xf32> -> vector<64x32xf32>
    %267 = arith.addf %262, %266 : vector<64x32xf32>
    %c2_236 = arith.constant 2 : index
    %c1_237 = arith.constant 1 : index
    %c0_238 = arith.constant 0 : index
    %268 = vector.load %arg12[%c2_236, %c1_237, %c0_238] : memref<10x10x32xf32, #tpu.memory_space<vmem>>, vector<8x8x32xf32>
    %269 = vector.shape_cast %268 : vector<8x8x32xf32> to vector<64x32xf32>
    %270 = vector.extract_strided_slice %229 {offsets = [224, 0], sizes = [32, 32], strides = [1, 1]} : vector<288x32xf32> to vector<32x32xf32>
    %cst_239 = arith.constant dense<0.000000e+00> : vector<64x32xf32>
    %271 = tpu.matmul %269, %270, %cst_239 {dimension_numbers = #tpu.dot_dimension_numbers<[1], [0], [0], [1], [0, 0, 1, 1], [], []>} : vector<64x32xf32>, vector<32x32xf32>, vector<64x32xf32> -> vector<64x32xf32>
    %272 = arith.addf %267, %271 : vector<64x32xf32>
    %c2_240 = arith.constant 2 : index
    %c2_241 = arith.constant 2 : index
    %c0_242 = arith.constant 0 : index
    %273 = vector.load %arg12[%c2_240, %c2_241, %c0_242] : memref<10x10x32xf32, #tpu.memory_space<vmem>>, vector<8x8x32xf32>
    %274 = vector.shape_cast %273 : vector<8x8x32xf32> to vector<64x32xf32>
    %275 = vector.extract_strided_slice %229 {offsets = [256, 0], sizes = [32, 32], strides = [1, 1]} : vector<288x32xf32> to vector<32x32xf32>
    %cst_243 = arith.constant dense<0.000000e+00> : vector<64x32xf32>
    %276 = tpu.matmul %274, %275, %cst_243 {dimension_numbers = #tpu.dot_dimension_numbers<[1], [0], [0], [1], [0, 0, 1, 1], [], []>} : vector<64x32xf32>, vector<32x32xf32>, vector<64x32xf32> -> vector<64x32xf32>
    %277 = arith.addf %272, %276 : vector<64x32xf32>
    %278 = vector.broadcast %231 : vector<1x32xf32> to vector<64x32xf32>
    %279 = arith.addf %277, %278 : vector<64x32xf32>
    %280 = arith.addf %279, %169 : vector<64x32xf32>
    %cst_244 = arith.constant 0.000000e+00 : f32
    %281 = vector.broadcast %cst_244 : f32 to vector<64x32xf32>
    %282 = arith.maximumf %280, %281 : vector<64x32xf32>
    %cst_245 = arith.constant dense<0.000000e+00> : vector<32xf32>
    %283 = vector.multi_reduction <add>, %282, %cst_245 [0] : vector<64x32xf32> to vector<32xf32>
    %284 = vector.shape_cast %283 : vector<32xf32> to vector<1x32xf32>
    %cst_246 = arith.constant 6.400000e+01 : f32
    %285 = vector.broadcast %cst_246 : f32 to vector<1x32xf32>
    %286 = arith.divf %284, %285 : vector<1x32xf32>
    %c0_247 = arith.constant 0 : index
    %c0_248 = arith.constant 0 : index
    %287 = vector.load %arg6[%c0_247, %c0_248] : memref<32x8xf32, #tpu.memory_space<vmem>>, vector<32x8xf32>
    %cst_249 = arith.constant dense<0.000000e+00> : vector<1x8xf32>
    %288 = tpu.matmul %286, %287, %cst_249 {dimension_numbers = #tpu.dot_dimension_numbers<[1], [0], [0], [1], [0, 0, 1, 1], [], []>} : vector<1x32xf32>, vector<32x8xf32>, vector<1x8xf32> -> vector<1x8xf32>
    %c0_250 = arith.constant 0 : index
    %c0_251 = arith.constant 0 : index
    %289 = vector.load %arg7[%c0_250, %c0_251] : memref<1x8xf32, #tpu.memory_space<vmem>>, vector<1x8xf32>
    %290 = arith.addf %288, %289 : vector<1x8xf32>
    %cst_252 = arith.constant dense<0xFF800000> : vector<1xf32>
    %291 = vector.multi_reduction <maximumf>, %290, %cst_252 [1] : vector<1x8xf32> to vector<1xf32>
    %292 = vector.shape_cast %291 : vector<1xf32> to vector<1x1xf32>
    %293 = vector.broadcast %292 : vector<1x1xf32> to vector<1x8xf32>
    %294 = arith.subf %290, %293 : vector<1x8xf32>
    %295 = math.exp %294 : vector<1x8xf32>
    %cst_253 = arith.constant dense<0.000000e+00> : vector<1xf32>
    %296 = vector.multi_reduction <add>, %295, %cst_253 [1] : vector<1x8xf32> to vector<1xf32>
    %297 = vector.shape_cast %296 : vector<1xf32> to vector<1x1xf32>
    %298 = vector.broadcast %297 : vector<1x1xf32> to vector<1x8xf32>
    %299 = arith.divf %295, %298 : vector<1x8xf32>
    %c0_254 = arith.constant 0 : index
    %c0_255 = arith.constant 0 : index
    %300 = vector.load %arg8[%c0_254, %c0_255] : memref<32x1xf32, #tpu.memory_space<vmem>>, vector<32x1xf32>
    %cst_256 = arith.constant dense<0.000000e+00> : vector<1x1xf32>
    %301 = tpu.matmul %286, %300, %cst_256 {dimension_numbers = #tpu.dot_dimension_numbers<[1], [0], [0], [1], [0, 0, 1, 1], [], []>} : vector<1x32xf32>, vector<32x1xf32>, vector<1x1xf32> -> vector<1x1xf32>
    %c0_257 = arith.constant 0 : index
    %c0_258 = arith.constant 0 : index
    %302 = vector.load %arg9[%c0_257, %c0_258] : memref<1x1xf32, #tpu.memory_space<vmem>>, vector<1x1xf32>
    %303 = arith.addf %301, %302 : vector<1x1xf32>
    %304 = math.tanh %303 : vector<1x1xf32>
    %305 = vector.shape_cast %299 : vector<1x8xf32> to vector<1x1x8xf32>
    %c0_259 = arith.constant 0 : index
    %c0_260 = arith.constant 0 : index
    %c0_261 = arith.constant 0 : index
    %306 = vector.load %arg10[%c0_259, %c0_260, %c0_261] : memref<1x1x8xf32, #tpu.memory_space<vmem>>, vector<1x1x8xf32>
    tpu.vector_store %arg10[%c0_259, %c0_260, %c0_261], %305 {strides = array<i32>} : memref<1x1x8xf32, #tpu.memory_space<vmem>>, vector<1x1x8xf32>,
    %307 = vector.shape_cast %304 : vector<1x1xf32> to vector<1x1x1xf32>
    %c0_262 = arith.constant 0 : index
    %c0_263 = arith.constant 0 : index
    %c0_264 = arith.constant 0 : index
    %308 = vector.load %arg11[%c0_262, %c0_263, %c0_264] : memref<1x1x1xf32, #tpu.memory_space<vmem>>, vector<1x1x1xf32>
    tpu.vector_store %arg11[%c0_262, %c0_263, %c0_264], %307 {strides = array<i32>} : memref<1x1x1xf32, #tpu.memory_space<vmem>>, vector<1x1x1xf32>,
    return
  }
  func.func @transform_0(%arg0: i32) -> (i32, i32, i32, i32) {
    %c0_i32 = arith.constant 0 : i32
    %c0_i32_0 = arith.constant 0 : i32
    %c0_i32_1 = arith.constant 0 : i32
    %c0_i32_2 = arith.constant 0 : i32
    return %arg0, %c0_i32, %c0_i32_0, %c0_i32_1 : i32, i32, i32, i32
  }
  func.func @transform_1(%arg0: i32) -> (i32, i32) {
    %c0_i32 = arith.constant 0 : i32
    %c0_i32_0 = arith.constant 0 : i32
    %c0_i32_1 = arith.constant 0 : i32
    return %c0_i32, %c0_i32_0 : i32, i32
  }
  func.func @transform_2(%arg0: i32) -> (i32, i32) {
    %c0_i32 = arith.constant 0 : i32
    %c0_i32_0 = arith.constant 0 : i32
    %c0_i32_1 = arith.constant 0 : i32
    return %c0_i32, %c0_i32_0 : i32, i32
  }
  func.func @transform_3(%arg0: i32) -> (i32, i32, i32, i32) {
    %c0_i32 = arith.constant 0 : i32
    %c0_i32_0 = arith.constant 0 : i32
    %c0_i32_1 = arith.constant 0 : i32
    %c0_i32_2 = arith.constant 0 : i32
    %c0_i32_3 = arith.constant 0 : i32
    return %c0_i32, %c0_i32_0, %c0_i32_1, %c0_i32_2 : i32, i32, i32, i32
  }
  func.func @transform_4(%arg0: i32) -> (i32, i32, i32, i32) {
    %c0_i32 = arith.constant 0 : i32
    %c0_i32_0 = arith.constant 0 : i32
    %c0_i32_1 = arith.constant 0 : i32
    %c0_i32_2 = arith.constant 0 : i32
    %c0_i32_3 = arith.constant 0 : i32
    return %c0_i32, %c0_i32_0, %c0_i32_1, %c0_i32_2 : i32, i32, i32, i32
  }
  func.func @transform_5(%arg0: i32) -> (i32, i32) {
    %c0_i32 = arith.constant 0 : i32
    %c0_i32_0 = arith.constant 0 : i32
    %c0_i32_1 = arith.constant 0 : i32
    return %c0_i32, %c0_i32_0 : i32, i32
  }
  func.func @transform_6(%arg0: i32) -> (i32, i32) {
    %c0_i32 = arith.constant 0 : i32
    %c0_i32_0 = arith.constant 0 : i32
    %c0_i32_1 = arith.constant 0 : i32
    return %c0_i32, %c0_i32_0 : i32, i32
  }
  func.func @transform_7(%arg0: i32) -> (i32, i32) {
    %c0_i32 = arith.constant 0 : i32
    %c0_i32_0 = arith.constant 0 : i32
    %c0_i32_1 = arith.constant 0 : i32
    return %c0_i32, %c0_i32_0 : i32, i32
  }
  func.func @transform_8(%arg0: i32) -> (i32, i32) {
    %c0_i32 = arith.constant 0 : i32
    %c0_i32_0 = arith.constant 0 : i32
    %c0_i32_1 = arith.constant 0 : i32
    return %c0_i32, %c0_i32_0 : i32, i32
  }
  func.func @transform_9(%arg0: i32) -> (i32, i32, i32) {
    %c0_i32 = arith.constant 0 : i32
    %c0_i32_0 = arith.constant 0 : i32
    %c0_i32_1 = arith.constant 0 : i32
    return %arg0, %c0_i32, %c0_i32_0 : i32, i32, i32
  }
  func.func @transform_10(%arg0: i32) -> (i32, i32, i32) {
    %c0_i32 = arith.constant 0 : i32
    %c0_i32_0 = arith.constant 0 : i32
    %c0_i32_1 = arith.constant 0 : i32
    return %arg0, %c0_i32, %c0_i32_0 : i32, i32, i32
  }
}

module attributes {stable_mosaic.version = 11 : i64} {
  func.func @_layer_kernel(%arg0: i32, %arg1: memref<1x10x10x4xf32, #tpu.memory_space<vmem>>, %arg2: memref<3x3x4x32xf32, #tpu.memory_space<vmem>>, %arg3: memref<1x32xf32, #tpu.memory_space<vmem>>, %arg4: memref<1x8x8x32xf32, #tpu.memory_space<vmem>>) attributes {dimension_semantics = [#tpu.dimension_semantics<parallel>], iteration_bounds = array<i64: 2>, scalar_prefetch = 0 : i64, scratch_operands = 0 : i64, tpu.core_type = #tpu.core_type<tc>, window_params = [{transform_indices = @transform_0, window_bounds = array<i64: 1, 10, 10, 4>}, {pipeline_mode = #tpu.pipeline_mode<synchronous>, transform_indices = @transform_1, window_bounds = array<i64: 3, 3, 4, 32>}, {pipeline_mode = #tpu.pipeline_mode<synchronous>, transform_indices = @transform_2, window_bounds = array<i64: 1, 32>}, {transform_indices = @transform_3, window_bounds = array<i64: 1, 8, 8, 32>}]} {
    %cst = arith.constant 0.000000e+00 : f32
    %0 = vector.broadcast %cst : f32 to vector<64x32xf32>
    %c0 = arith.constant 0 : index
    %c0_0 = arith.constant 0 : index
    %c0_1 = arith.constant 0 : index
    %c0_2 = arith.constant 0 : index
    %1 = vector.load %arg1[%c0, %c0_0, %c0_1, %c0_2] : memref<1x10x10x4xf32, #tpu.memory_space<vmem>>, vector<1x8x8x4xf32>
    %2 = vector.shape_cast %1 : vector<1x8x8x4xf32> to vector<8x8x4xf32>
    %3 = vector.shape_cast %2 : vector<8x8x4xf32> to vector<64x4xf32>
    %c0_3 = arith.constant 0 : index
    %c0_4 = arith.constant 0 : index
    %c0_5 = arith.constant 0 : index
    %c0_6 = arith.constant 0 : index
    %4 = vector.load %arg2[%c0_3, %c0_4, %c0_5, %c0_6] : memref<3x3x4x32xf32, #tpu.memory_space<vmem>>, vector<1x1x4x32xf32>
    %5 = vector.shape_cast %4 : vector<1x1x4x32xf32> to vector<4x32xf32>
    %cst_7 = arith.constant dense<0.000000e+00> : vector<64x32xf32>
    %6 = tpu.matmul %3, %5, %cst_7 {dimension_numbers = #tpu.dot_dimension_numbers<[1], [0], [0], [1], [0, 0, 1, 1], [], []>} : vector<64x4xf32>, vector<4x32xf32>, vector<64x32xf32> -> vector<64x32xf32>
    %7 = arith.addf %0, %6 : vector<64x32xf32>
    %c0_8 = arith.constant 0 : index
    %c0_9 = arith.constant 0 : index
    %c1 = arith.constant 1 : index
    %c0_10 = arith.constant 0 : index
    %8 = vector.load %arg1[%c0_8, %c0_9, %c1, %c0_10] : memref<1x10x10x4xf32, #tpu.memory_space<vmem>>, vector<1x8x8x4xf32>
    %9 = vector.shape_cast %8 : vector<1x8x8x4xf32> to vector<8x8x4xf32>
    %10 = vector.shape_cast %9 : vector<8x8x4xf32> to vector<64x4xf32>
    %c0_11 = arith.constant 0 : index
    %c1_12 = arith.constant 1 : index
    %c0_13 = arith.constant 0 : index
    %c0_14 = arith.constant 0 : index
    %11 = vector.load %arg2[%c0_11, %c1_12, %c0_13, %c0_14] : memref<3x3x4x32xf32, #tpu.memory_space<vmem>>, vector<1x1x4x32xf32>
    %12 = vector.shape_cast %11 : vector<1x1x4x32xf32> to vector<4x32xf32>
    %cst_15 = arith.constant dense<0.000000e+00> : vector<64x32xf32>
    %13 = tpu.matmul %10, %12, %cst_15 {dimension_numbers = #tpu.dot_dimension_numbers<[1], [0], [0], [1], [0, 0, 1, 1], [], []>} : vector<64x4xf32>, vector<4x32xf32>, vector<64x32xf32> -> vector<64x32xf32>
    %14 = arith.addf %7, %13 : vector<64x32xf32>
    %c0_16 = arith.constant 0 : index
    %c0_17 = arith.constant 0 : index
    %c2 = arith.constant 2 : index
    %c0_18 = arith.constant 0 : index
    %15 = vector.load %arg1[%c0_16, %c0_17, %c2, %c0_18] : memref<1x10x10x4xf32, #tpu.memory_space<vmem>>, vector<1x8x8x4xf32>
    %16 = vector.shape_cast %15 : vector<1x8x8x4xf32> to vector<8x8x4xf32>
    %17 = vector.shape_cast %16 : vector<8x8x4xf32> to vector<64x4xf32>
    %c0_19 = arith.constant 0 : index
    %c2_20 = arith.constant 2 : index
    %c0_21 = arith.constant 0 : index
    %c0_22 = arith.constant 0 : index
    %18 = vector.load %arg2[%c0_19, %c2_20, %c0_21, %c0_22] : memref<3x3x4x32xf32, #tpu.memory_space<vmem>>, vector<1x1x4x32xf32>
    %19 = vector.shape_cast %18 : vector<1x1x4x32xf32> to vector<4x32xf32>
    %cst_23 = arith.constant dense<0.000000e+00> : vector<64x32xf32>
    %20 = tpu.matmul %17, %19, %cst_23 {dimension_numbers = #tpu.dot_dimension_numbers<[1], [0], [0], [1], [0, 0, 1, 1], [], []>} : vector<64x4xf32>, vector<4x32xf32>, vector<64x32xf32> -> vector<64x32xf32>
    %21 = arith.addf %14, %20 : vector<64x32xf32>
    %c0_24 = arith.constant 0 : index
    %c1_25 = arith.constant 1 : index
    %c0_26 = arith.constant 0 : index
    %c0_27 = arith.constant 0 : index
    %22 = vector.load %arg1[%c0_24, %c1_25, %c0_26, %c0_27] : memref<1x10x10x4xf32, #tpu.memory_space<vmem>>, vector<1x8x8x4xf32>
    %23 = vector.shape_cast %22 : vector<1x8x8x4xf32> to vector<8x8x4xf32>
    %24 = vector.shape_cast %23 : vector<8x8x4xf32> to vector<64x4xf32>
    %c1_28 = arith.constant 1 : index
    %c0_29 = arith.constant 0 : index
    %c0_30 = arith.constant 0 : index
    %c0_31 = arith.constant 0 : index
    %25 = vector.load %arg2[%c1_28, %c0_29, %c0_30, %c0_31] : memref<3x3x4x32xf32, #tpu.memory_space<vmem>>, vector<1x1x4x32xf32>
    %26 = vector.shape_cast %25 : vector<1x1x4x32xf32> to vector<4x32xf32>
    %cst_32 = arith.constant dense<0.000000e+00> : vector<64x32xf32>
    %27 = tpu.matmul %24, %26, %cst_32 {dimension_numbers = #tpu.dot_dimension_numbers<[1], [0], [0], [1], [0, 0, 1, 1], [], []>} : vector<64x4xf32>, vector<4x32xf32>, vector<64x32xf32> -> vector<64x32xf32>
    %28 = arith.addf %21, %27 : vector<64x32xf32>
    %c0_33 = arith.constant 0 : index
    %c1_34 = arith.constant 1 : index
    %c1_35 = arith.constant 1 : index
    %c0_36 = arith.constant 0 : index
    %29 = vector.load %arg1[%c0_33, %c1_34, %c1_35, %c0_36] : memref<1x10x10x4xf32, #tpu.memory_space<vmem>>, vector<1x8x8x4xf32>
    %30 = vector.shape_cast %29 : vector<1x8x8x4xf32> to vector<8x8x4xf32>
    %31 = vector.shape_cast %30 : vector<8x8x4xf32> to vector<64x4xf32>
    %c1_37 = arith.constant 1 : index
    %c1_38 = arith.constant 1 : index
    %c0_39 = arith.constant 0 : index
    %c0_40 = arith.constant 0 : index
    %32 = vector.load %arg2[%c1_37, %c1_38, %c0_39, %c0_40] : memref<3x3x4x32xf32, #tpu.memory_space<vmem>>, vector<1x1x4x32xf32>
    %33 = vector.shape_cast %32 : vector<1x1x4x32xf32> to vector<4x32xf32>
    %cst_41 = arith.constant dense<0.000000e+00> : vector<64x32xf32>
    %34 = tpu.matmul %31, %33, %cst_41 {dimension_numbers = #tpu.dot_dimension_numbers<[1], [0], [0], [1], [0, 0, 1, 1], [], []>} : vector<64x4xf32>, vector<4x32xf32>, vector<64x32xf32> -> vector<64x32xf32>
    %35 = arith.addf %28, %34 : vector<64x32xf32>
    %c0_42 = arith.constant 0 : index
    %c1_43 = arith.constant 1 : index
    %c2_44 = arith.constant 2 : index
    %c0_45 = arith.constant 0 : index
    %36 = vector.load %arg1[%c0_42, %c1_43, %c2_44, %c0_45] : memref<1x10x10x4xf32, #tpu.memory_space<vmem>>, vector<1x8x8x4xf32>
    %37 = vector.shape_cast %36 : vector<1x8x8x4xf32> to vector<8x8x4xf32>
    %38 = vector.shape_cast %37 : vector<8x8x4xf32> to vector<64x4xf32>
    %c1_46 = arith.constant 1 : index
    %c2_47 = arith.constant 2 : index
    %c0_48 = arith.constant 0 : index
    %c0_49 = arith.constant 0 : index
    %39 = vector.load %arg2[%c1_46, %c2_47, %c0_48, %c0_49] : memref<3x3x4x32xf32, #tpu.memory_space<vmem>>, vector<1x1x4x32xf32>
    %40 = vector.shape_cast %39 : vector<1x1x4x32xf32> to vector<4x32xf32>
    %cst_50 = arith.constant dense<0.000000e+00> : vector<64x32xf32>
    %41 = tpu.matmul %38, %40, %cst_50 {dimension_numbers = #tpu.dot_dimension_numbers<[1], [0], [0], [1], [0, 0, 1, 1], [], []>} : vector<64x4xf32>, vector<4x32xf32>, vector<64x32xf32> -> vector<64x32xf32>
    %42 = arith.addf %35, %41 : vector<64x32xf32>
    %c0_51 = arith.constant 0 : index
    %c2_52 = arith.constant 2 : index
    %c0_53 = arith.constant 0 : index
    %c0_54 = arith.constant 0 : index
    %43 = vector.load %arg1[%c0_51, %c2_52, %c0_53, %c0_54] : memref<1x10x10x4xf32, #tpu.memory_space<vmem>>, vector<1x8x8x4xf32>
    %44 = vector.shape_cast %43 : vector<1x8x8x4xf32> to vector<8x8x4xf32>
    %45 = vector.shape_cast %44 : vector<8x8x4xf32> to vector<64x4xf32>
    %c2_55 = arith.constant 2 : index
    %c0_56 = arith.constant 0 : index
    %c0_57 = arith.constant 0 : index
    %c0_58 = arith.constant 0 : index
    %46 = vector.load %arg2[%c2_55, %c0_56, %c0_57, %c0_58] : memref<3x3x4x32xf32, #tpu.memory_space<vmem>>, vector<1x1x4x32xf32>
    %47 = vector.shape_cast %46 : vector<1x1x4x32xf32> to vector<4x32xf32>
    %cst_59 = arith.constant dense<0.000000e+00> : vector<64x32xf32>
    %48 = tpu.matmul %45, %47, %cst_59 {dimension_numbers = #tpu.dot_dimension_numbers<[1], [0], [0], [1], [0, 0, 1, 1], [], []>} : vector<64x4xf32>, vector<4x32xf32>, vector<64x32xf32> -> vector<64x32xf32>
    %49 = arith.addf %42, %48 : vector<64x32xf32>
    %c0_60 = arith.constant 0 : index
    %c2_61 = arith.constant 2 : index
    %c1_62 = arith.constant 1 : index
    %c0_63 = arith.constant 0 : index
    %50 = vector.load %arg1[%c0_60, %c2_61, %c1_62, %c0_63] : memref<1x10x10x4xf32, #tpu.memory_space<vmem>>, vector<1x8x8x4xf32>
    %51 = vector.shape_cast %50 : vector<1x8x8x4xf32> to vector<8x8x4xf32>
    %52 = vector.shape_cast %51 : vector<8x8x4xf32> to vector<64x4xf32>
    %c2_64 = arith.constant 2 : index
    %c1_65 = arith.constant 1 : index
    %c0_66 = arith.constant 0 : index
    %c0_67 = arith.constant 0 : index
    %53 = vector.load %arg2[%c2_64, %c1_65, %c0_66, %c0_67] : memref<3x3x4x32xf32, #tpu.memory_space<vmem>>, vector<1x1x4x32xf32>
    %54 = vector.shape_cast %53 : vector<1x1x4x32xf32> to vector<4x32xf32>
    %cst_68 = arith.constant dense<0.000000e+00> : vector<64x32xf32>
    %55 = tpu.matmul %52, %54, %cst_68 {dimension_numbers = #tpu.dot_dimension_numbers<[1], [0], [0], [1], [0, 0, 1, 1], [], []>} : vector<64x4xf32>, vector<4x32xf32>, vector<64x32xf32> -> vector<64x32xf32>
    %56 = arith.addf %49, %55 : vector<64x32xf32>
    %c0_69 = arith.constant 0 : index
    %c2_70 = arith.constant 2 : index
    %c2_71 = arith.constant 2 : index
    %c0_72 = arith.constant 0 : index
    %57 = vector.load %arg1[%c0_69, %c2_70, %c2_71, %c0_72] : memref<1x10x10x4xf32, #tpu.memory_space<vmem>>, vector<1x8x8x4xf32>
    %58 = vector.shape_cast %57 : vector<1x8x8x4xf32> to vector<8x8x4xf32>
    %59 = vector.shape_cast %58 : vector<8x8x4xf32> to vector<64x4xf32>
    %c2_73 = arith.constant 2 : index
    %c2_74 = arith.constant 2 : index
    %c0_75 = arith.constant 0 : index
    %c0_76 = arith.constant 0 : index
    %60 = vector.load %arg2[%c2_73, %c2_74, %c0_75, %c0_76] : memref<3x3x4x32xf32, #tpu.memory_space<vmem>>, vector<1x1x4x32xf32>
    %61 = vector.shape_cast %60 : vector<1x1x4x32xf32> to vector<4x32xf32>
    %cst_77 = arith.constant dense<0.000000e+00> : vector<64x32xf32>
    %62 = tpu.matmul %59, %61, %cst_77 {dimension_numbers = #tpu.dot_dimension_numbers<[1], [0], [0], [1], [0, 0, 1, 1], [], []>} : vector<64x4xf32>, vector<4x32xf32>, vector<64x32xf32> -> vector<64x32xf32>
    %63 = arith.addf %56, %62 : vector<64x32xf32>
    %c0_78 = arith.constant 0 : index
    %c0_79 = arith.constant 0 : index
    %64 = vector.load %arg3[%c0_78, %c0_79] : memref<1x32xf32, #tpu.memory_space<vmem>>, vector<1x32xf32>
    %65 = vector.broadcast %64 : vector<1x32xf32> to vector<64x32xf32>
    %66 = arith.addf %63, %65 : vector<64x32xf32>
    %cst_80 = arith.constant 0.000000e+00 : f32
    %67 = vector.broadcast %cst_80 : f32 to vector<64x32xf32>
    %68 = arith.maximumf %66, %67 : vector<64x32xf32>
    %69 = vector.shape_cast %68 : vector<64x32xf32> to vector<1x8x8x32xf32>
    %c0_81 = arith.constant 0 : index
    %c0_82 = arith.constant 0 : index
    %c0_83 = arith.constant 0 : index
    %c0_84 = arith.constant 0 : index
    %70 = vector.load %arg4[%c0_81, %c0_82, %c0_83, %c0_84] : memref<1x8x8x32xf32, #tpu.memory_space<vmem>>, vector<1x8x8x32xf32>
    tpu.vector_store %arg4[%c0_81, %c0_82, %c0_83, %c0_84], %69 {strides = array<i32>} : memref<1x8x8x32xf32, #tpu.memory_space<vmem>>, vector<1x8x8x32xf32>,
    return
  }
  func.func @transform_0(%arg0: i32) -> (i32, i32, i32, i32) {
    %c0_i32 = arith.constant 0 : i32
    %c0_i32_0 = arith.constant 0 : i32
    %c0_i32_1 = arith.constant 0 : i32
    %c0_i32_2 = arith.constant 0 : i32
    return %arg0, %c0_i32, %c0_i32_0, %c0_i32_1 : i32, i32, i32, i32
  }
  func.func @transform_1(%arg0: i32) -> (i32, i32, i32, i32) {
    %c0_i32 = arith.constant 0 : i32
    %c0_i32_0 = arith.constant 0 : i32
    %c0_i32_1 = arith.constant 0 : i32
    %c0_i32_2 = arith.constant 0 : i32
    %c0_i32_3 = arith.constant 0 : i32
    return %c0_i32, %c0_i32_0, %c0_i32_1, %c0_i32_2 : i32, i32, i32, i32
  }
  func.func @transform_2(%arg0: i32) -> (i32, i32) {
    %c0_i32 = arith.constant 0 : i32
    %c0_i32_0 = arith.constant 0 : i32
    %c0_i32_1 = arith.constant 0 : i32
    return %c0_i32, %c0_i32_0 : i32, i32
  }
  func.func @transform_3(%arg0: i32) -> (i32, i32, i32, i32) {
    %c0_i32 = arith.constant 0 : i32
    %c0_i32_0 = arith.constant 0 : i32
    %c0_i32_1 = arith.constant 0 : i32
    %c0_i32_2 = arith.constant 0 : i32
    return %arg0, %c0_i32, %c0_i32_0, %c0_i32_1 : i32, i32, i32, i32
  }
}

</mosaic_0001>

<bundles_post_ra>
// kernel: tpu_custom_call.1
= control target key start
LH: loop header
LB: loop body
LE: loop exit
PB: predicated region body
PF: predicated region fallthrough
CT: control target
= control target key end

     0   :  { %s6891_s0 = inlined_call_operand.vmem [shape: f32[2,8,8,32], index: 0, kind: input, shape index: {}]   ;;  %s6892_s1 = inlined_call_operand.vmem [shape: f32[288,32], index: 1, kind: input, shape index: {}]   ;;  %s6893_s2 = inlined_call_operand.vmem [shape: f32[1,32], index: 2, kind: input, shape index: {}]   ;;  %s6894_s3 = inlined_call_operand.vmem [shape: f32[2,2,288,32], index: 3, kind: input, shape index: {}]   ;;  %s6895_s4 = inlined_call_operand.vmem [shape: f32[2,2,1,32], index: 4, kind: input, shape index: {}]   ;;  %s6896_s5 = inlined_call_operand.vmem [shape: f32[32,8], index: 5, kind: input, shape index: {}]   ;;  %s6897_s6 = inlined_call_operand.vmem [shape: f32[1,8], index: 6, kind: input, shape index: {}]   ;;  %s6898_s7 = inlined_call_operand.vmem [shape: f32[32,1], index: 7, kind: input, shape index: {}]   ;;  %s6899_s8 = inlined_call_operand.<no memory space> [shape: f32[1,1], index: 8, kind: input, shape index: {}]   ;;  %s6900_s9 = inlined_call_operand.hbm [shape: f32[2,1,8], index: 9, kind: output, shape index: {0}]   ;;  %s6901_s10 = inlined_call_operand.vmem [shape: f32[2,1,1], index: 10, kind: output, shape index: {1}]  }
   0x1   :  { %6908 = sst [smem:[#allocation8_spill]] %s6891_s0  ;;  %v16_v0 = vstv %s6899_s8 }
   0x2   :  { %17 = vst [vmem:[#allocation3] sm:$0x1] %v16_v0 }
   0x3   :  { %18 = vsyncpa [#allocation5], 0 }
   0x4   :  { %20 = vsyncpa [#allocation5 + $0x1], 0  ;;  %s5150_s15 = smov 0   ;;  %s5152_s16 = smov 0  }
   0x5   :  { %s5154_s17 = smov 0   ;;  %s5156_s18 = smov 0  }
   0x6 LB: > { %s5171_s8 = sadd.s32 4294967295, %s5084_s18   ;;  %s3734_s19 = sadd.s32 4294967294, %s5084_s18   ;;  %s5084_s18 = sphi %s5156_s18, %s6920_s18   ;;  %s5080_s17 = sphi %s5154_s17, %s6919_s17   ;;  %s5076_s16 = sphi %s5152_s16, %s6918_s16   ;;  %s5072_s15 = sphi %s5150_s15, %s6917_s15  }
   0x7   : > { %s5175_s20 = sadd.s32 1, %s5084_s18   ;;  %s227_s21 = sadd.s32 1, %s5080_s17 }
   0x8   : > { %s224_s22 = ssub.s32 %s5084_s18, %s5175_s20  ;;  %p237_p0 = scmp.ne.s32.totalorder %s5080_s17, %s5076_s16 }
   0x9   : > { %p225_p1 = scmp.eq.s32.totalorder %s224_s22, 0  ;;  %p238_p2 = scmp.eq.s32.totalorder %s5171_s8, 1 }
   0xa   : > { %p243_p3 = scmp.ne.s32.totalorder %s5076_s16, %s5072_s15  ;;  %p244_p4 = scmp.eq.s32.totalorder %s3734_s19, 1 }
   0xb   : > { %s5186_s23 = scalar_select %p225_p1, %s5080_s17, %s227_s21  }
   0xc   : > { %p5188_p5 = por %p238_p2, %p237_p0  ;;  %p5192_p6 = por %p244_p4, %p243_p3 }
   0xd   : > { %6909 = sst [smem:[#allocation7_spill]] %s5186_s23  ;;  %p3737_p7 = scmp.ge.s32.totalorder %s5084_s18, 1 }
   0xe   : > { %p320_p8 = scmp.lt.s32.totalorder %s5084_s18, 3 }
  0x10   : > { %p321_p9 = pnand %p3737_p7, %p320_p8 }
  0x11   : > { %p360_p10 = scmp.lt.s32.totalorder (!%p321_p9), %s5171_s8, 1  ;;  %s6912_s0 = sld [smem:[#allocation8_spill]] (!%p321_p9) }
  0x12   : > { %324 = sbr.rel (%p321_p9) target bundleno = 2319 (0x90f), region = 56  ;;  %s6906_s30 = smov (!%p321_p9), 32  }
  0x13   : > { %s6904_s11 = smov (!%p321_p9), 96   ;;  %s6902_s23 = smov (!%p321_p9), 64  }
  0x14   : > { %s6913_s22 = smov (!%p321_p9), 64   ;;  %s6914_s13 = smov (!%p321_p9), 96  }
  0x15   : > { %s6915_s26 = smov (!%p321_p9), 32   ;;  %s3898_s29 = sshll.u32 (!%p321_p9), %s5171_s8, 4 }
  0x17   : > { %vm368_vm0 = vcmask 261120   ;;  %vm370_vm1 = vcmask 254976   ;;  %v438_v1 = vld [vmem:[%s6892_s1 + $0xf8] sm:$0xff]  ;;  %v5086_v2 = vmov 0.0   ;;  %v437_v4 = vld [vmem:[%s6892_s1 + $0xf0] sm:$0xff]  ;;  %s5254_s14 = scalar_select %p360_p10, %s5171_s8, 1 }
  0x18   : > { %369 = vst.msk [vmem:[#allocation2] sm:$0xff] %vm368_vm0, %v5086_v2  ;;  %372 = vst.msk [vmem:[#allocation2 + $0x10] sm:$0xff] %vm368_vm0, %v5086_v2  ;;  %3902 = vmatprep.subr.mxu0 %v438_v1  ;;  %v422_v3 = vld [vmem:[%s6892_s1 + $0x78] sm:$0xff]  ;;  %v421_v5 = vld [vmem:[%s6892_s1 + $0x70] sm:$0xff]  ;;  %vm717_vm2 = vcmask 523264   ;;  %vm726_vm3 = vcmask 785408  }
  0x19   : > { %371 = vst.msk [vmem:[#allocation2 + $0x8] sm:$0x3] %vm370_vm1, %v5086_v2  ;;  %373 = vst.msk [vmem:[#allocation2 + $0x18] sm:$0x3] %vm370_vm1, %v5086_v2  ;;  %3903 = vmatpush3.msra.mxu0 %v422_v3  ;;  %v436_v6 = vld [vmem:[%s6892_s1 + $0xe8] sm:$0xff]  ;;  %s3901_s27 = sshll.u32 %s5254_s14, 6  ;;  %s367_s28 = scalar_lea.vmem %s6901_s10, %s5254_s14 }
  0x1a   : > { %375 = vst.msk [vmem:[#allocation2 + $0x28] sm:$0x3] %vm370_vm1, %v5086_v2  ;;  %377 = vst.msk [vmem:[#allocation2 + $0x38] sm:$0x3] %vm370_vm1, %v5086_v2  ;;  %3904 = vmatprep.subr.mxu0 %v437_v4  ;;  %v420_v7 = vld [vmem:[%s6892_s1 + $0x68] sm:$0xff]  ;;  %v435_v8 = vld [vmem:[%s6892_s1 + $0xe0] sm:$0xff]  ;;  %s364_s12 = scalar_lea.vmem %s6912_s0, %s3901_s27 }
  0x1b   : > { %379 = vst.msk [vmem:[#allocation2 + $0x48] sm:$0x3] %vm370_vm1, %v5086_v2  ;;  %381 = vst.msk [vmem:[#allocation2 + $0x58] sm:$0x3] %vm370_vm1, %v5086_v2  ;;  %3905 = vmatpush3.msra.mxu0 %v421_v5  ;;  %v419_v9 = vld [vmem:[%s6892_s1 + $0x60] sm:$0xff]  ;;  %v434_v10 = vld [vmem:[%s6892_s1 + $0xd8] sm:$0xff] }
  0x1c   : > { %383 = vst.msk [vmem:[#allocation2 + $0x68] sm:$0x3] %vm370_vm1, %v5086_v2  ;;  %385 = vst.msk [vmem:[#allocation2 + $0x78] sm:$0x3] %vm370_vm1, %v5086_v2  ;;  %3906 = vmatprep.subr.mxu0 %v436_v6  ;;  %v418_v11 = vld [vmem:[%s6892_s1 + $0x58] sm:$0xff]  ;;  %v390_v12 = vld [vmem:[%s364_s12] sm:$0xff] }
  0x1d   : > { %374 = vst.msk [vmem:[#allocation2 + $0x20] sm:$0xff] %vm368_vm0, %v5086_v2  ;;  %376 = vst.msk [vmem:[#allocation2 + $0x30] sm:$0xff] %vm368_vm0, %v5086_v2  ;;  %v391_v13 = vld [vmem:[%s364_s12 + $0x8] sm:$0xff]  ;;  %v392_v14 = vld [vmem:[%s364_s12 + $0x10] sm:$0xff]  ;;  %3907 = vmatpush3.msra.mxu0 %v420_v7  ;;  %vm5090_vm4 = vmmov 0   ;;  %vm3550_vm5 = vcmask 57344  }
  0x1e   : > { %378 = vst.msk [vmem:[#allocation2 + $0x40] sm:$0xff] %vm368_vm0, %v5086_v2  ;;  %380 = vst.msk [vmem:[#allocation2 + $0x50] sm:$0xff] %vm368_vm0, %v5086_v2  ;;  %v393_v15 = vld [vmem:[%s364_s12 + $0x18] sm:$0xff]  ;;  %v394_v16 = vld [vmem:[%s364_s12 + $0x20] sm:$0xff]  ;;  %3908 = vmatprep.subr.mxu0 %v435_v8  ;;  %vm3639_vm6 = vcmask 0   ;;  %s5091_s0 = smov [#allocation4]  }
  0x1f   : > { %382 = vst.msk [vmem:[#allocation2 + $0x60] sm:$0xff] %vm368_vm0, %v5086_v2  ;;  %384 = vst.msk [vmem:[#allocation2 + $0x70] sm:$0xff] %vm368_vm0, %v5086_v2  ;;  %v395_v17 = vld [vmem:[%s364_s12 + $0x28] sm:$0xff]  ;;  %v396_v18 = vld [vmem:[%s364_s12 + $0x30] sm:$0xff]  ;;  %3909 = vmatpush3.msra.mxu0 %v419_v9 }
  0x20   : > { %386 = vst.msk [vmem:[#allocation2 + $0x80] sm:$0xff] %vm368_vm0, %v5086_v2  ;;  %388 = vst.msk [vmem:[#allocation2 + $0x90] sm:$0xff] %vm368_vm0, %v5086_v2  ;;  %v433_v19 = vld [vmem:[%s6892_s1 + $0xd0] sm:$0xff]  ;;  %v397_v20 = vld [vmem:[%s364_s12 + $0x38] sm:$0xff]  ;;  %3910 = vmatprep.subr.mxu0 %v434_v10 }
  0x21   : > { %387 = vst.msk [vmem:[#allocation2 + $0x88] sm:$0x3] %vm370_vm1, %v5086_v2  ;;  %389 = vst.msk [vmem:[#allocation2 + $0x98] sm:$0x3] %vm370_vm1, %v5086_v2  ;;  %v417_v21 = vld [vmem:[%s6892_s1 + $0x50] sm:$0xff]  ;;  %3911 = vmatpush3.msra.mxu0 %v418_v11  ;;  %v432_v22 = vld [vmem:[%s6892_s1 + $0xc8] sm:$0xff] }
  0x22   : > { %399 = vst.msk [vmem:[#allocation2 + $0x11] sm:$0xff] %vm368_vm0, %v390_v12  ;;  %400 = vst.msk [vmem:[#allocation2 + $0x21] sm:$0xff] %vm368_vm0, %v391_v13  ;;  %3912 = vmatprep.subr.mxu0 %v433_v19  ;;  %v416_v23 = vld [vmem:[%s6892_s1 + $0x48] sm:$0xff]  ;;  %v431_v25 = vld [vmem:[%s6892_s1 + $0xc0] sm:$0xff] }
  0x23   : > { %401 = vst.msk [vmem:[#allocation2 + $0x31] sm:$0xff] %vm368_vm0, %v392_v14  ;;  %402 = vst.msk [vmem:[#allocation2 + $0x41] sm:$0xff] %vm368_vm0, %v393_v15  ;;  %v5298_v24 = vld [vmem:[#allocation2 + $0x1] sm:$0xff]  ;;  %3913 = vmatpush3.msra.mxu0 %v417_v21  ;;  %v430_v28 = vld [vmem:[%s6892_s1 + $0xb8] sm:$0xff] }
  0x24   : > { %403 = vst.msk [vmem:[#allocation2 + $0x51] sm:$0xff] %vm368_vm0, %v394_v16  ;;  %404 = vst.msk [vmem:[#allocation2 + $0x61] sm:$0xff] %vm368_vm0, %v395_v17  ;;  %v5303_v26 = vld [vmem:[#allocation2 + $0x2] sm:$0xff]  ;;  %3914 = vmatprep.subr.mxu0 %v432_v22  ;;  %v414_v37 = vld [vmem:[%s6892_s1 + $0x38] sm:$0xff] }
  0x25   : > { %405 = vst.msk [vmem:[#allocation2 + $0x71] sm:$0xff] %vm368_vm0, %v396_v18  ;;  %406 = vst.msk [vmem:[#allocation2 + $0x81] sm:$0xff] %vm368_vm0, %v397_v20  ;;  %v415_v27 = vld [vmem:[%s6892_s1 + $0x40] sm:$0xff]  ;;  %3915 = vmatpush3.msra.mxu0 %v416_v23  ;;  %v429_v40 = vld [vmem:[%s6892_s1 + $0xb0] sm:$0xff] }
  0x26   : > { %3916 = vmatprep.subr.mxu0 %v431_v25  ;;  %v413_v43 = vld [vmem:[%s6892_s1 + $0x30] sm:$0xff]  ;;  %v428_v44 = vld [vmem:[%s6892_s1 + $0xa8] sm:$0xff]  ;;  %v442_v50 = vld [vmem:[%s6892_s1 + $0x118] sm:$0xff] }
  0x27   : > { %3917 = vmatpush3.msra.mxu0 %v415_v27  ;;  %v412_v47 = vld [vmem:[%s6892_s1 + $0x28] sm:$0xff]  ;;  %v427_v51 = vld [vmem:[%s6892_s1 + $0xa0] sm:$0xff]  ;;  %4252 = vmatprep.subr.mxu1 %v442_v50  ;;  %v441_v52 = vld [vmem:[%s6892_s1 + $0x110] sm:$0xff] }
  0x28   : > { %3918 = vmatprep.subr.mxu0 %v430_v28  ;;  %v411_v53 = vld [vmem:[%s6892_s1 + $0x20] sm:$0xff]  ;;  %4253 = vmatpush3.msra.mxu1 %v442_v50  ;;  %v426_v56 = vld [vmem:[%s6892_s1 + $0x98] sm:$0xff]  ;;  %v440_v57 = vld [vmem:[%s6892_s1 + $0x108] sm:$0xff] }
  0x29   : > { %v484_v29 = vld [vmem:[#allocation2 + $0x12] sm:$0xff]  ;;  %v5313_v31 = vld [vmem:[#allocation2 + $0x21] sm:$0xff]  ;;  %3919 = vmatpush3.msra.mxu0 %v414_v37  ;;  %4254 = vmatprep.subr.mxu1 %v441_v52 }
  0x2a   : > { %v5311_v30 = vld [vmem:[#allocation2 + $0x10] sm:$0xff]  ;;  %v4418_v32 = vpack.i.bf16 %v5298_v24, %v484_v29  ;;  %v5318_v34 = vld [vmem:[#allocation2 + $0x20] sm:$0xff]  ;;  %3920 = vmatprep.subr.mxu0 %v429_v40  ;;  %v410_v60 = vld [vmem:[%s6892_s1 + $0x18] sm:$0xff]  ;;  %4255 = vmatpush3.msra.mxu1 %v441_v52 }
  0x2b   : > { %v4428_v33 = vpack.i.bf16 %v5311_v30, %v5313_v31  ;;  %v5320_v35 = vld [vmem:[#allocation2 + $0x11] sm:$0xff]  ;;  %v485_v36 = vld [vmem:[#allocation2 + $0x22] sm:$0xff]  ;;  %v4423_v38 = vpack.i.bf16 %v5303_v26, %v5318_v34  ;;  %3921 = vmatpush3.msra.mxu0 %v413_v43  ;;  %4256 = vmatprep.subr.mxu1 %v440_v57 }
  0x2c   : > { %4260 = vmatprep.mubr.msk.f32.mxu1 %vm368_vm0, %v485_v36  ;;  %4419 = vrot.lane.b32.xlu0 %v4418_v32, %s6906_s30  ;;  %v4433_v39 = vpack.i.bf16 %v5320_v35, %v485_v36  ;;  %v5334_v41 = vld [vmem:[#allocation2 + $0x30] sm:$0xff]  ;;  %v5352_v49 = vld [vmem:[#allocation2 + $0x40] sm:$0xff]  ;;  %v424_v5 = vld [vmem:[%s6892_s1 + $0x88] sm:$0xff] }
  0x2d   : > { %4429 = vrot.lane.b32.xlu1 %v4428_v33, %s6904_s11  ;;  %v5336_v42 = vld [vmem:[#allocation2 + $0x31] sm:$0xff]  ;;  %v4438_v45 = vpack.i.bf16 %v484_v29, %v5334_v41  ;;  %3922 = vmatprep.subr.mxu0 %v428_v44  ;;  %v4453_v55 = vpack.i.bf16 %v485_v36, %v5352_v49  ;;  %v5376_v58 = vld [vmem:[#allocation2 + $0x41] sm:$0xff] }
  0x2e   : > { %v4443_v46 = vpack.i.bf16 %v5318_v34, %v5336_v42  ;;  %v486_v48 = vld [vmem:[#allocation2 + $0x32] sm:$0xff]  ;;  %3923 = vmatpush3.msra.mxu0 %v412_v47  ;;  %v487_v59 = vld [vmem:[#allocation2 + $0x42] sm:$0xff]  ;;  %v4458_v63 = vpack.i.bf16 %v5334_v41, %v5376_v58  ;;  %4257 = vmatpush3.msra.mxu1 %v440_v57 }
  0x2f   : > { %v4448_v54 = vpack.i.bf16 %v5313_v31, %v486_v48  ;;  %3924 = vmatprep.subr.mxu0 %v427_v51  ;;  %v425_v61 = vld [vmem:[%s6892_s1 + $0x90] sm:$0xff]  ;;  %v439_v62 = vld [vmem:[%s6892_s1 + $0x100] sm:$0xff]  ;;  %v4463_v0 = vpack.i.bf16 %v5336_v42, %v487_v59  ;;  %v408_v6 = vld [vmem:[%s6892_s1 + $0x8] sm:$0xff] }
  0x30   : > { %4424 = vrot.lane.b32.xlu0 %v4423_v38, %s6902_s23  ;;  %3925 = vmatpush3.msra.mxu0 %v411_v53  ;;  %v409_v1 = vld [vmem:[%s6892_s1 + $0x10] sm:$0xff]  ;;  %v423_v9 = vld [vmem:[%s6892_s1 + $0x80] sm:$0xff] }
  0x31   : > { %4434 = vrot.lane.b32.xlu1 %v4433_v39, %s6906_s30  ;;  %3926 = vmatprep.subr.mxu0 %v426_v56  ;;  %v5395_v3 = vld [vmem:[#allocation2 + $0x50] sm:$0xff]  ;;  %v5413_v11 = vld [vmem:[#allocation2 + $0x60] sm:$0xff] }
  0x32   : > { %v5397_v4 = vld [vmem:[#allocation2 + $0x51] sm:$0xff]  ;;  %3927 = vmatpush3.msra.mxu0 %v410_v60  ;;  %4258 = vmatprep.subr.mxu1 %v439_v62  ;;  %v4468_v7 = vpack.i.bf16 %v486_v48, %v5395_v3  ;;  %v407_v12 = vld [vmem:[%s6892_s1] sm:$0xff]  ;;  %v4483_v14 = vpack.i.bf16 %v487_v59, %v5413_v11 }
  0x33   : > { %3928 = vmatprep.subr.mxu0 %v425_v61  ;;  %4259 = vmatpush3.msra.mxu1 %v439_v62  ;;  %v4473_v8 = vpack.i.bf16 %v5352_v49, %v5397_v4  ;;  %v488_v10 = vld [vmem:[#allocation2 + $0x52] sm:$0xff]  ;;  %v5424_v15 = vld [vmem:[#allocation2 + $0x61] sm:$0xff] }
  0x34   : > { %4439 = vrot.lane.b32.xlu0 %v4438_v45, %s6902_s23  ;;  %3929 = vmatpush3.msra.mxu0 %v409_v1  ;;  %v4478_v13 = vpack.i.bf16 %v5376_v58, %v488_v10  ;;  %v489_v16 = vld [vmem:[#allocation2 + $0x62] sm:$0xff]  ;;  %v4488_v17 = vpack.i.bf16 %v5395_v3, %v5424_v15  ;;  %v490_v19 = vld [vmem:[#allocation2 + $0x72] sm:$0xff] }
  0x35   : > { %4444 = vrot.lane.b32.xlu1 %v4443_v46, %s6904_s11  ;;  %3930 = vmatprep.subr.mxu0 %v424_v5  ;;  %v4493_v18 = vpack.i.bf16 %v5397_v4, %v489_v16  ;;  %v5433_v20 = vld [vmem:[#allocation2 + $0x70] sm:$0xff]  ;;  %v491_v22 = vld [vmem:[#allocation2 + $0x82] sm:$0xff]  ;;  %v4508_v29 = vpack.i.bf16 %v5424_v15, %v490_v19 }
  0x36   : > { %4261 = vmatmul.mubr.msk.f32.vlgmr.msra.gmra.mxu1 %vm368_vm0, %v486_v48  ;;  %3931 = vmatpush3.msra.mxu0 %v408_v6  ;;  %v5435_v21 = vld [vmem:[#allocation2 + $0x71] sm:$0xff]  ;;  %v4498_v23 = vpack.i.bf16 %v488_v10, %v5433_v20  ;;  %v499_v27 = vld [vmem:[#allocation2 + $0x80] sm:$0xff] }
  0x37   : > { %4263 = vmatprep.mubr.msk.f32.mxu1 %vm368_vm0, %v487_v59  ;;  %3932 = vmatprep.subr.mxu0 %v423_v9  ;;  %v4503_v25 = vpack.i.bf16 %v5413_v11, %v5435_v21  ;;  %v5444_v28 = vld [vmem:[#allocation2 + $0x92] sm:$0xff]  ;;  %v4513_v32 = vpack.i.bf16 %v489_v16, %v499_v27  ;;  %v5449_v33 = vld [vmem:[#allocation2 + $0x81] sm:$0xff]  ;;  %v4523_v37 = vpack.i.bf16 %v5435_v21, %v491_v22 }
  0x38   : > { %4449 = vrot.lane.b32.xlu0 %v4448_v54, %s6906_s30  ;;  %3933 = vmatpush3.msra.mxu0 %v407_v12  ;;  %v4518_v36 = vpack.i.bf16 %v5433_v20, %v5449_v33  ;;  %v5458_v38 = vld [vmem:[#allocation2 + $0x90] sm:$0xff]  ;;  %v5468_v48 = vld [vmem:[#allocation2] sm:$0xff] }
  0x39   : > { %4454 = vrot.lane.b32.xlu1 %v4453_v55, %s6902_s23  ;;  %v5460_v39 = vld [vmem:[#allocation2 + $0x91] sm:$0xff]  ;;  %v4528_v40 = vpack.i.bf16 %v490_v19, %v5458_v38 }
  0x3a   : > { %4264 = vmatmul.mubr.msk.f32.gmra.mxu1 %vm368_vm0, %v488_v10  ;;  %v4533_v43 = vpack.i.bf16 %v499_v27, %v5460_v39 }
  0x3b   : > { %4266 = vmatprep.mubr.msk.f32.mxu1 %vm368_vm0, %v489_v16 }
  0x3c   : > { %4459 = vrot.lane.b32.xlu0 %v4458_v63, %s6904_s11 }
  0x3d   : > { %4464 = vrot.lane.b32.xlu1 %v4463_v0, %s6906_s30 }
  0x3e   : > { %4267 = vmatmul.mubr.msk.f32.gmra.mxu1 %vm368_vm0, %v490_v19 }
  0x3f   : > { %4269 = vmatprep.mubr.msk.f32.mxu1 %vm368_vm0, %v491_v22 }
  0x40   : > { %4469 = vrot.lane.b32.xlu0 %v4468_v7, %s6902_s23 }
  0x41   : > { %4474 = vrot.lane.b32.xlu1 %v4473_v8, %s6904_s11 }
  0x42   : > { %4270 = vmatmul.mubr.msk.f32.gmra.mxu1 %vm368_vm0, %v5444_v28 }
  0x44   : > { %4479 = vrot.lane.b32.xlu0 %v4478_v13, %s6906_s30 }
  0x45   : > { %4484 = vrot.lane.b32.xlu1 %v4483_v14, %s6902_s23 }
  0x48   : > { %4489 = vrot.lane.b32.xlu0 %v4488_v17, %s6904_s11 }
  0x49   : > { %4494 = vrot.lane.b32.xlu1 %v4493_v18, %s6906_s30 }
  0x4c   : > { %4499 = vrot.lane.b32.xlu0 %v4498_v23, %s6902_s23 }
  0x4d   : > { %4504 = vrot.lane.b32.xlu1 %v4503_v25, %s6904_s11 }
  0x50   : > { %4509 = vrot.lane.b32.xlu0 %v4508_v29, %s6906_s30 }
  0x51   : > { %4514 = vrot.lane.b32.xlu1 %v4513_v32, %s6902_s23 }
  0x54   : > { %4519 = vrot.lane.b32.xlu0 %v4518_v36, %s6904_s11 }
  0x55   : > { %4524 = vrot.lane.b32.xlu1 %v4523_v37, %s6906_s30 }
  0x58   : > { %4529 = vrot.lane.b32.xlu0 %v4528_v40, %s6902_s23 }
  0x59   : > { %4534 = vrot.lane.b32.xlu1 %v4533_v43, %s6904_s11 }
  0x9e   : > { %v4420_v44 = vpop.permute.xlu0 %4419 }
  0x9f   : > { %v4430_v45 = vpop.permute.xlu1 %4429  ;;  %v4422_v46 = vunpack.i.h.bf16 %v4420_v44  ;;  %v4421_v47 = vunpack.i.l.bf16 %v4420_v44 }
  0xa0   : > { %v4432_v52 = vunpack.i.h.bf16 %v4430_v45  ;;  %v4431_v53 = vunpack.i.l.bf16 %v4430_v45 }
  0xa1   : > { %v735_v59 = vsel %vm368_vm0, %v5320_v35, %v4421_v47  ;;  %v709_v60 = vsel %vm368_vm0, %v5468_v48, %v4422_v46 }
  0xa2   : > { %v4425_v50 = vpop.permute.xlu0 %4424 }
  0xa3   : > { %v4435_v51 = vpop.permute.xlu1 %4434  ;;  %v4427_v54 = vunpack.i.h.bf16 %v4425_v50  ;;  %v4426_v55 = vunpack.i.l.bf16 %v4425_v50 }
  0xa4   : > { %v4437_v56 = vunpack.i.h.bf16 %v4435_v51  ;;  %v4436_v57 = vunpack.i.l.bf16 %v4435_v51 }
  0xa5   : > { %v743_v61 = vsel %vm717_vm2, %v735_v59, %v4426_v55  ;;  %v718_v62 = vsel %vm717_vm2, %v709_v60, %v4427_v54 }
  0xa6   : > { %v4440_v63 = vpop.permute.xlu0 %4439  ;;  %v751_v0 = vsel %vm726_vm3, %v743_v61, %v4431_v53  ;;  %v727_v5 = vsel %vm726_vm3, %v718_v62, %v4432_v52  ;;  %v736_v35 = vsel %vm368_vm0, %v5313_v31, %v4436_v57  ;;  %v710_v10 = vsel %vm368_vm0, %v5311_v30, %v4437_v56 }
  0xa7   : > { %v4445_v1 = vpop.permute.xlu1 %4444  ;;  %v4442_v6 = vunpack.i.h.bf16 %v4440_v63  ;;  %v4441_v7 = vunpack.i.l.bf16 %v4440_v63  ;;  %853 = vmatprep.mubr.f32.mxu0 %v751_v0 }
  0xa8   : > { %v4447_v8 = vunpack.i.h.bf16 %v4445_v1  ;;  %v4446_v9 = vunpack.i.l.bf16 %v4445_v1  ;;  %854 = vmatmul.mubr.f32.vlgmr.msra.gmra.mxu0 %v727_v5 }
  0xa9   : > { %v744_v12 = vsel %vm717_vm2, %v736_v35, %v4441_v7  ;;  %v719_v13 = vsel %vm717_vm2, %v710_v10, %v4442_v6 }
  0xaa   : > { %v4450_v14 = vpop.permute.xlu0 %4449  ;;  %v752_v17 = vsel %vm726_vm3, %v744_v12, %v4446_v9  ;;  %v728_v18 = vsel %vm726_vm3, %v719_v13, %v4447_v8 }
  0xab   : > { %v4455_v16 = vpop.permute.xlu1 %4454  ;;  %v4452_v19 = vunpack.i.h.bf16 %v4450_v14  ;;  %v4451_v22 = vunpack.i.l.bf16 %v4450_v14  ;;  %858 = vmatprep.mubr.f32.mxu0 %v752_v17 }
  0xac   : > { %v4457_v23 = vunpack.i.h.bf16 %v4455_v16  ;;  %v4456_v25 = vunpack.i.l.bf16 %v4455_v16  ;;  %859 = vmatmul.mubr.f32.gmra.mxu0 %v728_v18 }
  0xad   : > { %v737_v31 = vsel %vm368_vm0, %v5336_v42, %v4451_v22  ;;  %v711_v30 = vsel %vm368_vm0, %v5318_v34, %v4452_v19 }
  0xae   : > { %v4460_v27 = vpop.permute.xlu0 %4459  ;;  %v745_v43 = vsel %vm717_vm2, %v737_v31, %v4456_v25  ;;  %v720_v44 = vsel %vm717_vm2, %v711_v30, %v4457_v23 }
  0xaf   : > { %v4465_v29 = vpop.permute.xlu1 %4464  ;;  %v4462_v32 = vunpack.i.h.bf16 %v4460_v27  ;;  %v4461_v36 = vunpack.i.l.bf16 %v4460_v27 }
  0xb0   : > { %v4467_v37 = vunpack.i.h.bf16 %v4465_v29  ;;  %v4466_v40 = vunpack.i.l.bf16 %v4465_v29 }
  0xb1   : > { %v753_v45 = vsel %vm726_vm3, %v745_v43, %v4461_v36  ;;  %v729_v46 = vsel %vm726_vm3, %v720_v44, %v4462_v32 }
  0xb2   : > { %v4470_v47 = vpop.permute.xlu0 %4469  ;;  %863 = vmatprep.mubr.f32.mxu0 %v753_v45  ;;  %v738_v53 = vsel %vm368_vm0, %v5376_v58, %v4466_v40  ;;  %v712_v54 = vsel %vm368_vm0, %v5334_v41, %v4467_v37 }
  0xb3   : > { %v4475_v42 = vpop.permute.xlu1 %4474  ;;  %v4472_v50 = vunpack.i.h.bf16 %v4470_v47  ;;  %v4471_v51 = vunpack.i.l.bf16 %v4470_v47  ;;  %864 = vmatmul.mubr.f32.gmra.mxu0 %v729_v46 }
  0xb4   : > { %v4477_v34 = vunpack.i.h.bf16 %v4475_v42  ;;  %v4476_v52 = vunpack.i.l.bf16 %v4475_v42 }
  0xb5   : > { %v746_v55 = vsel %vm717_vm2, %v738_v53, %v4471_v51  ;;  %v721_v56 = vsel %vm717_vm2, %v712_v54, %v4472_v50 }
  0xb6   : > { %v4480_v57 = vpop.permute.xlu0 %4479  ;;  %v754_v60 = vsel %vm726_vm3, %v746_v55, %v4476_v52  ;;  %v730_v61 = vsel %vm726_vm3, %v721_v56, %v4477_v34 }
  0xb7   : > { %v4485_v59 = vpop.permute.xlu1 %4484  ;;  %v4482_v62 = vunpack.i.h.bf16 %v4480_v57  ;;  %v4481_v63 = vunpack.i.l.bf16 %v4480_v57  ;;  %868 = vmatprep.mubr.f32.mxu0 %v754_v60 }
  0xb8   : > { %v4487_v0 = vunpack.i.h.bf16 %v4485_v59  ;;  %v4486_v1 = vunpack.i.l.bf16 %v4485_v59  ;;  %869 = vmatmul.mubr.f32.gmra.mxu0 %v730_v61 }
  0xb9   : > { %v739_v58 = vsel %vm368_vm0, %v5397_v4, %v4481_v63  ;;  %v713_v41 = vsel %vm368_vm0, %v5352_v49, %v4482_v62 }
  0xba   : > { %v4490_v5 = vpop.permute.xlu0 %4489  ;;  %v747_v10 = vsel %vm717_vm2, %v739_v58, %v4486_v1  ;;  %v722_v12 = vsel %vm717_vm2, %v713_v41, %v4487_v0  ;;  %v1050_v1 = vld [vmem:[%s6894_s3 + $0x118] sm:$0xff]  ;;  %v1047_v58 = vld [vmem:[%s6894_s3 + $0x100] sm:$0xff] }
  0xbb   : > { %v4495_v6 = vpop.permute.xlu1 %4494  ;;  %v4492_v7 = vunpack.i.h.bf16 %v4490_v5  ;;  %v4491_v8 = vunpack.i.l.bf16 %v4490_v5  ;;  %4272 = vmatprep.subr.mxu0 %v1050_v1  ;;  %v1046_v41 = vld [vmem:[%s6894_s3 + $0xf8] sm:$0xff] }
  0xbc   : > { %v4497_v9 = vunpack.i.h.bf16 %v4495_v6  ;;  %v4496_v35 = vunpack.i.l.bf16 %v4495_v6  ;;  %4273 = vmatpush3.msra.mxu0 %v1050_v1  ;;  %v1030_v5 = vld [vmem:[%s6894_s3 + $0x78] sm:$0xff]  ;;  %v1045_v6 = vld [vmem:[%s6894_s3 + $0xf0] sm:$0xff]  ;;  %3970 = vmatprep.subr.mxu1 %v1046_v41 }
  0xbd   : > { %v755_v13 = vsel %vm726_vm3, %v747_v10, %v4491_v8  ;;  %v731_v14 = vsel %vm726_vm3, %v722_v12, %v4492_v7  ;;  %v1029_v7 = vld [vmem:[%s6894_s3 + $0x70] sm:$0xff]  ;;  %3971 = vmatpush3.msra.mxu1 %v1030_v5  ;;  %v1044_v8 = vld [vmem:[%s6894_s3 + $0xe8] sm:$0xff]  ;;  %v1027_v10 = vld [vmem:[%s6894_s3 + $0x60] sm:$0xff] }
  0xbe   : > { %v4500_v16 = vpop.permute.xlu0 %4499  ;;  %873 = vmatprep.mubr.f32.mxu0 %v755_v13  ;;  %v740_v22 = vsel %vm368_vm0, %v5424_v15, %v4496_v35  ;;  %v714_v23 = vsel %vm368_vm0, %v5395_v3, %v4497_v9  ;;  %3972 = vmatprep.subr.mxu1 %v1045_v6  ;;  %v1028_v9 = vld [vmem:[%s6894_s3 + $0x68] sm:$0xff]  ;;  %v1043_v35 = vld [vmem:[%s6894_s3 + $0xe0] sm:$0xff]  ;;  %v1042_v12 = vld [vmem:[%s6894_s3 + $0xd8] sm:$0xff] }
  0xbf   : > { %v4505_v4 = vpop.permute.xlu1 %4504  ;;  %v4502_v17 = vunpack.i.h.bf16 %v4500_v16  ;;  %v4501_v18 = vunpack.i.l.bf16 %v4500_v16  ;;  %874 = vmatmul.mubr.f32.gmra.mxu0 %v731_v14  ;;  %3973 = vmatpush3.msra.mxu1 %v1029_v7  ;;  %v1026_v13 = vld [vmem:[%s6894_s3 + $0x58] sm:$0xff]  ;;  %v1041_v14 = vld [vmem:[%s6894_s3 + $0xd0] sm:$0xff] }
  0xc0   : > { %v4507_v49 = vunpack.i.h.bf16 %v4505_v4  ;;  %v4506_v19 = vunpack.i.l.bf16 %v4505_v4  ;;  %3974 = vmatprep.subr.mxu1 %v1044_v8  ;;  %v1025_v16 = vld [vmem:[%s6894_s3 + $0x50] sm:$0xff]  ;;  %v1040_v4 = vld [vmem:[%s6894_s3 + $0xc8] sm:$0xff] }
  0xc1   : > { %v748_v25 = vsel %vm717_vm2, %v740_v22, %v4501_v18  ;;  %v723_v31 = vsel %vm717_vm2, %v714_v23, %v4502_v17  ;;  %3975 = vmatpush3.msra.mxu1 %v1028_v9  ;;  %v1024_v17 = vld [vmem:[%s6894_s3 + $0x48] sm:$0xff]  ;;  %v1039_v18 = vld [vmem:[%s6894_s3 + $0xc0] sm:$0xff]  ;;  %v1022_v22 = vld [vmem:[%s6894_s3 + $0x38] sm:$0xff] }
  0xc2   : > { %v4510_v30 = vpop.permute.xlu0 %4509  ;;  %v756_v29 = vsel %vm726_vm3, %v748_v25, %v4506_v19  ;;  %v732_v32 = vsel %vm726_vm3, %v723_v31, %v4507_v49  ;;  %3976 = vmatprep.subr.mxu1 %v1043_v35  ;;  %v1023_v49 = vld [vmem:[%s6894_s3 + $0x40] sm:$0xff]  ;;  %v1038_v19 = vld [vmem:[%s6894_s3 + $0xb8] sm:$0xff]  ;;  %v1037_v23 = vld [vmem:[%s6894_s3 + $0xb0] sm:$0xff] }
  0xc3   : > { %v4515_v27 = vpop.permute.xlu1 %4514  ;;  %v4512_v36 = vunpack.i.h.bf16 %v4510_v30  ;;  %v4511_v37 = vunpack.i.l.bf16 %v4510_v30  ;;  %878 = vmatprep.mubr.f32.mxu0 %v756_v29  ;;  %3977 = vmatpush3.msra.mxu1 %v1027_v10  ;;  %v1021_v25 = vld [vmem:[%s6894_s3 + $0x30] sm:$0xff]  ;;  %v1036_v31 = vld [vmem:[%s6894_s3 + $0xa8] sm:$0xff] }
  0xc4   : > { %v4517_v40 = vunpack.i.h.bf16 %v4515_v27  ;;  %v4516_v43 = vunpack.i.l.bf16 %v4515_v27  ;;  %879 = vmatmul.mubr.f32.gmra.mxu0 %v732_v32  ;;  %3978 = vmatprep.subr.mxu1 %v1042_v12  ;;  %v1020_v30 = vld [vmem:[%s6894_s3 + $0x28] sm:$0xff]  ;;  %v1035_v27 = vld [vmem:[%s6894_s3 + $0xa0] sm:$0xff] }
  0xc5   : > { %v741_v15 = vsel %vm368_vm0, %v5435_v21, %v4511_v37  ;;  %v715_v3 = vsel %vm368_vm0, %v5413_v11, %v4512_v36  ;;  %3979 = vmatpush3.msra.mxu1 %v1026_v13  ;;  %v5618_v37 = vld [vmem:[%s6893_s2] ss:$0 sm:$0xff] }
  0xc6   : > { %v4520_v44 = vpop.permute.xlu0 %4519  ;;  %v749_v51 = vsel %vm717_vm2, %v741_v15, %v4516_v43  ;;  %v724_v34 = vsel %vm717_vm2, %v715_v3, %v4517_v40  ;;  %3980 = vmatprep.subr.mxu1 %v1041_v14 }
  0xc7   : > { %v4525_v45 = vpop.permute.xlu1 %4524  ;;  %v4522_v46 = vunpack.i.h.bf16 %v4520_v44  ;;  %v4521_v47 = vunpack.i.l.bf16 %v4520_v44  ;;  %3981 = vmatpush3.msra.mxu1 %v1025_v16 }
  0xc8   : > { %v4527_v42 = vunpack.i.h.bf16 %v4525_v45  ;;  %v4526_v50 = vunpack.i.l.bf16 %v4525_v45  ;;  %3982 = vmatprep.subr.mxu1 %v1040_v4 }
  0xc9   : > { %v757_v52 = vsel %vm726_vm3, %v749_v51, %v4521_v47  ;;  %v733_v53 = vsel %vm726_vm3, %v724_v34, %v4522_v46  ;;  %3983 = vmatpush3.msra.mxu1 %v1024_v17  ;;  %v1019_v47 = vld [vmem:[%s6894_s3 + $0x20] sm:$0xff]  ;;  %v1018_v34 = vld [vmem:[%s6894_s3 + $0x18] sm:$0xff] }
  0xca   : > { %v4530_v54 = vpop.permute.xlu0 %4529  ;;  %883 = vmatprep.mubr.f32.mxu0 %v757_v52  ;;  %v742_v59 = vsel %vm368_vm0, %v5449_v33, %v4526_v50  ;;  %v716_v60 = vsel %vm368_vm0, %v5433_v20, %v4527_v42  ;;  %v1049_v20 = vld [vmem:[%s6894_s3 + $0x110] sm:$0xff]  ;;  %v1048_v33 = vld [vmem:[%s6894_s3 + $0x108] sm:$0xff]  ;;  %3984 = vmatprep.subr.mxu1 %v1039_v18  ;;  %v1034_v42 = vld [vmem:[%s6894_s3 + $0x98] sm:$0xff] }
  0xcb   : > { %v4535_v21 = vpop.permute.xlu1 %4534  ;;  %v4532_v55 = vunpack.i.h.bf16 %v4530_v54  ;;  %v4531_v56 = vunpack.i.l.bf16 %v4530_v54  ;;  %884 = vmatmul.mubr.f32.gmra.mxu0 %v733_v53  ;;  %4274 = vmatprep.subr.mxu0 %v1049_v20  ;;  %v1033_v52 = vld [vmem:[%s6894_s3 + $0x90] sm:$0xff] }
  0xcc   : > { %v4537_v11 = vunpack.i.h.bf16 %v4535_v21  ;;  %v4536_v57 = vunpack.i.l.bf16 %v4535_v21  ;;  %4275 = vmatpush3.msra.mxu0 %v1049_v20  ;;  %3985 = vmatpush3.msra.mxu1 %v1023_v49  ;;  %v1017_v21 = vld [vmem:[%s6894_s3 + $0x10] sm:$0xff] }
  0xcd   : > { %v750_v61 = vsel %vm717_vm2, %v742_v59, %v4531_v56  ;;  %v725_v62 = vsel %vm717_vm2, %v716_v60, %v4532_v55  ;;  %4276 = vmatprep.subr.mxu0 %v1048_v33  ;;  %3986 = vmatprep.subr.mxu1 %v1038_v19  ;;  %v1032_v55 = vld [vmem:[%s6894_s3 + $0x88] sm:$0xff] }
  0xce   : > { %v758_v63 = vsel %vm726_vm3, %v750_v61, %v4536_v57  ;;  %v734_v0 = vsel %vm726_vm3, %v725_v62, %v4537_v11  ;;  %4277 = vmatpush3.msra.mxu0 %v1048_v33  ;;  %3987 = vmatpush3.msra.mxu1 %v1022_v22  ;;  %v1016_v59 = vld [vmem:[%s6894_s3 + $0x8] sm:$0xff]  ;;  %v1031_v61 = vld [vmem:[%s6894_s3 + $0x80] sm:$0xff] }
  0xcf   : > { %888 = vmatprep.mubr.f32.mxu0 %v758_v63  ;;  %4278 = vmatprep.subr.mxu0 %v1047_v58  ;;  %v1015_v62 = vld [vmem:[%s6894_s3] sm:$0xff] }
  0xd0   : > { %889 = vmatmul.mubr.f32.gmra.mxu0 %v734_v0  ;;  %3988 = vmatprep.subr.mxu1 %v1037_v23 }
  0xd1   : > { %4279 = vmatpush3.msra.mxu0 %v1047_v58  ;;  %3989 = vmatpush3.msra.mxu1 %v1021_v25 }
  0xd2   : > { %3990 = vmatprep.subr.mxu1 %v1036_v31 }
  0xd3   : > { %3991 = vmatpush3.msra.mxu1 %v1020_v30 }
  0xd4   : > { %3992 = vmatprep.subr.mxu1 %v1035_v27 }
  0xd5   : > { %3993 = vmatpush3.msra.mxu1 %v1019_v47 }
  0xd6   : > { %3994 = vmatprep.subr.mxu1 %v1034_v42 }
  0xd7   : > { %3995 = vmatpush3.msra.mxu1 %v1018_v34 }
  0xd8   : > { %3996 = vmatprep.subr.mxu1 %v1033_v52 }
  0xd9   : > { %3997 = vmatpush3.msra.mxu1 %v1017_v21 }
  0xda   : > { %3998 = vmatprep.subr.mxu1 %v1032_v55 }
  0xdb   : > { %3999 = vmatpush3.msra.mxu1 %v1016_v59 }
  0xdc   : > { %4000 = vmatprep.subr.mxu1 %v1031_v61 }
  0xdd   : > { %4001 = vmatpush3.msra.mxu1 %v1015_v62 }
  0xf6   : > { %v4262_v32 = vpop.f32.mrf.mxu1 }
  0xf8   : > { %v960_v15 = vpop.f32.mrf.mxu1 }
  0xfa   : > { %v4265_v57 = vpop.f32.mrf.mxu1 }
  0xfc   : > { %v970_v1 = vpop.f32.mrf.mxu1 }
  0xfe   : > { %v4268_v17 = vpop.f32.mrf.mxu1 }
 0x100   : > { %v980_v23 = vpop.f32.mrf.mxu1 }
 0x102   : > { %v4271_v21 = vpop.f32.mrf.mxu1 }
 0x104   : > { %v990_v61 = vpop.f32.mrf.mxu1 }
 0x168   : > { %v3934_v29 = vpop.f32.mrf.mxu0 }
 0x16a   : > { %v3935_v36 = vpop.f32.mrf.mxu0 }
 0x16b   : > { %v3936_v40 = vadd.f32 %v3935_v36, %v3934_v29 }
 0x16c   : > { %v3937_v43 = vpop.f32.mrf.mxu0 }
 0x16d   : > { %v856_v3 = vadd.f32 %v3936_v40, %v5618_v37 }
 0x16e   : > { %v3938_v44 = vpop.f32.mrf.mxu0 }
 0x16f   : > { %v3939_v45 = vadd.f32 %v3938_v44, %v3937_v43  ;;  %v5621_v46 = vadd.f32 %v960_v15, %v856_v3 }
 0x171   : > { %v861_v50 = vadd.f32 %v3939_v45, %v5618_v37  ;;  %v999_v51 = vmax.f32 %v5621_v46, 0.0  ;;  %v3824_v46 = vld [vmem:[%s6894_s3 + $0x2e0] sm:$0xff] }
 0x173   : > { %v5637_v53 = vadd.f32 %v4262_v32, %v861_v50  ;;  %1007 = vst.msk [vmem:[#allocation2 + $0x11] sm:$0xff] %vm368_vm0, %v999_v51  ;;  %v3940_v54 = vpop.f32.mrf.mxu0 }
 0x175   : > { %v1000_v56 = vmax.f32 %v5637_v53, 0.0  ;;  %v3941_v11 = vpop.f32.mrf.mxu0  ;;  %v3805_v53 = vld [vmem:[%s6894_s3 + $0x248] sm:$0xff] }
 0x176   : > { %v3942_v60 = vadd.f32 %v3941_v11, %v3940_v54 }
 0x177   : > { %1008 = vst.msk [vmem:[#allocation2 + $0x21] sm:$0xff] %vm368_vm0, %v1000_v56 }
 0x178   : > { %v866_v63 = vadd.f32 %v3942_v60, %v5618_v37  ;;  %v3943_v0 = vpop.f32.mrf.mxu0 }
 0x17a   : > { %v5662_v20 = vadd.f32 %v970_v1, %v866_v63  ;;  %v3944_v33 = vpop.f32.mrf.mxu0  ;;  %v1092_v58 = vld [vmem:[#allocation2 + $0x12] sm:$0xff] }
 0x17b   : > { %v3945_v41 = vadd.f32 %v3944_v33, %v3943_v0  ;;  %v4538_v5 = vpack.i.bf16 %v5298_v24, %v1092_v58  ;;  %v5668_v8 = vld [vmem:[#allocation2 + $0x10] sm:$0xff] }
 0x17c   : > { %v1001_v6 = vmax.f32 %v5662_v20, 0.0  ;;  %v5687_v49 = vld [vmem:[#allocation2 + $0x11] sm:$0xff] }
 0x17d   : > { %v871_v7 = vadd.f32 %v3945_v41, %v5618_v37  ;;  %4539 = vrot.lane.b32.xlu0 %v4538_v5, %s6906_s30 }
 0x17e   : > { %1009 = vst.msk [vmem:[#allocation2 + $0x31] sm:$0xff] %vm368_vm0, %v1001_v6  ;;  %v1116_v9 = vld [vmem:[#allocation2 + $0x22] sm:$0xff] }
 0x17f   : > { %v5673_v35 = vld [vmem:[#allocation2 + $0x21] sm:$0xff]  ;;  %v5677_v12 = vadd.f32 %v4265_v57, %v871_v7  ;;  %v3946_v24 = vpop.f32.mrf.mxu0  ;;  %4280 = vmatprep.mubr.msk.f32.mxu0 %vm368_vm0, %v1116_v9  ;;  %v4553_v19 = vpack.i.bf16 %v5687_v49, %v1116_v9 }
 0x180   : > { %v5675_v10 = vld [vmem:[#allocation2 + $0x20] sm:$0xff]  ;;  %v4548_v13 = vpack.i.bf16 %v5668_v8, %v5673_v35 }
 0x181   : > { %v4543_v14 = vpack.i.bf16 %v5303_v26, %v5675_v10  ;;  %v1002_v16 = vmax.f32 %v5677_v12, 0.0  ;;  %v3947_v4 = vpop.f32.mrf.mxu0 }
 0x182   : > { %4549 = vrot.lane.b32.xlu0 %v4548_v13, %s6904_s11  ;;  %v3948_v18 = vadd.f32 %v3947_v4, %v3946_v24 }
 0x183   : > { %4544 = vrot.lane.b32.xlu1 %v4543_v14, %s6913_s22  ;;  %1010 = vst.msk [vmem:[#allocation2 + $0x41] sm:$0xff] %vm368_vm0, %v1002_v16 }
 0x184   : > { %v876_v22 = vadd.f32 %v3948_v18, %v5618_v37  ;;  %v3949_v26 = vpop.f32.mrf.mxu0 }
 0x185   : > { %v1117_v25 = vld [vmem:[#allocation2 + $0x32] sm:$0xff] }
 0x186   : > { %v5695_v31 = vld [vmem:[#allocation2 + $0x30] sm:$0xff]  ;;  %v5699_v27 = vadd.f32 %v980_v23, %v876_v22  ;;  %v3950_v29 = vpop.f32.mrf.mxu0  ;;  %4281 = vmatmul.mubr.msk.f32.vlgmr.msra.gmra.mxu0 %vm368_vm0, %v1117_v25  ;;  %v4568_v44 = vpack.i.bf16 %v5673_v35, %v1117_v25 }
 0x187   : > { %4554 = vrot.lane.b32.xlu1 %v4553_v19, %s6906_s30  ;;  %v5697_v30 = vld [vmem:[#allocation2 + $0x31] sm:$0xff]  ;;  %v4558_v32 = vpack.i.bf16 %v1092_v58, %v5695_v31  ;;  %v3951_v40 = vadd.f32 %v3950_v29, %v3949_v26 }
 0x188   : > { %v4563_v36 = vpack.i.bf16 %v5675_v10, %v5697_v30  ;;  %v1003_v43 = vmax.f32 %v5699_v27, 0.0 }
 0x189   : > { %4559 = vrot.lane.b32.xlu0 %v4558_v32, %s6913_s22  ;;  %v881_v15 = vadd.f32 %v3951_v40, %v5618_v37 }
 0x18a   : > { %1011 = vst.msk [vmem:[#allocation2 + $0x51] sm:$0xff] %vm368_vm0, %v1003_v43  ;;  %v1118_v3 = vld [vmem:[#allocation2 + $0x42] sm:$0xff] }
 0x18b   : > { %4564 = vrot.lane.b32.xlu1 %v4563_v36, %s6904_s11  ;;  %v5713_v45 = vld [vmem:[#allocation2 + $0x40] sm:$0xff]  ;;  %v5715_v47 = vadd.f32 %v4268_v17, %v881_v15  ;;  %v3952_v42 = vpop.f32.mrf.mxu0  ;;  %4283 = vmatprep.mubr.msk.f32.mxu0 %vm368_vm0, %v1118_v3  ;;  %v4583_v57 = vpack.i.bf16 %v5697_v30, %v1118_v3 }
 0x18c   : > { %v4573_v50 = vpack.i.bf16 %v1116_v9, %v5713_v45  ;;  %v5719_v34 = vld [vmem:[#allocation2 + $0x41] sm:$0xff] }
 0x18d   : > { %4569 = vrot.lane.b32.xlu0 %v4568_v44, %s6906_s30  ;;  %v1004_v52 = vmax.f32 %v5715_v47, 0.0  ;;  %v3953_v54 = vpop.f32.mrf.mxu0  ;;  %v4578_v11 = vpack.i.bf16 %v5695_v31, %v5719_v34 }
 0x18e   : > { %v3954_v55 = vadd.f32 %v3953_v54, %v3952_v42 }
 0x18f   : > { %4574 = vrot.lane.b32.xlu1 %v4573_v50, %s6913_s22  ;;  %1012 = vst.msk [vmem:[#allocation2 + $0x61] sm:$0xff] %vm368_vm0, %v1004_v52 }
 0x190   : > { %v886_v59 = vadd.f32 %v3954_v55, %v5618_v37  ;;  %v3955_v60 = vpop.f32.mrf.mxu0 }
 0x191   : > { %4579 = vrot.lane.b32.xlu0 %v4578_v11, %s6904_s11  ;;  %v1119_v62 = vld [vmem:[#allocation2 + $0x52] sm:$0xff] }
 0x192   : > { %v5733_v63 = vld [vmem:[#allocation2 + $0x50] sm:$0xff]  ;;  %v5737_v1 = vadd.f32 %v990_v61, %v886_v59  ;;  %v3956_v33 = vpop.f32.mrf.mxu0  ;;  %4284 = vmatmul.mubr.msk.f32.gmra.mxu0 %vm368_vm0, %v1119_v62  ;;  %v4598_v13 = vpack.i.bf16 %v5719_v34, %v1119_v62 }
 0x193   : > { %4584 = vrot.lane.b32.xlu1 %v4583_v57, %s6906_s30  ;;  %v5735_v0 = vld [vmem:[#allocation2 + $0x51] sm:$0xff]  ;;  %v4588_v58 = vpack.i.bf16 %v1117_v25, %v5733_v63  ;;  %v3957_v5 = vadd.f32 %v3956_v33, %v3955_v60 }
 0x194   : > { %v4593_v41 = vpack.i.bf16 %v5713_v45, %v5735_v0  ;;  %v1005_v7 = vmax.f32 %v5737_v1, 0.0 }
 0x195   : > { %4589 = vrot.lane.b32.xlu0 %v4588_v58, %s6913_s22  ;;  %v891_v9 = vadd.f32 %v3957_v5, %v5618_v37 }
 0x196   : > { %1013 = vst.msk [vmem:[#allocation2 + $0x71] sm:$0xff] %vm368_vm0, %v1005_v7  ;;  %v1120_v24 = vld [vmem:[#allocation2 + $0x62] sm:$0xff] }
 0x197   : > { %4594 = vrot.lane.b32.xlu1 %v4593_v41, %s6904_s11  ;;  %v5751_v14 = vld [vmem:[#allocation2 + $0x60] sm:$0xff]  ;;  %v5753_v4 = vadd.f32 %v4271_v21, %v891_v9  ;;  %4286 = vmatprep.mubr.msk.f32.mxu0 %vm368_vm0, %v1120_v24  ;;  %v4613_v22 = vpack.i.bf16 %v5735_v0, %v1120_v24 }
 0x198   : > { %v4603_v17 = vpack.i.bf16 %v1118_v3, %v5751_v14  ;;  %v5757_v18 = vld [vmem:[#allocation2 + $0x61] sm:$0xff] }
 0x199   : > { %4599 = vrot.lane.b32.xlu0 %v4598_v13, %s6906_s30  ;;  %v1006_v37 = vmax.f32 %v5753_v4, 0.0  ;;  %v4608_v19 = vpack.i.bf16 %v5733_v63, %v5757_v18 }
 0x19b   : > { %4604 = vrot.lane.b32.xlu1 %v4603_v17, %s6913_s22  ;;  %1014 = vst.msk [vmem:[#allocation2 + $0x81] sm:$0xff] %vm368_vm0, %v1006_v37 }
 0x19d   : > { %4609 = vrot.lane.b32.xlu0 %v4608_v19, %s6904_s11  ;;  %v1121_v26 = vld [vmem:[#allocation2 + $0x72] sm:$0xff] }
 0x19e   : > { %v5770_v23 = vld [vmem:[#allocation2 + $0x70] sm:$0xff]  ;;  %4287 = vmatmul.mubr.msk.f32.gmra.mxu0 %vm368_vm0, %v1121_v26  ;;  %v4628_v40 = vpack.i.bf16 %v5757_v18, %v1121_v26  ;;  %v4643_v54 = vpack.i.bf16 %v1121_v26, %v5458_v38 }
 0x19f   : > { %4614 = vrot.lane.b32.xlu1 %v4613_v22, %s6906_s30  ;;  %v5772_v25 = vld [vmem:[#allocation2 + $0x71] sm:$0xff]  ;;  %v4618_v29 = vpack.i.bf16 %v1119_v62, %v5770_v23 }
 0x1a0   : > { %v4623_v32 = vpack.i.bf16 %v5751_v14, %v5772_v25 }
 0x1a1   : > { %4619 = vrot.lane.b32.xlu0 %v4618_v29, %s6913_s22 }
 0x1a2   : > { %v1122_v36 = vld [vmem:[#allocation2 + $0x82] sm:$0xff] }
 0x1a3   : > { %4624 = vrot.lane.b32.xlu1 %v4623_v32, %s6904_s11  ;;  %v1106_v15 = vld [vmem:[#allocation2 + $0x80] sm:$0xff]  ;;  %4289 = vmatprep.mubr.msk.f32.mxu0 %vm368_vm0, %v1122_v36  ;;  %v4648_v50 = vpack.i.bf16 %v5772_v25, %v1122_v36 }
 0x1a4   : > { %v4633_v3 = vpack.i.bf16 %v1120_v24, %v1106_v15  ;;  %v5782_v44 = vld [vmem:[#allocation2 + $0x81] sm:$0xff]  ;;  %4290 = vmatmul.mubr.msk.f32.gmra.mxu0 %vm368_vm0, %v5444_v28  ;;  %v4653_v21 = vpack.i.bf16 %v1106_v15, %v5460_v39 }
 0x1a5   : > { %4629 = vrot.lane.b32.xlu0 %v4628_v40, %s6906_s30  ;;  %v4638_v42 = vpack.i.bf16 %v5770_v23, %v5782_v44 }
 0x1a7   : > { %4634 = vrot.lane.b32.xlu1 %v4633_v3, %s6913_s22 }
 0x1a9   : > { %4639 = vrot.lane.b32.xlu0 %v4638_v42, %s6904_s11 }
 0x1ab   : > { %4649 = vrot.lane.b32.xlu1 %v4648_v50, %s6906_s30 }
 0x1ad   : > { %4644 = vrot.lane.b32.xlu0 %v4643_v54, %s6913_s22 }
 0x1af   : > { %4654 = vrot.lane.b32.xlu1 %v4653_v21, %s6904_s11  ;;  %s353_s11 = sand.u32 1, %s5076_s16  }
 0x1b0   : > { %s354_s19 = scalar_lea.vmem [#allocation4], %s353_s11  ;;  %s3642_s12 = scalar_lea.sflag [#allocation5], %s353_s11 }
 0x1ef   : > { %v4540_v28 = vpop.permute.xlu0 %4539 }
 0x1f0   : > { %v4542_v55 = vunpack.i.h.bf16 %v4540_v28  ;;  %v4541_v11 = vunpack.i.l.bf16 %v4540_v28 }
 0x1f2   : > { %v1316_v58 = vsel %vm368_vm0, %v5468_v48, %v4542_v55  ;;  %v1340_v38 = vsel %vm368_vm0, %v5687_v49, %v4541_v11 }
 0x1f4   : > { %v4550_v57 = vpop.permute.xlu0 %4549 }
 0x1f5   : > { %v4545_v59 = vpop.permute.xlu1 %4544  ;;  %v4552_v60 = vunpack.i.h.bf16 %v4550_v57  ;;  %v4551_v61 = vunpack.i.l.bf16 %v4550_v57 }
 0x1f6   : > { %v4547_v62 = vunpack.i.h.bf16 %v4545_v59  ;;  %v4546_v33 = vunpack.i.l.bf16 %v4545_v59 }
 0x1f8   : > { %v1324_v39 = vsel %vm717_vm2, %v1316_v58, %v4547_v62  ;;  %v1348_v41 = vsel %vm717_vm2, %v1340_v38, %v4546_v33 }
 0x1f9   : > { %v4555_v5 = vpop.permute.xlu1 %4554  ;;  %v1356_v9 = vsel %vm726_vm3, %v1348_v41, %v4551_v61  ;;  %v1332_v24 = vsel %vm726_vm3, %v1324_v39, %v4552_v60 }
 0x1fa   : > { %v4557_v13 = vunpack.i.h.bf16 %v4555_v5  ;;  %v4556_v17 = vunpack.i.l.bf16 %v4555_v5  ;;  %1458 = vmatprep.mubr.f32.mxu1 %v1356_v9 }
 0x1fb   : > { %1459 = vmatmul.mubr.f32.vlgmr.msra.gmra.mxu1 %v1332_v24  ;;  %v4560_v19 = vpop.permute.xlu0 %4559 }
 0x1fc   : > { %v4562_v22 = vunpack.i.h.bf16 %v4560_v19  ;;  %v4561_v26 = vunpack.i.l.bf16 %v4560_v19  ;;  %v1341_v49 = vsel %vm368_vm0, %v5673_v35, %v4556_v17  ;;  %v1317_v36 = vsel %vm368_vm0, %v5668_v8, %v4557_v13 }
 0x1fd   : > { %v4565_v48 = vpop.permute.xlu1 %4564 }
 0x1fe   : > { %v4567_v29 = vunpack.i.h.bf16 %v4565_v48  ;;  %v4566_v32 = vunpack.i.l.bf16 %v4565_v48  ;;  %v1349_v40 = vsel %vm717_vm2, %v1341_v49, %v4561_v26  ;;  %v1325_v15 = vsel %vm717_vm2, %v1317_v36, %v4562_v22 }
 0x1ff   : > { %v4570_v3 = vpop.permute.xlu0 %4569 }
 0x200   : > { %v1357_v42 = vsel %vm726_vm3, %v1349_v40, %v4566_v32  ;;  %v1333_v50 = vsel %vm726_vm3, %v1325_v15, %v4567_v29  ;;  %v4572_v54 = vunpack.i.h.bf16 %v4570_v3  ;;  %v4571_v21 = vunpack.i.l.bf16 %v4570_v3 }
 0x201   : > { %1463 = vmatprep.mubr.f32.mxu1 %v1357_v42  ;;  %v4575_v28 = vpop.permute.xlu1 %4574 }
 0x202   : > { %v4577_v55 = vunpack.i.h.bf16 %v4575_v28  ;;  %v4576_v11 = vunpack.i.l.bf16 %v4575_v28  ;;  %1464 = vmatmul.mubr.f32.gmra.mxu1 %v1333_v50  ;;  %v1342_v35 = vsel %vm368_vm0, %v5697_v30, %v4571_v21  ;;  %v1318_v8 = vsel %vm368_vm0, %v5675_v10, %v4572_v54 }
 0x203   : > { %v4580_v57 = vpop.permute.xlu0 %4579 }
 0x204   : > { %v4582_v59 = vunpack.i.h.bf16 %v4580_v57  ;;  %v4581_v60 = vunpack.i.l.bf16 %v4580_v57  ;;  %v1350_v58 = vsel %vm717_vm2, %v1342_v35, %v4576_v11  ;;  %v1326_v38 = vsel %vm717_vm2, %v1318_v8, %v4577_v55 }
 0x205   : > { %v4585_v61 = vpop.permute.xlu1 %4584 }
 0x206   : > { %v4587_v62 = vunpack.i.h.bf16 %v4585_v61  ;;  %v4586_v33 = vunpack.i.l.bf16 %v4585_v61  ;;  %v1358_v39 = vsel %vm726_vm3, %v1350_v58, %v4581_v60  ;;  %v1334_v41 = vsel %vm726_vm3, %v1326_v38, %v4582_v59 }
 0x207   : > { %v4590_v5 = vpop.permute.xlu0 %4589  ;;  %1468 = vmatprep.mubr.f32.mxu1 %v1358_v39 }
 0x208   : > { %v4592_v30 = vunpack.i.h.bf16 %v4590_v5  ;;  %v4591_v9 = vunpack.i.l.bf16 %v4590_v5  ;;  %1469 = vmatmul.mubr.f32.gmra.mxu1 %v1334_v41  ;;  %v1343_v17 = vsel %vm368_vm0, %v5719_v34, %v4586_v33  ;;  %v1319_v19 = vsel %vm368_vm0, %v5695_v31, %v4587_v62 }
 0x209   : > { %v4595_v24 = vpop.permute.xlu1 %4594 }
 0x20a   : > { %v4597_v10 = vunpack.i.h.bf16 %v4595_v24  ;;  %v4596_v13 = vunpack.i.l.bf16 %v4595_v24  ;;  %v1351_v22 = vsel %vm717_vm2, %v1343_v17, %v4591_v9  ;;  %v1327_v26 = vsel %vm717_vm2, %v1319_v19, %v4592_v30 }
 0x20b   : > { %v4600_v48 = vpop.permute.xlu0 %4599 }
 0x20c   : > { %v1359_v29 = vsel %vm726_vm3, %v1351_v22, %v4596_v13  ;;  %v1335_v32 = vsel %vm726_vm3, %v1327_v26, %v4597_v10  ;;  %v4602_v49 = vunpack.i.h.bf16 %v4600_v48  ;;  %v4601_v36 = vunpack.i.l.bf16 %v4600_v48 }
 0x20d   : > { %v4605_v40 = vpop.permute.xlu1 %4604  ;;  %1473 = vmatprep.mubr.f32.mxu1 %v1359_v29 }
 0x20e   : > { %v4607_v15 = vunpack.i.h.bf16 %v4605_v40  ;;  %v4606_v3 = vunpack.i.l.bf16 %v4605_v40  ;;  %1474 = vmatmul.mubr.f32.gmra.mxu1 %v1335_v32  ;;  %v1344_v34 = vsel %vm368_vm0, %v5735_v0, %v4601_v36  ;;  %v1320_v31 = vsel %vm368_vm0, %v5713_v45, %v4602_v49 }
 0x20f   : > { %v4610_v42 = vpop.permute.xlu0 %4609 }
 0x210   : > { %v4612_v50 = vunpack.i.h.bf16 %v4610_v42  ;;  %v4611_v54 = vunpack.i.l.bf16 %v4610_v42  ;;  %v1352_v11 = vsel %vm717_vm2, %v1344_v34, %v4606_v3  ;;  %v1328_v35 = vsel %vm717_vm2, %v1320_v31, %v4607_v15 }
 0x211   : > { %v4615_v21 = vpop.permute.xlu1 %4614 }
 0x212   : > { %v4617_v28 = vunpack.i.h.bf16 %v4615_v21  ;;  %v4616_v55 = vunpack.i.l.bf16 %v4615_v21  ;;  %v1360_v8 = vsel %vm726_vm3, %v1352_v11, %v4611_v54  ;;  %v1336_v57 = vsel %vm726_vm3, %v1328_v35, %v4612_v50  ;;  %v3793_v35 = vld [vmem:[%s6894_s3 + $0x238] sm:$0xff] }
 0x213   : > { %v4620_v59 = vpop.permute.xlu0 %4619  ;;  %1478 = vmatprep.mubr.f32.mxu1 %v1360_v8  ;;  %4292 = vmatprep.subr.mxu0 %v3793_v35  ;;  %v3790_v8 = vld [vmem:[%s6894_s3 + $0x220] sm:$0xff] }
 0x214   : > { %v4622_v0 = vunpack.i.h.bf16 %v4620_v59  ;;  %v4621_v60 = vunpack.i.l.bf16 %v4620_v59  ;;  %1479 = vmatmul.mubr.f32.gmra.mxu1 %v1336_v57  ;;  %v1345_v33 = vsel %vm368_vm0, %v5757_v18, %v4616_v55  ;;  %v1321_v58 = vsel %vm368_vm0, %v5733_v63, %v4617_v28  ;;  %4293 = vmatpush3.msra.mxu0 %v3793_v35  ;;  %v3789_v57 = vld [vmem:[%s6894_s3 + $0x218] sm:$0xff]  ;;  %v3775_v35 = vld [vmem:[%s6894_s3 + $0x1a8] sm:$0xff] }
 0x215   : > { %v4625_v61 = vpop.permute.xlu1 %4624  ;;  %v3773_v59 = vld [vmem:[%s6894_s3 + $0x198] sm:$0xff]  ;;  %4038 = vmatprep.subr.mxu1 %v3789_v57  ;;  %v5968_v57 = vld [vmem:[#allocation2 + $0x1] sm:$0xff] }
 0x216   : > { %v4627_v45 = vunpack.i.h.bf16 %v4625_v61  ;;  %v4626_v62 = vunpack.i.l.bf16 %v4625_v61  ;;  %v1353_v38 = vsel %vm717_vm2, %v1345_v33, %v4621_v60  ;;  %v1329_v39 = vsel %vm717_vm2, %v1321_v58, %v4622_v0  ;;  %v3788_v0 = vld [vmem:[%s6894_s3 + $0x210] sm:$0xff]  ;;  %4039 = vmatpush3.msra.mxu1 %v3773_v59  ;;  %v3787_v61 = vld [vmem:[%s6894_s3 + $0x208] sm:$0xff]  ;;  %v3770_v33 = vld [vmem:[%s6894_s3 + $0x180] sm:$0xff] }
 0x217   : > { %v4630_v41 = vpop.permute.xlu0 %4629  ;;  %v3772_v60 = vld [vmem:[%s6894_s3 + $0x190] sm:$0xff]  ;;  %4040 = vmatprep.subr.mxu1 %v3788_v0  ;;  %v3785_v58 = vld [vmem:[%s6894_s3 + $0x1f8] sm:$0xff]  ;;  %v3759_v59 = vld [vmem:[%s6894_s3 + $0x128] sm:$0xff] }
 0x218   : > { %v1361_v5 = vsel %vm726_vm3, %v1353_v38, %v4626_v62  ;;  %v1337_v30 = vsel %vm726_vm3, %v1329_v39, %v4627_v45  ;;  %v4632_v9 = vunpack.i.h.bf16 %v4630_v41  ;;  %v4631_v24 = vunpack.i.l.bf16 %v4630_v41  ;;  %v3771_v45 = vld [vmem:[%s6894_s3 + $0x188] sm:$0xff]  ;;  %4041 = vmatpush3.msra.mxu1 %v3772_v60  ;;  %v3786_v62 = vld [vmem:[%s6894_s3 + $0x200] sm:$0xff]  ;;  %v3769_v38 = vld [vmem:[%s6894_s3 + $0x178] sm:$0xff] }
 0x219   : > { %v4635_v10 = vpop.permute.xlu1 %4634  ;;  %1483 = vmatprep.mubr.f32.mxu1 %v1361_v5  ;;  %4042 = vmatprep.subr.mxu1 %v3787_v61  ;;  %v3784_v39 = vld [vmem:[%s6894_s3 + $0x1f0] sm:$0xff]  ;;  %v3783_v5 = vld [vmem:[%s6894_s3 + $0x1e8] sm:$0xff]  ;;  %v3774_v60 = vld [vmem:[%s6894_s3 + $0x1a0] sm:$0xff] }
 0x21a   : > { %v4637_v13 = vunpack.i.h.bf16 %v4635_v10  ;;  %v4636_v17 = vunpack.i.l.bf16 %v4635_v10  ;;  %1484 = vmatmul.mubr.f32.gmra.mxu1 %v1337_v30  ;;  %v1346_v18 = vsel %vm368_vm0, %v5772_v25, %v4631_v24  ;;  %v1322_v63 = vsel %vm368_vm0, %v5751_v14, %v4632_v9  ;;  %v3768_v41 = vld [vmem:[%s6894_s3 + $0x170] sm:$0xff]  ;;  %v3767_v30 = vld [vmem:[%s6894_s3 + $0x168] sm:$0xff]  ;;  %v3782_v9 = vld [vmem:[%s6894_s3 + $0x1e0] sm:$0xff] }
 0x21b   : > { %v4640_v19 = vpop.permute.xlu0 %4639  ;;  %4043 = vmatpush3.msra.mxu1 %v3771_v45  ;;  %v3766_v24 = vld [vmem:[%s6894_s3 + $0x160] sm:$0xff]  ;;  %v3781_v10 = vld [vmem:[%s6894_s3 + $0x1d8] sm:$0xff] }
 0x21c   : > { %v4642_v22 = vunpack.i.h.bf16 %v4640_v19  ;;  %v4641_v26 = vunpack.i.l.bf16 %v4640_v19  ;;  %v1354_v49 = vsel %vm717_vm2, %v1346_v18, %v4636_v17  ;;  %v1330_v36 = vsel %vm717_vm2, %v1322_v63, %v4637_v13  ;;  %4044 = vmatprep.subr.mxu1 %v3786_v62  ;;  %v3765_v13 = vld [vmem:[%s6894_s3 + $0x158] sm:$0xff]  ;;  %v3780_v17 = vld [vmem:[%s6894_s3 + $0x1d0] sm:$0xff] }
 0x21d   : > { %v4650_v48 = vpop.permute.xlu1 %4649  ;;  %4045 = vmatpush3.msra.mxu1 %v3770_v33  ;;  %v3764_v18 = vld [vmem:[%s6894_s3 + $0x150] sm:$0xff] }
 0x21e   : > { %v4652_v29 = vunpack.i.h.bf16 %v4650_v48  ;;  %v4651_v32 = vunpack.i.l.bf16 %v4650_v48  ;;  %v1362_v40 = vsel %vm726_vm3, %v1354_v49, %v4641_v26  ;;  %v1338_v15 = vsel %vm726_vm3, %v1330_v36, %v4642_v22  ;;  %4046 = vmatprep.subr.mxu1 %v3785_v58  ;;  %v5936_v22 = vld [vmem:[%s6895_s4] ss:$0 sm:$0xff] }
 0x21f   : > { %v4645_v3 = vpop.permute.xlu0 %4644  ;;  %1488 = vmatprep.mubr.f32.mxu1 %v1362_v40  ;;  %4047 = vmatpush3.msra.mxu1 %v3769_v38  ;;  %v3779_v40 = vld [vmem:[%s6894_s3 + $0x1c8] sm:$0xff]  ;;  %v3758_v58 = vld [vmem:[%s6894_s3 + $0x120] sm:$0xff] }
 0x220   : > { %v4647_v25 = vunpack.i.h.bf16 %v4645_v3  ;;  %v4646_v34 = vunpack.i.l.bf16 %v4645_v3  ;;  %1489 = vmatmul.mubr.f32.gmra.mxu1 %v1338_v15  ;;  %v1347_v50 = vsel %vm368_vm0, %v5782_v44, %v4651_v32  ;;  %v1323_v54 = vsel %vm368_vm0, %v5770_v23, %v4652_v29  ;;  %v3792_v23 = vld [vmem:[%s6894_s3 + $0x230] sm:$0xff]  ;;  %v3791_v44 = vld [vmem:[%s6894_s3 + $0x228] sm:$0xff]  ;;  %4048 = vmatprep.subr.mxu1 %v3784_v39 }
 0x221   : > { %v4655_v31 = vpop.permute.xlu1 %4654  ;;  %4294 = vmatprep.subr.mxu0 %v3792_v23  ;;  %4049 = vmatpush3.msra.mxu1 %v3768_v41  ;;  %v3763_v15 = vld [vmem:[%s6894_s3 + $0x148] sm:$0xff] }
 0x222   : > { %v4657_v14 = vunpack.i.h.bf16 %v4655_v31  ;;  %v4656_v42 = vunpack.i.l.bf16 %v4655_v31  ;;  %v1355_v21 = vsel %vm717_vm2, %v1347_v50, %v4646_v34  ;;  %v1331_v28 = vsel %vm717_vm2, %v1323_v54, %v4647_v25  ;;  %4295 = vmatpush3.msra.mxu0 %v3792_v23  ;;  %4050 = vmatprep.subr.mxu1 %v3783_v5  ;;  %v3778_v34 = vld [vmem:[%s6894_s3 + $0x1c0] sm:$0xff]  ;;  %v3761_v50 = vld [vmem:[%s6894_s3 + $0x138] sm:$0xff]  ;;  %v3776_v54 = vld [vmem:[%s6894_s3 + $0x1b0] sm:$0xff] }
 0x223   : > { %4296 = vmatprep.subr.mxu0 %v3791_v44  ;;  %4051 = vmatpush3.msra.mxu1 %v3767_v30 }
 0x224   : > { %v1363_v55 = vsel %vm726_vm3, %v1355_v21, %v4656_v42  ;;  %v1339_v11 = vsel %vm726_vm3, %v1331_v28, %v4657_v14  ;;  %4297 = vmatpush3.msra.mxu0 %v3791_v44  ;;  %4052 = vmatprep.subr.mxu1 %v3782_v9  ;;  %v3762_v14 = vld [vmem:[%s6894_s3 + $0x140] sm:$0xff]  ;;  %v3777_v42 = vld [vmem:[%s6894_s3 + $0x1b8] sm:$0xff] }
 0x225   : > { %1493 = vmatprep.mubr.f32.mxu1 %v1363_v55  ;;  %4298 = vmatprep.subr.mxu0 %v3790_v8  ;;  %v5983_v9 = vld [vmem:[#allocation2 + $0x2] sm:$0xff] }
 0x226   : > { %1494 = vmatmul.mubr.f32.gmra.mxu1 %v1339_v11  ;;  %4299 = vmatpush3.msra.mxu0 %v3790_v8  ;;  %v3760_v11 = vld [vmem:[%s6894_s3 + $0x130] sm:$0xff] }
 0x227   : > { %4053 = vmatpush3.msra.mxu1 %v3766_v24 }
 0x228   : > { %4054 = vmatprep.subr.mxu1 %v3781_v10 }
 0x229   : > { %4055 = vmatpush3.msra.mxu1 %v3765_v13 }
 0x22a   : > { %4056 = vmatprep.subr.mxu1 %v3780_v17 }
 0x22b   : > { %4057 = vmatpush3.msra.mxu1 %v3764_v18 }
 0x22c   : > { %4058 = vmatprep.subr.mxu1 %v3779_v40 }
 0x22d   : > { %4059 = vmatpush3.msra.mxu1 %v3763_v15 }
 0x22e   : > { %4060 = vmatprep.subr.mxu1 %v3778_v34 }
 0x22f   : > { %4061 = vmatpush3.msra.mxu1 %v3762_v14 }
 0x230   : > { %4062 = vmatprep.subr.mxu1 %v3777_v42 }
 0x231   : > { %4063 = vmatpush3.msra.mxu1 %v3761_v50 }
 0x232   : > { %4064 = vmatprep.subr.mxu1 %v3776_v54 }
 0x233   : > { %4065 = vmatpush3.msra.mxu1 %v3760_v11 }
 0x234   : > { %4066 = vmatprep.subr.mxu1 %v3775_v35 }
 0x235   : > { %4067 = vmatpush3.msra.mxu1 %v3759_v59 }
 0x236   : > { %4068 = vmatprep.subr.mxu1 %v3774_v60 }
 0x237   : > { %4069 = vmatpush3.msra.mxu1 %v3758_v58 }
 0x246   : > { %v4282_v19 = vpop.f32.mrf.mxu0 }
 0x248   : > { %v1565_v32 = vpop.f32.mrf.mxu0 }
 0x252   : > { %v4285_v23 = vpop.f32.mrf.mxu0 }
 0x254   : > { %v1575_v38 = vpop.f32.mrf.mxu0 }
 0x2bb   : > { %v4002_v63 = vpop.f32.mrf.mxu1 }
 0x2bd   : > { %v4003_v26 = vpop.f32.mrf.mxu1 }
 0x2be   : > { %v4004_v48 = vadd.f32 %v4003_v26, %v4002_v63 }
 0x2c0   : > { %v1461_v29 = vadd.f32 %v4004_v48, %v5936_v22 }
 0x2c2   : > { %v1566_v49 = vadd.f32 %v1565_v32, %v1461_v29  ;;  %v4005_v36 = vpop.f32.mrf.mxu1  ;;  %v4288_v29 = vpop.f32.mrf.mxu0 }
 0x2c4   : > { %v1604_v3 = vmax.f32 %v1566_v49, 0.0  ;;  %v4006_v25 = vpop.f32.mrf.mxu1  ;;  %v1585_v34 = vpop.f32.mrf.mxu0 }
 0x2c5   : > { %v4007_v31 = vadd.f32 %v4006_v25, %v4005_v36 }
 0x2c6   : > { %1612 = vst.msk [vmem:[#allocation2 + $0x11] sm:$0xff] %vm368_vm0, %v1604_v3 }
 0x2c7   : > { %v1466_v21 = vadd.f32 %v4007_v31, %v5936_v22 }
 0x2c8   : > { %v4008_v55 = vpop.f32.mrf.mxu1 }
 0x2c9   : > { %v1571_v28 = vadd.f32 %v4282_v19, %v1466_v21 }
 0x2ca   : > { %v4009_v8 = vpop.f32.mrf.mxu1 }
 0x2cb   : > { %v1605_v44 = vmax.f32 %v1571_v28, 0.0  ;;  %v4010_v0 = vadd.f32 %v4009_v8, %v4008_v55 }
 0x2cd   : > { %1613 = vst.msk [vmem:[#allocation2 + $0x21] sm:$0xff] %vm368_vm0, %v1605_v44  ;;  %v1699_v61 = vld [vmem:[#allocation2 + $0x12] sm:$0xff]  ;;  %v1471_v45 = vadd.f32 %v4010_v0, %v5936_v22 }
 0x2ce   : > { %v4011_v62 = vpop.f32.mrf.mxu1  ;;  %v4658_v33 = vpack.i.bf16 %v5968_v57, %v1699_v61  ;;  %v5986_v10 = vld [vmem:[#allocation2 + $0x10] sm:$0xff] }
 0x2cf   : > { %v1576_v39 = vadd.f32 %v1575_v38, %v1471_v45  ;;  %v6000_v40 = vld [vmem:[#allocation2 + $0x11] sm:$0xff] }
 0x2d0   : > { %4659 = vrot.lane.b32.xlu0 %v4658_v33, %s6906_s30  ;;  %v4012_v41 = vpop.f32.mrf.mxu1  ;;  %v4291_v33 = vpop.f32.mrf.mxu0 }
 0x2d1   : > { %v4013_v5 = vadd.f32 %v4012_v41, %v4011_v62  ;;  %v1606_v30 = vmax.f32 %v1576_v39, 0.0 }
 0x2d3   : > { %v1476_v24 = vadd.f32 %v4013_v5, %v5936_v22  ;;  %1614 = vst.msk [vmem:[#allocation2 + $0x31] sm:$0xff] %vm368_vm0, %v1606_v30  ;;  %v1595_v30 = vpop.f32.mrf.mxu0 }
 0x2d4   : > { %v1723_v13 = vld [vmem:[#allocation2 + $0x22] sm:$0xff]  ;;  %v4014_v19 = vpop.f32.mrf.mxu1 }
 0x2d5   : > { %v5989_v17 = vld [vmem:[#allocation2 + $0x21] sm:$0xff]  ;;  %v1581_v63 = vadd.f32 %v4285_v23, %v1476_v24  ;;  %4300 = vmatprep.mubr.msk.f32.mxu0 %vm368_vm0, %v1723_v13  ;;  %v4673_v15 = vpack.i.bf16 %v6000_v40, %v1723_v13 }
 0x2d6   : > { %v5991_v18 = vld [vmem:[#allocation2 + $0x20] sm:$0xff]  ;;  %v4668_v26 = vpack.i.bf16 %v5986_v10, %v5989_v17  ;;  %v4015_v49 = vpop.f32.mrf.mxu1 }
 0x2d7   : > { %v4663_v48 = vpack.i.bf16 %v5983_v9, %v5991_v18  ;;  %v1607_v32 = vmax.f32 %v1581_v63, 0.0  ;;  %v4016_v36 = vadd.f32 %v4015_v49, %v4014_v19 }
 0x2d8   : > { %4669 = vrot.lane.b32.xlu0 %v4668_v26, %s6914_s13 }
 0x2d9   : > { %4664 = vrot.lane.b32.xlu1 %v4663_v48, %s6913_s22  ;;  %1615 = vst.msk [vmem:[#allocation2 + $0x41] sm:$0xff] %vm368_vm0, %v1607_v32  ;;  %v1481_v3 = vadd.f32 %v4016_v36, %v5936_v22 }
 0x2da   : > { %v4017_v25 = vpop.f32.mrf.mxu1  ;;  %v1724_v31 = vld [vmem:[#allocation2 + $0x32] sm:$0xff] }
 0x2db   : > { %v6006_v14 = vld [vmem:[#allocation2 + $0x30] sm:$0xff]  ;;  %v1586_v50 = vadd.f32 %v1585_v34, %v1481_v3  ;;  %4301 = vmatmul.mubr.msk.f32.vlgmr.msra.gmra.mxu0 %vm368_vm0, %v1724_v31  ;;  %v4688_v44 = vpack.i.bf16 %v5989_v17, %v1724_v31 }
 0x2dc   : > { %v6008_v42 = vld [vmem:[#allocation2 + $0x31] sm:$0xff]  ;;  %v4018_v54 = vpop.f32.mrf.mxu1  ;;  %v4678_v21 = vpack.i.bf16 %v1699_v61, %v6006_v14 }
 0x2dd   : > { %4674 = vrot.lane.b32.xlu1 %v4673_v15, %s6906_s30  ;;  %v4683_v28 = vpack.i.bf16 %v5991_v18, %v6008_v42  ;;  %v4019_v55 = vadd.f32 %v4018_v54, %v4017_v25  ;;  %v1608_v11 = vmax.f32 %v1586_v50, 0.0 }
 0x2de   : > { %4679 = vrot.lane.b32.xlu0 %v4678_v21, %s6913_s22 }
 0x2df   : > { %v1486_v35 = vadd.f32 %v4019_v55, %v5936_v22  ;;  %1616 = vst.msk [vmem:[#allocation2 + $0x51] sm:$0xff] %vm368_vm0, %v1608_v11 }
 0x2e0   : > { %v1725_v23 = vld [vmem:[#allocation2 + $0x42] sm:$0xff]  ;;  %v4020_v0 = vpop.f32.mrf.mxu1 }
 0x2e1   : > { %4684 = vrot.lane.b32.xlu1 %v4683_v28, %s6914_s13  ;;  %v6019_v8 = vld [vmem:[#allocation2 + $0x40] sm:$0xff]  ;;  %v1591_v59 = vadd.f32 %v4288_v29, %v1486_v35  ;;  %4303 = vmatprep.mubr.msk.f32.mxu0 %vm368_vm0, %v1725_v23  ;;  %v4703_v39 = vpack.i.bf16 %v6008_v42, %v1725_v23 }
 0x2e2   : > { %v4693_v60 = vpack.i.bf16 %v1723_v13, %v6019_v8  ;;  %v6023_v61 = vld [vmem:[#allocation2 + $0x41] sm:$0xff]  ;;  %4689 = vrot.lane.b32.xlu0 %v4688_v44, %s6906_s30  ;;  %v4021_v62 = vpop.f32.mrf.mxu1  ;;  %v6071_v44 = vld [vmem:[#allocation2 + $0x92] sm:$0xff] }
 0x2e3   : > { %v1609_v45 = vmax.f32 %v1591_v59, 0.0  ;;  %v4022_v58 = vadd.f32 %v4021_v62, %v4020_v0  ;;  %v4698_v38 = vpack.i.bf16 %v6006_v14, %v6023_v61 }
 0x2e5   : > { %4694 = vrot.lane.b32.xlu1 %v4693_v60, %s6913_s22  ;;  %1617 = vst.msk [vmem:[#allocation2 + $0x61] sm:$0xff] %vm368_vm0, %v1609_v45  ;;  %v1491_v41 = vadd.f32 %v4022_v58, %v5936_v22 }
 0x2e6   : > { %v4023_v5 = vpop.f32.mrf.mxu1  ;;  %4699 = vrot.lane.b32.xlu0 %v4698_v38, %s6914_s13  ;;  %v1726_v24 = vld [vmem:[#allocation2 + $0x52] sm:$0xff] }
 0x2e7   : > { %v6034_v13 = vld [vmem:[#allocation2 + $0x50] sm:$0xff]  ;;  %v1596_v19 = vadd.f32 %v1595_v30, %v1491_v41  ;;  %4304 = vmatmul.mubr.msk.f32.gmra.mxu0 %vm368_vm0, %v1726_v24  ;;  %v4718_v3 = vpack.i.bf16 %v6023_v61, %v1726_v24 }
 0x2e8   : > { %v6036_v63 = vld [vmem:[#allocation2 + $0x51] sm:$0xff]  ;;  %v4024_v26 = vpop.f32.mrf.mxu1  ;;  %v4708_v48 = vpack.i.bf16 %v1724_v31, %v6034_v13 }
 0x2e9   : > { %4704 = vrot.lane.b32.xlu1 %v4703_v39, %s6906_s30  ;;  %v4713_v29 = vpack.i.bf16 %v6019_v8, %v6036_v63  ;;  %v4025_v32 = vadd.f32 %v4024_v26, %v4023_v5  ;;  %v1610_v49 = vmax.f32 %v1596_v19, 0.0  ;;  %v6084_v38 = vld [vmem:[#allocation2 + $0x90] sm:$0xff]  ;;  %v6094_v26 = vld [vmem:[#allocation2] sm:$0xff] }
 0x2ea   : > { %4709 = vrot.lane.b32.xlu0 %v4708_v48, %s6913_s22  ;;  %v6087_v39 = vld [vmem:[#allocation2 + $0x91] sm:$0xff] }
 0x2eb   : > { %v1496_v36 = vadd.f32 %v4025_v32, %v5936_v22  ;;  %1618 = vst.msk [vmem:[#allocation2 + $0x71] sm:$0xff] %vm368_vm0, %v1610_v49 }
 0x2ec   : > { %v1727_v15 = vld [vmem:[#allocation2 + $0x62] sm:$0xff] }
 0x2ed   : > { %4714 = vrot.lane.b32.xlu1 %v4713_v29, %s6914_s13  ;;  %v6047_v25 = vld [vmem:[#allocation2 + $0x60] sm:$0xff]  ;;  %v1601_v34 = vadd.f32 %v4291_v33, %v1496_v36  ;;  %4306 = vmatprep.mubr.msk.f32.mxu0 %vm368_vm0, %v1727_v15  ;;  %v4733_v21 = vpack.i.bf16 %v6036_v63, %v1727_v15 }
 0x2ee   : > { %v4723_v31 = vpack.i.bf16 %v1725_v23, %v6047_v25  ;;  %v6051_v50 = vld [vmem:[#allocation2 + $0x61] sm:$0xff]  ;;  %4719 = vrot.lane.b32.xlu0 %v4718_v3, %s6906_s30 }
 0x2ef   : > { %v1611_v54 = vmax.f32 %v1601_v34, 0.0  ;;  %v4728_v22 = vpack.i.bf16 %v6034_v13, %v6051_v50 }
 0x2f1   : > { %4724 = vrot.lane.b32.xlu1 %v4723_v31, %s6913_s22  ;;  %1619 = vst.msk [vmem:[#allocation2 + $0x81] sm:$0xff] %vm368_vm0, %v1611_v54 }
 0x2f2   : > { %4729 = vrot.lane.b32.xlu0 %v4728_v22, %s6914_s13  ;;  %v1728_v28 = vld [vmem:[#allocation2 + $0x72] sm:$0xff] }
 0x2f3   : > { %v6061_v55 = vld [vmem:[#allocation2 + $0x70] sm:$0xff]  ;;  %4307 = vmatmul.mubr.msk.f32.gmra.mxu0 %vm368_vm0, %v1728_v28  ;;  %v4748_v0 = vpack.i.bf16 %v6051_v50, %v1728_v28  ;;  %v4763_v41 = vpack.i.bf16 %v1728_v28, %v6084_v38 }
 0x2f4   : > { %v6063_v11 = vld [vmem:[#allocation2 + $0x71] sm:$0xff]  ;;  %v4738_v35 = vpack.i.bf16 %v1726_v24, %v6061_v55 }
 0x2f5   : > { %4734 = vrot.lane.b32.xlu1 %v4733_v21, %s6906_s30  ;;  %v4743_v23 = vpack.i.bf16 %v6047_v25, %v6063_v11 }
 0x2f6   : > { %4739 = vrot.lane.b32.xlu0 %v4738_v35, %s6913_s22 }
 0x2f8   : > { %v1729_v59 = vld [vmem:[#allocation2 + $0x82] sm:$0xff] }
 0x2f9   : > { %4744 = vrot.lane.b32.xlu1 %v4743_v23, %s6914_s13  ;;  %v1713_v60 = vld [vmem:[#allocation2 + $0x80] sm:$0xff]  ;;  %4309 = vmatprep.mubr.msk.f32.mxu0 %vm368_vm0, %v1729_v59  ;;  %v4768_v58 = vpack.i.bf16 %v6063_v11, %v1729_v59 }
 0x2fa   : > { %v4753_v45 = vpack.i.bf16 %v1727_v15, %v1713_v60  ;;  %v6075_v62 = vld [vmem:[#allocation2 + $0x81] sm:$0xff]  ;;  %4749 = vrot.lane.b32.xlu0 %v4748_v0, %s6906_s30  ;;  %4310 = vmatmul.mubr.msk.f32.gmra.mxu0 %vm368_vm0, %v6071_v44  ;;  %v4773_v5 = vpack.i.bf16 %v1713_v60, %v6087_v39 }
 0x2fb   : > { %v4758_v33 = vpack.i.bf16 %v6061_v55, %v6075_v62 }
 0x2fd   : > { %4754 = vrot.lane.b32.xlu1 %v4753_v45, %s6913_s22 }
 0x2fe   : > { %4759 = vrot.lane.b32.xlu0 %v4758_v33, %s6914_s13 }
 0x301   : > { %4769 = vrot.lane.b32.xlu1 %v4768_v58, %s6906_s30  ;;  %s5028_s30 = sshll.u32 %s5091_s0, 4  ;;  %s5029_s30 = int_to_ptr.vmem [resolvable:$false] %s5028_s30 }
 0x302   : > { %4764 = vrot.lane.b32.xlu0 %v4763_v41, %s6913_s22  ;;  %s5030_s8 = scalar_lea.vmem %s5029_s30, 32 }
 0x305   : > { %4774 = vrot.lane.b32.xlu1 %v4773_v5, %s6914_s13 }
 0x342   : > { %v4660_v30 = vpop.permute.xlu0 %4659 }
 0x343   : > { %v4662_v24 = vunpack.i.h.bf16 %v4660_v30  ;;  %v4661_v19 = vunpack.i.l.bf16 %v4660_v30 }
 0x345   : > { %v1923_v3 = vsel %vm368_vm0, %v6094_v26, %v4662_v24  ;;  %v1947_v34 = vsel %vm368_vm0, %v6000_v40, %v4661_v19 }
 0x34a   : > { %v4670_v48 = vpop.permute.xlu0 %4669 }
 0x34b   : > { %v4665_v29 = vpop.permute.xlu1 %4664  ;;  %v4672_v32 = vunpack.i.h.bf16 %v4670_v48  ;;  %v4671_v49 = vunpack.i.l.bf16 %v4670_v48 }
 0x34c   : > { %v4667_v36 = vunpack.i.h.bf16 %v4665_v29  ;;  %v4666_v15 = vunpack.i.l.bf16 %v4665_v29 }
 0x34e   : > { %v1931_v31 = vsel %vm717_vm2, %v1923_v3, %v4667_v36  ;;  %v1955_v54 = vsel %vm717_vm2, %v1947_v34, %v4666_v15 }
 0x34f   : > { %v4675_v22 = vpop.permute.xlu1 %4674  ;;  %v1963_v21 = vsel %vm726_vm3, %v1955_v54, %v4671_v49  ;;  %v1939_v28 = vsel %vm726_vm3, %v1931_v31, %v4672_v32 }
 0x350   : > { %v4677_v35 = vunpack.i.h.bf16 %v4675_v22  ;;  %v4676_v23 = vunpack.i.l.bf16 %v4675_v22  ;;  %2065 = vmatprep.mubr.f32.mxu1 %v1963_v21  ;;  %v4680_v59 = vpop.permute.xlu0 %4679 }
 0x351   : > { %2066 = vmatmul.mubr.f32.vlgmr.msra.gmra.mxu1 %v1939_v28  ;;  %v4682_v0 = vunpack.i.h.bf16 %v4680_v59  ;;  %v4681_v60 = vunpack.i.l.bf16 %v4680_v59 }
 0x352   : > { %v1948_v40 = vsel %vm368_vm0, %v5989_v17, %v4676_v23  ;;  %v1924_v41 = vsel %vm368_vm0, %v5986_v10, %v4677_v35 }
 0x353   : > { %v4685_v45 = vpop.permute.xlu1 %4684  ;;  %v1956_v5 = vsel %vm717_vm2, %v1948_v40, %v4681_v60  ;;  %v1932_v30 = vsel %vm717_vm2, %v1924_v41, %v4682_v0 }
 0x354   : > { %v4687_v33 = vunpack.i.h.bf16 %v4685_v45  ;;  %v4686_v58 = vunpack.i.l.bf16 %v4685_v45  ;;  %v4690_v24 = vpop.permute.xlu0 %4689 }
 0x355   : > { %v4692_v29 = vunpack.i.h.bf16 %v4690_v24  ;;  %v4691_v32 = vunpack.i.l.bf16 %v4690_v24 }
 0x356   : > { %v1964_v19 = vsel %vm726_vm3, %v1956_v5, %v4686_v58  ;;  %v1940_v48 = vsel %vm726_vm3, %v1932_v30, %v4687_v33 }
 0x357   : > { %v4695_v49 = vpop.permute.xlu1 %4694  ;;  %2070 = vmatprep.mubr.f32.mxu1 %v1964_v19  ;;  %v1949_v17 = vsel %vm368_vm0, %v6008_v42, %v4691_v32  ;;  %v1925_v10 = vsel %vm368_vm0, %v5991_v18, %v4692_v29 }
 0x358   : > { %v4697_v36 = vunpack.i.h.bf16 %v4695_v49  ;;  %v4696_v15 = vunpack.i.l.bf16 %v4695_v49  ;;  %2071 = vmatmul.mubr.f32.gmra.mxu1 %v1940_v48  ;;  %v4700_v3 = vpop.permute.xlu0 %4699 }
 0x359   : > { %v4702_v34 = vunpack.i.h.bf16 %v4700_v3  ;;  %v4701_v31 = vunpack.i.l.bf16 %v4700_v3 }
 0x35a   : > { %v1957_v28 = vsel %vm717_vm2, %v1949_v17, %v4696_v15  ;;  %v1933_v35 = vsel %vm717_vm2, %v1925_v10, %v4697_v36 }
 0x35b   : > { %v4705_v54 = vpop.permute.xlu1 %4704  ;;  %v1965_v23 = vsel %vm726_vm3, %v1957_v28, %v4701_v31  ;;  %v1941_v59 = vsel %vm726_vm3, %v1933_v35, %v4702_v34 }
 0x35c   : > { %v4707_v22 = vunpack.i.h.bf16 %v4705_v54  ;;  %v4706_v21 = vunpack.i.l.bf16 %v4705_v54  ;;  %2075 = vmatprep.mubr.f32.mxu1 %v1965_v23  ;;  %v4710_v0 = vpop.permute.xlu0 %4709 }
 0x35d   : > { %v4712_v42 = vunpack.i.h.bf16 %v4710_v0  ;;  %v4711_v60 = vunpack.i.l.bf16 %v4710_v0  ;;  %2076 = vmatmul.mubr.f32.gmra.mxu1 %v1941_v59 }
 0x35e   : > { %v1950_v58 = vsel %vm368_vm0, %v6023_v61, %v4706_v21  ;;  %v1926_v40 = vsel %vm368_vm0, %v6006_v14, %v4707_v22 }
 0x35f   : > { %v4715_v18 = vpop.permute.xlu1 %4714  ;;  %v1958_v41 = vsel %vm717_vm2, %v1950_v58, %v4711_v60  ;;  %v1934_v5 = vsel %vm717_vm2, %v1926_v40, %v4712_v42 }
 0x360   : > { %v4717_v45 = vunpack.i.h.bf16 %v4715_v18  ;;  %v4716_v33 = vunpack.i.l.bf16 %v4715_v18  ;;  %v4720_v30 = vpop.permute.xlu0 %4719 }
 0x361   : > { %v4722_v48 = vunpack.i.h.bf16 %v4720_v30  ;;  %v4721_v29 = vunpack.i.l.bf16 %v4720_v30 }
 0x362   : > { %v1966_v24 = vsel %vm726_vm3, %v1958_v41, %v4716_v33  ;;  %v1942_v19 = vsel %vm726_vm3, %v1934_v5, %v4717_v45 }
 0x363   : > { %v4725_v32 = vpop.permute.xlu1 %4724  ;;  %2080 = vmatprep.mubr.f32.mxu1 %v1966_v24  ;;  %v1951_v61 = vsel %vm368_vm0, %v6036_v63, %v4721_v29  ;;  %v1927_v14 = vsel %vm368_vm0, %v6019_v8, %v4722_v48 }
 0x364   : > { %v4727_v49 = vunpack.i.h.bf16 %v4725_v32  ;;  %v4726_v36 = vunpack.i.l.bf16 %v4725_v32  ;;  %2081 = vmatmul.mubr.f32.gmra.mxu1 %v1942_v19  ;;  %v4730_v15 = vpop.permute.xlu0 %4729 }
 0x365   : > { %v4732_v17 = vunpack.i.h.bf16 %v4730_v15  ;;  %v4731_v10 = vunpack.i.l.bf16 %v4730_v15 }
 0x366   : > { %v1959_v54 = vsel %vm717_vm2, %v1951_v61, %v4726_v36  ;;  %v1935_v22 = vsel %vm717_vm2, %v1927_v14, %v4727_v49 }
 0x367   : > { %v4735_v3 = vpop.permute.xlu1 %4734  ;;  %v1967_v21 = vsel %vm726_vm3, %v1959_v54, %v4731_v10  ;;  %v1943_v28 = vsel %vm726_vm3, %v1935_v22, %v4732_v17 }
 0x368   : > { %v4737_v34 = vunpack.i.h.bf16 %v4735_v3  ;;  %v4736_v31 = vunpack.i.l.bf16 %v4735_v3  ;;  %v4740_v35 = vpop.permute.xlu0 %4739  ;;  %2085 = vmatprep.mubr.f32.mxu1 %v1967_v21 }
 0x369   : > { %v4742_v63 = vunpack.i.h.bf16 %v4740_v35  ;;  %v4741_v23 = vunpack.i.l.bf16 %v4740_v35  ;;  %2086 = vmatmul.mubr.f32.gmra.mxu1 %v1943_v28 }
 0x36a   : > { %v1952_v42 = vsel %vm368_vm0, %v6051_v50, %v4736_v31  ;;  %v1928_v60 = vsel %vm368_vm0, %v6034_v13, %v4737_v34 }
 0x36b   : > { %v4745_v59 = vpop.permute.xlu1 %4744  ;;  %v1960_v18 = vsel %vm717_vm2, %v1952_v42, %v4741_v23  ;;  %v1936_v45 = vsel %vm717_vm2, %v1928_v60, %v4742_v63  ;;  %v3819_v42 = vld [vmem:[%s6894_s3 + $0x2b8] sm:$0xff]  ;;  %v3834_v60 = vld [vmem:[%s6894_s3 + $0x330] sm:$0xff] }
 0x36c   : > { %v4747_v8 = vunpack.i.h.bf16 %v4745_v59  ;;  %v4746_v0 = vunpack.i.l.bf16 %v4745_v59  ;;  %v4750_v33 = vpop.permute.xlu0 %4749  ;;  %v3839_v59 = vld [vmem:[%s6894_s3 + $0x358] sm:$0xff] }
 0x36d   : > { %v4752_v41 = vunpack.i.h.bf16 %v4750_v33  ;;  %v4751_v5 = vunpack.i.l.bf16 %v4750_v33  ;;  %4312 = vmatprep.subr.mxu0 %v3839_v59  ;;  %v3817_v33 = vld [vmem:[%s6894_s3 + $0x2a8] sm:$0xff] }
 0x36e   : > { %v1968_v58 = vsel %vm726_vm3, %v1960_v18, %v4746_v0  ;;  %v1944_v40 = vsel %vm726_vm3, %v1936_v45, %v4747_v8  ;;  %4313 = vmatpush3.msra.mxu0 %v3839_v59  ;;  %v3836_v8 = vld [vmem:[%s6894_s3 + $0x340] sm:$0xff]  ;;  %v3835_v0 = vld [vmem:[%s6894_s3 + $0x338] sm:$0xff]  ;;  %v3818_v18 = vld [vmem:[%s6894_s3 + $0x2b0] sm:$0xff] }
 0x36f   : > { %v4755_v30 = vpop.permute.xlu1 %4754  ;;  %2090 = vmatprep.mubr.f32.mxu1 %v1968_v58  ;;  %v1953_v50 = vsel %vm368_vm0, %v6063_v11, %v4751_v5  ;;  %v1929_v13 = vsel %vm368_vm0, %v6047_v25, %v4752_v41  ;;  %4106 = vmatprep.subr.mxu1 %v3835_v0  ;;  %v3833_v45 = vld [vmem:[%s6894_s3 + $0x328] sm:$0xff]  ;;  %v3832_v58 = vld [vmem:[%s6894_s3 + $0x320] sm:$0xff]  ;;  %v3831_v41 = vld [vmem:[%s6894_s3 + $0x318] sm:$0xff] }
 0x370   : > { %v4757_v24 = vunpack.i.h.bf16 %v4755_v30  ;;  %v4756_v19 = vunpack.i.l.bf16 %v4755_v30  ;;  %2091 = vmatmul.mubr.f32.gmra.mxu1 %v1944_v40  ;;  %v4760_v48 = vpop.permute.xlu0 %4759  ;;  %v3816_v40 = vld [vmem:[%s6894_s3 + $0x2a0] sm:$0xff]  ;;  %v3815_v5 = vld [vmem:[%s6894_s3 + $0x298] sm:$0xff]  ;;  %v3830_v30 = vld [vmem:[%s6894_s3 + $0x310] sm:$0xff] }
 0x371   : > { %v4762_v29 = vunpack.i.h.bf16 %v4760_v48  ;;  %v4761_v32 = vunpack.i.l.bf16 %v4760_v48  ;;  %4107 = vmatpush3.msra.mxu1 %v3819_v42  ;;  %v3812_v48 = vld [vmem:[%s6894_s3 + $0x280] sm:$0xff]  ;;  %v3807_v59 = vld [vmem:[%s6894_s3 + $0x258] sm:$0xff] }
 0x372   : > { %v1961_v14 = vsel %vm717_vm2, %v1953_v50, %v4756_v19  ;;  %v1937_v15 = vsel %vm717_vm2, %v1929_v13, %v4757_v24  ;;  %4108 = vmatprep.subr.mxu1 %v3834_v60  ;;  %v3814_v24 = vld [vmem:[%s6894_s3 + $0x290] sm:$0xff]  ;;  %v3829_v19 = vld [vmem:[%s6894_s3 + $0x308] sm:$0xff]  ;;  %v3828_v13 = vld [vmem:[%s6894_s3 + $0x300] sm:$0xff] }
 0x373   : > { %v4770_v49 = vpop.permute.xlu1 %4769  ;;  %v1969_v17 = vsel %vm726_vm3, %v1961_v14, %v4761_v32  ;;  %v1945_v10 = vsel %vm726_vm3, %v1937_v15, %v4762_v29  ;;  %4109 = vmatpush3.msra.mxu1 %v3818_v18  ;;  %v3813_v50 = vld [vmem:[%s6894_s3 + $0x288] sm:$0xff]  ;;  %v3827_v29 = vld [vmem:[%s6894_s3 + $0x2f8] sm:$0xff]  ;;  %v6235_v15 = vld [vmem:[%s6895_s4 + $0x1] ss:$0 sm:$0xff] }
 0x374   : > { %v4772_v36 = vunpack.i.h.bf16 %v4770_v49  ;;  %v4771_v61 = vunpack.i.l.bf16 %v4770_v49  ;;  %v4765_v3 = vpop.permute.xlu0 %4764  ;;  %2095 = vmatprep.mubr.f32.mxu1 %v1969_v17  ;;  %4110 = vmatprep.subr.mxu1 %v3833_v45  ;;  %v3811_v32 = vld [vmem:[%s6894_s3 + $0x278] sm:$0xff]  ;;  %v3826_v49 = vld [vmem:[%s6894_s3 + $0x2f0] sm:$0xff] }
 0x375   : > { %v4767_v11 = vunpack.i.h.bf16 %v4765_v3  ;;  %v4766_v34 = vunpack.i.l.bf16 %v4765_v3  ;;  %2096 = vmatmul.mubr.f32.gmra.mxu1 %v1945_v10  ;;  %v3806_v18 = vld [vmem:[%s6894_s3 + $0x250] sm:$0xff] }
 0x376   : > { %v1954_v22 = vsel %vm368_vm0, %v6075_v62, %v4771_v61  ;;  %v1930_v21 = vsel %vm368_vm0, %v6061_v55, %v4772_v36  ;;  %v3838_v55 = vld [vmem:[%s6894_s3 + $0x350] sm:$0xff]  ;;  %v3837_v62 = vld [vmem:[%s6894_s3 + $0x348] sm:$0xff]  ;;  %4111 = vmatpush3.msra.mxu1 %v3817_v33 }
 0x377   : > { %v4775_v31 = vpop.permute.xlu1 %4774  ;;  %v1962_v28 = vsel %vm717_vm2, %v1954_v22, %v4766_v34  ;;  %v1938_v35 = vsel %vm717_vm2, %v1930_v21, %v4767_v11  ;;  %4314 = vmatprep.subr.mxu0 %v3838_v55  ;;  %4112 = vmatprep.subr.mxu1 %v3832_v58  ;;  %v3810_v36 = vld [vmem:[%s6894_s3 + $0x270] sm:$0xff]  ;;  %v3825_v22 = vld [vmem:[%s6894_s3 + $0x2e8] sm:$0xff] }
 0x378   : > { %v4777_v25 = vunpack.i.h.bf16 %v4775_v31  ;;  %v4776_v54 = vunpack.i.l.bf16 %v4775_v31  ;;  %4315 = vmatpush3.msra.mxu0 %v3838_v55  ;;  %4113 = vmatpush3.msra.mxu1 %v3816_v40  ;;  %v3822_v55 = vld [vmem:[%s6894_s3 + $0x2d0] sm:$0xff]  ;;  %v3821_v33 = vld [vmem:[%s6894_s3 + $0x2c8] sm:$0xff] }
 0x379   : > { %4316 = vmatprep.subr.mxu0 %v3837_v62  ;;  %4114 = vmatprep.subr.mxu1 %v3831_v41  ;;  %v3820_v41 = vld [vmem:[%s6894_s3 + $0x2c0] sm:$0xff] }
 0x37a   : > { %v1970_v63 = vsel %vm726_vm3, %v1962_v28, %v4776_v54  ;;  %v1946_v23 = vsel %vm726_vm3, %v1938_v35, %v4777_v25  ;;  %4317 = vmatpush3.msra.mxu0 %v3837_v62  ;;  %4115 = vmatpush3.msra.mxu1 %v3815_v5  ;;  %v3809_v28 = vld [vmem:[%s6894_s3 + $0x268] sm:$0xff] }
 0x37b   : > { %2100 = vmatprep.mubr.f32.mxu1 %v1970_v63  ;;  %4318 = vmatprep.subr.mxu0 %v3836_v8  ;;  %v3808_v63 = vld [vmem:[%s6894_s3 + $0x260] sm:$0xff] }
 0x37c   : > { %2101 = vmatmul.mubr.f32.gmra.mxu1 %v1946_v23  ;;  %4319 = vmatpush3.msra.mxu0 %v3836_v8  ;;  %v3823_v23 = vld [vmem:[%s6894_s3 + $0x2d8] sm:$0xff] }
 0x37d   : > { %4116 = vmatprep.subr.mxu1 %v3830_v30 }
 0x37e   : > { %4117 = vmatpush3.msra.mxu1 %v3814_v24 }
 0x37f   : > { %4118 = vmatprep.subr.mxu1 %v3829_v19 }
 0x380   : > { %4119 = vmatpush3.msra.mxu1 %v3813_v50 }
 0x381   : > { %4120 = vmatprep.subr.mxu1 %v3828_v13  ;;  %v3804_v13 = vld [vmem:[%s6894_s3 + $0x240] sm:$0xff] }
 0x382   : > { %4121 = vmatpush3.msra.mxu1 %v3812_v48 }
 0x383   : > { %4122 = vmatprep.subr.mxu1 %v3827_v29 }
 0x384   : > { %4123 = vmatpush3.msra.mxu1 %v3811_v32 }
 0x385   : > { %4124 = vmatprep.subr.mxu1 %v3826_v49 }
 0x386   : > { %4125 = vmatpush3.msra.mxu1 %v3810_v36 }
 0x387   : > { %4126 = vmatprep.subr.mxu1 %v3825_v22 }
 0x388   : > { %4127 = vmatpush3.msra.mxu1 %v3809_v28 }
 0x389   : > { %4128 = vmatprep.subr.mxu1 %v3824_v46 }
 0x38a   : > { %4129 = vmatpush3.msra.mxu1 %v3808_v63 }
 0x38b   : > { %4130 = vmatprep.subr.mxu1 %v3823_v23 }
 0x38c   : > { %4131 = vmatpush3.msra.mxu1 %v3807_v59 }
 0x38d   : > { %4132 = vmatprep.subr.mxu1 %v3822_v55 }
 0x38e   : > { %4133 = vmatpush3.msra.mxu1 %v3806_v18 }
 0x38f   : > { %4134 = vmatprep.subr.mxu1 %v3821_v33 }
 0x390   : > { %4135 = vmatpush3.msra.mxu1 %v3805_v53 }
 0x391   : > { %4136 = vmatprep.subr.mxu1 %v3820_v41 }
 0x392   : > { %4137 = vmatpush3.msra.mxu1 %v3804_v13 }
 0x39b   : > { %v4302_v14 = vpop.f32.mrf.mxu0 }
 0x39d   : > { %v2172_v11 = vpop.f32.mrf.mxu0 }
 0x3a7   : > { %v4305_v0 = vpop.f32.mrf.mxu0 }
 0x3a9   : > { %v2182_v5 = vpop.f32.mrf.mxu0 }
 0x411   : > { %v4070_v61 = vpop.f32.mrf.mxu1 }
 0x413   : > { %v4071_v17 = vpop.f32.mrf.mxu1 }
 0x414   : > { %v4072_v10 = vadd.f32 %v4071_v17, %v4070_v61 }
 0x416   : > { %v2068_v3 = vadd.f32 %v4072_v10, %v6235_v15 }
 0x418   : > { %v2173_v34 = vadd.f32 %v2172_v11, %v2068_v3  ;;  %v4073_v31 = vpop.f32.mrf.mxu1 }
 0x41a   : > { %v6240_v25 = vadd.f32 %v2173_v34, %v999_v51  ;;  %v4074_v54 = vpop.f32.mrf.mxu1 }
 0x41b   : > { %v4075_v21 = vadd.f32 %v4074_v54, %v4073_v31 }
 0x41c   : > { %v2219_v35 = vmax.f32 %v6240_v25, 0.0 }
 0x41d   : > { %v2073_v51 = vadd.f32 %v4075_v21, %v6235_v15  ;;  %v4076_v8 = vpop.f32.mrf.mxu1 }
 0x41e   : > { %2227 = vst.msk [vmem:[#allocation2 + $0x11] sm:$0xff] %vm368_vm0, %v2219_v35 }
 0x41f   : > { %v2178_v62 = vadd.f32 %v4302_v14, %v2073_v51  ;;  %v4077_v60 = vpop.f32.mrf.mxu1 }
 0x420   : > { %v4078_v45 = vadd.f32 %v4077_v60, %v4076_v8 }
 0x421   : > { %v6270_v42 = vadd.f32 %v2178_v62, %v1000_v56 }
 0x422   : > { %v2078_v56 = vadd.f32 %v4078_v45, %v6235_v15 }
 0x423   : > { %v2220_v58 = vmax.f32 %v6270_v42, 0.0 }
 0x424   : > { %v4079_v40 = vpop.f32.mrf.mxu1  ;;  %v2183_v24 = vadd.f32 %v2182_v5, %v2078_v56 }
 0x425   : > { %2228 = vst.msk [vmem:[#allocation2 + $0x21] sm:$0xff] %vm368_vm0, %v2220_v58  ;;  %v2314_v30 = vld [vmem:[#allocation2 + $0x12] sm:$0xff] }
 0x426   : > { %v4080_v19 = vpop.f32.mrf.mxu1  ;;  %v4778_v50 = vpack.i.bf16 %v5968_v57, %v2314_v30  ;;  %v6295_v29 = vadd.f32 %v2183_v24, %v1001_v6  ;;  %v6300_v14 = vld [vmem:[#allocation2 + $0x10] sm:$0xff]  ;;  %v4308_v6 = vpop.f32.mrf.mxu0 }
 0x427   : > { %v4081_v48 = vadd.f32 %v4080_v19, %v4079_v40  ;;  %v6322_v22 = vld [vmem:[#allocation2 + $0x11] sm:$0xff] }
 0x428   : > { %4779 = vrot.lane.b32.xlu0 %v4778_v50, %s6915_s26  ;;  %v2221_v49 = vmax.f32 %v6295_v29, 0.0  ;;  %v2192_v21 = vpop.f32.mrf.mxu0 }
 0x429   : > { %v2083_v32 = vadd.f32 %v4081_v48, %v6235_v15  ;;  %v4082_v61 = vpop.f32.mrf.mxu1 }
 0x42a   : > { %2229 = vst.msk [vmem:[#allocation2 + $0x31] sm:$0xff] %vm368_vm0, %v2221_v49  ;;  %v4311_v40 = vpop.f32.mrf.mxu0 }
 0x42b   : > { %v2188_v36 = vadd.f32 %v4305_v0, %v2083_v32  ;;  %v4083_v3 = vpop.f32.mrf.mxu1 }
 0x42c   : > { %v2338_v57 = vld [vmem:[#allocation2 + $0x22] sm:$0xff]  ;;  %v4084_v31 = vadd.f32 %v4083_v3, %v4082_v61  ;;  %v2202_v50 = vpop.f32.mrf.mxu0 }
 0x42d   : > { %v6305_v17 = vld [vmem:[#allocation2 + $0x21] sm:$0xff]  ;;  %v6311_v10 = vadd.f32 %v2188_v36, %v1002_v16  ;;  %4320 = vmatprep.mubr.msk.f32.mxu0 %vm368_vm0, %v2338_v57  ;;  %v4793_v28 = vpack.i.bf16 %v6322_v22, %v2338_v57 }
 0x42e   : > { %v6307_v20 = vld [vmem:[#allocation2 + $0x20] sm:$0xff]  ;;  %v4788_v11 = vpack.i.bf16 %v6300_v14, %v6305_v17  ;;  %v2088_v12 = vadd.f32 %v4084_v31, %v6235_v15 }
 0x42f   : > { %v4783_v34 = vpack.i.bf16 %v5983_v9, %v6307_v20  ;;  %v2222_v54 = vmax.f32 %v6311_v10, 0.0 }
 0x430   : > { %4789 = vrot.lane.b32.xlu0 %v4788_v11, %s6914_s13  ;;  %v4085_v16 = vpop.f32.mrf.mxu1  ;;  %v2193_v9 = vadd.f32 %v2192_v21, %v2088_v12 }
 0x431   : > { %4784 = vrot.lane.b32.xlu1 %v4783_v34, %s6913_s22  ;;  %2230 = vst.msk [vmem:[#allocation2 + $0x41] sm:$0xff] %vm368_vm0, %v2222_v54  ;;  %v2339_v63 = vld [vmem:[#allocation2 + $0x32] sm:$0xff] }
 0x432   : > { %v4086_v46 = vpop.f32.mrf.mxu1  ;;  %v6329_v23 = vld [vmem:[#allocation2 + $0x30] sm:$0xff]  ;;  %v6335_v55 = vadd.f32 %v2193_v9, %v1003_v43  ;;  %4321 = vmatmul.mubr.msk.f32.vlgmr.msra.gmra.mxu0 %vm368_vm0, %v2339_v63  ;;  %v4808_v43 = vpack.i.bf16 %v6305_v17, %v2339_v63 }
 0x433   : > { %v4087_v51 = vadd.f32 %v4086_v46, %v4085_v16  ;;  %v6331_v59 = vld [vmem:[#allocation2 + $0x31] sm:$0xff]  ;;  %v4798_v62 = vpack.i.bf16 %v2314_v30, %v6329_v23 }
 0x434   : > { %v4803_v8 = vpack.i.bf16 %v6307_v20, %v6331_v59  ;;  %v2223_v60 = vmax.f32 %v6335_v55, 0.0 }
 0x435   : > { %4794 = vrot.lane.b32.xlu1 %v4793_v28, %s6915_s26  ;;  %v2093_v0 = vadd.f32 %v4087_v51, %v6235_v15  ;;  %4799 = vrot.lane.b32.xlu0 %v4798_v62, %s6913_s22  ;;  %v4088_v45 = vpop.f32.mrf.mxu1 }
 0x436   : > { %2231 = vst.msk [vmem:[#allocation2 + $0x51] sm:$0xff] %vm368_vm0, %v2223_v60 }
 0x437   : > { %v2198_v18 = vadd.f32 %v4308_v6, %v2093_v0  ;;  %v4089_v56 = vpop.f32.mrf.mxu1 }
 0x438   : > { %v2340_v27 = vld [vmem:[#allocation2 + $0x42] sm:$0xff]  ;;  %v4090_v30 = vadd.f32 %v4089_v56, %v4088_v45 }
 0x439   : > { %4804 = vrot.lane.b32.xlu1 %v4803_v8, %s6914_s13  ;;  %v6349_v33 = vld [vmem:[#allocation2 + $0x40] sm:$0xff]  ;;  %v6353_v53 = vadd.f32 %v2198_v18, %v1004_v52  ;;  %4323 = vmatprep.mubr.msk.f32.mxu0 %vm368_vm0, %v2340_v27  ;;  %v4823_v13 = vpack.i.bf16 %v6331_v59, %v2340_v27 }
 0x43a   : > { %v4813_v41 = vpack.i.bf16 %v2338_v57, %v6349_v33  ;;  %v6357_v5 = vld [vmem:[#allocation2 + $0x41] sm:$0xff]  ;;  %4809 = vrot.lane.b32.xlu0 %v4808_v43, %s6915_s26  ;;  %v2098_v19 = vadd.f32 %v4090_v30, %v6235_v15 }
 0x43b   : > { %v2224_v24 = vmax.f32 %v6353_v53, 0.0  ;;  %v4818_v52 = vpack.i.bf16 %v6329_v23, %v6357_v5 }
 0x43c   : > { %v4091_v47 = vpop.f32.mrf.mxu1  ;;  %v2203_v48 = vadd.f32 %v2202_v50, %v2098_v19 }
 0x43d   : > { %4814 = vrot.lane.b32.xlu1 %v4813_v41, %s6913_s22  ;;  %2232 = vst.msk [vmem:[#allocation2 + $0x61] sm:$0xff] %vm368_vm0, %v2224_v24  ;;  %v2341_v61 = vld [vmem:[#allocation2 + $0x52] sm:$0xff] }
 0x43e   : > { %v4092_v32 = vpop.f32.mrf.mxu1  ;;  %4819 = vrot.lane.b32.xlu0 %v4818_v52, %s6914_s13  ;;  %v6371_v57 = vld [vmem:[#allocation2 + $0x50] sm:$0xff]  ;;  %v6377_v3 = vadd.f32 %v2203_v48, %v1005_v7  ;;  %4324 = vmatmul.mubr.msk.f32.gmra.mxu0 %vm368_vm0, %v2341_v61  ;;  %v4838_v7 = vpack.i.bf16 %v6357_v5, %v2341_v61 }
 0x43f   : > { %v4093_v36 = vadd.f32 %v4092_v32, %v4091_v47  ;;  %v6373_v6 = vld [vmem:[#allocation2 + $0x51] sm:$0xff]  ;;  %v4828_v11 = vpack.i.bf16 %v2339_v63, %v6371_v57 }
 0x440   : > { %v4833_v34 = vpack.i.bf16 %v6349_v33, %v6373_v6  ;;  %v2225_v12 = vmax.f32 %v6377_v3, 0.0 }
 0x441   : > { %4824 = vrot.lane.b32.xlu1 %v4823_v13, %s6915_s26  ;;  %v2103_v31 = vadd.f32 %v4093_v36, %v6235_v15 }
 0x442   : > { %4829 = vrot.lane.b32.xlu0 %v4828_v11, %s6913_s22  ;;  %2233 = vst.msk [vmem:[#allocation2 + $0x71] sm:$0xff] %vm368_vm0, %v2225_v12 }
 0x443   : > { %v2208_v16 = vadd.f32 %v4311_v40, %v2103_v31 }
 0x444   : > { %v2342_v1 = vld [vmem:[#allocation2 + $0x62] sm:$0xff] }
 0x445   : > { %4834 = vrot.lane.b32.xlu1 %v4833_v34, %s6914_s13  ;;  %v6391_v21 = vld [vmem:[#allocation2 + $0x60] sm:$0xff]  ;;  %v6395_v28 = vadd.f32 %v2208_v16, %v1006_v37  ;;  %4326 = vmatprep.mubr.msk.f32.mxu0 %vm368_vm0, %v2342_v1  ;;  %v4853_v4 = vpack.i.bf16 %v6373_v6, %v2342_v1 }
 0x446   : > { %v4843_v15 = vpack.i.bf16 %v2340_v27, %v6391_v21  ;;  %v6399_v9 = vld [vmem:[#allocation2 + $0x61] sm:$0xff]  ;;  %4839 = vrot.lane.b32.xlu0 %v4838_v7, %s6915_s26 }
 0x447   : > { %v2226_v46 = vmax.f32 %v6395_v28, 0.0  ;;  %v4848_v51 = vpack.i.bf16 %v6371_v57, %v6399_v9  ;;  %v3476_v28 = vld [vmem:[%s6897_s6] sm:$0x1] }
 0x449   : > { %4844 = vrot.lane.b32.xlu1 %v4843_v15, %s6913_s22  ;;  %2234 = vst.msk [vmem:[#allocation2 + $0x81] sm:$0xff] %vm368_vm0, %v2226_v46  ;;  %v2343_v37 = vld [vmem:[#allocation2 + $0x72] sm:$0xff] }
 0x44a   : > { %4849 = vrot.lane.b32.xlu0 %v4848_v51, %s6914_s13  ;;  %v6412_v63 = vld [vmem:[#allocation2 + $0x70] sm:$0xff]  ;;  %4327 = vmatmul.mubr.msk.f32.gmra.mxu0 %vm368_vm0, %v2343_v37  ;;  %v4868_v45 = vpack.i.bf16 %v6399_v9, %v2343_v37  ;;  %v4883_v30 = vpack.i.bf16 %v2343_v37, %v6084_v38 }
 0x44b   : > { %v6414_v62 = vld [vmem:[#allocation2 + $0x71] sm:$0xff]  ;;  %v4858_v8 = vpack.i.bf16 %v2341_v61, %v6412_v63 }
 0x44c   : > { %v4863_v0 = vpack.i.bf16 %v6391_v21, %v6414_v62 }
 0x44d   : > { %4854 = vrot.lane.b32.xlu1 %v4853_v4, %s6915_s26 }
 0x44e   : > { %4859 = vrot.lane.b32.xlu0 %v4858_v8, %s6913_s22 }
 0x450   : > { %v2344_v18 = vld [vmem:[#allocation2 + $0x82] sm:$0xff] }
 0x451   : > { %4864 = vrot.lane.b32.xlu1 %v4863_v0, %s6914_s13  ;;  %v2328_v27 = vld [vmem:[#allocation2 + $0x80] sm:$0xff]  ;;  %4329 = vmatprep.mubr.msk.f32.mxu0 %vm368_vm0, %v2344_v18  ;;  %v4888_v41 = vpack.i.bf16 %v6414_v62, %v2344_v18 }
 0x452   : > { %v4873_v43 = vpack.i.bf16 %v2342_v1, %v2328_v27  ;;  %v6424_v56 = vld [vmem:[#allocation2 + $0x81] sm:$0xff]  ;;  %4869 = vrot.lane.b32.xlu0 %v4868_v45, %s6915_s26  ;;  %4330 = vmatmul.mubr.msk.f32.gmra.mxu0 %vm368_vm0, %v6071_v44  ;;  %v4893_v19 = vpack.i.bf16 %v2328_v27, %v6087_v39 }
 0x453   : > { %v4878_v40 = vpack.i.bf16 %v6412_v63, %v6424_v56 }
 0x455   : > { %4874 = vrot.lane.b32.xlu1 %v4873_v43, %s6913_s22 }
 0x456   : > { %4879 = vrot.lane.b32.xlu0 %v4878_v40, %s6914_s13 }
 0x459   : > { %4889 = vrot.lane.b32.xlu1 %v4888_v41, %s6915_s26 }
 0x45a   : > { %4884 = vrot.lane.b32.xlu0 %v4883_v30, %s6913_s22 }
 0x45d   : > { %4894 = vrot.lane.b32.xlu1 %v4893_v19, %s6914_s13 }
 0x49a   : > { %v4780_v44 = vpop.permute.xlu0 %4779 }
 0x49b   : > { %v4782_v47 = vunpack.i.h.bf16 %v4780_v44  ;;  %v4781_v52 = vunpack.i.l.bf16 %v4780_v44 }
 0x49d   : > { %v2538_v11 = vsel %vm368_vm0, %v6094_v26, %v4782_v47  ;;  %v2562_v38 = vsel %vm368_vm0, %v6322_v22, %v4781_v52 }
 0x4a2   : > { %v4790_v50 = vpop.permute.xlu0 %4789 }
 0x4a3   : > { %v4785_v13 = vpop.permute.xlu1 %4784  ;;  %v4792_v48 = vunpack.i.h.bf16 %v4790_v50  ;;  %v4791_v32 = vunpack.i.l.bf16 %v4790_v50 }
 0x4a4   : > { %v4787_v36 = vunpack.i.h.bf16 %v4785_v13  ;;  %v4786_v61 = vunpack.i.l.bf16 %v4785_v13 }
 0x4a6   : > { %v2546_v39 = vsel %vm717_vm2, %v2538_v11, %v4787_v36  ;;  %v2570_v34 = vsel %vm717_vm2, %v2562_v38, %v4786_v61 }
 0x4a7   : > { %v4795_v31 = vpop.permute.xlu1 %4794  ;;  %v2578_v16 = vsel %vm726_vm3, %v2570_v34, %v4791_v32  ;;  %v2554_v1 = vsel %vm726_vm3, %v2546_v39, %v4792_v48  ;;  %v4800_v51 = vpop.permute.xlu0 %4799 }
 0x4a8   : > { %v4797_v7 = vunpack.i.h.bf16 %v4795_v31  ;;  %v4796_v15 = vunpack.i.l.bf16 %v4795_v31  ;;  %2680 = vmatprep.mubr.f32.mxu1 %v2578_v16  ;;  %v4802_v4 = vunpack.i.h.bf16 %v4800_v51  ;;  %v4801_v37 = vunpack.i.l.bf16 %v4800_v51 }
 0x4a9   : > { %2681 = vmatmul.mubr.f32.vlgmr.msra.gmra.mxu1 %v2554_v1 }
 0x4aa   : > { %v2563_v22 = vsel %vm368_vm0, %v6305_v17, %v4796_v15  ;;  %v2539_v18 = vsel %vm368_vm0, %v6300_v14, %v4797_v7 }
 0x4ab   : > { %v4805_v26 = vpop.permute.xlu1 %4804  ;;  %v2571_v45 = vsel %vm717_vm2, %v2563_v22, %v4801_v37  ;;  %v2547_v27 = vsel %vm717_vm2, %v2539_v18, %v4802_v4 }
 0x4ac   : > { %v4807_v8 = vunpack.i.h.bf16 %v4805_v26  ;;  %v4806_v0 = vunpack.i.l.bf16 %v4805_v26  ;;  %v4810_v43 = vpop.permute.xlu0 %4809 }
 0x4ad   : > { %v4812_v30 = vunpack.i.h.bf16 %v4810_v43  ;;  %v4811_v19 = vunpack.i.l.bf16 %v4810_v43 }
 0x4ae   : > { %v2579_v40 = vsel %vm726_vm3, %v2571_v45, %v4806_v0  ;;  %v2555_v41 = vsel %vm726_vm3, %v2547_v27, %v4807_v8 }
 0x4af   : > { %2685 = vmatprep.mubr.f32.mxu1 %v2579_v40  ;;  %v4815_v44 = vpop.permute.xlu1 %4814  ;;  %v2564_v17 = vsel %vm368_vm0, %v6331_v59, %v4811_v19  ;;  %v2540_v14 = vsel %vm368_vm0, %v6307_v20, %v4812_v30 }
 0x4b0   : > { %v4817_v47 = vunpack.i.h.bf16 %v4815_v44  ;;  %v4816_v52 = vunpack.i.l.bf16 %v4815_v44  ;;  %2686 = vmatmul.mubr.f32.gmra.mxu1 %v2555_v41  ;;  %v4820_v50 = vpop.permute.xlu0 %4819 }
 0x4b1   : > { %v4822_v13 = vunpack.i.h.bf16 %v4820_v50  ;;  %v4821_v48 = vunpack.i.l.bf16 %v4820_v50 }
 0x4b2   : > { %v2572_v11 = vsel %vm717_vm2, %v2564_v17, %v4816_v52  ;;  %v2548_v38 = vsel %vm717_vm2, %v2540_v14, %v4817_v47 }
 0x4b3   : > { %v4825_v32 = vpop.permute.xlu1 %4824  ;;  %v2580_v39 = vsel %vm726_vm3, %v2572_v11, %v4821_v48  ;;  %v2556_v34 = vsel %vm726_vm3, %v2548_v38, %v4822_v13 }
 0x4b4   : > { %v4827_v36 = vunpack.i.h.bf16 %v4825_v32  ;;  %v4826_v61 = vunpack.i.l.bf16 %v4825_v32  ;;  %v4830_v31 = vpop.permute.xlu0 %4829  ;;  %2690 = vmatprep.mubr.f32.mxu1 %v2580_v39 }
 0x4b5   : > { %v4832_v59 = vunpack.i.h.bf16 %v4830_v31  ;;  %v4831_v16 = vunpack.i.l.bf16 %v4830_v31  ;;  %2691 = vmatmul.mubr.f32.gmra.mxu1 %v2556_v34 }
 0x4b6   : > { %v2565_v15 = vsel %vm368_vm0, %v6357_v5, %v4826_v61  ;;  %v2541_v51 = vsel %vm368_vm0, %v6329_v23, %v4827_v36 }
 0x4b7   : > { %v4835_v20 = vpop.permute.xlu1 %4834  ;;  %v2573_v4 = vsel %vm717_vm2, %v2565_v15, %v4831_v16  ;;  %v2549_v37 = vsel %vm717_vm2, %v2541_v51, %v4832_v59 }
 0x4b8   : > { %v4837_v1 = vunpack.i.h.bf16 %v4835_v20  ;;  %v4836_v7 = vunpack.i.l.bf16 %v4835_v20  ;;  %v4840_v26 = vpop.permute.xlu0 %4839 }
 0x4b9   : > { %v4842_v22 = vunpack.i.h.bf16 %v4840_v26  ;;  %v4841_v18 = vunpack.i.l.bf16 %v4840_v26 }
 0x4ba   : > { %v2581_v8 = vsel %vm726_vm3, %v2573_v4, %v4836_v7  ;;  %v2557_v0 = vsel %vm726_vm3, %v2549_v37, %v4837_v1 }
 0x4bb   : > { %2695 = vmatprep.mubr.f32.mxu1 %v2581_v8  ;;  %v4845_v45 = vpop.permute.xlu1 %4844  ;;  %v2566_v5 = vsel %vm368_vm0, %v6373_v6, %v4841_v18  ;;  %v2542_v23 = vsel %vm368_vm0, %v6349_v33, %v4842_v22 }
 0x4bc   : > { %v4847_v27 = vunpack.i.h.bf16 %v4845_v45  ;;  %v4846_v43 = vunpack.i.l.bf16 %v4845_v45  ;;  %2696 = vmatmul.mubr.f32.gmra.mxu1 %v2557_v0  ;;  %v4850_v40 = vpop.permute.xlu0 %4849 }
 0x4bd   : > { %v4852_v41 = vunpack.i.h.bf16 %v4850_v40  ;;  %v4851_v30 = vunpack.i.l.bf16 %v4850_v40 }
 0x4be   : > { %v2574_v52 = vsel %vm717_vm2, %v2566_v5, %v4846_v43  ;;  %v2550_v17 = vsel %vm717_vm2, %v2542_v23, %v4847_v27 }
 0x4bf   : > { %v4855_v19 = vpop.permute.xlu1 %4854  ;;  %v2582_v14 = vsel %vm726_vm3, %v2574_v52, %v4851_v30  ;;  %v2558_v50 = vsel %vm726_vm3, %v2550_v17, %v4852_v41  ;;  %v3885_v17 = vld [vmem:[%s6894_s3 + $0x478] sm:$0xff] }
 0x4c0   : > { %v4857_v44 = vunpack.i.h.bf16 %v4855_v19  ;;  %v4856_v47 = vunpack.i.l.bf16 %v4855_v19  ;;  %v4860_v13 = vpop.permute.xlu0 %4859  ;;  %2700 = vmatprep.mubr.f32.mxu1 %v2582_v14  ;;  %4332 = vmatprep.subr.mxu1 %v3885_v17  ;;  %v3882_v14 = vld [vmem:[%s6894_s3 + $0x460] sm:$0xff] }
 0x4c1   : > { %v4862_v6 = vunpack.i.h.bf16 %v4860_v13  ;;  %v4861_v48 = vunpack.i.l.bf16 %v4860_v13  ;;  %2701 = vmatmul.mubr.f32.gmra.mxu1 %v2558_v50  ;;  %v3881_v50 = vld [vmem:[%s6894_s3 + $0x458] sm:$0xff] }
 0x4c2   : > { %v2567_v61 = vsel %vm368_vm0, %v6399_v9, %v4856_v47  ;;  %v2543_v11 = vsel %vm368_vm0, %v6371_v57, %v4857_v44  ;;  %4333 = vmatpush3.msra.mxu1 %v3885_v17  ;;  %v3865_v13 = vld [vmem:[%s6894_s3 + $0x3d8] sm:$0xff]  ;;  %4174 = vmatprep.subr.mxu0 %v3881_v50  ;;  %v3867_v17 = vld [vmem:[%s6894_s3 + $0x3e8] sm:$0xff] }
 0x4c3   : > { %v4865_v32 = vpop.permute.xlu1 %4864  ;;  %v2575_v38 = vsel %vm717_vm2, %v2567_v61, %v4861_v48  ;;  %v2551_v39 = vsel %vm717_vm2, %v2543_v11, %v4862_v6  ;;  %v3880_v6 = vld [vmem:[%s6894_s3 + $0x450] sm:$0xff]  ;;  %4175 = vmatpush3.msra.mxu0 %v3865_v13  ;;  %v3862_v61 = vld [vmem:[%s6894_s3 + $0x3c0] sm:$0xff]  ;;  %v3877_v11 = vld [vmem:[%s6894_s3 + $0x438] sm:$0xff] }
 0x4c4   : > { %v4867_v33 = vunpack.i.h.bf16 %v4865_v32  ;;  %v4866_v36 = vunpack.i.l.bf16 %v4865_v32  ;;  %v4870_v34 = vpop.permute.xlu0 %4869  ;;  %v3864_v48 = vld [vmem:[%s6894_s3 + $0x3d0] sm:$0xff]  ;;  %v3879_v32 = vld [vmem:[%s6894_s3 + $0x448] sm:$0xff]  ;;  %4176 = vmatprep.subr.mxu0 %v3880_v6 }
 0x4c5   : > { %v4872_v16 = vunpack.i.h.bf16 %v4870_v34  ;;  %v4871_v20 = vunpack.i.l.bf16 %v4870_v34  ;;  %4177 = vmatpush3.msra.mxu0 %v3864_v48  ;;  %v3860_v34 = vld [vmem:[%s6894_s3 + $0x3b0] sm:$0xff]  ;;  %v2889_v50 = vld [vmem:[#allocation2 + $0x1] sm:$0xff] }
 0x4c6   : > { %v2583_v31 = vsel %vm726_vm3, %v2575_v38, %v4866_v36  ;;  %v2559_v59 = vsel %vm726_vm3, %v2551_v39, %v4867_v33  ;;  %v3863_v33 = vld [vmem:[%s6894_s3 + $0x3c8] sm:$0xff]  ;;  %v3878_v36 = vld [vmem:[%s6894_s3 + $0x440] sm:$0xff]  ;;  %4178 = vmatprep.subr.mxu0 %v3879_v32  ;;  %v3861_v38 = vld [vmem:[%s6894_s3 + $0x3b8] sm:$0xff] }
 0x4c7   : > { %v4875_v1 = vpop.permute.xlu1 %4874  ;;  %2705 = vmatprep.mubr.f32.mxu1 %v2583_v31  ;;  %v2568_v9 = vsel %vm368_vm0, %v6414_v62, %v4871_v20  ;;  %v2544_v57 = vsel %vm368_vm0, %v6391_v21, %v4872_v16  ;;  %4179 = vmatpush3.msra.mxu0 %v3863_v33  ;;  %v3876_v39 = vld [vmem:[%s6894_s3 + $0x430] sm:$0xff]  ;;  %v3875_v31 = vld [vmem:[%s6894_s3 + $0x428] sm:$0xff]  ;;  %v3874_v16 = vld [vmem:[%s6894_s3 + $0x420] sm:$0xff] }
 0x4c8   : > { %v4877_v7 = vunpack.i.h.bf16 %v4875_v1  ;;  %v4876_v15 = vunpack.i.l.bf16 %v4875_v1  ;;  %2706 = vmatmul.mubr.f32.gmra.mxu1 %v2559_v59  ;;  %v4880_v51 = vpop.permute.xlu0 %4879  ;;  %4180 = vmatprep.subr.mxu0 %v3878_v36  ;;  %v3859_v59 = vld [vmem:[%s6894_s3 + $0x3a8] sm:$0xff]  ;;  %v3858_v20 = vld [vmem:[%s6894_s3 + $0x3a0] sm:$0xff]  ;;  %v3873_v1 = vld [vmem:[%s6894_s3 + $0x418] sm:$0xff] }
 0x4c9   : > { %v4882_v4 = vunpack.i.h.bf16 %v4880_v51  ;;  %v4881_v37 = vunpack.i.l.bf16 %v4880_v51  ;;  %4181 = vmatpush3.msra.mxu0 %v3862_v61  ;;  %v3851_v13 = vld [vmem:[%s6894_s3 + $0x368] sm:$0xff]  ;;  %v3866_v48 = vld [vmem:[%s6894_s3 + $0x3e0] sm:$0xff] }
 0x4ca   : > { %v2576_v22 = vsel %vm717_vm2, %v2568_v9, %v4876_v15  ;;  %v2552_v18 = vsel %vm717_vm2, %v2544_v57, %v4877_v7  ;;  %4182 = vmatprep.subr.mxu0 %v3877_v11  ;;  %v3857_v7 = vld [vmem:[%s6894_s3 + $0x398] sm:$0xff]  ;;  %v3872_v15 = vld [vmem:[%s6894_s3 + $0x410] sm:$0xff]  ;;  %v3850_v11 = vld [vmem:[%s6894_s3 + $0x360] sm:$0xff] }
 0x4cb   : > { %v4890_v26 = vpop.permute.xlu1 %4889  ;;  %v2584_v45 = vsel %vm726_vm3, %v2576_v22, %v4881_v37  ;;  %v2560_v27 = vsel %vm726_vm3, %v2552_v18, %v4882_v4  ;;  %4183 = vmatpush3.msra.mxu0 %v3861_v38  ;;  %v3856_v9 = vld [vmem:[%s6894_s3 + $0x390] sm:$0xff]  ;;  %v6579_v4 = vld [vmem:[%s6895_s4 + $0x2] ss:$0 sm:$0xff] }
 0x4cc   : > { %v4892_v8 = vunpack.i.h.bf16 %v4890_v26  ;;  %v4891_v0 = vunpack.i.l.bf16 %v4890_v26  ;;  %v4885_v43 = vpop.permute.xlu0 %4884  ;;  %2710 = vmatprep.mubr.f32.mxu1 %v2584_v45  ;;  %4184 = vmatprep.subr.mxu0 %v3876_v39  ;;  %v3871_v45 = vld [vmem:[%s6894_s3 + $0x408] sm:$0xff] }
 0x4cd   : > { %v4887_v62 = vunpack.i.h.bf16 %v4885_v43  ;;  %v4886_v5 = vunpack.i.l.bf16 %v4885_v43  ;;  %2711 = vmatmul.mubr.f32.gmra.mxu1 %v2560_v27  ;;  %4185 = vmatpush3.msra.mxu0 %v3860_v34  ;;  %v3855_v27 = vld [vmem:[%s6894_s3 + $0x388] sm:$0xff] }
 0x4ce   : > { %v2569_v41 = vsel %vm368_vm0, %v6424_v56, %v4891_v0  ;;  %v2545_v30 = vsel %vm368_vm0, %v6412_v63, %v4892_v8  ;;  %v3884_v63 = vld [vmem:[%s6894_s3 + $0x470] sm:$0xff]  ;;  %v3883_v56 = vld [vmem:[%s6894_s3 + $0x468] sm:$0xff]  ;;  %4186 = vmatprep.subr.mxu0 %v3875_v31 }
 0x4cf   : > { %v4895_v23 = vpop.permute.xlu1 %4894  ;;  %v2577_v19 = vsel %vm717_vm2, %v2569_v41, %v4886_v5  ;;  %v2553_v44 = vsel %vm717_vm2, %v2545_v30, %v4887_v62  ;;  %4334 = vmatprep.subr.mxu1 %v3884_v63  ;;  %4187 = vmatpush3.msra.mxu0 %v3859_v59  ;;  %v3870_v5 = vld [vmem:[%s6894_s3 + $0x400] sm:$0xff]  ;;  %v3853_v41 = vld [vmem:[%s6894_s3 + $0x378] sm:$0xff]  ;;  %v3868_v30 = vld [vmem:[%s6894_s3 + $0x3f0] sm:$0xff] }
 0x4d0   : > { %v4897_v21 = vunpack.i.h.bf16 %v4895_v23  ;;  %v4896_v40 = vunpack.i.l.bf16 %v4895_v23  ;;  %4335 = vmatpush3.msra.mxu1 %v3884_v63  ;;  %4188 = vmatprep.subr.mxu0 %v3874_v16  ;;  %v2897_v16 = vld [vmem:[#allocation2 + $0x2] sm:$0xff] }
 0x4d1   : > { %4336 = vmatprep.subr.mxu1 %v3883_v56  ;;  %4189 = vmatpush3.msra.mxu0 %v3858_v20 }
 0x4d2   : > { %v2585_v47 = vsel %vm726_vm3, %v2577_v19, %v4896_v40  ;;  %v2561_v52 = vsel %vm726_vm3, %v2553_v44, %v4897_v21  ;;  %4337 = vmatpush3.msra.mxu1 %v3883_v56  ;;  %4190 = vmatprep.subr.mxu0 %v3873_v1  ;;  %v3854_v21 = vld [vmem:[%s6894_s3 + $0x380] sm:$0xff]  ;;  %v3869_v40 = vld [vmem:[%s6894_s3 + $0x3f8] sm:$0xff] }
 0x4d3   : > { %2715 = vmatprep.mubr.f32.mxu1 %v2585_v47  ;;  %4338 = vmatprep.subr.mxu1 %v3882_v14 }
 0x4d4   : > { %2716 = vmatmul.mubr.f32.gmra.mxu1 %v2561_v52  ;;  %4191 = vmatpush3.msra.mxu0 %v3857_v7  ;;  %v3852_v52 = vld [vmem:[%s6894_s3 + $0x370] sm:$0xff] }
 0x4d5   : > { %4339 = vmatpush3.msra.mxu1 %v3882_v14  ;;  %4192 = vmatprep.subr.mxu0 %v3872_v15 }
 0x4d6   : > { %4352 = vmatprep.subr.mxu1 %v5086_v2  ;;  %4193 = vmatpush3.msra.mxu0 %v3856_v9 }
 0x4d7   : > { %4194 = vmatprep.subr.mxu0 %v3871_v45 }
 0x4d8   : > { %4195 = vmatpush3.msra.mxu0 %v3855_v27 }
 0x4d9   : > { %4196 = vmatprep.subr.mxu0 %v3870_v5 }
 0x4da   : > { %4197 = vmatpush3.msra.mxu0 %v3854_v21 }
 0x4db   : > { %4198 = vmatprep.subr.mxu0 %v3869_v40 }
 0x4dc   : > { %4199 = vmatpush3.msra.mxu0 %v3853_v41 }
 0x4dd   : > { %4200 = vmatprep.subr.mxu0 %v3868_v30 }
 0x4de   : > { %4201 = vmatpush3.msra.mxu0 %v3852_v52 }
 0x4df   : > { %4202 = vmatprep.subr.mxu0 %v3867_v17 }
 0x4e0   : > { %4203 = vmatpush3.msra.mxu0 %v3851_v13 }
 0x4e1   : > { %4204 = vmatprep.subr.mxu0 %v3866_v48 }
 0x4e2   : > { %4205 = vmatpush3.msra.mxu0 %v3850_v11 }
 0x4e3   : > { %4363 = vmatprep.subr.mxu0 %v5086_v2 }
 0x4f2   : > { %v4322_v51 = vpop.f32.mrf.mxu0 }
 0x4f4   : > { %v2787_v0 = vpop.f32.mrf.mxu0 }
 0x4fe   : > { %v4325_v63 = vpop.f32.mrf.mxu0 }
 0x500   : > { %v2797_v38 = vpop.f32.mrf.mxu0 }
 0x569   : > { %v4138_v57 = vpop.f32.mrf.mxu1 }
 0x56b   : > { %v4139_v37 = vpop.f32.mrf.mxu1 }
 0x56c   : > { %v4140_v26 = vadd.f32 %v4139_v37, %v4138_v57 }
 0x56e   : > { %v2683_v8 = vadd.f32 %v4140_v26, %v6579_v4 }
 0x570   : > { %v2788_v22 = vadd.f32 %v2787_v0, %v2683_v8  ;;  %v4141_v18 = vpop.f32.mrf.mxu1  ;;  %v4328_v8 = vpop.f32.mrf.mxu0 }
 0x572   : > { %v2826_v43 = vmax.f32 %v2788_v22, 0.0  ;;  %v4142_v62 = vpop.f32.mrf.mxu1  ;;  %v2807_v5 = vpop.f32.mrf.mxu0 }
 0x573   : > { %v4143_v23 = vadd.f32 %v4142_v62, %v4141_v18 }
 0x574   : > { %2834 = vst.msk [vmem:[#allocation2 + $0x11] sm:$0xff] %vm368_vm0, %v2826_v43 }
 0x575   : > { %v2688_v19 = vadd.f32 %v4143_v23, %v6579_v4  ;;  %v4144_v47 = vpop.f32.mrf.mxu1 }
 0x577   : > { %v2793_v44 = vadd.f32 %v4322_v51, %v2688_v19  ;;  %v4145_v14 = vpop.f32.mrf.mxu1 }
 0x578   : > { %v4146_v6 = vadd.f32 %v4145_v14, %v4144_v47 }
 0x579   : > { %v2827_v56 = vmax.f32 %v2793_v44, 0.0 }
 0x57a   : > { %v2693_v33 = vadd.f32 %v4146_v6, %v6579_v4 }
 0x57b   : > { %2835 = vst.msk [vmem:[#allocation2 + $0x21] sm:$0xff] %vm368_vm0, %v2827_v56  ;;  %v2921_v32 = vld [vmem:[#allocation2 + $0x12] sm:$0xff] }
 0x57c   : > { %v4147_v36 = vpop.f32.mrf.mxu1  ;;  %v4898_v61 = vpack.i.bf16 %v2889_v50, %v2921_v32  ;;  %v2798_v39 = vadd.f32 %v2797_v38, %v2693_v33  ;;  %v6625_v1 = vld [vmem:[#allocation2 + $0x10] sm:$0xff]  ;;  %v4331_v33 = vpop.f32.mrf.mxu0 }
 0x57d   : > { %v6638_v45 = vld [vmem:[#allocation2 + $0x11] sm:$0xff] }
 0x57e   : > { %v4148_v34 = vpop.f32.mrf.mxu1  ;;  %4899 = vrot.lane.b32.xlu0 %v4898_v61, %s6915_s26  ;;  %v2828_v59 = vmax.f32 %v2798_v39, 0.0 }
 0x57f   : > { %v4149_v31 = vadd.f32 %v4148_v34, %v4147_v36 }
 0x580   : > { %2836 = vst.msk [vmem:[#allocation2 + $0x31] sm:$0xff] %vm368_vm0, %v2828_v59 }
 0x581   : > { %v2698_v20 = vadd.f32 %v4149_v31, %v6579_v4  ;;  %v4150_v51 = vpop.f32.mrf.mxu1  ;;  %v2817_v31 = vpop.f32.mrf.mxu0 }
 0x582   : > { %v2945_v7 = vld [vmem:[#allocation2 + $0x22] sm:$0xff] }
 0x583   : > { %v6628_v15 = vld [vmem:[#allocation2 + $0x20] sm:$0xff]  ;;  %v2803_v57 = vadd.f32 %v4325_v63, %v2698_v20  ;;  %4340 = vmatprep.mubr.msk.f32.mxu1 %vm368_vm0, %v2945_v7  ;;  %v4151_v22 = vpop.f32.mrf.mxu1  ;;  %v4913_v27 = vpack.i.bf16 %v6638_v45, %v2945_v7 }
 0x584   : > { %v6630_v9 = vld [vmem:[#allocation2 + $0x21] sm:$0xff]  ;;  %v4903_v37 = vpack.i.bf16 %v2897_v16, %v6628_v15  ;;  %v4152_v18 = vadd.f32 %v4151_v22, %v4150_v51 }
 0x585   : > { %v4908_v26 = vpack.i.bf16 %v6625_v1, %v6630_v9  ;;  %v2829_v0 = vmax.f32 %v2803_v57, 0.0 }
 0x586   : > { %4904 = vrot.lane.b32.xlu1 %v4903_v37, %s6913_s22  ;;  %v2703_v43 = vadd.f32 %v4152_v18, %v6579_v4 }
 0x587   : > { %4909 = vrot.lane.b32.xlu0 %v4908_v26, %s6914_s13  ;;  %2837 = vst.msk [vmem:[#allocation2 + $0x41] sm:$0xff] %vm368_vm0, %v2829_v0  ;;  %v2946_v23 = vld [vmem:[#allocation2 + $0x32] sm:$0xff] }
 0x588   : > { %v4153_v62 = vpop.f32.mrf.mxu1  ;;  %v6644_v21 = vld [vmem:[#allocation2 + $0x30] sm:$0xff]  ;;  %v2808_v41 = vadd.f32 %v2807_v5, %v2703_v43  ;;  %4341 = vmatmul.mubr.msk.f32.vlgmr.msra.gmra.mxu1 %vm368_vm0, %v2946_v23  ;;  %v4928_v56 = vpack.i.bf16 %v6630_v9, %v2946_v23 }
 0x589   : > { %v6646_v40 = vld [vmem:[#allocation2 + $0x31] sm:$0xff]  ;;  %v4918_v19 = vpack.i.bf16 %v2921_v32, %v6644_v21 }
 0x58a   : > { %4914 = vrot.lane.b32.xlu1 %v4913_v27, %s6915_s26  ;;  %v4154_v30 = vpop.f32.mrf.mxu1  ;;  %v4923_v44 = vpack.i.bf16 %v6628_v15, %v6646_v40  ;;  %v2830_v52 = vmax.f32 %v2808_v41, 0.0 }
 0x58b   : > { %v4155_v47 = vadd.f32 %v4154_v30, %v4153_v62  ;;  %4919 = vrot.lane.b32.xlu0 %v4918_v19, %s6913_s22 }
 0x58c   : > { %2838 = vst.msk [vmem:[#allocation2 + $0x51] sm:$0xff] %vm368_vm0, %v2830_v52 }
 0x58d   : > { %v2708_v17 = vadd.f32 %v4155_v47, %v6579_v4  ;;  %v4156_v13 = vpop.f32.mrf.mxu1 }
 0x58e   : > { %4924 = vrot.lane.b32.xlu1 %v4923_v44, %s6914_s13  ;;  %v2947_v63 = vld [vmem:[#allocation2 + $0x42] sm:$0xff] }
 0x58f   : > { %v6657_v14 = vld [vmem:[#allocation2 + $0x40] sm:$0xff]  ;;  %v2813_v50 = vadd.f32 %v4328_v8, %v2708_v17  ;;  %4343 = vmatprep.mubr.msk.f32.mxu1 %vm368_vm0, %v2947_v63  ;;  %4929 = vrot.lane.b32.xlu0 %v4928_v56, %s6915_s26  ;;  %v4157_v36 = vpop.f32.mrf.mxu1  ;;  %v4943_v38 = vpack.i.bf16 %v6646_v40, %v2947_v63 }
 0x590   : > { %v4933_v6 = vpack.i.bf16 %v2945_v7, %v6657_v14  ;;  %v6661_v48 = vld [vmem:[#allocation2 + $0x41] sm:$0xff]  ;;  %v4158_v61 = vadd.f32 %v4157_v36, %v4156_v13  ;;  %v2936_v36 = vld [vmem:[#allocation2 + $0x90] sm:$0xff] }
 0x591   : > { %v2831_v32 = vmax.f32 %v2813_v50, 0.0  ;;  %v4938_v11 = vpack.i.bf16 %v6644_v21, %v6661_v48 }
 0x592   : > { %4934 = vrot.lane.b32.xlu1 %v4933_v6, %s6913_s22  ;;  %v2713_v39 = vadd.f32 %v4158_v61, %v6579_v4  ;;  %v2952_v6 = vld [vmem:[#allocation2 + $0x92] sm:$0xff] }
 0x593   : > { %2839 = vst.msk [vmem:[#allocation2 + $0x61] sm:$0xff] %vm368_vm0, %v2831_v32  ;;  %4939 = vrot.lane.b32.xlu0 %v4938_v11, %s6914_s13  ;;  %v2948_v59 = vld [vmem:[#allocation2 + $0x52] sm:$0xff] }
 0x594   : > { %v4159_v34 = vpop.f32.mrf.mxu1  ;;  %v6672_v16 = vld [vmem:[#allocation2 + $0x50] sm:$0xff]  ;;  %v2818_v7 = vadd.f32 %v2817_v31, %v2713_v39  ;;  %4344 = vmatmul.mubr.msk.f32.gmra.mxu1 %vm368_vm0, %v2948_v59  ;;  %v4958_v18 = vpack.i.bf16 %v6661_v48, %v2948_v59 }
 0x595   : > { %v6674_v20 = vld [vmem:[#allocation2 + $0x51] sm:$0xff]  ;;  %v4948_v51 = vpack.i.bf16 %v2946_v23, %v6672_v16 }
 0x596   : > { %4944 = vrot.lane.b32.xlu1 %v4943_v38, %s6915_s26  ;;  %v4160_v57 = vpop.f32.mrf.mxu1  ;;  %v4953_v37 = vpack.i.bf16 %v6657_v14, %v6674_v20  ;;  %v2832_v8 = vmax.f32 %v2818_v7, 0.0  ;;  %v2944_v61 = vld [vmem:[#allocation2 + $0x91] sm:$0xff] }
 0x597   : > { %v4161_v26 = vadd.f32 %v4160_v57, %v4159_v34  ;;  %4949 = vrot.lane.b32.xlu0 %v4948_v51, %s6913_s22 }
 0x598   : > { %2840 = vst.msk [vmem:[#allocation2 + $0x71] sm:$0xff] %vm368_vm0, %v2832_v8 }
 0x599   : > { %v2718_v0 = vadd.f32 %v4161_v26, %v6579_v4 }
 0x59a   : > { %4954 = vrot.lane.b32.xlu1 %v4953_v37, %s6914_s13  ;;  %v2949_v22 = vld [vmem:[#allocation2 + $0x62] sm:$0xff] }
 0x59b   : > { %v6685_v27 = vld [vmem:[#allocation2 + $0x60] sm:$0xff]  ;;  %v2823_v43 = vadd.f32 %v4331_v33, %v2718_v0  ;;  %4346 = vmatprep.mubr.msk.f32.mxu1 %vm368_vm0, %v2949_v22  ;;  %4959 = vrot.lane.b32.xlu0 %v4958_v18, %s6915_s26  ;;  %v4973_v41 = vpack.i.bf16 %v6674_v20, %v2949_v22 }
 0x59c   : > { %v4963_v62 = vpack.i.bf16 %v2947_v63, %v6685_v27  ;;  %v6689_v5 = vld [vmem:[#allocation2 + $0x61] sm:$0xff] }
 0x59d   : > { %v2833_v23 = vmax.f32 %v2823_v43, 0.0  ;;  %v4968_v4 = vpack.i.bf16 %v6672_v16, %v6689_v5 }
 0x59e   : > { %4964 = vrot.lane.b32.xlu1 %v4963_v62, %s6913_s22 }
 0x59f   : > { %2841 = vst.msk [vmem:[#allocation2 + $0x81] sm:$0xff] %vm368_vm0, %v2833_v23  ;;  %4969 = vrot.lane.b32.xlu0 %v4968_v4, %s6914_s13  ;;  %v2950_v30 = vld [vmem:[#allocation2 + $0x72] sm:$0xff] }
 0x5a0   : > { %v6699_v19 = vld [vmem:[#allocation2 + $0x70] sm:$0xff]  ;;  %4347 = vmatmul.mubr.msk.f32.gmra.mxu1 %vm368_vm0, %v2950_v30  ;;  %v4988_v63 = vpack.i.bf16 %v6689_v5, %v2950_v30  ;;  %v5003_v11 = vpack.i.bf16 %v2950_v30, %v2936_v36 }
 0x5a1   : > { %v6701_v44 = vld [vmem:[#allocation2 + $0x71] sm:$0xff]  ;;  %v4978_v47 = vpack.i.bf16 %v2948_v59, %v6699_v19  ;;  %v2881_v59 = vld [vmem:[#allocation2] sm:$0xff] }
 0x5a2   : > { %4974 = vrot.lane.b32.xlu1 %v4973_v41, %s6915_s26  ;;  %v4983_v52 = vpack.i.bf16 %v6685_v27, %v6701_v44 }
 0x5a3   : > { %4979 = vrot.lane.b32.xlu0 %v4978_v47, %s6913_s22 }
 0x5a6   : > { %4984 = vrot.lane.b32.xlu1 %v4983_v52, %s6914_s13  ;;  %v2951_v17 = vld [vmem:[#allocation2 + $0x82] sm:$0xff] }
 0x5a7   : > { %v2935_v56 = vld [vmem:[#allocation2 + $0x80] sm:$0xff]  ;;  %4349 = vmatprep.mubr.msk.f32.mxu1 %vm368_vm0, %v2951_v17  ;;  %4989 = vrot.lane.b32.xlu0 %v4988_v63, %s6915_s26  ;;  %v5008_v33 = vpack.i.bf16 %v6701_v44, %v2951_v17 }
 0x5a8   : > { %v4993_v50 = vpack.i.bf16 %v2949_v22, %v2935_v56  ;;  %v6711_v13 = vld [vmem:[#allocation2 + $0x81] sm:$0xff]  ;;  %4350 = vmatmul.mubr.msk.f32.gmra.mxu1 %vm368_vm0, %v2952_v6  ;;  %v5013_v38 = vpack.i.bf16 %v2935_v56, %v2944_v61 }
 0x5a9   : > { %v4998_v32 = vpack.i.bf16 %v6699_v19, %v6711_v13  ;;  %4360 = vmatprep.mubr.msk.f32.mxu1 %vm5090_vm4, %v5086_v2 }
 0x5aa   : > { %4994 = vrot.lane.b32.xlu1 %v4993_v50, %s6913_s22 }
 0x5ab   : > { %4999 = vrot.lane.b32.xlu0 %v4998_v32, %s6914_s13 }
 0x5ae   : > { %5009 = vrot.lane.b32.xlu1 %v5008_v33, %s6915_s26  ;;  %s3655_s26 = scalar_lea.hbm %s6900_s9, %s3898_s29 }
 0x5af   : > { %5004 = vrot.lane.b32.xlu0 %v5003_v11, %s6913_s22  ;;  %s3657_s22 = sshll.u32 %s354_s19, 4  ;;  %s3658_s22 = int_to_ptr.vmem [resolvable:$true] %s3657_s22 }
 0x5b0   : > { %s5024_s23 = scalar_lea.vmem %s3658_s22, 16  ;;  %p5031_p0 = scmp.lt.s32.totalorder %s3658_s22, %s5029_s30 }
 0x5b1   : > { %p5025_p11 = scmp.ne.s32.totalorder %s3658_s22, %s5024_s23  ;;  %p5032_p1 = scmp.lt.s32.totalorder %s5030_s8, %s5024_s23 }
 0x5b2   : > { %5014 = vrot.lane.b32.xlu1 %v5013_v38, %s6914_s13 }
 0x5b3   : > { %p5026_p12 = pnand %p5025_p11, %p5188_p5  ;;  %p5033_p2 = por %p5032_p1, %p5031_p0 }
 0x5b5   : > { %p5027_p13 = pneg %p5026_p12 }
 0x5b7   : > { %p5034_p3 = pnand %p5033_p2, %p5027_p13 }
 0x5f0   : > { %v4900_v39 = vpop.permute.xlu0 %4899 }
 0x5f1   : > { %v4902_v34 = vunpack.i.h.bf16 %v4900_v39  ;;  %v4901_v31 = vunpack.i.l.bf16 %v4900_v39 }
 0x5f3   : > { %v3145_v0 = vsel %vm368_vm0, %v2881_v59, %v4902_v34  ;;  %v3169_v22 = vsel %vm368_vm0, %v6638_v45, %v4901_v31 }
 0x5f8   : > { %v4905_v7 = vpop.permute.xlu1 %4904 }
 0x5f9   : > { %v4910_v57 = vpop.permute.xlu0 %4909  ;;  %v4907_v51 = vunpack.i.h.bf16 %v4905_v7  ;;  %v4906_v37 = vunpack.i.l.bf16 %v4905_v7 }
 0x5fa   : > { %v4912_v26 = vunpack.i.h.bf16 %v4910_v57  ;;  %v4911_v8 = vunpack.i.l.bf16 %v4910_v57 }
 0x5fb   : > { %v3153_v18 = vsel %vm717_vm2, %v3145_v0, %v4907_v51  ;;  %v3177_v43 = vsel %vm717_vm2, %v3169_v22, %v4906_v37 }
 0x5fc   : > { %v4915_v62 = vpop.permute.xlu1 %4914  ;;  %v3185_v23 = vsel %vm726_vm3, %v3177_v43, %v4911_v8  ;;  %v3161_v4 = vsel %vm726_vm3, %v3153_v18, %v4912_v26 }
 0x5fd   : > { %v4917_v41 = vunpack.i.h.bf16 %v4915_v62  ;;  %v4916_v30 = vunpack.i.l.bf16 %v4915_v62  ;;  %3287 = vmatprep.mubr.f32.mxu0 %v3185_v23  ;;  %v4920_v47 = vpop.permute.xlu0 %4919 }
 0x5fe   : > { %3288 = vmatmul.mubr.f32.vlgmr.msra.gmra.mxu0 %v3161_v4  ;;  %v4922_v52 = vunpack.i.h.bf16 %v4920_v47  ;;  %v4921_v17 = vunpack.i.l.bf16 %v4920_v47 }
 0x5ff   : > { %v3170_v45 = vsel %vm368_vm0, %v6630_v9, %v4916_v30  ;;  %v3146_v6 = vsel %vm368_vm0, %v6625_v1, %v4917_v41 }
 0x600   : > { %v4925_v63 = vpop.permute.xlu1 %4924  ;;  %v3178_v32 = vsel %vm717_vm2, %v3170_v45, %v4921_v17  ;;  %v3154_v33 = vsel %vm717_vm2, %v3146_v6, %v4922_v52 }
 0x601   : > { %v4927_v56 = vunpack.i.h.bf16 %v4925_v63  ;;  %v4926_v50 = vunpack.i.l.bf16 %v4925_v63  ;;  %v4930_v36 = vpop.permute.xlu0 %4929 }
 0x602   : > { %v4932_v38 = vunpack.i.h.bf16 %v4930_v36  ;;  %v4931_v39 = vunpack.i.l.bf16 %v4930_v36 }
 0x603   : > { %v3186_v61 = vsel %vm726_vm3, %v3178_v32, %v4926_v50  ;;  %v3162_v11 = vsel %vm726_vm3, %v3154_v33, %v4927_v56 }
 0x604   : > { %3292 = vmatprep.mubr.f32.mxu0 %v3186_v61  ;;  %v4935_v34 = vpop.permute.xlu1 %4934  ;;  %v3171_v9 = vsel %vm368_vm0, %v6646_v40, %v4931_v39  ;;  %v3147_v1 = vsel %vm368_vm0, %v6628_v15, %v4932_v38 }
 0x605   : > { %v4937_v31 = vunpack.i.h.bf16 %v4935_v34  ;;  %v4936_v59 = vunpack.i.l.bf16 %v4935_v34  ;;  %3293 = vmatmul.mubr.f32.gmra.mxu0 %v3162_v11  ;;  %v4940_v7 = vpop.permute.xlu0 %4939 }
 0x606   : > { %v4942_v57 = vunpack.i.h.bf16 %v4940_v7  ;;  %v4941_v51 = vunpack.i.l.bf16 %v4940_v7 }
 0x607   : > { %v3179_v0 = vsel %vm717_vm2, %v3171_v9, %v4936_v59  ;;  %v3155_v22 = vsel %vm717_vm2, %v3147_v1, %v4937_v31 }
 0x608   : > { %v4945_v37 = vpop.permute.xlu1 %4944  ;;  %v3187_v18 = vsel %vm726_vm3, %v3179_v0, %v4941_v51  ;;  %v3163_v43 = vsel %vm726_vm3, %v3155_v22, %v4942_v57 }
 0x609   : > { %v4947_v26 = vunpack.i.h.bf16 %v4945_v37  ;;  %v4946_v8 = vunpack.i.l.bf16 %v4945_v37  ;;  %3297 = vmatprep.mubr.f32.mxu0 %v3187_v18  ;;  %v4950_v62 = vpop.permute.xlu0 %4949 }
 0x60a   : > { %v4952_v40 = vunpack.i.h.bf16 %v4950_v62  ;;  %v4951_v23 = vunpack.i.l.bf16 %v4950_v62  ;;  %3298 = vmatmul.mubr.f32.gmra.mxu0 %v3163_v43 }
 0x60b   : > { %v3172_v30 = vsel %vm368_vm0, %v6661_v48, %v4946_v8  ;;  %v3148_v47 = vsel %vm368_vm0, %v6644_v21, %v4947_v26 }
 0x60c   : > { %v4955_v15 = vpop.permute.xlu1 %4954  ;;  %v3180_v52 = vsel %vm717_vm2, %v3172_v30, %v4951_v23  ;;  %v3156_v17 = vsel %vm717_vm2, %v3148_v47, %v4952_v40 }
 0x60d   : > { %v4957_v4 = vunpack.i.h.bf16 %v4955_v15  ;;  %v4956_v41 = vunpack.i.l.bf16 %v4955_v15  ;;  %v4960_v63 = vpop.permute.xlu0 %4959 }
 0x60e   : > { %v4962_v45 = vunpack.i.h.bf16 %v4960_v63  ;;  %v4961_v6 = vunpack.i.l.bf16 %v4960_v63 }
 0x60f   : > { %v3188_v56 = vsel %vm726_vm3, %v3180_v52, %v4956_v41  ;;  %v3164_v50 = vsel %vm726_vm3, %v3156_v17, %v4957_v4 }
 0x610   : > { %v4965_v32 = vpop.permute.xlu1 %4964  ;;  %3302 = vmatprep.mubr.f32.mxu0 %v3188_v56  ;;  %v3173_v48 = vsel %vm368_vm0, %v6674_v20, %v4961_v6  ;;  %v3149_v21 = vsel %vm368_vm0, %v6657_v14, %v4962_v45 }
 0x611   : > { %v4967_v33 = vunpack.i.h.bf16 %v4965_v32  ;;  %v4966_v36 = vunpack.i.l.bf16 %v4965_v32  ;;  %3303 = vmatmul.mubr.f32.gmra.mxu0 %v3164_v50  ;;  %v4970_v61 = vpop.permute.xlu0 %4969 }
 0x612   : > { %v4972_v11 = vunpack.i.h.bf16 %v4970_v61  ;;  %v4971_v38 = vunpack.i.l.bf16 %v4970_v61 }
 0x613   : > { %v3181_v59 = vsel %vm717_vm2, %v3173_v48, %v4966_v36  ;;  %v3157_v9 = vsel %vm717_vm2, %v3149_v21, %v4967_v33 }
 0x614   : > { %v4975_v39 = vpop.permute.xlu1 %4974  ;;  %v3189_v1 = vsel %vm726_vm3, %v3181_v59, %v4971_v38  ;;  %v3165_v7 = vsel %vm726_vm3, %v3157_v9, %v4972_v11  ;;  %v3475_v9 = vld [vmem:[%s6896_s5 + $0x18] sm:$0xff] }
 0x615   : > { %v4977_v34 = vunpack.i.h.bf16 %v4975_v39  ;;  %v4976_v31 = vunpack.i.l.bf16 %v4975_v39  ;;  %3307 = vmatprep.mubr.f32.mxu0 %v3189_v1  ;;  %v4980_v57 = vpop.permute.xlu0 %4979  ;;  %4353 = vmatpush3.msra.mxu1 %v3475_v9  ;;  %v3564_v1 = vld [vmem:[%s6898_s7 + $0x10] sm:$0xff] }
 0x616   : > { %v4982_v20 = vunpack.i.h.bf16 %v4980_v57  ;;  %v4981_v51 = vunpack.i.l.bf16 %v4980_v57  ;;  %3308 = vmatmul.mubr.f32.gmra.mxu0 %v3165_v7  ;;  %4354 = vmatprep.subr.mxu1 %v5086_v2  ;;  %v3473_v7 = vld [vmem:[%s6896_s5 + $0x8] sm:$0xff] }
 0x617   : > { %v3174_v8 = vsel %vm368_vm0, %v6689_v5, %v4976_v31  ;;  %v3150_v0 = vsel %vm368_vm0, %v6672_v16, %v4977_v34  ;;  %v3563_v57 = vld [vmem:[%s6898_s7 + $0x8] sm:$0xff] }
 0x618   : > { %v4985_v14 = vpop.permute.xlu1 %4984  ;;  %v3182_v22 = vsel %vm717_vm2, %v3174_v8, %v4981_v51  ;;  %v3158_v18 = vsel %vm717_vm2, %v3150_v0, %v4982_v20  ;;  %v3472_v20 = vld [vmem:[%s6896_s5] sm:$0xff] }
 0x619   : > { %v4987_v37 = vunpack.i.h.bf16 %v4985_v14  ;;  %v4986_v26 = vunpack.i.l.bf16 %v4985_v14  ;;  %v4990_v43 = vpop.permute.xlu0 %4989  ;;  %v3562_v51 = vld [vmem:[%s6898_s7] sm:$0xff] }
 0x61a   : > { %v4992_v23 = vunpack.i.h.bf16 %v4990_v43  ;;  %v4991_v15 = vunpack.i.l.bf16 %v4990_v43 }
 0x61b   : > { %v3190_v62 = vsel %vm726_vm3, %v3182_v22, %v4986_v26  ;;  %v3166_v40 = vsel %vm726_vm3, %v3158_v18, %v4987_v37 }
 0x61c   : > { %v4995_v4 = vpop.permute.xlu1 %4994  ;;  %3312 = vmatprep.mubr.f32.mxu0 %v3190_v62  ;;  %v3175_v5 = vsel %vm368_vm0, %v6701_v44, %v4991_v15  ;;  %v3151_v16 = vsel %vm368_vm0, %v6685_v27, %v4992_v23 }
 0x61d   : > { %v4997_v41 = vunpack.i.h.bf16 %v4995_v4  ;;  %v4996_v30 = vunpack.i.l.bf16 %v4995_v4  ;;  %3313 = vmatmul.mubr.f32.gmra.mxu0 %v3166_v40  ;;  %v5000_v47 = vpop.permute.xlu0 %4999 }
 0x61e   : > { %v5002_v52 = vunpack.i.h.bf16 %v5000_v47  ;;  %v5001_v17 = vunpack.i.l.bf16 %v5000_v47 }
 0x61f   : > { %v3183_v45 = vsel %vm717_vm2, %v3175_v5, %v4996_v30  ;;  %v3159_v6 = vsel %vm717_vm2, %v3151_v16, %v4997_v41  ;;  %v3887_v30 = vld [vmem:[%s6895_s4 + $0x3] ss:$0 sm:$0xff] }
 0x620   : > { %v5010_v63 = vpop.permute.xlu1 %5009  ;;  %v3191_v32 = vsel %vm726_vm3, %v3183_v45, %v5001_v17  ;;  %v3167_v33 = vsel %vm726_vm3, %v3159_v6, %v5002_v52 }
 0x621   : > { %v5012_v56 = vunpack.i.h.bf16 %v5010_v63  ;;  %v5011_v50 = vunpack.i.l.bf16 %v5010_v63  ;;  %v5005_v36 = vpop.permute.xlu0 %5004  ;;  %3317 = vmatprep.mubr.f32.mxu0 %v3191_v32 }
 0x622   : > { %v5007_v44 = vunpack.i.h.bf16 %v5005_v36  ;;  %v5006_v48 = vunpack.i.l.bf16 %v5005_v36  ;;  %3318 = vmatmul.mubr.f32.gmra.mxu0 %v3167_v33 }
 0x623   : > { %v3176_v11 = vsel %vm368_vm0, %v6711_v13, %v5011_v50  ;;  %v3152_v38 = vsel %vm368_vm0, %v6699_v19, %v5012_v56  ;;  %v3565_v13 = vld [vmem:[%s6898_s7 + $0x18] sm:$0xff]  ;;  %v3474_v19 = vld [vmem:[%s6896_s5 + $0x10] sm:$0xff] }
 0x624   : > { %v5015_v21 = vpop.permute.xlu1 %5014  ;;  %v3184_v39 = vsel %vm717_vm2, %v3176_v11, %v5006_v48  ;;  %v3160_v34 = vsel %vm717_vm2, %v3152_v38, %v5007_v44  ;;  %4364 = vmatpush3.msra.mxu0 %v3565_v13  ;;  %4355 = vmatpush3.msra.mxu1 %v3474_v19 }
 0x625   : > { %v5017_v27 = vunpack.i.h.bf16 %v5015_v21  ;;  %v5016_v61 = vunpack.i.l.bf16 %v5015_v21  ;;  %4365 = vmatprep.subr.mxu0 %v5086_v2  ;;  %4356 = vmatprep.subr.mxu1 %v5086_v2 }
 0x626   : > { %4366 = vmatpush3.msra.mxu0 %v3564_v1  ;;  %4357 = vmatpush3.msra.mxu1 %v3473_v7 }
 0x627   : > { %v3192_v31 = vsel %vm726_vm3, %v3184_v39, %v5016_v61  ;;  %v3168_v59 = vsel %vm726_vm3, %v3160_v34, %v5017_v27  ;;  %4367 = vmatprep.subr.mxu0 %v5086_v2  ;;  %4358 = vmatprep.subr.mxu1 %v5086_v2 }
 0x628   : > { %3322 = vmatprep.mubr.f32.mxu0 %v3192_v31  ;;  %4368 = vmatpush3.msra.mxu0 %v3563_v57 }
 0x629   : > { %3323 = vmatmul.mubr.f32.gmra.mxu0 %v3168_v59  ;;  %4369 = vmatprep.subr.mxu0 %v5086_v2 }
 0x62a   : > { %4359 = vmatpush3.msra.mxu1 %v3472_v20  ;;  %4370 = vmatpush3.msra.mxu0 %v3562_v51 }
 0x62b   : > { %4371 = vmatprep.mubr.msk.f32.mxu0 %vm5090_vm4, %v5086_v2 }
 0x648   : > { %v4342_v18 = vpop.f32.mrf.mxu1 }
 0x64a   : > { %v3394_v40 = vpop.f32.mrf.mxu1 }
 0x654   : > { %v4345_v41 = vpop.f32.mrf.mxu1 }
 0x656   : > { %v3404_v63 = vpop.f32.mrf.mxu1 }
 0x660   : > { %v4348_v6 = vpop.f32.mrf.mxu1 }
 0x662   : > { %v3414_v11 = vpop.f32.mrf.mxu1 }
 0x668   : > { %v4351_v1 = vpop.f32.mrf.mxu1 }
 0x66a   : > { %v3424_v20 = vpop.f32.mrf.mxu1 }
 0x6be   : > { %v4206_v14 = vpop.f32.mrf.mxu0 }
 0x6c0   : > { %v4207_v37 = vpop.f32.mrf.mxu0 }
 0x6c1   : > { %v4208_v15 = vadd.f32 %v4207_v37, %v4206_v14 }
 0x6c3   : > { %v3290_v47 = vadd.f32 %v4208_v15, %v3887_v30 }
 0x6c5   : > { %v4209_v26 = vpop.f32.mrf.mxu0  ;;  %v3395_v33 = vadd.f32 %v3394_v40, %v3290_v47 }
 0x6c7   : > { %v4210_v8 = vpop.f32.mrf.mxu0  ;;  %v3433_v38 = vadd.f32 %v3395_v33, %v2219_v35 }
 0x6c8   : > { %v4211_v62 = vadd.f32 %v4210_v8, %v4209_v26 }
 0x6c9   : > { %v3441_v42 = vmax.f32 %v3433_v38, 0.0 }
 0x6ca   : > { %v4212_v0 = vpop.f32.mrf.mxu0  ;;  %v3295_v5 = vadd.f32 %v4211_v62, %v3887_v30 }
 0x6cc   : > { %v4213_v22 = vpop.f32.mrf.mxu0  ;;  %v3400_v50 = vadd.f32 %v4342_v18, %v3295_v5 }
 0x6cd   : > { %v4214_v4 = vadd.f32 %v4213_v22, %v4212_v0 }
 0x6ce   : > { %v3434_v21 = vadd.f32 %v3400_v50, %v2220_v58 }
 0x6cf   : > { %v3300_v52 = vadd.f32 %v4214_v4, %v3887_v30 }
 0x6d0   : > { %v3442_v59 = vmax.f32 %v3434_v21, 0.0 }
 0x6d1   : > { %v4215_v43 = vpop.f32.mrf.mxu0  ;;  %v3405_v36 = vadd.f32 %v3404_v63, %v3300_v52 }
 0x6d2   : > { %v3450_v35 = vsel %vm368_vm0, %v3442_v59, 0.0 }
 0x6d3   : > { %v4216_v23 = vpop.f32.mrf.mxu0  ;;  %v3435_v39 = vadd.f32 %v3405_v36, %v2221_v49 }
 0x6d4   : > { %v4217_v2 = vadd.f32 %v4216_v23, %v4215_v43 }
 0x6d5   : > { %v3443_v58 = vmax.f32 %v3435_v39, 0.0 }
 0x6d6   : > { %v4218_v16 = vpop.f32.mrf.mxu0  ;;  %v3305_v45 = vadd.f32 %v4217_v2, %v3887_v30 }
 0x6d7   : > { %v3452_v14 = vsel %vm368_vm0, %v3443_v58, 0.0 }
 0x6d8   : > { %v4219_v17 = vpop.f32.mrf.mxu0  ;;  %v3410_v27 = vadd.f32 %v4345_v41, %v3305_v45 }
 0x6d9   : > { %v4220_v56 = vadd.f32 %v4219_v17, %v4218_v16 }
 0x6da   : > { %v3436_v9 = vadd.f32 %v3410_v27, %v2222_v54  ;;  %v3449_v54 = vsel %vm368_vm0, %v3441_v42, 0.0 }
 0x6db   : > { %v3310_v44 = vadd.f32 %v4220_v56, %v3887_v30  ;;  %v3451_v26 = vadd.f32 %v3450_v35, %v3449_v54 }
 0x6dc   : > { %v3444_v29 = vmax.f32 %v3436_v9, 0.0 }
 0x6dd   : > { %v4221_v32 = vpop.f32.mrf.mxu0  ;;  %v3415_v34 = vadd.f32 %v3414_v11, %v3310_v44  ;;  %v3453_v18 = vadd.f32 %v3452_v14, %v3451_v26 }
 0x6df   : > { %v4222_v48 = vpop.f32.mrf.mxu0  ;;  %v3437_v7 = vadd.f32 %v3415_v34, %v2223_v60  ;;  %v3454_v60 = vsel %vm368_vm0, %v3444_v29, 0.0 }
 0x6e0   : > { %v4223_v61 = vadd.f32 %v4222_v48, %v4221_v32  ;;  %v3455_v62 = vadd.f32 %v3454_v60, %v3453_v18 }
 0x6e1   : > { %v3445_v37 = vmax.f32 %v3437_v7, 0.0 }
 0x6e2   : > { %v3315_v31 = vadd.f32 %v4223_v61, %v3887_v30  ;;  %v4224_v19 = vpop.f32.mrf.mxu0 }
 0x6e4   : > { %v3420_v13 = vadd.f32 %v4348_v6, %v3315_v31  ;;  %v4225_v57 = vpop.f32.mrf.mxu0 }
 0x6e5   : > { %v4226_v25 = vadd.f32 %v4225_v57, %v4224_v19 }
 0x6e6   : > { %v3438_v49 = vadd.f32 %v3420_v13, %v2224_v24  ;;  %v3456_v24 = vsel %vm368_vm0, %v3445_v37, 0.0 }
 0x6e7   : > { %v3320_v10 = vadd.f32 %v4226_v25, %v3887_v30  ;;  %v3457_v4 = vadd.f32 %v3456_v24, %v3455_v62 }
 0x6e8   : > { %v3446_v0 = vmax.f32 %v3438_v49, 0.0 }
 0x6e9   : > { %v4227_v51 = vpop.f32.mrf.mxu0  ;;  %v3425_v8 = vadd.f32 %v3424_v20, %v3320_v10 }
 0x6ea   : > { %v3458_v23 = vsel %vm368_vm0, %v3446_v0, 0.0 }
 0x6eb   : > { %v4228_v55 = vpop.f32.mrf.mxu0  ;;  %v3439_v53 = vadd.f32 %v3425_v8, %v2225_v12  ;;  %v3459_v2 = vadd.f32 %v3458_v23, %v3457_v4 }
 0x6ec   : > { %v4229_v22 = vadd.f32 %v4228_v55, %v4227_v51 }
 0x6ed   : > { %v3447_v40 = vmax.f32 %v3439_v53, 0.0 }
 0x6ee   : > { %v3325_v43 = vadd.f32 %v4229_v22, %v3887_v30 }
 0x6ef   : > { %v3460_v41 = vsel %vm368_vm0, %v3447_v40, 0.0 }
 0x6f0   : > { %v3430_v15 = vadd.f32 %v4351_v1, %v3325_v43  ;;  %v3461_v47 = vadd.f32 %v3460_v41, %v3459_v2 }
 0x6f2   : > { %v3440_v5 = vadd.f32 %v3430_v15, %v2226_v46  ;;  %v3566_v46 = vld [vmem:[#allocation3] sm:$0x1] }
 0x6f4   : > { %v3448_v16 = vmax.f32 %v3440_v5, 0.0 }
 0x6f6   : > { %v3462_v3 = vsel %vm368_vm0, %v3448_v16, 0.0 }
 0x6f7   : > { %v3463_v12 = vadd.f32 %v3462_v3, %v3461_v47 }
 0x6f9   : > { %v3464_v52 = vrot.slane %v3463_v12, 4 }
 0x6fb   : > { %v3465_v17 = vadd.f32 %v3464_v52, %v3463_v12 }
 0x6fd   : > { %v3466_v30 = vrot.slane %v3465_v17, 2 }
 0x6ff   : > { %v3467_v63 = vadd.f32 %v3466_v30, %v3465_v17 }
 0x701   : > { %v3468_v56 = vrot.slane %v3467_v63, 1 }
 0x703   : > { %v3469_v50 = vadd.f32 %v3468_v56, %v3467_v63 }
 0x705   : > { %v3471_v45 = vmul.f32 0.015625, %v3469_v50 }
 0x707   : > { %4361 = vmatmul.mubr.msk.f32.vlgmr.msra.gmra.mxu1 %vm368_vm0, %v3471_v45  ;;  %4372 = vmatmul.mubr.msk.f32.vlgmr.msra.gmra.mxu0 %vm368_vm0, %v3471_v45 }
 0x7c7   : > { %v3546_v6 = vpop.f32.mrf.mxu1  ;;  %v3633_v32 = vpop.f32.mrf.mxu0 }
 0x7c8   : > { %v3547_v33 = vadd.f32 %v3546_v6, %v3476_v28  ;;  %v3634_v36 = vadd.f32 %v3633_v32, %v3566_v46 }
 0x7c9   : > { %v4362_v44 = vpop.f32.mrf.mxu1  ;;  %v4373_v48 = vpop.f32.mrf.mxu0 }
 0x7ca   : > { %5018 = vtanh.f32 %v3634_v36  ;;  %v3551_v21 = vsel %vm3550_vm5, %v3547_v33, -inf }
 0x7cb   : > { %3552 = vmax.xlane.f32.xlu0 %v3551_v21 }
 0x7d7   : > { %v5019_v27 = vpop.eup %5018 }
 0x7d8   : > { %3640 = vst.msk [vmem:[%s367_s28] sm:$0x1] %vm3639_vm6, %v5019_v27 }
 0x854   : > { %v3553_v61 = vpop.xlane.xlu0 %3552 }
 0x855   : > { %v3554_v11 = vsub.f32 %v3547_v33, %v3553_v61 }
 0x857   : > { %v3555_v38 = vmul.f32 1.442695, %v3554_v11 }
 0x859   : > { %5020 = vpow2.f32 %v3555_v38 }
 0x866   : > { %v5021_v39 = vpop.eup %5020 }
 0x867   : > { %v3557_v34 = vsel %vm3550_vm5, %v5021_v39, 0.0 }
 0x868   : > { %3558 = vadd.xlane.f32.xlu1 %v3557_v34 }
 0x8f1   : > { %v3559_v31 = vpop.xlane.xlu1 %3558 }
 0x8f2   : > { %5022 = vrcp.f32 %v3559_v31 }
 0x8ff   : > { %v5023_v59 = vpop.eup %5022 }
 0x900   : > { %v3561_v9 = vmul.f32 %v5023_v59, %v5021_v39 }
 0x902   : > { %3638 = vst.msk [vmem:[%s354_s19] sm:$0x1] %vm3550_vm5, %v3561_v9 }
 0x903   : > { %5037 = shalt.err (!%p5034_p3)
}
 0x904   : > { %s5038_s21 = scalar_lea.hbm %s3655_s26, 16  ;;  %s5042_s11 = scalar_lea.hbm %s6900_s9, 32 }
 0x905   : > { %p5039_p4 = scmp.ne.s32.totalorder %s3655_s26, %s5038_s21  ;;  %p5043_p9 = scmp.lt.s32.totalorder %s3655_s26, %s6900_s9 }
 0x906   : > { %p5044_p10 = scmp.lt.s32.totalorder %s5042_s11, %s5038_s21 }
 0x907   : > { %p5040_p7 = pnand %p5039_p4, %p5188_p5 }
 0x908   : > { %p5045_p11 = por %p5044_p10, %p5043_p9 }
 0x909   : > { %p5041_p8 = pneg %p5040_p7 }
 0x90b   : > { %p5046_p12 = pnand %p5045_p11, %p5041_p8 }
 0x90d   : > { %5049 = shalt.err (!%p5046_p12)
}
 0x90e   : > { %4374 = dma.vmem_to_hbm [thread:$0]  (%p5188_p5), %s3658_s22, 16, %s3655_s26, %s3642_s12  }
 0x90f PF: > { %p4380_p13 = scmp.ge.s32.totalorder %s5084_s18, 2  ;;  %s3672_s14 = sand.u32 1, %s5072_s15  }
 0x910   : > { %s3673_s13 = scalar_lea.sflag [#allocation5], %s3672_s14 }
 0x911   : > { %p4377_p0 = pnand %p4380_p13, %p5192_p6 }
 0x913   : > { %p4378_p1 = pneg %p4377_p0 }
 0x915   : > { %5067 = dma.done.wait (%p4378_p1), %s3673_s13, 16  }
 0x916   : > { %5069 = vsyncadd (%p4378_p1), %s3673_s13, 4294967280  ;;  %s6916_s23 = sld [smem:[#allocation7_spill]]  ;;  %p23_p2 = scmp.ge.s32.totalorder %s5175_s20, 4  }
 0x917   : > { %s6917_s15 = smov %s5076_s16  ;;  %s6918_s16 = smov %s5080_s17 }
 0x918   : > { %s6920_s18 = smov %s5175_s20  ;;  %25 = sbr.rel (!%p23_p2) target bundleno = 6 (0x6), region = 111 }
 0x91c   : > { %s6919_s17 = smov %s6916_s23 }
 0x91d   :  { %3683 = vsyncpa [#allocation5], 1 }
 0x91e   :  { %3685 = vsyncpa [#allocation5 + $0x1], 1 }

// kernel: tpu_custom_call.1
= control target key start
LH: loop header
LB: loop body
LE: loop exit
PB: predicated region body
PF: predicated region fallthrough
CT: control target
= control target key end

     0   :  { %s11528_s0 = inlined_call_operand.vmem [shape: f32[2,8,8,32], index: 0, kind: input, shape index: {}]   ;;  %s11529_s1 = inlined_call_operand.vmem [shape: f32[288,32], index: 1, kind: input, shape index: {}]   ;;  %s11530_s2 = inlined_call_operand.vmem [shape: f32[1,32], index: 2, kind: input, shape index: {}]   ;;  %s11531_s3 = inlined_call_operand.vmem [shape: f32[2,2,288,32], index: 3, kind: input, shape index: {}]   ;;  %s11532_s4 = inlined_call_operand.vmem [shape: f32[2,2,1,32], index: 4, kind: input, shape index: {}]   ;;  %s11533_s5 = inlined_call_operand.vmem [shape: f32[32,8], index: 5, kind: input, shape index: {}]   ;;  %s11534_s6 = inlined_call_operand.vmem [shape: f32[1,8], index: 6, kind: input, shape index: {}]   ;;  %s11535_s7 = inlined_call_operand.vmem [shape: f32[32,1], index: 7, kind: input, shape index: {}]   ;;  %s11536_s8 = inlined_call_operand.<no memory space> [shape: f32[1,1], index: 8, kind: input, shape index: {}]   ;;  %s11537_s9 = inlined_call_operand.hbm [shape: f32[2,1,8], index: 9, kind: output, shape index: {0}]   ;;  %s11538_s10 = inlined_call_operand.vmem [shape: f32[2,1,1], index: 10, kind: output, shape index: {1}]  }
   0x1   :  { %v16_v0 = vstv %s11536_s8 }
   0x2   :  { %17 = vst [vmem:[#allocation3] sm:$0x1] %v16_v0 }
   0x3   :  { %18 = vsyncpa [#allocation5], 0 }
   0x4   :  { %20 = vsyncpa [#allocation5 + $0x1], 0  ;;  %s9617_s15 = smov 0   ;;  %s9619_s16 = smov 0  }
   0x5   :  { %s9621_s17 = smov 0   ;;  %s9623_s18 = smov 0  }
   0x6 LB: > { %s9638_s8 = sadd.s32 4294967295, %s9554_s18   ;;  %s7487_s19 = sadd.s32 4294967294, %s9554_s18   ;;  %s9554_s18 = sphi %s9623_s18, %s11711_s18   ;;  %s9550_s17 = sphi %s9621_s17, %s11710_s17   ;;  %s9546_s16 = sphi %s9619_s16, %s11709_s16   ;;  %s9542_s15 = sphi %s9617_s15, %s11708_s15  }
   0x7   : > { %s9642_s20 = sadd.s32 1, %s9554_s18   ;;  %s227_s21 = sadd.s32 1, %s9550_s17 }
   0x8   : > { %s224_s22 = ssub.s32 %s9554_s18, %s9642_s20  ;;  %p237_p0 = scmp.ne.s32.totalorder %s9550_s17, %s9546_s16 }
   0x9   : > { %p225_p1 = scmp.eq.s32.totalorder %s224_s22, 0  ;;  %p238_p2 = scmp.eq.s32.totalorder %s9638_s8, 1 }
   0xa   : > { %p243_p3 = scmp.ne.s32.totalorder %s9546_s16, %s9542_s15  ;;  %p244_p4 = scmp.eq.s32.totalorder %s7487_s19, 1 }
   0xb   : > { %s9653_s23 = scalar_select %p225_p1, %s9550_s17, %s227_s21  }
   0xc   : > { %p9655_p5 = por %p238_p2, %p237_p0  ;;  %p9659_p6 = por %p244_p4, %p243_p3 }
   0xd   : > { %p7490_p7 = scmp.ge.s32.totalorder %s9554_s18, 1  ;;  %p320_p8 = scmp.lt.s32.totalorder %s9554_s18, 3 }
   0xf   : > { %p321_p9 = pnand %p7490_p7, %p320_p8 }
  0x11   : > { %324 = sbr.rel (%p321_p9) target bundleno = 1958 (0x7a6), region = 56 }
  0x16   : > { %v414_v1 = vld [vmem:[%s11529_s1 + $0x38] sm:$0xff]  ;;  %v413_v3 = vld [vmem:[%s11529_s1 + $0x30] sm:$0xff]  ;;  %vm368_vm0 = vcmask 261120   ;;  %vm370_vm1 = vcmask 254976   ;;  %v11539_v5 = vmov 0.0   ;;  %p360_p10 = scmp.lt.s32.totalorder %s9638_s8, 1 }
  0x17   : > { %v410_v2 = vld [vmem:[%s11529_s1 + $0x18] sm:$0xff]  ;;  %8525 = vmatprep.subr.mxu0 %v414_v1  ;;  %v409_v4 = vld [vmem:[%s11529_s1 + $0x10] sm:$0xff]  ;;  %369 = vst.msk [vmem:[#allocation2] sm:$0xff] %vm368_vm0, %v11539_v5  ;;  %372 = vst.msk [vmem:[#allocation2 + $0x10] sm:$0xff] %vm368_vm0, %v11539_v5  ;;  %vm9557_vm2 = vmmov 0   ;;  %vm7303_vm3 = vcmask 57344  }
  0x18   : > { %8545 = vmatprep.subr.mxu1 %v410_v2  ;;  %371 = vst.msk [vmem:[#allocation2 + $0x8] sm:$0x3] %vm370_vm1, %v11539_v5  ;;  %375 = vst.msk [vmem:[#allocation2 + $0x28] sm:$0x3] %vm370_vm1, %v11539_v5  ;;  %8526 = vmatpush3.msra.mxu0 %v414_v1  ;;  %v412_v6 = vld [vmem:[%s11529_s1 + $0x28] sm:$0xff]  ;;  %s9725_s26 = scalar_select %p360_p10, %s9638_s8, 1 }
  0x19   : > { %377 = vst.msk [vmem:[#allocation2 + $0x38] sm:$0x3] %vm370_vm1, %v11539_v5  ;;  %379 = vst.msk [vmem:[#allocation2 + $0x48] sm:$0x3] %vm370_vm1, %v11539_v5  ;;  %8546 = vmatpush3.msra.mxu1 %v410_v2  ;;  %v408_v7 = vld [vmem:[%s11529_s1 + $0x8] sm:$0xff]  ;;  %8527 = vmatprep.subr.mxu0 %v413_v3  ;;  %v411_v8 = vld [vmem:[%s11529_s1 + $0x20] sm:$0xff] }
  0x1a   : > { %381 = vst.msk [vmem:[#allocation2 + $0x58] sm:$0x3] %vm370_vm1, %v11539_v5  ;;  %383 = vst.msk [vmem:[#allocation2 + $0x68] sm:$0x3] %vm370_vm1, %v11539_v5  ;;  %8547 = vmatprep.subr.mxu1 %v409_v4  ;;  %8528 = vmatpush3.msra.mxu0 %v413_v3  ;;  %v407_v9 = vld [vmem:[%s11529_s1] sm:$0xff]  ;;  %s7974_s11 = sshll.u32 %s9725_s26, 6  ;;  %s367_s19 = scalar_lea.vmem %s11538_s10, %s9725_s26 }
  0x1b   : > { %385 = vst.msk [vmem:[#allocation2 + $0x78] sm:$0x3] %vm370_vm1, %v11539_v5  ;;  %373 = vst.msk [vmem:[#allocation2 + $0x18] sm:$0x3] %vm370_vm1, %v11539_v5  ;;  %8548 = vmatpush3.msra.mxu1 %v409_v4  ;;  %8529 = vmatprep.subr.mxu0 %v412_v6  ;;  %v418_v10 = vld [vmem:[%s11529_s1 + $0x58] sm:$0xff]  ;;  %s364_s21 = scalar_lea.vmem %s11528_s0, %s7974_s11  ;;  %v417_v22 = vld [vmem:[%s11529_s1 + $0x50] sm:$0xff] }
  0x1c   : > { %374 = vst.msk [vmem:[#allocation2 + $0x20] sm:$0xff] %vm368_vm0, %v11539_v5  ;;  %376 = vst.msk [vmem:[#allocation2 + $0x30] sm:$0xff] %vm368_vm0, %v11539_v5  ;;  %8549 = vmatprep.subr.mxu1 %v408_v7  ;;  %8530 = vmatpush3.msra.mxu0 %v412_v6  ;;  %v422_v11 = vld [vmem:[%s11529_s1 + $0x78] sm:$0xff]  ;;  %v390_v12 = vld [vmem:[%s364_s21] sm:$0xff]  ;;  %vm7392_vm4 = vcmask 0   ;;  %s7971_s22 = sshll.u32 %s9638_s8, 4 }
  0x1d   : > { %378 = vst.msk [vmem:[#allocation2 + $0x40] sm:$0xff] %vm368_vm0, %v11539_v5  ;;  %380 = vst.msk [vmem:[#allocation2 + $0x50] sm:$0xff] %vm368_vm0, %v11539_v5  ;;  %8550 = vmatpush3.msra.mxu1 %v408_v7  ;;  %8531 = vmatprep.subr.mxu0 %v411_v8  ;;  %v391_v13 = vld [vmem:[%s364_s21 + $0x8] sm:$0xff]  ;;  %v392_v14 = vld [vmem:[%s364_s21 + $0x10] sm:$0xff]  ;;  %s7408_s30 = scalar_lea.hbm %s11537_s9, %s7971_s22  ;;  %s9558_s13 = smov [#allocation4]  }
  0x1e   : > { %382 = vst.msk [vmem:[#allocation2 + $0x60] sm:$0xff] %vm368_vm0, %v11539_v5  ;;  %384 = vst.msk [vmem:[#allocation2 + $0x70] sm:$0xff] %vm368_vm0, %v11539_v5  ;;  %8551 = vmatprep.subr.mxu1 %v407_v9  ;;  %8532 = vmatpush3.msra.mxu0 %v411_v8  ;;  %v9745_v16 = vld [vmem:[#allocation2] sm:$0xff]  ;;  %v393_v17 = vld [vmem:[%s364_s21 + $0x18] sm:$0xff]  ;;  %s9498_s14 = sshll.u32 %s9558_s13, 4  ;;  %s9499_s14 = int_to_ptr.vmem [resolvable:$false] %s9498_s14 }
  0x1f   : > { %386 = vst.msk [vmem:[#allocation2 + $0x80] sm:$0xff] %vm368_vm0, %v11539_v5  ;;  %388 = vst.msk [vmem:[#allocation2 + $0x90] sm:$0xff] %vm368_vm0, %v11539_v5  ;;  %v9743_v15 = vld [vmem:[#allocation2 + $0x1] sm:$0xff]  ;;  %8552 = vmatpush3.msra.mxu1 %v407_v9  ;;  %8553 = vmatprep.mubr.msk.f32.mxu1 %vm368_vm0, %v9745_v16  ;;  %v396_v20 = vld [vmem:[%s364_s21 + $0x30] sm:$0xff]  ;;  %s9500_s8 = scalar_lea.vmem %s9499_s14, 32 }
  0x20   : > { %387 = vst.msk [vmem:[#allocation2 + $0x88] sm:$0x3] %vm370_vm1, %v11539_v5  ;;  %389 = vst.msk [vmem:[#allocation2 + $0x98] sm:$0x3] %vm370_vm1, %v11539_v5  ;;  %8533 = vmatprep.mubr.msk.f32.mxu0 %vm368_vm0, %v9743_v15  ;;  %v394_v18 = vld [vmem:[%s364_s21 + $0x20] sm:$0xff]  ;;  %v395_v19 = vld [vmem:[%s364_s21 + $0x28] sm:$0xff]  ;;  %8565 = vmatprep.subr.mxu0 %v418_v10 }
  0x21   : > { %399 = vst.msk [vmem:[#allocation2 + $0x11] sm:$0xff] %vm368_vm0, %v390_v12  ;;  %400 = vst.msk [vmem:[#allocation2 + $0x21] sm:$0xff] %vm368_vm0, %v391_v13  ;;  %8585 = vmatprep.subr.mxu1 %v422_v11  ;;  %v397_v21 = vld [vmem:[%s364_s21 + $0x38] sm:$0xff]  ;;  %v416_v31 = vld [vmem:[%s11529_s1 + $0x48] sm:$0xff]  ;;  %s353_s21 = sand.u32 1, %s9546_s16  }
  0x22   : > { %401 = vst.msk [vmem:[#allocation2 + $0x31] sm:$0xff] %vm368_vm0, %v392_v14  ;;  %402 = vst.msk [vmem:[#allocation2 + $0x41] sm:$0xff] %vm368_vm0, %v393_v17  ;;  %v421_v32 = vld [vmem:[%s11529_s1 + $0x70] sm:$0xff]  ;;  %v415_v37 = vld [vmem:[%s11529_s1 + $0x40] sm:$0xff]  ;;  %s354_s27 = scalar_lea.vmem [#allocation4], %s353_s21  ;;  %s7395_s11 = scalar_lea.sflag [#allocation5], %s353_s21 }
  0x23   : > { %403 = vst.msk [vmem:[#allocation2 + $0x51] sm:$0xff] %vm368_vm0, %v394_v18  ;;  %404 = vst.msk [vmem:[#allocation2 + $0x61] sm:$0xff] %vm368_vm0, %v395_v19  ;;  %v420_v38 = vld [vmem:[%s11529_s1 + $0x68] sm:$0xff]  ;;  %v426_v42 = vld [vmem:[%s11529_s1 + $0x98] sm:$0xff]  ;;  %s7410_s28 = sshll.u32 %s354_s27, 4  ;;  %s7411_s28 = int_to_ptr.vmem [resolvable:$true] %s7410_s28 }
  0x24   : > { %405 = vst.msk [vmem:[#allocation2 + $0x71] sm:$0xff] %vm368_vm0, %v396_v20  ;;  %406 = vst.msk [vmem:[#allocation2 + $0x81] sm:$0xff] %vm368_vm0, %v397_v21  ;;  %v9823_v41 = vld [vmem:[#allocation2 + $0x2] sm:$0xff]  ;;  %v425_v46 = vld [vmem:[%s11529_s1 + $0x90] sm:$0xff]  ;;  %s9494_s12 = scalar_lea.vmem %s7411_s28, 16  ;;  %p9501_p0 = scmp.lt.s32.totalorder %s7411_s28, %s9499_s14 }
  0x25   : > { %11594 = vst [vmem:[#allocation7_spill] sm:$0xff] %v9823_v41  ;;  %v419_v43 = vld [vmem:[%s11529_s1 + $0x60] sm:$0xff]  ;;  %v430_v47 = vld [vmem:[%s11529_s1 + $0xb8] sm:$0xff]  ;;  %v424_v50 = vld [vmem:[%s11529_s1 + $0x88] sm:$0xff]  ;;  %p9495_p11 = scmp.ne.s32.totalorder %s7411_s28, %s9494_s12  ;;  %p9502_p1 = scmp.lt.s32.totalorder %s9500_s8, %s9494_s12 }
  0x26   : > { %v423_v51 = vld [vmem:[%s11529_s1 + $0x80] sm:$0xff]  ;;  %v429_v54 = vld [vmem:[%s11529_s1 + $0xb0] sm:$0xff]  ;;  %v434_v55 = vld [vmem:[%s11529_s1 + $0xd8] sm:$0xff] }
  0x27   : > { %v428_v58 = vld [vmem:[%s11529_s1 + $0xa8] sm:$0xff]  ;;  %v427_v59 = vld [vmem:[%s11529_s1 + $0xa0] sm:$0xff]  ;;  %v433_v60 = vld [vmem:[%s11529_s1 + $0xd0] sm:$0xff]  ;;  %p9496_p12 = pnand %p9495_p11, %p9655_p5  ;;  %p9503_p2 = por %p9502_p1, %p9501_p0 }
  0x28   : > { %v9762_v23 = vld [vmem:[#allocation2 + $0x11] sm:$0xff]  ;;  %v9764_v25 = vld [vmem:[#allocation2 + $0x21] sm:$0xff] }
  0x29   : > { %v445_v24 = vld [vmem:[#allocation2 + $0x10] sm:$0xff]  ;;  %8534 = vmatmul.mubr.msk.f32.vlgmr.msra.gmra.mxu0 %vm368_vm0, %v9762_v23  ;;  %v9769_v26 = vld [vmem:[#allocation2 + $0x20] sm:$0xff]  ;;  %v432_v61 = vld [vmem:[%s11529_s1 + $0xc8] sm:$0xff]  ;;  %p9497_p13 = pneg %p9496_p12 }
  0x2a   : > { %8554 = vmatmul.mubr.msk.f32.vlgmr.msra.gmra.mxu1 %vm368_vm0, %v445_v24  ;;  %8566 = vmatpush3.msra.mxu0 %v418_v10  ;;  %v9773_v27 = vld [vmem:[#allocation2 + $0x31] sm:$0xff]  ;;  %v9779_v29 = vld [vmem:[#allocation2 + $0x41] sm:$0xff] }
  0x2b   : > { %8536 = vmatprep.mubr.msk.f32.mxu0 %vm368_vm0, %v9764_v25  ;;  %v9775_v28 = vld [vmem:[#allocation2 + $0x30] sm:$0xff]  ;;  %8556 = vmatprep.mubr.msk.f32.mxu1 %vm368_vm0, %v9769_v26  ;;  %v9781_v30 = vld [vmem:[#allocation2 + $0x40] sm:$0xff]  ;;  %v438_v62 = vld [vmem:[%s11529_s1 + $0xf8] sm:$0xff]  ;;  %p9504_p3 = pnand %p9503_p2, %p9497_p13 }
  0x2c   : > { %8567 = vmatprep.subr.mxu0 %v417_v22  ;;  %8586 = vmatpush3.msra.mxu1 %v422_v11  ;;  %v9797_v33 = vld [vmem:[#allocation2 + $0x51] sm:$0xff]  ;;  %v9801_v35 = vld [vmem:[#allocation2 + $0x61] sm:$0xff] }
  0x2d   : > { %8568 = vmatpush3.msra.mxu0 %v417_v22  ;;  %v9799_v34 = vld [vmem:[#allocation2 + $0x50] sm:$0xff]  ;;  %v9803_v36 = vld [vmem:[#allocation2 + $0x60] sm:$0xff]  ;;  %8587 = vmatprep.subr.mxu1 %v421_v32  ;;  %v436_v2 = vld [vmem:[%s11529_s1 + $0xe8] sm:$0xff] }
  0x2e   : > { %8537 = vmatmul.mubr.msk.f32.gmra.mxu0 %vm368_vm0, %v9773_v27  ;;  %8557 = vmatmul.mubr.msk.f32.gmra.mxu1 %vm368_vm0, %v9775_v28  ;;  %v9819_v39 = vld [vmem:[#allocation2 + $0x71] sm:$0xff]  ;;  %v9838_v45 = vld [vmem:[#allocation2 + $0x22] sm:$0xff] }
  0x2f   : > { %8539 = vmatprep.mubr.msk.f32.mxu0 %vm368_vm0, %v9779_v29  ;;  %8559 = vmatprep.mubr.msk.f32.mxu1 %vm368_vm0, %v9781_v30  ;;  %v9821_v40 = vld [vmem:[#allocation2 + $0x70] sm:$0xff]  ;;  %v9855_v49 = vld [vmem:[#allocation2 + $0x42] sm:$0xff]  ;;  %v442_v4 = vld [vmem:[%s11529_s1 + $0x118] sm:$0xff] }
  0x30   : > { %8569 = vmatprep.subr.mxu0 %v416_v31  ;;  %8588 = vmatpush3.msra.mxu1 %v421_v32  ;;  %v719_v44 = vld [vmem:[#allocation2 + $0x12] sm:$0xff]  ;;  %v9873_v53 = vld [vmem:[#allocation2 + $0x62] sm:$0xff] }
  0x31   : > { %8570 = vmatpush3.msra.mxu0 %v416_v31  ;;  %8589 = vmatprep.subr.mxu1 %v420_v38  ;;  %v9851_v48 = vld [vmem:[#allocation2 + $0x32] sm:$0xff]  ;;  %v9889_v57 = vld [vmem:[#allocation2 + $0x80] sm:$0xff]  ;;  %v440_v8 = vld [vmem:[%s11529_s1 + $0x108] sm:$0xff] }
  0x32   : > { %8540 = vmatmul.mubr.msk.f32.gmra.mxu0 %vm368_vm0, %v9797_v33  ;;  %8560 = vmatmul.mubr.msk.f32.gmra.mxu1 %vm368_vm0, %v9799_v34  ;;  %v9869_v52 = vld [vmem:[#allocation2 + $0x52] sm:$0xff]  ;;  %v431_v63 = vld [vmem:[%s11529_s1 + $0xc0] sm:$0xff]  ;;  %v1769_v17 = vld [vmem:[%s11531_s3 + $0x28] sm:$0xff] }
  0x33   : > { %8542 = vmatprep.mubr.msk.f32.mxu0 %vm368_vm0, %v9801_v35  ;;  %8562 = vmatprep.mubr.msk.f32.mxu1 %vm368_vm0, %v9803_v36  ;;  %v9887_v56 = vld [vmem:[#allocation2 + $0x72] sm:$0xff]  ;;  %v1015_v1 = vld [vmem:[#allocation2 + $0x81] sm:$0xff] }
  0x34   : > { %8571 = vmatprep.subr.mxu0 %v415_v37  ;;  %8590 = vmatpush3.msra.mxu1 %v420_v38  ;;  %v437_v0 = vld [vmem:[%s11529_s1 + $0xf0] sm:$0xff]  ;;  %v1160_v3 = vld [vmem:[#allocation2 + $0x82] sm:$0xff]  ;;  %v1771_v13 = vld [vmem:[%s11531_s3 + $0x38] sm:$0xff] }
  0x35   : > { %8572 = vmatpush3.msra.mxu0 %v415_v37  ;;  %8591 = vmatprep.subr.mxu1 %v419_v43  ;;  %v435_v6 = vld [vmem:[%s11529_s1 + $0xe0] sm:$0xff]  ;;  %v441_v7 = vld [vmem:[%s11529_s1 + $0x110] sm:$0xff]  ;;  %v1767_v14 = vld [vmem:[%s11531_s3 + $0x18] sm:$0xff] }
  0x36   : > { %8543 = vmatmul.mubr.msk.f32.gmra.mxu0 %vm368_vm0, %v9819_v39  ;;  %8563 = vmatmul.mubr.msk.f32.gmra.mxu1 %vm368_vm0, %v9821_v40  ;;  %v439_v9 = vld [vmem:[%s11529_s1 + $0x100] sm:$0xff]  ;;  %v9991_v10 = vld [vmem:[#allocation2 + $0x90] sm:$0xff]  ;;  %v1765_v18 = vld [vmem:[%s11531_s3 + $0x8] sm:$0xff] }
  0x37   : > { %8573 = vmatprep.mubr.msk.f32.mxu0 %vm368_vm0, %v9823_v41  ;;  %8605 = vmatprep.subr.mxu0 %v426_v42  ;;  %11595 = vst [vmem:[#allocation8_spill] sm:$0xff] %v9991_v10  ;;  %v9994_v11 = vld [vmem:[#allocation2 + $0x91] sm:$0xff]  ;;  %v1768_v19 = vld [vmem:[%s11531_s3 + $0x20] sm:$0xff] }
  0x38   : > { %8593 = vmatprep.mubr.msk.f32.mxu1 %vm368_vm0, %v445_v24  ;;  %8592 = vmatpush3.msra.mxu1 %v419_v43  ;;  %11596 = vst [vmem:[#allocation9_spill] sm:$0xff] %v9994_v11  ;;  %v10015_v12 = vld [vmem:[#allocation2 + $0x92] sm:$0xff]  ;;  %v1764_v20 = vld [vmem:[%s11531_s3] sm:$0xff] }
  0x39   : > { %8625 = vmatprep.subr.mxu1 %v430_v47  ;;  %11597 = vst [vmem:[#allocation10_spill] sm:$0xff] %v10015_v12  ;;  %v10048_v21 = vld [vmem:[%s11531_s3 + $0x58] sm:$0xff] }
  0x3a   : > { %8574 = vmatmul.mubr.msk.f32.vlgmr.msra.gmra.mxu0 %vm368_vm0, %v719_v44  ;;  %8594 = vmatmul.mubr.msk.f32.vlgmr.msra.gmra.mxu1 %vm368_vm0, %v9769_v26  ;;  %11598 = vst [vmem:[#allocation11_spill] sm:$0xff] %v10048_v21  ;;  %v10054_v22 = vld [vmem:[%s11531_s3 + $0x78] sm:$0xff] }
  0x3b   : > { %8606 = vmatpush3.msra.mxu0 %v426_v42  ;;  %8576 = vmatprep.mubr.msk.f32.mxu0 %vm368_vm0, %v9838_v45  ;;  %11599 = vst [vmem:[#allocation12_spill] sm:$0xff] %v10054_v22 }
  0x3c   : > { %8607 = vmatprep.subr.mxu0 %v425_v46  ;;  %8596 = vmatprep.mubr.msk.f32.mxu1 %vm368_vm0, %v9775_v28 }
  0x3d   : > { %8608 = vmatpush3.msra.mxu0 %v425_v46  ;;  %8626 = vmatpush3.msra.mxu1 %v430_v47 }
  0x3e   : > { %8577 = vmatmul.mubr.msk.f32.gmra.mxu0 %vm368_vm0, %v9851_v48  ;;  %8597 = vmatmul.mubr.msk.f32.gmra.mxu1 %vm368_vm0, %v9781_v30 }
  0x3f   : > { %8579 = vmatprep.mubr.msk.f32.mxu0 %vm368_vm0, %v9855_v49  ;;  %8609 = vmatprep.subr.mxu0 %v424_v50 }
  0x40   : > { %8610 = vmatpush3.msra.mxu0 %v424_v50  ;;  %8599 = vmatprep.mubr.msk.f32.mxu1 %vm368_vm0, %v9799_v34 }
  0x41   : > { %8611 = vmatprep.subr.mxu0 %v423_v51  ;;  %8627 = vmatprep.subr.mxu1 %v429_v54 }
  0x42   : > { %8580 = vmatmul.mubr.msk.f32.gmra.mxu0 %vm368_vm0, %v9869_v52  ;;  %8600 = vmatmul.mubr.msk.f32.gmra.mxu1 %vm368_vm0, %v9803_v36 }
  0x43   : > { %8582 = vmatprep.mubr.msk.f32.mxu0 %vm368_vm0, %v9873_v53  ;;  %8612 = vmatpush3.msra.mxu0 %v423_v51 }
  0x44   : > { %8602 = vmatprep.mubr.msk.f32.mxu1 %vm368_vm0, %v9821_v40  ;;  %8628 = vmatpush3.msra.mxu1 %v429_v54 }
  0x45   : > { %8645 = vmatprep.subr.mxu0 %v434_v55  ;;  %8629 = vmatprep.subr.mxu1 %v428_v58 }
  0x46   : > { %8583 = vmatmul.mubr.msk.f32.gmra.mxu0 %vm368_vm0, %v9887_v56  ;;  %8603 = vmatmul.mubr.msk.f32.gmra.mxu1 %vm368_vm0, %v9889_v57 }
  0x47   : > { %8613 = vmatprep.mubr.msk.f32.mxu0 %vm368_vm0, %v9762_v23  ;;  %8630 = vmatpush3.msra.mxu1 %v428_v58 }
  0x48   : > { %8633 = vmatprep.mubr.msk.f32.mxu1 %vm368_vm0, %v719_v44  ;;  %8631 = vmatprep.subr.mxu1 %v427_v59 }
  0x49   : > { %8632 = vmatpush3.msra.mxu1 %v427_v59 }
  0x4a   : > { %8614 = vmatmul.mubr.msk.f32.vlgmr.msra.gmra.mxu0 %vm368_vm0, %v9764_v25  ;;  %8634 = vmatmul.mubr.msk.f32.vlgmr.msra.gmra.mxu1 %vm368_vm0, %v9838_v45 }
  0x4b   : > { %8646 = vmatpush3.msra.mxu0 %v434_v55  ;;  %8616 = vmatprep.mubr.msk.f32.mxu0 %vm368_vm0, %v9773_v27 }
  0x4c   : > { %8647 = vmatprep.subr.mxu0 %v433_v60  ;;  %8636 = vmatprep.mubr.msk.f32.mxu1 %vm368_vm0, %v9851_v48 }
  0x4d   : > { %8648 = vmatpush3.msra.mxu0 %v433_v60  ;;  %8665 = vmatprep.subr.mxu1 %v438_v62 }
  0x4e   : > { %8617 = vmatmul.mubr.msk.f32.gmra.mxu0 %vm368_vm0, %v9779_v29  ;;  %8649 = vmatprep.subr.mxu0 %v432_v61 }
  0x4f   : > { %8637 = vmatmul.mubr.msk.f32.gmra.mxu1 %vm368_vm0, %v9855_v49  ;;  %8619 = vmatprep.mubr.msk.f32.mxu0 %vm368_vm0, %v9797_v33 }
  0x50   : > { %8650 = vmatpush3.msra.mxu0 %v432_v61  ;;  %8639 = vmatprep.mubr.msk.f32.mxu1 %vm368_vm0, %v9869_v52 }
  0x51   : > { %8651 = vmatprep.subr.mxu0 %v431_v63  ;;  %8666 = vmatpush3.msra.mxu1 %v438_v62 }
  0x52   : > { %8620 = vmatmul.mubr.msk.f32.gmra.mxu0 %vm368_vm0, %v9801_v35  ;;  %8667 = vmatprep.subr.mxu1 %v437_v0 }
  0x53   : > { %8640 = vmatmul.mubr.msk.f32.gmra.mxu1 %vm368_vm0, %v9873_v53  ;;  %8622 = vmatprep.mubr.msk.f32.mxu0 %vm368_vm0, %v9819_v39 }
  0x54   : > { %8652 = vmatpush3.msra.mxu0 %v431_v63  ;;  %8642 = vmatprep.mubr.msk.f32.mxu1 %vm368_vm0, %v9887_v56 }
  0x55   : > { %8668 = vmatpush3.msra.mxu1 %v437_v0  ;;  %8685 = vmatprep.subr.mxu0 %v442_v4 }
  0x56   : > { %8623 = vmatmul.mubr.msk.f32.gmra.mxu0 %vm368_vm0, %v1015_v1  ;;  %8669 = vmatprep.subr.mxu1 %v436_v2 }
  0x57   : > { %8643 = vmatmul.mubr.msk.f32.gmra.mxu1 %vm368_vm0, %v1160_v3  ;;  %8653 = vmatprep.mubr.msk.f32.mxu0 %vm368_vm0, %v9769_v26 }
  0x58   : > { %8670 = vmatpush3.msra.mxu1 %v436_v2  ;;  %8673 = vmatprep.mubr.msk.f32.mxu1 %vm368_vm0, %v9764_v25 }
  0x59   : > { %8671 = vmatprep.subr.mxu1 %v435_v6 }
  0x5a   : > { %8654 = vmatmul.mubr.msk.f32.vlgmr.msra.gmra.mxu0 %vm368_vm0, %v9775_v28  ;;  %8672 = vmatpush3.msra.mxu1 %v435_v6 }
  0x5b   : > { %8686 = vmatpush3.msra.mxu0 %v442_v4  ;;  %8674 = vmatmul.mubr.msk.f32.vlgmr.msra.gmra.mxu1 %vm368_vm0, %v9773_v27 }
  0x5c   : > { %8656 = vmatprep.mubr.msk.f32.mxu0 %vm368_vm0, %v9781_v30  ;;  %8687 = vmatprep.subr.mxu0 %v441_v7 }
  0x5d   : > { %8688 = vmatpush3.msra.mxu0 %v441_v7  ;;  %8676 = vmatprep.mubr.msk.f32.mxu1 %vm368_vm0, %v9779_v29 }
  0x5e   : > { %8657 = vmatmul.mubr.msk.f32.gmra.mxu0 %vm368_vm0, %v9799_v34  ;;  %8689 = vmatprep.subr.mxu0 %v440_v8 }
  0x5f   : > { %8677 = vmatmul.mubr.msk.f32.gmra.mxu1 %vm368_vm0, %v9797_v33  ;;  %8659 = vmatprep.mubr.msk.f32.mxu0 %vm368_vm0, %v9803_v36 }
  0x60   : > { %8690 = vmatpush3.msra.mxu0 %v440_v8  ;;  %8679 = vmatprep.mubr.msk.f32.mxu1 %vm368_vm0, %v9801_v35 }
  0x61   : > { %8691 = vmatprep.subr.mxu0 %v439_v9  ;;  %8705 = vmatprep.subr.mxu1 %v1771_v13 }
  0x62   : > { %8660 = vmatmul.mubr.msk.f32.gmra.mxu0 %vm368_vm0, %v9821_v40  ;;  %8706 = vmatpush3.msra.mxu1 %v1771_v13 }
  0x63   : > { %8680 = vmatmul.mubr.msk.f32.gmra.mxu1 %vm368_vm0, %v9819_v39  ;;  %8662 = vmatprep.mubr.msk.f32.mxu0 %vm368_vm0, %v9889_v57 }
  0x64   : > { %8692 = vmatpush3.msra.mxu0 %v439_v9  ;;  %8682 = vmatprep.mubr.msk.f32.mxu1 %vm368_vm0, %v1015_v1 }
  0x65   : > { %8725 = vmatprep.subr.mxu0 %v1767_v14 }
  0x66   : > { %8663 = vmatmul.mubr.msk.f32.gmra.mxu0 %vm368_vm0, %v9991_v10 }
  0x67   : > { %8683 = vmatmul.mubr.msk.f32.gmra.mxu1 %vm368_vm0, %v9994_v11  ;;  %8693 = vmatprep.mubr.msk.f32.mxu0 %vm368_vm0, %v9838_v45 }
  0x68   : > { %8713 = vmatprep.mubr.msk.f32.mxu1 %vm368_vm0, %v9743_v15  ;;  %v1770_v15 = vld [vmem:[%s11531_s3 + $0x30] sm:$0xff] }
  0x69   : > { %8707 = vmatprep.subr.mxu1 %v1770_v15 }
  0x6a   : > { %8694 = vmatmul.mubr.msk.f32.vlgmr.msra.gmra.mxu0 %vm368_vm0, %v9851_v48  ;;  %8708 = vmatpush3.msra.mxu1 %v1770_v15 }
  0x6b   : > { %8696 = vmatprep.mubr.msk.f32.mxu0 %vm368_vm0, %v9855_v49  ;;  %8726 = vmatpush3.msra.mxu0 %v1767_v14 }
  0x6c   : > { %8709 = vmatprep.subr.mxu1 %v1769_v17 }
  0x6d   : > { %8710 = vmatpush3.msra.mxu1 %v1769_v17 }
  0x6e   : > { %8697 = vmatmul.mubr.msk.f32.gmra.mxu0 %vm368_vm0, %v9869_v52  ;;  %8711 = vmatprep.subr.mxu1 %v1768_v19 }
  0x6f   : > { %8699 = vmatprep.mubr.msk.f32.mxu0 %vm368_vm0, %v9873_v53  ;;  %8712 = vmatpush3.msra.mxu1 %v1768_v19 }
  0x70   : > { %8745 = vmatprep.subr.mxu1 %v10048_v21 }
  0x72   : > { %8700 = vmatmul.mubr.msk.f32.gmra.mxu0 %vm368_vm0, %v9887_v56 }
  0x73   : > { %8702 = vmatprep.mubr.msk.f32.mxu0 %vm368_vm0, %v1160_v3 }
  0x76   : > { %8703 = vmatmul.mubr.msk.f32.gmra.mxu0 %vm368_vm0, %v10015_v12 }
  0x77   : > { %8733 = vmatprep.mubr.msk.f32.mxu0 %vm368_vm0, %v9745_v16  ;;  %v1766_v16 = vld [vmem:[%s11531_s3 + $0x10] sm:$0xff] }
  0x78   : > { %8727 = vmatprep.subr.mxu0 %v1766_v16 }
  0x79   : > { %8728 = vmatpush3.msra.mxu0 %v1766_v16 }
  0x7a   : > { %8729 = vmatprep.subr.mxu0 %v1765_v18 }
  0x7b   : > { %8730 = vmatpush3.msra.mxu0 %v1765_v18 }
  0x7c   : > { %8731 = vmatprep.subr.mxu0 %v1764_v20 }
  0x7d   : > { %8732 = vmatpush3.msra.mxu0 %v1764_v20 }
  0x7e   : > { %8765 = vmatprep.subr.mxu0 %v10054_v22 }
  0xe9   : > { %v8535_v23 = vpop.f32.mrf.mxu0 }
  0xea   : > { %v8555_v24 = vpop.f32.mrf.mxu1 }
  0xeb   : > { %v550_v25 = vpop.f32.mrf.mxu0  ;;  %v685_v6 = vadd.f32 %v8555_v24, %v8535_v23 }
  0xec   : > { %v679_v26 = vpop.f32.mrf.mxu1 }
  0xed   : > { %v680_v9 = vadd.f32 %v679_v26, %v550_v25 }
  0xee   : > { %v8538_v27 = vpop.f32.mrf.mxu0  ;;  %v8558_v28 = vpop.f32.mrf.mxu1 }
  0xef   : > { %v695_v16 = vadd.f32 %v8558_v28, %v8538_v27 }
  0xf0   : > { %v560_v29 = vpop.f32.mrf.mxu0  ;;  %v689_v30 = vpop.f32.mrf.mxu1 }
  0xf1   : > { %v690_v20 = vadd.f32 %v689_v30, %v560_v29 }
  0xf2   : > { %v8541_v31 = vpop.f32.mrf.mxu0  ;;  %v8561_v32 = vpop.f32.mrf.mxu1 }
  0xf3   : > { %v705_v10 = vadd.f32 %v8561_v32, %v8541_v31 }
  0xf4   : > { %v570_v33 = vpop.f32.mrf.mxu0  ;;  %v699_v34 = vpop.f32.mrf.mxu1 }
  0xf5   : > { %v700_v21 = vadd.f32 %v699_v34, %v570_v33 }
  0xf6   : > { %v8544_v35 = vpop.f32.mrf.mxu0  ;;  %v8564_v36 = vpop.f32.mrf.mxu1 }
  0xf8   : > { %v10057_v37 = vpop.f32.mrf.mxu0  ;;  %v709_v38 = vpop.f32.mrf.mxu1 }
  0xf9   : > { %v710_v30 = vadd.f32 %v709_v38, %v10057_v37 }
  0xfa   : > { %v8575_v39 = vpop.f32.mrf.mxu0  ;;  %v8595_v40 = vpop.f32.mrf.mxu1 }
  0xfb   : > { %v856_v13 = vadd.f32 %v8575_v39, %v685_v6 }
  0xfc   : > { %v816_v42 = vpop.f32.mrf.mxu0  ;;  %v961_v43 = vpop.f32.mrf.mxu1 }
  0xfd   : > { %v855_v17 = vadd.f32 %v816_v42, %v680_v9  ;;  %v1001_v5 = vadd.f32 %v8595_v40, %v856_v13 }
  0xfe   : > { %v8578_v44 = vpop.f32.mrf.mxu0  ;;  %v8598_v45 = vpop.f32.mrf.mxu1 }
  0xff   : > { %v858_v12 = vadd.f32 %v8578_v44, %v695_v16  ;;  %v1000_v22 = vadd.f32 %v961_v43, %v855_v17 }
 0x100   : > { %v826_v46 = vpop.f32.mrf.mxu0  ;;  %v971_v47 = vpop.f32.mrf.mxu1 }
 0x101   : > { %v857_v23 = vadd.f32 %v826_v46, %v690_v20  ;;  %v1003_v39 = vadd.f32 %v8598_v45, %v858_v12 }
 0x102   : > { %v8581_v48 = vpop.f32.mrf.mxu0  ;;  %v8601_v49 = vpop.f32.mrf.mxu1 }
 0x103   : > { %v1002_v42 = vadd.f32 %v971_v47, %v857_v23 }
 0x104   : > { %v836_v50 = vpop.f32.mrf.mxu0  ;;  %v981_v51 = vpop.f32.mrf.mxu1 }
 0x105   : > { %v859_v27 = vadd.f32 %v836_v50, %v700_v21 }
 0x106   : > { %v8584_v52 = vpop.f32.mrf.mxu0  ;;  %v8604_v53 = vpop.f32.mrf.mxu1 }
 0x108   : > { %v846_v54 = vpop.f32.mrf.mxu0  ;;  %v10059_v55 = vpop.f32.mrf.mxu1 }
 0x109   : > { %v861_v34 = vadd.f32 %v846_v54, %v710_v30 }
 0x10a   : > { %v8615_v56 = vpop.f32.mrf.mxu0  ;;  %v8635_v57 = vpop.f32.mrf.mxu1 }
 0x10b   : > { %v1146_v24 = vadd.f32 %v8615_v56, %v1001_v5  ;;  %v1006_v38 = vadd.f32 %v10059_v55, %v861_v34 }
 0x10c   : > { %v1106_v58 = vpop.f32.mrf.mxu0  ;;  %v1251_v59 = vpop.f32.mrf.mxu1 }
 0x10d   : > { %v1145_v6 = vadd.f32 %v1106_v58, %v1000_v22  ;;  %v1291_v9 = vadd.f32 %v8635_v57, %v1146_v24 }
 0x10e   : > { %v8618_v60 = vpop.f32.mrf.mxu0 }
 0x10f   : > { %v8638_v61 = vpop.f32.mrf.mxu1  ;;  %v1148_v29 = vadd.f32 %v8618_v60, %v1003_v39  ;;  %v1290_v44 = vadd.f32 %v1251_v59, %v1145_v6 }
 0x110   : > { %v1116_v62 = vpop.f32.mrf.mxu0 }
 0x111   : > { %v1261_v63 = vpop.f32.mrf.mxu1  ;;  %v1147_v5 = vadd.f32 %v1116_v62, %v1002_v42  ;;  %v1293_v22 = vadd.f32 %v8638_v61, %v1148_v29 }
 0x112   : > { %v8621_v0 = vpop.f32.mrf.mxu0 }
 0x113   : > { %v8641_v1 = vpop.f32.mrf.mxu1 }
 0x114   : > { %v1126_v2 = vpop.f32.mrf.mxu0 }
 0x115   : > { %v10061_v3 = vpop.f32.mrf.mxu1 }
 0x116   : > { %v8624_v4 = vpop.f32.mrf.mxu0 }
 0x117   : > { %v10063_v7 = vpop.f32.mrf.mxu1 }
 0x118   : > { %11600 = vst [vmem:[#allocation13_spill] sm:$0xff] %v10063_v7  ;;  %v1136_v8 = vpop.f32.mrf.mxu0  ;;  %v860_v7 = vadd.f32 %v8581_v48, %v705_v10  ;;  %v1004_v10 = vadd.f32 %v981_v51, %v859_v27  ;;  %v1292_v48 = vadd.f32 %v1261_v63, %v1147_v5  ;;  %v7565_v51 = vld [vmem:[%s11530_s2] ss:$0 sm:$0xff] }
 0x119   : > { %v10065_v14 = vpop.f32.mrf.mxu1  ;;  %v1151_v59 = vadd.f32 %v1136_v8, %v1006_v38 }
 0x11a   : > { %11601 = vst [vmem:[#allocation14_spill] sm:$0xff] %v10065_v14  ;;  %v8655_v15 = vpop.f32.mrf.mxu0  ;;  %v715_v14 = vadd.f32 %v8564_v36, %v8544_v35  ;;  %v1005_v40 = vadd.f32 %v8601_v49, %v860_v7  ;;  %v1149_v36 = vadd.f32 %v1126_v2, %v1004_v10 }
 0x11b   : > { %v8675_v18 = vpop.f32.mrf.mxu1  ;;  %v1437_v33 = vadd.f32 %v8655_v15, %v1291_v9 }
 0x11c   : > { %v1397_v19 = vpop.f32.mrf.mxu0  ;;  %v862_v31 = vadd.f32 %v8584_v52, %v715_v14  ;;  %v1150_v46 = vadd.f32 %v8621_v0, %v1005_v40 }
 0x11d   : > { %v1542_v11 = vpop.f32.mrf.mxu1  ;;  %v1436_v35 = vadd.f32 %v1397_v19, %v1290_v44  ;;  %v1582_v50 = vadd.f32 %v8675_v18, %v1437_v33 }
 0x11e   : > { %v8658_v41 = vpop.f32.mrf.mxu0  ;;  %v1007_v21 = vadd.f32 %v8604_v53, %v862_v31  ;;  %v1295_v49 = vadd.f32 %v8641_v1, %v1150_v46  ;;  %v1294_v53 = vadd.f32 %v10061_v3, %v1149_v36 }
 0x11f   : > { %v8678_v26 = vpop.f32.mrf.mxu1  ;;  %v1439_v37 = vadd.f32 %v8658_v41, %v1293_v22  ;;  %v1581_v56 = vadd.f32 %v1542_v11, %v1436_v35  ;;  %v11603_v0 = vld [vmem:[#allocation13_spill] sm:$0xff] }
 0x120   : > { %v1407_v25 = vpop.f32.mrf.mxu0  ;;  %v1152_v52 = vadd.f32 %v8624_v4, %v1007_v21  ;;  %v1774_v35 = vld [vmem:[%s11531_s3 + $0x50] sm:$0xff] }
 0x121   : > { %v1552_v32 = vpop.f32.mrf.mxu1  ;;  %v1438_v57 = vadd.f32 %v1407_v25, %v1292_v48  ;;  %v1584_v63 = vadd.f32 %v8678_v26, %v1439_v37  ;;  %v11605_v15 = vld [vmem:[#allocation14_spill] sm:$0xff]  ;;  %v1773_v37 = vld [vmem:[%s11531_s3 + $0x48] sm:$0xff] }
 0x122   : > { %v8661_v28 = vpop.f32.mrf.mxu0  ;;  %v1297_v1 = vadd.f32 %v11603_v0, %v1152_v52  ;;  %v1296_v3 = vadd.f32 %v11605_v15, %v1151_v59  ;;  %v11613_v52 = vld [vmem:[#allocation12_spill] sm:$0xff]  ;;  %v1783_v0 = vld [vmem:[%s11531_s3 + $0x98] sm:$0xff] }
 0x123   : > { %v8681_v45 = vpop.f32.mrf.mxu1  ;;  %v1441_v60 = vadd.f32 %v8661_v28, %v1295_v49  ;;  %v1583_v7 = vadd.f32 %v1552_v32, %v1438_v57  ;;  %v1772_v57 = vld [vmem:[%s11531_s3 + $0x40] sm:$0xff]  ;;  %v1777_v59 = vld [vmem:[%s11531_s3 + $0x68] sm:$0xff] }
 0x124   : > { %v1417_v43 = vpop.f32.mrf.mxu0 }
 0x125   : > { %v1562_v61 = vpop.f32.mrf.mxu1  ;;  %v1440_v2 = vadd.f32 %v1417_v43, %v1294_v53  ;;  %v1586_v8 = vadd.f32 %v8681_v45, %v1441_v60 }
 0x126   : > { %v8664_v12 = vpop.f32.mrf.mxu0 }
 0x127   : > { %v8684_v16 = vpop.f32.mrf.mxu1  ;;  %v1443_v18 = vadd.f32 %v8664_v12, %v1297_v1  ;;  %v1585_v24 = vadd.f32 %v1562_v61, %v1440_v2  ;;  %v1787_v1 = vld [vmem:[%s11531_s3 + $0xb8] sm:$0xff]  ;;  %v11614_v2 = vld [vmem:[#allocation7_spill] sm:$0xff] }
 0x128   : > { %v1427_v47 = vpop.f32.mrf.mxu0 }
 0x129   : > { %v1442_v26 = vadd.f32 %v1427_v47, %v1296_v3  ;;  %v1572_v28 = vpop.f32.mrf.mxu1  ;;  %v1588_v9 = vadd.f32 %v8684_v16, %v1443_v18  ;;  %v11612_v47 = vld [vmem:[#allocation11_spill] sm:$0xff] }
 0x12a   : > { %v8695_v54 = vpop.f32.mrf.mxu0  ;;  %v1781_v3 = vld [vmem:[%s11531_s3 + $0x88] sm:$0xff]  ;;  %v1780_v18 = vld [vmem:[%s11531_s3 + $0x80] sm:$0xff] }
 0x12b   : > { %v1727_v58 = vadd.f32 %v8695_v54, %v1582_v50  ;;  %v1587_v32 = vadd.f32 %v1572_v28, %v1442_v26  ;;  %v1791_v28 = vld [vmem:[%s11531_s3 + $0xd8] sm:$0xff] }
 0x12c   : > { %v1687_v62 = vpop.f32.mrf.mxu0 }
 0x12d   : > { %v10073_v41 = vadd.f32 %v7565_v51, %v1727_v58  ;;  %v1726_v55 = vadd.f32 %v1687_v62, %v1581_v56  ;;  %v1776_v62 = vld [vmem:[%s11531_s3 + $0x60] sm:$0xff] }
 0x12e   : > { %v8698_v4 = vpop.f32.mrf.mxu0 }
 0x12f   : > { %11602 = vst [vmem:[#allocation15_spill] sm:$0xff] %v10073_v41  ;;  %v11554_v13 = vmax.f32 %v10073_v41, 0.0  ;;  %v10077_v11 = vadd.f32 %v7565_v51, %v1726_v55  ;;  %v1729_v14 = vadd.f32 %v8698_v4, %v1584_v63 }
 0x130   : > { %v1697_v17 = vpop.f32.mrf.mxu0 }
 0x131   : > { %11604 = vst [vmem:[#allocation13_spill] sm:$0xff] %v10077_v11  ;;  %1757 = vst.msk [vmem:[#allocation2 + $0x21] sm:$0xff] %vm368_vm0, %v11554_v13  ;;  %v11553_v19 = vmax.f32 %v10077_v11, 0.0  ;;  %v10084_v20 = vadd.f32 %v7565_v51, %v1729_v14  ;;  %v1728_v23 = vadd.f32 %v1697_v17, %v1583_v7  ;;  %v1782_v7 = vld [vmem:[%s11531_s3 + $0x90] sm:$0xff] }
 0x132   : > { %v8701_v25 = vpop.f32.mrf.mxu0 }
 0x133   : > { %11606 = vst [vmem:[#allocation14_spill] sm:$0xff] %v10084_v20  ;;  %1756 = vst.msk [vmem:[#allocation2 + $0x11] sm:$0xff] %vm368_vm0, %v11553_v19  ;;  %v11552_v39 = vmax.f32 %v10084_v20, 0.0  ;;  %v10090_v6 = vadd.f32 %v7565_v51, %v1728_v23  ;;  %v1731_v27 = vadd.f32 %v8701_v25, %v1586_v8  ;;  %v1786_v8 = vld [vmem:[%s11531_s3 + $0xb0] sm:$0xff]  ;;  %v1785_v23 = vld [vmem:[%s11531_s3 + $0xa8] sm:$0xff] }
 0x134   : > { %v1707_v42 = vpop.f32.mrf.mxu0  ;;  %v1784_v25 = vld [vmem:[%s11531_s3 + $0xa0] sm:$0xff] }
 0x135   : > { %11607 = vst [vmem:[#allocation16_spill] sm:$0xff] %v10090_v6  ;;  %1759 = vst.msk [vmem:[#allocation2 + $0x41] sm:$0xff] %vm368_vm0, %v11552_v39  ;;  %v11551_v29 = vmax.f32 %v10090_v6, 0.0  ;;  %v10096_v30 = vadd.f32 %v7565_v51, %v1731_v27  ;;  %v1730_v40 = vadd.f32 %v1707_v42, %v1585_v24  ;;  %v1790_v42 = vld [vmem:[%s11531_s3 + $0xd0] sm:$0xff] }
 0x136   : > { %v8704_v31 = vpop.f32.mrf.mxu0 }
 0x137   : > { %11608 = vst [vmem:[#allocation17_spill] sm:$0xff] %v10096_v30  ;;  %1758 = vst.msk [vmem:[#allocation2 + $0x31] sm:$0xff] %vm368_vm0, %v11551_v29  ;;  %v11550_v43 = vmax.f32 %v10096_v30, 0.0  ;;  %v10102_v44 = vadd.f32 %v7565_v51, %v1730_v40  ;;  %v1733_v5 = vadd.f32 %v8704_v31, %v1588_v9  ;;  %v1795_v9 = vld [vmem:[%s11531_s3 + $0xf8] sm:$0xff]  ;;  %v1789_v40 = vld [vmem:[%s11531_s3 + $0xc8] sm:$0xff] }
 0x138   : > { %v1717_v33 = vpop.f32.mrf.mxu0  ;;  %v10124_v45 = vld [vmem:[#allocation2 + $0x21] sm:$0xff]  ;;  %v1794_v31 = vld [vmem:[%s11531_s3 + $0xf0] sm:$0xff] }
 0x139   : > { %11609 = vst [vmem:[#allocation18_spill] sm:$0xff] %v10102_v44  ;;  %1761 = vst.msk [vmem:[#allocation2 + $0x61] sm:$0xff] %vm368_vm0, %v11550_v43  ;;  %v11549_v10 = vmax.f32 %v10102_v44, 0.0  ;;  %v10108_v34 = vadd.f32 %v7565_v51, %v1733_v5  ;;  %v1732_v46 = vadd.f32 %v1717_v33, %v1587_v32  ;;  %v10129_v48 = vld [vmem:[#allocation2 + $0x20] sm:$0xff]  ;;  %v1793_v5 = vld [vmem:[%s11531_s3 + $0xe8] sm:$0xff] }
 0x13a   : > { %v10110_v12 = vld [vmem:[#allocation2 + $0x11] sm:$0xff]  ;;  %v10211_v14 = vld [vmem:[#allocation2 + $0x22] sm:$0xff] }
 0x13b   : > { %11610 = vst [vmem:[#allocation19_spill] sm:$0xff] %v10108_v34  ;;  %v1802_v22 = vld [vmem:[#allocation2 + $0x10] sm:$0xff]  ;;  %1760 = vst.msk [vmem:[#allocation2 + $0x51] sm:$0xff] %vm368_vm0, %v11549_v10  ;;  %v11548_v21 = vmax.f32 %v10108_v34, 0.0  ;;  %v10119_v36 = vadd.f32 %v7565_v51, %v1732_v46  ;;  %8714 = vmatmul.mubr.msk.f32.vlgmr.msra.gmra.mxu1 %vm368_vm0, %v10110_v12  ;;  %v1788_v32 = vld [vmem:[%s11531_s3 + $0xc0] sm:$0xff] }
 0x13c   : > { %8734 = vmatmul.mubr.msk.f32.vlgmr.msra.gmra.mxu0 %vm368_vm0, %v1802_v22  ;;  %8746 = vmatpush3.msra.mxu1 %v11612_v47  ;;  %v1778_v51 = vld [vmem:[%s11531_s3 + $0x70] sm:$0xff]  ;;  %v10155_v54 = vld [vmem:[#allocation2 + $0x41] sm:$0xff] }
 0x13d   : > { %11611 = vst [vmem:[#allocation20_spill] sm:$0xff] %v10119_v36  ;;  %8716 = vmatprep.mubr.msk.f32.mxu1 %vm368_vm0, %v10124_v45  ;;  %1763 = vst.msk [vmem:[#allocation2 + $0x81] sm:$0xff] %vm368_vm0, %v11548_v21  ;;  %v11547_v50 = vmax.f32 %v10119_v36, 0.0  ;;  %8736 = vmatprep.mubr.msk.f32.mxu0 %vm368_vm0, %v10129_v48  ;;  %v10157_v56 = vld [vmem:[#allocation2 + $0x40] sm:$0xff]  ;;  %v2076_v4 = vld [vmem:[#allocation2 + $0x12] sm:$0xff] }
 0x13e   : > { %8747 = vmatprep.subr.mxu1 %v1774_v35  ;;  %v10140_v38 = vld [vmem:[#allocation2 + $0x31] sm:$0xff]  ;;  %8766 = vmatpush3.msra.mxu0 %v11613_v52  ;;  %v10229_v16 = vld [vmem:[#allocation2 + $0x42] sm:$0xff] }
 0x13f   : > { %v10142_v49 = vld [vmem:[#allocation2 + $0x30] sm:$0xff]  ;;  %8748 = vmatpush3.msra.mxu1 %v1774_v35  ;;  %1762 = vst.msk [vmem:[#allocation2 + $0x71] sm:$0xff] %vm368_vm0, %v11547_v50  ;;  %8767 = vmatprep.subr.mxu0 %v1778_v51  ;;  %v1796_v47 = vld [vmem:[%s11531_s3 + $0x100] sm:$0xff]  ;;  %v7642_v52 = vld [vmem:[%s11531_s3 + $0x138] sm:$0xff] }
 0x140   : > { %8717 = vmatmul.mubr.msk.f32.gmra.mxu1 %vm368_vm0, %v10140_v38  ;;  %8737 = vmatmul.mubr.msk.f32.gmra.mxu0 %vm368_vm0, %v10142_v49  ;;  %v10177_v60 = vld [vmem:[#allocation2 + $0x61] sm:$0xff]  ;;  %v10217_v15 = vld [vmem:[#allocation2 + $0x32] sm:$0xff] }
 0x141   : > { %8719 = vmatprep.mubr.msk.f32.mxu1 %vm368_vm0, %v10155_v54  ;;  %8739 = vmatprep.mubr.msk.f32.mxu0 %vm368_vm0, %v10157_v56  ;;  %v10179_v61 = vld [vmem:[#allocation2 + $0x60] sm:$0xff]  ;;  %v1798_v35 = vld [vmem:[%s11531_s3 + $0x110] sm:$0xff] }
 0x142   : > { %8749 = vmatprep.subr.mxu1 %v1773_v37  ;;  %v10166_v58 = vld [vmem:[#allocation2 + $0x51] sm:$0xff]  ;;  %8768 = vmatpush3.msra.mxu0 %v1778_v51  ;;  %v10247_v24 = vld [vmem:[#allocation2 + $0x62] sm:$0xff] }
 0x143   : > { %v10168_v53 = vld [vmem:[#allocation2 + $0x50] sm:$0xff]  ;;  %8750 = vmatpush3.msra.mxu1 %v1773_v37  ;;  %8769 = vmatprep.subr.mxu0 %v1777_v59 }
 0x144   : > { %8720 = vmatmul.mubr.msk.f32.gmra.mxu1 %vm368_vm0, %v10166_v58  ;;  %8740 = vmatmul.mubr.msk.f32.gmra.mxu0 %vm368_vm0, %v10168_v53  ;;  %v10235_v17 = vld [vmem:[#allocation2 + $0x52] sm:$0xff]  ;;  %v10258_v27 = vld [vmem:[#allocation2 + $0x80] sm:$0xff] }
 0x145   : > { %8722 = vmatprep.mubr.msk.f32.mxu1 %vm368_vm0, %v10177_v60  ;;  %8742 = vmatprep.mubr.msk.f32.mxu0 %vm368_vm0, %v10179_v61  ;;  %v2372_v33 = vld [vmem:[#allocation2 + $0x81] sm:$0xff]  ;;  %v11616_v37 = vld [vmem:[#allocation9_spill] sm:$0xff] }
 0x146   : > { %8751 = vmatprep.subr.mxu1 %v1772_v57  ;;  %v10188_v63 = vld [vmem:[#allocation2 + $0x71] sm:$0xff]  ;;  %8770 = vmatpush3.msra.mxu0 %v1777_v59  ;;  %v2517_v46 = vld [vmem:[#allocation2 + $0x82] sm:$0xff] }
 0x147   : > { %v10190_v55 = vld [vmem:[#allocation2 + $0x70] sm:$0xff]  ;;  %8752 = vmatpush3.msra.mxu1 %v1772_v57  ;;  %8771 = vmatprep.subr.mxu0 %v1776_v62  ;;  %v7640_v57 = vld [vmem:[%s11531_s3 + $0x128] sm:$0xff] }
 0x148   : > { %8723 = vmatmul.mubr.msk.f32.gmra.mxu1 %vm368_vm0, %v10188_v63  ;;  %8743 = vmatmul.mubr.msk.f32.gmra.mxu0 %vm368_vm0, %v10190_v55  ;;  %v10256_v26 = vld [vmem:[#allocation2 + $0x72] sm:$0xff]  ;;  %v10399_v59 = vld [vmem:[#allocation2 + $0x1] sm:$0xff] }
 0x149   : > { %8773 = vmatprep.mubr.msk.f32.mxu0 %vm368_vm0, %v1802_v22  ;;  %8753 = vmatprep.mubr.msk.f32.mxu1 %vm368_vm0, %v11614_v2  ;;  %v1799_v22 = vld [vmem:[%s11531_s3 + $0x118] sm:$0xff]  ;;  %v7645_v51 = vld [vmem:[%s11531_s3 + $0x150] sm:$0xff]  ;;  %11618 = vst [vmem:[#allocation11_spill] sm:$0xff] %v10399_v59 }
 0x14a   : > { %8772 = vmatpush3.msra.mxu0 %v1776_v62  ;;  %8785 = vmatprep.subr.mxu1 %v1783_v0  ;;  %v10416_v62 = vld [vmem:[%s11531_s3 + $0x198] sm:$0xff] }
 0x14b   : > { %8805 = vmatprep.subr.mxu0 %v1787_v1 }
 0x14c   : > { %8754 = vmatmul.mubr.msk.f32.vlgmr.msra.gmra.mxu1 %vm368_vm0, %v2076_v4  ;;  %8774 = vmatmul.mubr.msk.f32.vlgmr.msra.gmra.mxu0 %vm368_vm0, %v10129_v48 }
 0x14d   : > { %8786 = vmatpush3.msra.mxu1 %v1783_v0  ;;  %8756 = vmatprep.mubr.msk.f32.mxu1 %vm368_vm0, %v10211_v14 }
 0x14e   : > { %8776 = vmatprep.mubr.msk.f32.mxu0 %vm368_vm0, %v10142_v49  ;;  %8787 = vmatprep.subr.mxu1 %v1782_v7 }
 0x14f   : > { %8788 = vmatpush3.msra.mxu1 %v1782_v7  ;;  %8806 = vmatpush3.msra.mxu0 %v1787_v1 }
 0x150   : > { %8757 = vmatmul.mubr.msk.f32.gmra.mxu1 %vm368_vm0, %v10217_v15  ;;  %8777 = vmatmul.mubr.msk.f32.gmra.mxu0 %vm368_vm0, %v10157_v56 }
 0x151   : > { %8759 = vmatprep.mubr.msk.f32.mxu1 %vm368_vm0, %v10229_v16  ;;  %8779 = vmatprep.mubr.msk.f32.mxu0 %vm368_vm0, %v10168_v53 }
 0x152   : > { %8789 = vmatprep.subr.mxu1 %v1781_v3  ;;  %8807 = vmatprep.subr.mxu0 %v1786_v8 }
 0x153   : > { %8790 = vmatpush3.msra.mxu1 %v1781_v3  ;;  %8808 = vmatpush3.msra.mxu0 %v1786_v8 }
 0x154   : > { %8760 = vmatmul.mubr.msk.f32.gmra.mxu1 %vm368_vm0, %v10235_v17  ;;  %8780 = vmatmul.mubr.msk.f32.gmra.mxu0 %vm368_vm0, %v10179_v61 }
 0x155   : > { %8762 = vmatprep.mubr.msk.f32.mxu1 %vm368_vm0, %v10247_v24  ;;  %8782 = vmatprep.mubr.msk.f32.mxu0 %vm368_vm0, %v10190_v55 }
 0x156   : > { %8791 = vmatprep.subr.mxu1 %v1780_v18  ;;  %8809 = vmatprep.subr.mxu0 %v1785_v23 }
 0x157   : > { %8792 = vmatpush3.msra.mxu1 %v1780_v18  ;;  %8810 = vmatpush3.msra.mxu0 %v1785_v23 }
 0x158   : > { %8763 = vmatmul.mubr.msk.f32.gmra.mxu1 %vm368_vm0, %v10256_v26  ;;  %8783 = vmatmul.mubr.msk.f32.gmra.mxu0 %vm368_vm0, %v10258_v27 }
 0x159   : > { %8793 = vmatprep.mubr.msk.f32.mxu1 %vm368_vm0, %v10110_v12  ;;  %8813 = vmatprep.mubr.msk.f32.mxu0 %vm368_vm0, %v2076_v4  ;;  %v1792_v12 = vld [vmem:[%s11531_s3 + $0xe0] sm:$0xff] }
 0x15a   : > { %8811 = vmatprep.subr.mxu0 %v1784_v25  ;;  %8825 = vmatprep.subr.mxu1 %v1791_v28 }
 0x15b   : > { %8812 = vmatpush3.msra.mxu0 %v1784_v25 }
 0x15c   : > { %8794 = vmatmul.mubr.msk.f32.vlgmr.msra.gmra.mxu1 %vm368_vm0, %v10124_v45  ;;  %8814 = vmatmul.mubr.msk.f32.vlgmr.msra.gmra.mxu0 %vm368_vm0, %v10211_v14 }
 0x15d   : > { %8826 = vmatpush3.msra.mxu1 %v1791_v28  ;;  %8796 = vmatprep.mubr.msk.f32.mxu1 %vm368_vm0, %v10140_v38 }
 0x15e   : > { %8816 = vmatprep.mubr.msk.f32.mxu0 %vm368_vm0, %v10217_v15  ;;  %8827 = vmatprep.subr.mxu1 %v1790_v42 }
 0x15f   : > { %8828 = vmatpush3.msra.mxu1 %v1790_v42  ;;  %8845 = vmatprep.subr.mxu0 %v1795_v9 }
 0x160   : > { %8797 = vmatmul.mubr.msk.f32.gmra.mxu1 %vm368_vm0, %v10155_v54  ;;  %8817 = vmatmul.mubr.msk.f32.gmra.mxu0 %vm368_vm0, %v10229_v16 }
 0x161   : > { %8799 = vmatprep.mubr.msk.f32.mxu1 %vm368_vm0, %v10166_v58  ;;  %8819 = vmatprep.mubr.msk.f32.mxu0 %vm368_vm0, %v10235_v17 }
 0x162   : > { %8829 = vmatprep.subr.mxu1 %v1789_v40  ;;  %8846 = vmatpush3.msra.mxu0 %v1795_v9 }
 0x163   : > { %8830 = vmatpush3.msra.mxu1 %v1789_v40  ;;  %8847 = vmatprep.subr.mxu0 %v1794_v31 }
 0x164   : > { %8800 = vmatmul.mubr.msk.f32.gmra.mxu1 %vm368_vm0, %v10177_v60  ;;  %8820 = vmatmul.mubr.msk.f32.gmra.mxu0 %vm368_vm0, %v10247_v24 }
 0x165   : > { %8802 = vmatprep.mubr.msk.f32.mxu1 %vm368_vm0, %v10188_v63  ;;  %8822 = vmatprep.mubr.msk.f32.mxu0 %vm368_vm0, %v10256_v26 }
 0x166   : > { %8831 = vmatprep.subr.mxu1 %v1788_v32  ;;  %8848 = vmatpush3.msra.mxu0 %v1794_v31 }
 0x167   : > { %8832 = vmatpush3.msra.mxu1 %v1788_v32  ;;  %8849 = vmatprep.subr.mxu0 %v1793_v5 }
 0x168   : > { %8803 = vmatmul.mubr.msk.f32.gmra.mxu1 %vm368_vm0, %v2372_v33  ;;  %8823 = vmatmul.mubr.msk.f32.gmra.mxu0 %vm368_vm0, %v2517_v46 }
 0x169   : > { %8833 = vmatprep.mubr.msk.f32.mxu1 %vm368_vm0, %v10129_v48  ;;  %8850 = vmatpush3.msra.mxu0 %v1793_v5  ;;  %v11615_v48 = vld [vmem:[#allocation8_spill] sm:$0xff] }
 0x16a   : > { %8853 = vmatprep.mubr.msk.f32.mxu0 %vm368_vm0, %v10124_v45  ;;  %8851 = vmatprep.subr.mxu0 %v1792_v12  ;;  %v1797_v45 = vld [vmem:[%s11531_s3 + $0x108] sm:$0xff]  ;;  %11621 = vst [vmem:[#allocation8_spill] sm:$0xff] %v10416_v62 }
 0x16b   : > { %8852 = vmatpush3.msra.mxu0 %v1792_v12  ;;  %8865 = vmatprep.subr.mxu1 %v1799_v22 }
 0x16c   : > { %8834 = vmatmul.mubr.msk.f32.vlgmr.msra.gmra.mxu1 %vm368_vm0, %v10142_v49  ;;  %8854 = vmatmul.mubr.msk.f32.vlgmr.msra.gmra.mxu0 %vm368_vm0, %v10140_v38  ;;  %v11617_v38 = vld [vmem:[#allocation10_spill] sm:$0xff] }
 0x16d   : > { %8866 = vmatpush3.msra.mxu1 %v1799_v22  ;;  %8836 = vmatprep.mubr.msk.f32.mxu1 %vm368_vm0, %v10157_v56  ;;  %v7646_v49 = vld [vmem:[%s11531_s3 + $0x158] sm:$0xff]  ;;  %v7644_v56 = vld [vmem:[%s11531_s3 + $0x148] sm:$0xff] }
 0x16e   : > { %8856 = vmatprep.mubr.msk.f32.mxu0 %vm368_vm0, %v10155_v54  ;;  %8867 = vmatprep.subr.mxu1 %v1798_v35  ;;  %v7641_v54 = vld [vmem:[%s11531_s3 + $0x130] sm:$0xff] }
 0x16f   : > { %8868 = vmatpush3.msra.mxu1 %v1798_v35  ;;  %8885 = vmatprep.subr.mxu0 %v7646_v49 }
 0x170   : > { %8837 = vmatmul.mubr.msk.f32.gmra.mxu1 %vm368_vm0, %v10168_v53  ;;  %8857 = vmatmul.mubr.msk.f32.gmra.mxu0 %vm368_vm0, %v10166_v58  ;;  %v7643_v58 = vld [vmem:[%s11531_s3 + $0x140] sm:$0xff] }
 0x171   : > { %8839 = vmatprep.mubr.msk.f32.mxu1 %vm368_vm0, %v10179_v61  ;;  %8859 = vmatprep.mubr.msk.f32.mxu0 %vm368_vm0, %v10177_v60  ;;  %v7639_v53 = vld [vmem:[%s11531_s3 + $0x120] sm:$0xff]  ;;  %v10410_v61 = vld [vmem:[%s11531_s3 + $0x178] sm:$0xff] }
 0x172   : > { %8869 = vmatprep.subr.mxu1 %v1797_v45  ;;  %8886 = vmatpush3.msra.mxu0 %v7646_v49  ;;  %v10401_v60 = vld [vmem:[#allocation2] sm:$0xff]  ;;  %11620 = vst [vmem:[#allocation7_spill] sm:$0xff] %v10410_v61 }
 0x173   : > { %8870 = vmatpush3.msra.mxu1 %v1797_v45  ;;  %8887 = vmatprep.subr.mxu0 %v7645_v51  ;;  %11619 = vst [vmem:[#allocation12_spill] sm:$0xff] %v10401_v60 }
 0x174   : > { %8840 = vmatmul.mubr.msk.f32.gmra.mxu1 %vm368_vm0, %v10190_v55  ;;  %8860 = vmatmul.mubr.msk.f32.gmra.mxu0 %vm368_vm0, %v10188_v63 }
 0x175   : > { %8842 = vmatprep.mubr.msk.f32.mxu1 %vm368_vm0, %v10258_v27  ;;  %8862 = vmatprep.mubr.msk.f32.mxu0 %vm368_vm0, %v2372_v33 }
 0x176   : > { %8871 = vmatprep.subr.mxu1 %v1796_v47  ;;  %8888 = vmatpush3.msra.mxu0 %v7645_v51 }
 0x177   : > { %8872 = vmatpush3.msra.mxu1 %v1796_v47  ;;  %8889 = vmatprep.subr.mxu0 %v7644_v56 }
 0x178   : > { %8843 = vmatmul.mubr.msk.f32.gmra.mxu1 %vm368_vm0, %v11615_v48  ;;  %8863 = vmatmul.mubr.msk.f32.gmra.mxu0 %vm368_vm0, %v11616_v37 }
 0x179   : > { %8873 = vmatprep.mubr.msk.f32.mxu1 %vm368_vm0, %v10211_v14  ;;  %8905 = vmatprep.subr.mxu1 %v7642_v52 }
 0x17a   : > { %8890 = vmatpush3.msra.mxu0 %v7644_v56  ;;  %8893 = vmatprep.mubr.msk.f32.mxu0 %vm368_vm0, %v10399_v59 }
 0x17b   : > { %8891 = vmatprep.subr.mxu0 %v7643_v58 }
 0x17c   : > { %8874 = vmatmul.mubr.msk.f32.vlgmr.msra.gmra.mxu1 %vm368_vm0, %v10217_v15  ;;  %8892 = vmatpush3.msra.mxu0 %v7643_v58 }
 0x17d   : > { %8876 = vmatprep.mubr.msk.f32.mxu1 %vm368_vm0, %v10229_v16  ;;  %8906 = vmatpush3.msra.mxu1 %v7642_v52 }
 0x17e   : > { %8907 = vmatprep.subr.mxu1 %v7641_v54  ;;  %8925 = vmatprep.subr.mxu0 %v10410_v61 }
 0x17f   : > { %8908 = vmatpush3.msra.mxu1 %v7641_v54 }
 0x180   : > { %8877 = vmatmul.mubr.msk.f32.gmra.mxu1 %vm368_vm0, %v10235_v17  ;;  %8909 = vmatprep.subr.mxu1 %v7640_v57 }
 0x181   : > { %8879 = vmatprep.mubr.msk.f32.mxu1 %vm368_vm0, %v10247_v24  ;;  %8910 = vmatpush3.msra.mxu1 %v7640_v57 }
 0x182   : > { %8911 = vmatprep.subr.mxu1 %v7639_v53 }
 0x183   : > { %8912 = vmatpush3.msra.mxu1 %v7639_v53 }
 0x184   : > { %8880 = vmatmul.mubr.msk.f32.gmra.mxu1 %vm368_vm0, %v10256_v26  ;;  %8945 = vmatprep.subr.mxu1 %v10416_v62 }
 0x185   : > { %8882 = vmatprep.mubr.msk.f32.mxu1 %vm368_vm0, %v2517_v46 }
 0x188   : > { %8883 = vmatmul.mubr.msk.f32.gmra.mxu1 %vm368_vm0, %v11617_v38 }
 0x189   : > { %8913 = vmatprep.mubr.msk.f32.mxu1 %vm368_vm0, %v10401_v60 }
 0x1fb   : > { %v8715_v63 = vpop.f32.mrf.mxu1 }
 0x1fc   : > { %v8735_v55 = vpop.f32.mrf.mxu0 }
 0x1fd   : > { %v1907_v0 = vpop.f32.mrf.mxu1  ;;  %v2042_v10 = vadd.f32 %v8735_v55, %v8715_v63 }
 0x1fe   : > { %v2036_v1 = vpop.f32.mrf.mxu0 }
 0x1ff   : > { %v2037_v39 = vadd.f32 %v2036_v1, %v1907_v0 }
 0x200   : > { %v8718_v2 = vpop.f32.mrf.mxu1  ;;  %v8738_v4 = vpop.f32.mrf.mxu0 }
 0x201   : > { %v2052_v34 = vadd.f32 %v8738_v4, %v8718_v2 }
 0x202   : > { %v1917_v7 = vpop.f32.mrf.mxu1  ;;  %v2046_v14 = vpop.f32.mrf.mxu0 }
 0x203   : > { %v2047_v6 = vadd.f32 %v2046_v14, %v1917_v7 }
 0x204   : > { %v8721_v15 = vpop.f32.mrf.mxu1  ;;  %v8741_v3 = vpop.f32.mrf.mxu0 }
 0x205   : > { %v2062_v41 = vadd.f32 %v8741_v3, %v8721_v15 }
 0x206   : > { %v1927_v8 = vpop.f32.mrf.mxu1  ;;  %v2056_v16 = vpop.f32.mrf.mxu0 }
 0x207   : > { %v2057_v63 = vadd.f32 %v2056_v16, %v1927_v8 }
 0x208   : > { %v8724_v17 = vpop.f32.mrf.mxu1  ;;  %v8744_v18 = vpop.f32.mrf.mxu0 }
 0x20a   : > { %v10419_v23 = vpop.f32.mrf.mxu1  ;;  %v2066_v24 = vpop.f32.mrf.mxu0 }
 0x20c   : > { %v8755_v25 = vpop.f32.mrf.mxu1  ;;  %v8775_v26 = vpop.f32.mrf.mxu0 }
 0x20d   : > { %v2213_v19 = vadd.f32 %v8755_v25, %v2042_v10  ;;  %v2072_v10 = vadd.f32 %v8744_v18, %v8724_v17 }
 0x20e   : > { %v2173_v27 = vpop.f32.mrf.mxu1  ;;  %v2318_v28 = vpop.f32.mrf.mxu0 }
 0x20f   : > { %v2212_v44 = vadd.f32 %v2173_v27, %v2037_v39  ;;  %v2358_v20 = vadd.f32 %v8775_v26, %v2213_v19  ;;  %v2067_v19 = vadd.f32 %v2066_v24, %v10419_v23 }
 0x210   : > { %v8758_v42 = vpop.f32.mrf.mxu1  ;;  %v8778_v9 = vpop.f32.mrf.mxu0 }
 0x211   : > { %v2215_v11 = vadd.f32 %v8758_v42, %v2052_v34  ;;  %v2357_v62 = vadd.f32 %v2318_v28, %v2212_v44 }
 0x212   : > { %v2183_v40 = vpop.f32.mrf.mxu1  ;;  %v2328_v31 = vpop.f32.mrf.mxu0 }
 0x213   : > { %v2214_v61 = vadd.f32 %v2183_v40, %v2047_v6 }
 0x214   : > { %v8761_v32 = vpop.f32.mrf.mxu1  ;;  %v8781_v5 = vpop.f32.mrf.mxu0 }
 0x215   : > { %v2217_v55 = vadd.f32 %v8761_v32, %v2062_v41  ;;  %v2359_v39 = vadd.f32 %v2328_v31, %v2214_v61 }
 0x216   : > { %v2193_v33 = vpop.f32.mrf.mxu1  ;;  %v2338_v46 = vpop.f32.mrf.mxu0 }
 0x217   : > { %v2216_v1 = vadd.f32 %v2193_v33, %v2057_v63  ;;  %v2362_v34 = vadd.f32 %v8781_v5, %v2217_v55 }
 0x218   : > { %v8764_v12 = vpop.f32.mrf.mxu1  ;;  %v8784_v22 = vpop.f32.mrf.mxu0 }
 0x219   : > { %v2219_v14 = vadd.f32 %v8764_v12, %v2072_v10  ;;  %v2361_v3 = vadd.f32 %v2338_v46, %v2216_v1 }
 0x21a   : > { %v2203_v35 = vpop.f32.mrf.mxu1  ;;  %v10421_v45 = vpop.f32.mrf.mxu0 }
 0x21b   : > { %v2218_v41 = vadd.f32 %v2203_v35, %v2067_v19  ;;  %v2364_v18 = vadd.f32 %v8784_v22, %v2219_v14 }
 0x21c   : > { %v8795_v47 = vpop.f32.mrf.mxu1  ;;  %v8815_v48 = vpop.f32.mrf.mxu0 }
 0x21d   : > { %v2363_v23 = vadd.f32 %v10421_v45, %v2218_v41 }
 0x21e   : > { %v2463_v37 = vpop.f32.mrf.mxu1  ;;  %v2608_v38 = vpop.f32.mrf.mxu0 }
 0x21f   : > { %v2502_v0 = vadd.f32 %v2463_v37, %v2357_v62 }
 0x220   : > { %v8798_v49 = vpop.f32.mrf.mxu1  ;;  %v8818_v52 = vpop.f32.mrf.mxu0 }
 0x221   : > { %v2647_v44 = vadd.f32 %v2608_v38, %v2502_v0 }
 0x222   : > { %v2473_v51 = vpop.f32.mrf.mxu1  ;;  %v2618_v54 = vpop.f32.mrf.mxu0 }
 0x223   : > { %v2504_v6 = vadd.f32 %v2473_v51, %v2359_v39 }
 0x224   : > { %v8801_v56 = vpop.f32.mrf.mxu1  ;;  %v8821_v57 = vpop.f32.mrf.mxu0 }
 0x225   : > { %v2507_v8 = vadd.f32 %v8801_v56, %v2362_v34 }
 0x226   : > { %v2483_v58 = vpop.f32.mrf.mxu1  ;;  %v10423_v53 = vpop.f32.mrf.mxu0 }
 0x227   : > { %11622 = vst [vmem:[#allocation9_spill] sm:$0xff] %v10423_v53  ;;  %v2506_v26 = vadd.f32 %v2483_v58, %v2361_v3  ;;  %v2652_v24 = vadd.f32 %v8821_v57, %v2507_v8 }
 0x228   : > { %v8804_v50 = vpop.f32.mrf.mxu1  ;;  %v10425_v21 = vpop.f32.mrf.mxu0 }
 0x229   : > { %11623 = vst [vmem:[#allocation10_spill] sm:$0xff] %v10425_v21  ;;  %v2503_v21 = vadd.f32 %v8795_v47, %v2358_v20  ;;  %v2509_v28 = vadd.f32 %v8804_v50, %v2364_v18  ;;  %v7649_v18 = vld [vmem:[%s11531_s3 + $0x170] sm:$0xff] }
 0x22a   : > { %v2493_v43 = vpop.f32.mrf.mxu1  ;;  %v10427_v29 = vpop.f32.mrf.mxu0 }
 0x22b   : > { %11624 = vst [vmem:[#allocation21_spill] sm:$0xff] %v10427_v29  ;;  %v2360_v29 = vadd.f32 %v8778_v9, %v2215_v11  ;;  %v2648_v4 = vadd.f32 %v8815_v48, %v2503_v21  ;;  %v2649_v21 = vadd.f32 %v2618_v54, %v2504_v6  ;;  %v2508_v33 = vadd.f32 %v2493_v43, %v2363_v23 }
 0x22c   : > { %v8835_v13 = vpop.f32.mrf.mxu1  ;;  %v8855_v36 = vpop.f32.mrf.mxu0 }
 0x22d   : > { %v2505_v7 = vadd.f32 %v8798_v49, %v2360_v29  ;;  %v2793_v20 = vadd.f32 %v8835_v13, %v2648_v4  ;;  %v7638_v13 = vld [vmem:[%s11532_s4] ss:$0 sm:$0xff] }
 0x22e   : > { %v2753_v30 = vpop.f32.mrf.mxu1  ;;  %v2898_v60 = vpop.f32.mrf.mxu0 }
 0x22f   : > { %v2650_v16 = vadd.f32 %v8818_v52, %v2505_v7  ;;  %v2792_v17 = vadd.f32 %v2753_v30, %v2647_v44  ;;  %v2938_v29 = vadd.f32 %v8855_v36, %v2793_v20  ;;  %v11625_v30 = vld [vmem:[#allocation9_spill] sm:$0xff] }
 0x230   : > { %v8838_v59 = vpop.f32.mrf.mxu1  ;;  %v8858_v25 = vpop.f32.mrf.mxu0  ;;  %v2651_v5 = vadd.f32 %v11625_v30, %v2506_v26  ;;  %v11626_v35 = vld [vmem:[#allocation10_spill] sm:$0xff] }
 0x231   : > { %v2795_v27 = vadd.f32 %v8838_v59, %v2650_v16  ;;  %v2937_v40 = vadd.f32 %v2898_v60, %v2792_v17  ;;  %v2654_v45 = vadd.f32 %v11626_v35, %v2509_v28  ;;  %v10514_v35 = vld [vmem:[#allocation2 + $0x2] sm:$0xff] }
 0x232   : > { %v2763_v53 = vpop.f32.mrf.mxu1  ;;  %v2908_v11 = vpop.f32.mrf.mxu0  ;;  %v11627_v60 = vld [vmem:[#allocation21_spill] sm:$0xff]  ;;  %11630 = vst [vmem:[#allocation9_spill] sm:$0xff] %v10514_v35 }
 0x233   : > { %v2794_v31 = vadd.f32 %v2763_v53, %v2649_v21  ;;  %v2940_v36 = vadd.f32 %v8858_v25, %v2795_v27  ;;  %v2653_v51 = vadd.f32 %v11627_v60, %v2508_v33  ;;  %v7652_v33 = vld [vmem:[%s11531_s3 + $0x188] sm:$0xff] }
 0x234   : > { %v8841_v2 = vpop.f32.mrf.mxu1  ;;  %v8861_v42 = vpop.f32.mrf.mxu0 }
 0x235   : > { %v2797_v46 = vadd.f32 %v8841_v2, %v2652_v24  ;;  %v2939_v37 = vadd.f32 %v2908_v11, %v2794_v31  ;;  %v7648_v24 = vld [vmem:[%s11531_s3 + $0x168] sm:$0xff] }
 0x236   : > { %v2773_v15 = vpop.f32.mrf.mxu1  ;;  %v2918_v47 = vpop.f32.mrf.mxu0 }
 0x237   : > { %v2796_v50 = vadd.f32 %v2773_v15, %v2651_v5  ;;  %v2942_v54 = vadd.f32 %v8861_v42, %v2797_v46 }
 0x238   : > { %v8844_v62 = vpop.f32.mrf.mxu1  ;;  %v8864_v56 = vpop.f32.mrf.mxu0 }
 0x239   : > { %v2799_v43 = vadd.f32 %v8844_v62, %v2654_v45  ;;  %v2941_v55 = vadd.f32 %v2918_v47, %v2796_v50  ;;  %v7658_v45 = vld [vmem:[%s11531_s3 + $0x1b8] sm:$0xff] }
 0x23a   : > { %v2783_v61 = vpop.f32.mrf.mxu1  ;;  %v2928_v39 = vpop.f32.mrf.mxu0  ;;  %v7662_v50 = vld [vmem:[%s11531_s3 + $0x1d8] sm:$0xff] }
 0x23b   : > { %v2798_v10 = vadd.f32 %v2783_v61, %v2653_v51  ;;  %v2944_v7 = vadd.f32 %v8864_v56, %v2799_v43  ;;  %v7660_v56 = vld [vmem:[%s11531_s3 + $0x1c8] sm:$0xff]  ;;  %v7659_v43 = vld [vmem:[%s11531_s3 + $0x1c0] sm:$0xff] }
 0x23c   : > { %v8875_v9 = vpop.f32.mrf.mxu1 }
 0x23d   : > { %v3083_v32 = vadd.f32 %v8875_v9, %v2938_v29  ;;  %v2943_v44 = vadd.f32 %v2928_v39, %v2798_v10  ;;  %v11628_v29 = vld [vmem:[#allocation7_spill] sm:$0xff]  ;;  %v7653_v9 = vld [vmem:[%s11531_s3 + $0x190] sm:$0xff] }
 0x23e   : > { %v3043_v12 = vpop.f32.mrf.mxu1  ;;  %v7664_v10 = vld [vmem:[%s11531_s3 + $0x1e8] sm:$0xff] }
 0x23f   : > { %v3097_v59 = vadd.f32 %v7638_v13, %v3083_v32  ;;  %v3082_v22 = vadd.f32 %v3043_v12, %v2937_v40  ;;  %v7647_v32 = vld [vmem:[%s11531_s3 + $0x160] sm:$0xff] }
 0x240   : > { %v8878_v48 = vpop.f32.mrf.mxu1 }
 0x241   : > { %v3105_v38 = vmax.f32 %v3097_v59, 0.0  ;;  %v3096_v49 = vadd.f32 %v7638_v13, %v3082_v22  ;;  %v3085_v52 = vadd.f32 %v8878_v48, %v2940_v36  ;;  %v7651_v36 = vld [vmem:[%s11531_s3 + $0x180] sm:$0xff]  ;;  %v7657_v48 = vld [vmem:[%s11531_s3 + $0x1b0] sm:$0xff] }
 0x242   : > { %v3053_v57 = vpop.f32.mrf.mxu1 }
 0x243   : > { %3113 = vst.msk [vmem:[#allocation2 + $0x21] sm:$0xff] %vm368_vm0, %v3105_v38  ;;  %v3104_v58 = vmax.f32 %v3096_v49, 0.0  ;;  %v3099_v53 = vadd.f32 %v7638_v13, %v3085_v52  ;;  %v3084_v63 = vadd.f32 %v3053_v57, %v2939_v37  ;;  %v7656_v49 = vld [vmem:[%s11531_s3 + $0x1a8] sm:$0xff]  ;;  %v7661_v52 = vld [vmem:[%s11531_s3 + $0x1d0] sm:$0xff] }
 0x244   : > { %v8881_v0 = vpop.f32.mrf.mxu1 }
 0x245   : > { %3112 = vst.msk [vmem:[#allocation2 + $0x11] sm:$0xff] %vm368_vm0, %v3104_v58  ;;  %v3107_v1 = vmax.f32 %v3099_v53, 0.0  ;;  %v3098_v25 = vadd.f32 %v7638_v13, %v3084_v63  ;;  %v3087_v2 = vadd.f32 %v8881_v0, %v2942_v54  ;;  %v7655_v54 = vld [vmem:[%s11531_s3 + $0x1a0] sm:$0xff]  ;;  %v7666_v63 = vld [vmem:[%s11531_s3 + $0x1f8] sm:$0xff] }
 0x246   : > { %v3063_v4 = vpop.f32.mrf.mxu1  ;;  %v7670_v0 = vld [vmem:[%s11531_s3 + $0x218] sm:$0xff] }
 0x247   : > { %3115 = vst.msk [vmem:[#allocation2 + $0x41] sm:$0xff] %vm368_vm0, %v3107_v1  ;;  %v3106_v19 = vmax.f32 %v3098_v25, 0.0  ;;  %v3101_v34 = vadd.f32 %v7638_v13, %v3087_v2  ;;  %v3086_v14 = vadd.f32 %v3063_v4, %v2941_v55  ;;  %v7665_v55 = vld [vmem:[%s11531_s3 + $0x1f0] sm:$0xff]  ;;  %v7663_v25 = vld [vmem:[%s11531_s3 + $0x1e0] sm:$0xff]  ;;  %v7668_v2 = vld [vmem:[%s11531_s3 + $0x208] sm:$0xff] }
 0x248   : > { %v8884_v15 = vpop.f32.mrf.mxu1  ;;  %v7669_v1 = vld [vmem:[%s11531_s3 + $0x210] sm:$0xff] }
 0x249   : > { %3114 = vst.msk [vmem:[#allocation2 + $0x31] sm:$0xff] %vm368_vm0, %v3106_v19  ;;  %v3109_v6 = vmax.f32 %v3101_v34, 0.0  ;;  %v3100_v20 = vadd.f32 %v7638_v13, %v3086_v14  ;;  %v3089_v3 = vadd.f32 %v8884_v15, %v2944_v7  ;;  %v7667_v7 = vld [vmem:[%s11531_s3 + $0x200] sm:$0xff]  ;;  %v7674_v19 = vld [vmem:[%s11531_s3 + $0x238] sm:$0xff]  ;;  %v7673_v34 = vld [vmem:[%s11531_s3 + $0x230] sm:$0xff] }
 0x24a   : > { %v3073_v41 = vpop.f32.mrf.mxu1  ;;  %v10451_v21 = vld [vmem:[#allocation2 + $0x21] sm:$0xff] }
 0x24b   : > { %3117 = vst.msk [vmem:[#allocation2 + $0x61] sm:$0xff] %vm368_vm0, %v3109_v6  ;;  %v3108_v8 = vmax.f32 %v3100_v20, 0.0  ;;  %v3103_v11 = vadd.f32 %v7638_v13, %v3089_v3  ;;  %v3088_v62 = vadd.f32 %v3073_v41, %v2943_v44  ;;  %v10456_v27 = vld [vmem:[#allocation2 + $0x20] sm:$0xff]  ;;  %v7672_v14 = vld [vmem:[%s11531_s3 + $0x228] sm:$0xff]  ;;  %v10680_v44 = vld [vmem:[#allocation2 + $0x90] sm:$0xff] }
 0x24c   : > { %v10442_v16 = vld [vmem:[#allocation2 + $0x11] sm:$0xff]  ;;  %v10535_v37 = vld [vmem:[#allocation2 + $0x22] sm:$0xff]  ;;  %11631 = vst [vmem:[#allocation10_spill] sm:$0xff] %v10680_v44 }
 0x24d   : > { %v3160_v17 = vld [vmem:[#allocation2 + $0x10] sm:$0xff]  ;;  %3116 = vst.msk [vmem:[#allocation2 + $0x51] sm:$0xff] %vm368_vm0, %v3108_v8  ;;  %v3111_v26 = vmax.f32 %v3103_v11, 0.0  ;;  %v3102_v61 = vadd.f32 %v7638_v13, %v3088_v62  ;;  %8894 = vmatmul.mubr.msk.f32.vlgmr.msra.gmra.mxu0 %vm368_vm0, %v10442_v16  ;;  %v7671_v15 = vld [vmem:[%s11531_s3 + $0x220] sm:$0xff]  ;;  %v7756_v8 = vld [vmem:[%s11531_s3 + $0x278] sm:$0xff] }
 0x24e   : > { %8914 = vmatmul.mubr.msk.f32.vlgmr.msra.gmra.mxu1 %vm368_vm0, %v3160_v17  ;;  %8926 = vmatpush3.msra.mxu0 %v11628_v29  ;;  %v11629_v13 = vld [vmem:[#allocation8_spill] sm:$0xff]  ;;  %v10477_v40 = vld [vmem:[#allocation2 + $0x41] sm:$0xff]  ;;  %v7752_v11 = vld [vmem:[%s11531_s3 + $0x258] sm:$0xff] }
 0x24f   : > { %8896 = vmatprep.mubr.msk.f32.mxu0 %vm368_vm0, %v10451_v21  ;;  %3119 = vst.msk [vmem:[#allocation2 + $0x81] sm:$0xff] %vm368_vm0, %v3111_v26  ;;  %v3110_v23 = vmax.f32 %v3102_v61, 0.0  ;;  %8916 = vmatprep.mubr.msk.f32.mxu1 %vm368_vm0, %v10456_v27  ;;  %v10479_v31 = vld [vmem:[#allocation2 + $0x40] sm:$0xff]  ;;  %v3434_v47 = vld [vmem:[#allocation2 + $0x12] sm:$0xff] }
 0x250   : > { %8927 = vmatprep.subr.mxu0 %v7649_v18  ;;  %v10464_v28 = vld [vmem:[#allocation2 + $0x31] sm:$0xff]  ;;  %8946 = vmatpush3.msra.mxu1 %v11629_v13  ;;  %v10553_v60 = vld [vmem:[#allocation2 + $0x42] sm:$0xff] }
 0x251   : > { %v10466_v42 = vld [vmem:[#allocation2 + $0x30] sm:$0xff]  ;;  %8928 = vmatpush3.msra.mxu0 %v7649_v18  ;;  %3118 = vst.msk [vmem:[#allocation2 + $0x71] sm:$0xff] %vm368_vm0, %v3110_v23  ;;  %8947 = vmatprep.subr.mxu1 %v7653_v9  ;;  %v11633_v20 = vld [vmem:[#allocation11_spill] sm:$0xff]  ;;  %v10742_v29 = vld [vmem:[%s11531_s3 + $0x2b8] sm:$0xff] }
 0x252   : > { %8897 = vmatmul.mubr.msk.f32.gmra.mxu0 %vm368_vm0, %v10464_v28  ;;  %8917 = vmatmul.mubr.msk.f32.gmra.mxu1 %vm368_vm0, %v10466_v42  ;;  %v10499_v46 = vld [vmem:[#allocation2 + $0x61] sm:$0xff]  ;;  %v10541_v38 = vld [vmem:[#allocation2 + $0x32] sm:$0xff]  ;;  %11637 = vst [vmem:[#allocation11_spill] sm:$0xff] %v10742_v29 }
 0x253   : > { %8899 = vmatprep.mubr.msk.f32.mxu0 %vm368_vm0, %v10477_v40  ;;  %8919 = vmatprep.mubr.msk.f32.mxu1 %vm368_vm0, %v10479_v31  ;;  %v10501_v12 = vld [vmem:[#allocation2 + $0x60] sm:$0xff]  ;;  %v10682_v6 = vld [vmem:[#allocation2 + $0x91] sm:$0xff]  ;;  %v7750_v18 = vld [vmem:[%s11531_s3 + $0x248] sm:$0xff] }
 0x254   : > { %8929 = vmatprep.subr.mxu0 %v7648_v24  ;;  %v10488_v30 = vld [vmem:[#allocation2 + $0x51] sm:$0xff]  ;;  %8948 = vmatpush3.msra.mxu1 %v7653_v9  ;;  %v10571_v57 = vld [vmem:[#allocation2 + $0x62] sm:$0xff]  ;;  %11632 = vst [vmem:[#allocation21_spill] sm:$0xff] %v10682_v6 }
 0x255   : > { %v10490_v5 = vld [vmem:[#allocation2 + $0x50] sm:$0xff]  ;;  %8930 = vmatpush3.msra.mxu0 %v7648_v24  ;;  %8949 = vmatprep.subr.mxu1 %v7652_v33  ;;  %v7753_v26 = vld [vmem:[%s11531_s3 + $0x260] sm:$0xff] }
 0x256   : > { %8900 = vmatmul.mubr.msk.f32.gmra.mxu0 %vm368_vm0, %v10488_v30  ;;  %8920 = vmatmul.mubr.msk.f32.gmra.mxu1 %vm368_vm0, %v10490_v5  ;;  %v10559_v51 = vld [vmem:[#allocation2 + $0x52] sm:$0xff]  ;;  %v10582_v53 = vld [vmem:[#allocation2 + $0x80] sm:$0xff] }
 0x257   : > { %8902 = vmatprep.mubr.msk.f32.mxu0 %vm368_vm0, %v10499_v46  ;;  %8922 = vmatprep.mubr.msk.f32.mxu1 %vm368_vm0, %v10501_v12  ;;  %v3730_v39 = vld [vmem:[#allocation2 + $0x81] sm:$0xff]  ;;  %v10703_v3 = vld [vmem:[#allocation2 + $0x92] sm:$0xff] }
 0x258   : > { %8931 = vmatprep.subr.mxu0 %v7647_v32  ;;  %v10510_v59 = vld [vmem:[#allocation2 + $0x71] sm:$0xff]  ;;  %8950 = vmatpush3.msra.mxu1 %v7652_v33  ;;  %v3875_v4 = vld [vmem:[#allocation2 + $0x82] sm:$0xff]  ;;  %11634 = vst [vmem:[#allocation7_spill] sm:$0xff] %v10703_v3 }
 0x259   : > { %v10512_v22 = vld [vmem:[#allocation2 + $0x70] sm:$0xff]  ;;  %8932 = vmatpush3.msra.mxu0 %v7647_v32  ;;  %8951 = vmatprep.subr.mxu1 %v7651_v36  ;;  %v7749_v61 = vld [vmem:[%s11531_s3 + $0x240] sm:$0xff] }
 0x25a   : > { %8903 = vmatmul.mubr.msk.f32.gmra.mxu0 %vm368_vm0, %v10510_v59  ;;  %8923 = vmatmul.mubr.msk.f32.gmra.mxu1 %vm368_vm0, %v10512_v22  ;;  %v10580_v58 = vld [vmem:[#allocation2 + $0x72] sm:$0xff] }
 0x25b   : > { %8953 = vmatprep.mubr.msk.f32.mxu1 %vm368_vm0, %v3160_v17  ;;  %8933 = vmatprep.mubr.msk.f32.mxu0 %vm368_vm0, %v10514_v35  ;;  %v11635_v41 = vld [vmem:[#allocation12_spill] sm:$0xff] }
 0x25c   : > { %8952 = vmatpush3.msra.mxu1 %v7651_v36  ;;  %8965 = vmatprep.subr.mxu0 %v7658_v45  ;;  %v7755_v62 = vld [vmem:[%s11531_s3 + $0x270] sm:$0xff]  ;;  %v7754_v17 = vld [vmem:[%s11531_s3 + $0x268] sm:$0xff] }
 0x25d   : > { %8985 = vmatprep.subr.mxu1 %v7662_v50 }
 0x25e   : > { %8934 = vmatmul.mubr.msk.f32.vlgmr.msra.gmra.mxu0 %vm368_vm0, %v3434_v47  ;;  %8954 = vmatmul.mubr.msk.f32.vlgmr.msra.gmra.mxu1 %vm368_vm0, %v10456_v27 }
 0x25f   : > { %8966 = vmatpush3.msra.mxu0 %v7658_v45  ;;  %8936 = vmatprep.mubr.msk.f32.mxu0 %vm368_vm0, %v10535_v37 }
 0x260   : > { %8956 = vmatprep.mubr.msk.f32.mxu1 %vm368_vm0, %v10466_v42  ;;  %8967 = vmatprep.subr.mxu0 %v7657_v48 }
 0x261   : > { %8968 = vmatpush3.msra.mxu0 %v7657_v48  ;;  %8986 = vmatpush3.msra.mxu1 %v7662_v50 }
 0x262   : > { %8937 = vmatmul.mubr.msk.f32.gmra.mxu0 %vm368_vm0, %v10541_v38  ;;  %8957 = vmatmul.mubr.msk.f32.gmra.mxu1 %vm368_vm0, %v10479_v31 }
 0x263   : > { %8939 = vmatprep.mubr.msk.f32.mxu0 %vm368_vm0, %v10553_v60  ;;  %8959 = vmatprep.mubr.msk.f32.mxu1 %vm368_vm0, %v10490_v5 }
 0x264   : > { %8969 = vmatprep.subr.mxu0 %v7656_v49  ;;  %8987 = vmatprep.subr.mxu1 %v7661_v52 }
 0x265   : > { %8970 = vmatpush3.msra.mxu0 %v7656_v49  ;;  %8988 = vmatpush3.msra.mxu1 %v7661_v52 }
 0x266   : > { %8940 = vmatmul.mubr.msk.f32.gmra.mxu0 %vm368_vm0, %v10559_v51  ;;  %8960 = vmatmul.mubr.msk.f32.gmra.mxu1 %vm368_vm0, %v10501_v12 }
 0x267   : > { %8942 = vmatprep.mubr.msk.f32.mxu0 %vm368_vm0, %v10571_v57  ;;  %8962 = vmatprep.mubr.msk.f32.mxu1 %vm368_vm0, %v10512_v22 }
 0x268   : > { %8971 = vmatprep.subr.mxu0 %v7655_v54  ;;  %8989 = vmatprep.subr.mxu1 %v7660_v56 }
 0x269   : > { %8972 = vmatpush3.msra.mxu0 %v7655_v54  ;;  %8990 = vmatpush3.msra.mxu1 %v7660_v56 }
 0x26a   : > { %8943 = vmatmul.mubr.msk.f32.gmra.mxu0 %vm368_vm0, %v10580_v58  ;;  %8963 = vmatmul.mubr.msk.f32.gmra.mxu1 %vm368_vm0, %v10582_v53 }
 0x26b   : > { %8973 = vmatprep.mubr.msk.f32.mxu0 %vm368_vm0, %v10442_v16  ;;  %8993 = vmatprep.mubr.msk.f32.mxu1 %vm368_vm0, %v3434_v47  ;;  %v7751_v16 = vld [vmem:[%s11531_s3 + $0x250] sm:$0xff] }
 0x26c   : > { %8991 = vmatprep.subr.mxu1 %v7659_v43  ;;  %9005 = vmatprep.subr.mxu0 %v7666_v63 }
 0x26d   : > { %8992 = vmatpush3.msra.mxu1 %v7659_v43 }
 0x26e   : > { %8974 = vmatmul.mubr.msk.f32.vlgmr.msra.gmra.mxu0 %vm368_vm0, %v10451_v21  ;;  %8994 = vmatmul.mubr.msk.f32.vlgmr.msra.gmra.mxu1 %vm368_vm0, %v10535_v37 }
 0x26f   : > { %9006 = vmatpush3.msra.mxu0 %v7666_v63  ;;  %8976 = vmatprep.mubr.msk.f32.mxu0 %vm368_vm0, %v10464_v28 }
 0x270   : > { %8996 = vmatprep.mubr.msk.f32.mxu1 %vm368_vm0, %v10541_v38  ;;  %9007 = vmatprep.subr.mxu0 %v7665_v55 }
 0x271   : > { %9008 = vmatpush3.msra.mxu0 %v7665_v55  ;;  %9025 = vmatprep.subr.mxu1 %v7670_v0 }
 0x272   : > { %8977 = vmatmul.mubr.msk.f32.gmra.mxu0 %vm368_vm0, %v10477_v40  ;;  %8997 = vmatmul.mubr.msk.f32.gmra.mxu1 %vm368_vm0, %v10553_v60 }
 0x273   : > { %8979 = vmatprep.mubr.msk.f32.mxu0 %vm368_vm0, %v10488_v30  ;;  %8999 = vmatprep.mubr.msk.f32.mxu1 %vm368_vm0, %v10559_v51 }
 0x274   : > { %9009 = vmatprep.subr.mxu0 %v7664_v10  ;;  %9026 = vmatpush3.msra.mxu1 %v7670_v0 }
 0x275   : > { %9010 = vmatpush3.msra.mxu0 %v7664_v10  ;;  %9027 = vmatprep.subr.mxu1 %v7669_v1 }
 0x276   : > { %8980 = vmatmul.mubr.msk.f32.gmra.mxu0 %vm368_vm0, %v10499_v46  ;;  %9000 = vmatmul.mubr.msk.f32.gmra.mxu1 %vm368_vm0, %v10571_v57 }
 0x277   : > { %8982 = vmatprep.mubr.msk.f32.mxu0 %vm368_vm0, %v10510_v59  ;;  %9002 = vmatprep.mubr.msk.f32.mxu1 %vm368_vm0, %v10580_v58 }
 0x278   : > { %9011 = vmatprep.subr.mxu0 %v7663_v25  ;;  %9028 = vmatpush3.msra.mxu1 %v7669_v1 }
 0x279   : > { %9012 = vmatpush3.msra.mxu0 %v7663_v25  ;;  %9029 = vmatprep.subr.mxu1 %v7668_v2 }
 0x27a   : > { %8983 = vmatmul.mubr.msk.f32.gmra.mxu0 %vm368_vm0, %v3730_v39  ;;  %9003 = vmatmul.mubr.msk.f32.gmra.mxu1 %vm368_vm0, %v3875_v4 }
 0x27b   : > { %9013 = vmatprep.mubr.msk.f32.mxu0 %vm368_vm0, %v10456_v27  ;;  %9030 = vmatpush3.msra.mxu1 %v7668_v2 }
 0x27c   : > { %9033 = vmatprep.mubr.msk.f32.mxu1 %vm368_vm0, %v10451_v21  ;;  %9031 = vmatprep.subr.mxu1 %v7667_v7  ;;  %v10736_v21 = vld [vmem:[%s11531_s3 + $0x298] sm:$0xff] }
 0x27d   : > { %9032 = vmatpush3.msra.mxu1 %v7667_v7  ;;  %9045 = vmatprep.subr.mxu0 %v7674_v19  ;;  %11636 = vst [vmem:[#allocation8_spill] sm:$0xff] %v10736_v21 }
 0x27e   : > { %9014 = vmatmul.mubr.msk.f32.vlgmr.msra.gmra.mxu0 %vm368_vm0, %v10466_v42  ;;  %9034 = vmatmul.mubr.msk.f32.vlgmr.msra.gmra.mxu1 %vm368_vm0, %v10464_v28 }
 0x27f   : > { %9046 = vmatpush3.msra.mxu0 %v7674_v19  ;;  %9016 = vmatprep.mubr.msk.f32.mxu0 %vm368_vm0, %v10479_v31 }
 0x280   : > { %9036 = vmatprep.mubr.msk.f32.mxu1 %vm368_vm0, %v10477_v40  ;;  %9047 = vmatprep.subr.mxu0 %v7673_v34 }
 0x281   : > { %9048 = vmatpush3.msra.mxu0 %v7673_v34  ;;  %9065 = vmatprep.subr.mxu1 %v7756_v8 }
 0x282   : > { %9017 = vmatmul.mubr.msk.f32.gmra.mxu0 %vm368_vm0, %v10490_v5  ;;  %9037 = vmatmul.mubr.msk.f32.gmra.mxu1 %vm368_vm0, %v10488_v30 }
 0x283   : > { %9019 = vmatprep.mubr.msk.f32.mxu0 %vm368_vm0, %v10501_v12  ;;  %9039 = vmatprep.mubr.msk.f32.mxu1 %vm368_vm0, %v10499_v46 }
 0x284   : > { %9049 = vmatprep.subr.mxu0 %v7672_v14  ;;  %9066 = vmatpush3.msra.mxu1 %v7756_v8 }
 0x285   : > { %9050 = vmatpush3.msra.mxu0 %v7672_v14  ;;  %9067 = vmatprep.subr.mxu1 %v7755_v62 }
 0x286   : > { %9020 = vmatmul.mubr.msk.f32.gmra.mxu0 %vm368_vm0, %v10512_v22  ;;  %9040 = vmatmul.mubr.msk.f32.gmra.mxu1 %vm368_vm0, %v10510_v59 }
 0x287   : > { %9022 = vmatprep.mubr.msk.f32.mxu0 %vm368_vm0, %v10582_v53  ;;  %9042 = vmatprep.mubr.msk.f32.mxu1 %vm368_vm0, %v3730_v39 }
 0x288   : > { %9051 = vmatprep.subr.mxu0 %v7671_v15  ;;  %9068 = vmatpush3.msra.mxu1 %v7755_v62 }
 0x289   : > { %9052 = vmatpush3.msra.mxu0 %v7671_v15  ;;  %9069 = vmatprep.subr.mxu1 %v7754_v17 }
 0x28a   : > { %9023 = vmatmul.mubr.msk.f32.gmra.mxu0 %vm368_vm0, %v10680_v44  ;;  %9043 = vmatmul.mubr.msk.f32.gmra.mxu1 %vm368_vm0, %v10682_v6 }
 0x28b   : > { %9053 = vmatprep.mubr.msk.f32.mxu0 %vm368_vm0, %v10535_v37  ;;  %9073 = vmatprep.mubr.msk.f32.mxu1 %vm368_vm0, %v11633_v20 }
 0x28c   : > { %9085 = vmatprep.subr.mxu0 %v7752_v11  ;;  %9070 = vmatpush3.msra.mxu1 %v7754_v17 }
 0x28d   : > { %9071 = vmatprep.subr.mxu1 %v7753_v26 }
 0x28e   : > { %9054 = vmatmul.mubr.msk.f32.vlgmr.msra.gmra.mxu0 %vm368_vm0, %v10541_v38  ;;  %9072 = vmatpush3.msra.mxu1 %v7753_v26 }
 0x28f   : > { %9056 = vmatprep.mubr.msk.f32.mxu0 %vm368_vm0, %v10553_v60  ;;  %9086 = vmatpush3.msra.mxu0 %v7752_v11 }
 0x290   : > { %9087 = vmatprep.subr.mxu0 %v7751_v16  ;;  %9105 = vmatprep.subr.mxu1 %v10736_v21 }
 0x291   : > { %9088 = vmatpush3.msra.mxu0 %v7751_v16 }
 0x292   : > { %9057 = vmatmul.mubr.msk.f32.gmra.mxu0 %vm368_vm0, %v10559_v51  ;;  %9089 = vmatprep.subr.mxu0 %v7750_v18 }
 0x293   : > { %9059 = vmatprep.mubr.msk.f32.mxu0 %vm368_vm0, %v10571_v57  ;;  %9090 = vmatpush3.msra.mxu0 %v7750_v18 }
 0x294   : > { %9091 = vmatprep.subr.mxu0 %v7749_v61 }
 0x295   : > { %9092 = vmatpush3.msra.mxu0 %v7749_v61 }
 0x296   : > { %9060 = vmatmul.mubr.msk.f32.gmra.mxu0 %vm368_vm0, %v10580_v58  ;;  %9125 = vmatprep.subr.mxu0 %v10742_v29 }
 0x297   : > { %9062 = vmatprep.mubr.msk.f32.mxu0 %vm368_vm0, %v3875_v4 }
 0x29a   : > { %9063 = vmatmul.mubr.msk.f32.gmra.mxu0 %vm368_vm0, %v10703_v3 }
 0x29b   : > { %9093 = vmatprep.mubr.msk.f32.mxu0 %vm368_vm0, %v11635_v41 }
 0x30d   : > { %v8895_v27 = vpop.f32.mrf.mxu0 }
 0x30e   : > { %v8915_v23 = vpop.f32.mrf.mxu1 }
 0x30f   : > { %v3265_v24 = vpop.f32.mrf.mxu0  ;;  %v3400_v14 = vadd.f32 %v8915_v23, %v8895_v27 }
 0x310   : > { %v3394_v28 = vpop.f32.mrf.mxu1 }
 0x311   : > { %v3395_v41 = vadd.f32 %v3394_v28, %v3265_v24 }
 0x312   : > { %v8898_v42 = vpop.f32.mrf.mxu0  ;;  %v8918_v13 = vpop.f32.mrf.mxu1 }
 0x313   : > { %v3410_v16 = vadd.f32 %v8918_v13, %v8898_v42 }
 0x314   : > { %v3275_v9 = vpop.f32.mrf.mxu0  ;;  %v3404_v40 = vpop.f32.mrf.mxu1 }
 0x315   : > { %v3405_v26 = vadd.f32 %v3404_v40, %v3275_v9 }
 0x316   : > { %v8901_v31 = vpop.f32.mrf.mxu0  ;;  %v8921_v32 = vpop.f32.mrf.mxu1 }
 0x317   : > { %v3420_v44 = vadd.f32 %v8921_v32, %v8901_v31 }
 0x318   : > { %v3285_v30 = vpop.f32.mrf.mxu0  ;;  %v3414_v5 = vpop.f32.mrf.mxu1 }
 0x319   : > { %v3415_v27 = vadd.f32 %v3414_v5, %v3285_v30 }
 0x31a   : > { %v8904_v33 = vpop.f32.mrf.mxu0  ;;  %v8924_v46 = vpop.f32.mrf.mxu1 }
 0x31c   : > { %v10745_v12 = vpop.f32.mrf.mxu0  ;;  %v3424_v36 = vpop.f32.mrf.mxu1 }
 0x31d   : > { %v3425_v40 = vadd.f32 %v3424_v36, %v10745_v12 }
 0x31e   : > { %v8935_v59 = vpop.f32.mrf.mxu0  ;;  %v8955_v22 = vpop.f32.mrf.mxu1 }
 0x31f   : > { %v3571_v8 = vadd.f32 %v8935_v59, %v3400_v14  ;;  %v3430_v59 = vadd.f32 %v8924_v46, %v8904_v33 }
 0x320   : > { %v3531_v45 = vpop.f32.mrf.mxu0  ;;  %v3676_v50 = vpop.f32.mrf.mxu1 }
 0x321   : > { %v3570_v17 = vadd.f32 %v3531_v45, %v3395_v41  ;;  %v3716_v61 = vadd.f32 %v8955_v22, %v3571_v8 }
 0x322   : > { %v8938_v47 = vpop.f32.mrf.mxu0  ;;  %v8958_v48 = vpop.f32.mrf.mxu1 }
 0x323   : > { %v3573_v3 = vadd.f32 %v8938_v47, %v3410_v16  ;;  %v3715_v29 = vadd.f32 %v3676_v50, %v3570_v17 }
 0x324   : > { %v3541_v37 = vpop.f32.mrf.mxu0  ;;  %v3686_v38 = vpop.f32.mrf.mxu1 }
 0x325   : > { %v3572_v21 = vadd.f32 %v3541_v37, %v3405_v26 }
 0x326   : > { %v8941_v49 = vpop.f32.mrf.mxu0  ;;  %v8961_v52 = vpop.f32.mrf.mxu1 }
 0x327   : > { %v3575_v23 = vadd.f32 %v8941_v49, %v3420_v44  ;;  %v3717_v13 = vadd.f32 %v3686_v38, %v3572_v21 }
 0x328   : > { %v3551_v60 = vpop.f32.mrf.mxu0  ;;  %v3696_v51 = vpop.f32.mrf.mxu1 }
 0x329   : > { %v3574_v14 = vadd.f32 %v3551_v60, %v3415_v27  ;;  %v3720_v22 = vadd.f32 %v8961_v52, %v3575_v23  ;;  %v11647_v23 = vld [vmem:[#allocation13_spill] sm:$0xff] }
 0x32a   : > { %v8944_v54 = vpop.f32.mrf.mxu0  ;;  %v8964_v56 = vpop.f32.mrf.mxu1 }
 0x32b   : > { %v3577_v31 = vadd.f32 %v8944_v54, %v3430_v59  ;;  %v3719_v44 = vadd.f32 %v3696_v51, %v3574_v14  ;;  %v7748_v51 = vld [vmem:[%s11532_s4 + $0x1] ss:$0 sm:$0xff] }
 0x32c   : > { %v3561_v57 = vpop.f32.mrf.mxu0  ;;  %v10747_v43 = vpop.f32.mrf.mxu1 }
 0x32d   : > { %v3576_v5 = vadd.f32 %v3561_v57, %v3425_v40  ;;  %v3722_v46 = vadd.f32 %v8964_v56, %v3577_v31 }
 0x32e   : > { %v8975_v58 = vpop.f32.mrf.mxu0  ;;  %v8995_v53 = vpop.f32.mrf.mxu1 }
 0x32f   : > { %v3721_v36 = vadd.f32 %v10747_v43, %v3576_v5  ;;  %v11653_v5 = vld [vmem:[#allocation16_spill] sm:$0xff] }
 0x330   : > { %v3821_v63 = vpop.f32.mrf.mxu0  ;;  %v3966_v55 = vpop.f32.mrf.mxu1 }
 0x331   : > { %v3860_v24 = vadd.f32 %v3821_v63, %v3715_v29 }
 0x332   : > { %v8978_v0 = vpop.f32.mrf.mxu0  ;;  %v8998_v10 = vpop.f32.mrf.mxu1 }
 0x333   : > { %v4005_v50 = vadd.f32 %v3966_v55, %v3860_v24  ;;  %v11648_v24 = vmax.f32 %v11647_v23, 0.0 }
 0x334   : > { %v3831_v1 = vpop.f32.mrf.mxu0  ;;  %v3976_v25 = vpop.f32.mrf.mxu1 }
 0x335   : > { %v3862_v47 = vadd.f32 %v3831_v1, %v3717_v13 }
 0x336   : > { %v8981_v2 = vpop.f32.mrf.mxu0  ;;  %v9001_v39 = vpop.f32.mrf.mxu1 }
 0x337   : > { %v4007_v38 = vadd.f32 %v3976_v25, %v3862_v47 }
 0x338   : > { %v3841_v4 = vpop.f32.mrf.mxu0  ;;  %v10749_v7 = vpop.f32.mrf.mxu1 }
 0x339   : > { %11638 = vst [vmem:[#allocation12_spill] sm:$0xff] %v10749_v7  ;;  %v3864_v49 = vadd.f32 %v3841_v4, %v3719_v44 }
 0x33a   : > { %v8984_v19 = vpop.f32.mrf.mxu0  ;;  %v10751_v34 = vpop.f32.mrf.mxu1 }
 0x33b   : > { %11639 = vst [vmem:[#allocation22_spill] sm:$0xff] %v10751_v34  ;;  %v3861_v34 = vadd.f32 %v8975_v58, %v3716_v61  ;;  %v3867_v54 = vadd.f32 %v8984_v19, %v3722_v46 }
 0x33c   : > { %v3851_v15 = vpop.f32.mrf.mxu0  ;;  %v10753_v20 = vpop.f32.mrf.mxu1 }
 0x33d   : > { %11640 = vst [vmem:[#allocation23_spill] sm:$0xff] %v10753_v20  ;;  %v3718_v20 = vadd.f32 %v8958_v48, %v3573_v3  ;;  %v4006_v45 = vadd.f32 %v8995_v53, %v3861_v34  ;;  %v3865_v3 = vadd.f32 %v8981_v2, %v3720_v22  ;;  %v11650_v22 = vld [vmem:[#allocation14_spill] sm:$0xff] }
 0x33e   : > { %v9015_v11 = vpop.f32.mrf.mxu0  ;;  %v9035_v62 = vpop.f32.mrf.mxu1  ;;  %v11651_v31 = vmax.f32 %v11650_v22, 0.0  ;;  %v7768_v22 = vld [vmem:[%s11531_s3 + $0x2d8] sm:$0xff] }
 0x33f   : > { %v3863_v9 = vadd.f32 %v8978_v0, %v3718_v20  ;;  %v4151_v37 = vadd.f32 %v9015_v11, %v4006_v45  ;;  %v4010_v52 = vadd.f32 %v9001_v39, %v3865_v3  ;;  %v11643_v11 = vld [vmem:[#allocation15_spill] sm:$0xff]  ;;  %v11654_v3 = vmax.f32 %v11653_v5, 0.0 }
 0x340   : > { %v4111_v18 = vpop.f32.mrf.mxu0  ;;  %v4256_v6 = vpop.f32.mrf.mxu1  ;;  %v11641_v0 = vld [vmem:[#allocation12_spill] sm:$0xff] }
 0x341   : > { %v4008_v48 = vadd.f32 %v8998_v10, %v3863_v9  ;;  %v4150_v33 = vadd.f32 %v4111_v18, %v4005_v50  ;;  %v4296_v60 = vadd.f32 %v9035_v62, %v4151_v37  ;;  %v4009_v56 = vadd.f32 %v11641_v0, %v3864_v49 }
 0x342   : > { %v9018_v35 = vpop.f32.mrf.mxu0  ;;  %v9038_v28 = vpop.f32.mrf.mxu1  ;;  %v3866_v10 = vadd.f32 %v3851_v15, %v3721_v36  ;;  %v11642_v43 = vld [vmem:[#allocation22_spill] sm:$0xff]  ;;  %v11644_v62 = vmax.f32 %v11643_v11, 0.0 }
 0x343   : > { %v4153_v58 = vadd.f32 %v9018_v35, %v4008_v48  ;;  %v4295_v53 = vadd.f32 %v4256_v6, %v4150_v33  ;;  %v4012_v39 = vadd.f32 %v11642_v43, %v3867_v54 }
 0x344   : > { %v4121_v7 = vpop.f32.mrf.mxu0  ;;  %v4266_v30 = vpop.f32.mrf.mxu1  ;;  %v11646_v17 = vld [vmem:[#allocation23_spill] sm:$0xff] }
 0x345   : > { %v4152_v63 = vadd.f32 %v4121_v7, %v4007_v38  ;;  %v4298_v2 = vadd.f32 %v9038_v28, %v4153_v58  ;;  %v4011_v15 = vadd.f32 %v11646_v17, %v3866_v10  ;;  %v11656_v38 = vld [vmem:[#allocation17_spill] sm:$0xff]  ;;  %v11662_v10 = vld [vmem:[#allocation19_spill] sm:$0xff] }
 0x346   : > { %v9021_v42 = vpop.f32.mrf.mxu0  ;;  %v9041_v12 = vpop.f32.mrf.mxu1  ;;  %v11669_v17 = vld [vmem:[#allocation11_spill] sm:$0xff] }
 0x347   : > { %v4155_v1 = vadd.f32 %v9021_v42, %v4010_v52  ;;  %v4297_v41 = vadd.f32 %v4266_v30, %v4152_v63 }
 0x348   : > { %v4131_v32 = vpop.f32.mrf.mxu0  ;;  %v4276_v35 = vpop.f32.mrf.mxu1 }
 0x349   : > { %v4154_v19 = vadd.f32 %v4131_v32, %v4009_v56  ;;  %v4300_v18 = vadd.f32 %v9041_v12, %v4155_v1  ;;  %v11663_v1 = vmax.f32 %v11662_v10, 0.0  ;;  %v7779_v10 = vld [vmem:[%s11531_s3 + $0x330] sm:$0xff] }
 0x34a   : > { %v9024_v29 = vpop.f32.mrf.mxu0  ;;  %v9044_v8 = vpop.f32.mrf.mxu1 }
 0x34b   : > { %v4157_v26 = vadd.f32 %v9024_v29, %v4012_v39  ;;  %v4299_v42 = vadd.f32 %v4276_v35, %v4154_v19  ;;  %v11665_v39 = vld [vmem:[#allocation20_spill] sm:$0xff] }
 0x34c   : > { %v4141_v21 = vpop.f32.mrf.mxu0  ;;  %v4286_v9 = vpop.f32.mrf.mxu1  ;;  %v11666_v19 = vmax.f32 %v11665_v39, 0.0  ;;  %v7784_v39 = vld [vmem:[%s11531_s3 + $0x358] sm:$0xff] }
 0x34d   : > { %v4156_v13 = vadd.f32 %v4141_v21, %v4011_v15  ;;  %v4302_v37 = vadd.f32 %v9044_v8, %v4157_v26  ;;  %v7763_v15 = vld [vmem:[%s11531_s3 + $0x2b0] sm:$0xff] }
 0x34e   : > { %v9055_v57 = vpop.f32.mrf.mxu0 }
 0x34f   : > { %v4441_v55 = vadd.f32 %v9055_v57, %v4296_v60  ;;  %v4301_v46 = vadd.f32 %v4286_v9, %v4156_v13  ;;  %v11657_v60 = vmax.f32 %v11656_v38, 0.0  ;;  %v11659_v57 = vld [vmem:[#allocation18_spill] sm:$0xff]  ;;  %v7770_v38 = vld [vmem:[%s11531_s3 + $0x2e8] sm:$0xff] }
 0x350   : > { %v4401_v25 = vpop.f32.mrf.mxu0  ;;  %v7761_v13 = vld [vmem:[%s11531_s3 + $0x2a0] sm:$0xff] }
 0x351   : > { %v4455_v4 = vadd.f32 %v7748_v51, %v4441_v55  ;;  %v4440_v34 = vadd.f32 %v4401_v25, %v4295_v53  ;;  %v11660_v53 = vmax.f32 %v11659_v57, 0.0  ;;  %v7776_v57 = vld [vmem:[%s11531_s3 + $0x318] sm:$0xff] }
 0x352   : > { %v9058_v20 = vpop.f32.mrf.mxu0 }
 0x353   : > { %v10764_v6 = vadd.f32 %v4455_v4, %v11644_v62  ;;  %v4454_v7 = vadd.f32 %v7748_v51, %v4440_v34  ;;  %v4443_v16 = vadd.f32 %v9058_v20, %v4298_v2  ;;  %v7759_v34 = vld [vmem:[%s11531_s3 + $0x290] sm:$0xff]  ;;  %v7758_v62 = vld [vmem:[%s11531_s3 + $0x288] sm:$0xff] }
 0x354   : > { %v4411_v61 = vpop.f32.mrf.mxu0 }
 0x355   : > { %11645 = vst [vmem:[#allocation12_spill] sm:$0xff] %v10764_v6  ;;  %v11580_v27 = vmax.f32 %v10764_v6, 0.0  ;;  %v10770_v28 = vadd.f32 %v4454_v7, %v11648_v24  ;;  %v4457_v59 = vadd.f32 %v7748_v51, %v4443_v16  ;;  %v4442_v14 = vadd.f32 %v4411_v61, %v4297_v41  ;;  %v11668_v41 = vld [vmem:[#allocation8_spill] sm:$0xff]  ;;  %v7757_v61 = vld [vmem:[%s11531_s3 + $0x280] sm:$0xff] }
 0x356   : > { %v9061_v45 = vpop.f32.mrf.mxu0 }
 0x357   : > { %11649 = vst [vmem:[#allocation22_spill] sm:$0xff] %v10770_v28  ;;  %4479 = vst.msk [vmem:[#allocation2 + $0x21] sm:$0xff] %vm368_vm0, %v11580_v27  ;;  %v11579_v40 = vmax.f32 %v10770_v28, 0.0  ;;  %v10778_v32 = vadd.f32 %v4457_v59, %v11651_v31  ;;  %v4456_v50 = vadd.f32 %v7748_v51, %v4442_v14  ;;  %v4445_v47 = vadd.f32 %v9061_v45, %v4300_v18  ;;  %v7762_v59 = vld [vmem:[%s11531_s3 + $0x2a8] sm:$0xff]  ;;  %v7772_v31 = vld [vmem:[%s11531_s3 + $0x2f8] sm:$0xff] }
 0x358   : > { %v4421_v30 = vpop.f32.mrf.mxu0 }
 0x359   : > { %11652 = vst [vmem:[#allocation15_spill] sm:$0xff] %v10778_v32  ;;  %4478 = vst.msk [vmem:[#allocation2 + $0x11] sm:$0xff] %vm368_vm0, %v11579_v40  ;;  %v11578_v44 = vmax.f32 %v10778_v32, 0.0  ;;  %v10786_v29 = vadd.f32 %v4456_v50, %v11654_v3  ;;  %v4459_v48 = vadd.f32 %v7748_v51, %v4445_v47  ;;  %v4444_v33 = vadd.f32 %v4421_v30, %v4299_v42  ;;  %v11670_v50 = vld [vmem:[#allocation9_spill] sm:$0xff]  ;;  %v7766_v3 = vld [vmem:[%s11531_s3 + $0x2c8] sm:$0xff] }
 0x35a   : > { %v9064_v49 = vpop.f32.mrf.mxu0 }
 0x35b   : > { %11655 = vst [vmem:[#allocation23_spill] sm:$0xff] %v10786_v29  ;;  %4481 = vst.msk [vmem:[#allocation2 + $0x41] sm:$0xff] %vm368_vm0, %v11578_v44  ;;  %v11577_v21 = vmax.f32 %v10786_v29, 0.0  ;;  %v10794_v58 = vadd.f32 %v4459_v48, %v11657_v60  ;;  %v4458_v12 = vadd.f32 %v7748_v51, %v4444_v33  ;;  %v4447_v36 = vadd.f32 %v9064_v49, %v4302_v37  ;;  %v7767_v37 = vld [vmem:[%s11531_s3 + $0x2d0] sm:$0xff]  ;;  %v7765_v49 = vld [vmem:[%s11531_s3 + $0x2c0] sm:$0xff] }
 0x35c   : > { %v4431_v52 = vpop.f32.mrf.mxu0  ;;  %v7771_v48 = vld [vmem:[%s11531_s3 + $0x2f0] sm:$0xff] }
 0x35d   : > { %11658 = vst [vmem:[#allocation13_spill] sm:$0xff] %v10794_v58  ;;  %4480 = vst.msk [vmem:[#allocation2 + $0x31] sm:$0xff] %vm368_vm0, %v11577_v21  ;;  %v11576_v54 = vmax.f32 %v10794_v58, 0.0  ;;  %v10802_v63 = vadd.f32 %v4458_v12, %v11660_v53  ;;  %v4461_v55 = vadd.f32 %v7748_v51, %v4447_v36  ;;  %v4446_v0 = vadd.f32 %v4431_v52, %v4301_v46  ;;  %v7769_v12 = vld [vmem:[%s11531_s3 + $0x2e0] sm:$0xff]  ;;  %v7775_v53 = vld [vmem:[%s11531_s3 + $0x310] sm:$0xff] }
 0x35e   : > { %v10833_v8 = vld [vmem:[#allocation2 + $0x20] sm:$0xff] }
 0x35f   : > { %11661 = vst [vmem:[#allocation14_spill] sm:$0xff] %v10802_v63  ;;  %4483 = vst.msk [vmem:[#allocation2 + $0x61] sm:$0xff] %vm368_vm0, %v11576_v54  ;;  %v11575_v56 = vmax.f32 %v10802_v63, 0.0  ;;  %v10810_v25 = vadd.f32 %v4461_v55, %v11663_v1  ;;  %v4460_v2 = vadd.f32 %v7748_v51, %v4446_v0  ;;  %v10828_v51 = vld [vmem:[#allocation2 + $0x21] sm:$0xff]  ;;  %v7780_v55 = vld [vmem:[%s11531_s3 + $0x338] sm:$0xff] }
 0x360   : > { %v10812_v35 = vld [vmem:[#allocation2 + $0x11] sm:$0xff]  ;;  %v10915_v30 = vld [vmem:[#allocation2 + $0x22] sm:$0xff] }
 0x361   : > { %11664 = vst [vmem:[#allocation16_spill] sm:$0xff] %v10810_v25  ;;  %v4526_v4 = vld [vmem:[#allocation2 + $0x10] sm:$0xff]  ;;  %4482 = vst.msk [vmem:[#allocation2 + $0x51] sm:$0xff] %vm368_vm0, %v11575_v56  ;;  %v11574_v43 = vmax.f32 %v10810_v25, 0.0  ;;  %v10823_v20 = vadd.f32 %v4460_v2, %v11666_v19  ;;  %9074 = vmatmul.mubr.msk.f32.vlgmr.msra.gmra.mxu1 %vm368_vm0, %v10812_v35  ;;  %v7774_v0 = vld [vmem:[%s11531_s3 + $0x308] sm:$0xff] }
 0x362   : > { %9094 = vmatmul.mubr.msk.f32.vlgmr.msra.gmra.mxu0 %vm368_vm0, %v4526_v4  ;;  %9106 = vmatpush3.msra.mxu1 %v11668_v41  ;;  %v10859_v18 = vld [vmem:[#allocation2 + $0x41] sm:$0xff]  ;;  %v4800_v47 = vld [vmem:[#allocation2 + $0x12] sm:$0xff] }
 0x363   : > { %11667 = vst [vmem:[#allocation17_spill] sm:$0xff] %v10823_v20  ;;  %9076 = vmatprep.mubr.msk.f32.mxu1 %vm368_vm0, %v10828_v51  ;;  %4485 = vst.msk [vmem:[#allocation2 + $0x81] sm:$0xff] %vm368_vm0, %v11574_v43  ;;  %v11573_v11 = vmax.f32 %v10823_v20, 0.0  ;;  %9096 = vmatprep.mubr.msk.f32.mxu0 %vm368_vm0, %v10833_v8  ;;  %v10861_v26 = vld [vmem:[#allocation2 + $0x40] sm:$0xff]  ;;  %v7778_v2 = vld [vmem:[%s11531_s3 + $0x328] sm:$0xff] }
 0x364   : > { %9107 = vmatprep.subr.mxu1 %v7759_v34  ;;  %v10844_v7 = vld [vmem:[#allocation2 + $0x31] sm:$0xff]  ;;  %9126 = vmatpush3.msra.mxu0 %v11669_v17  ;;  %v10933_v33 = vld [vmem:[#allocation2 + $0x42] sm:$0xff] }
 0x365   : > { %v10846_v16 = vld [vmem:[#allocation2 + $0x30] sm:$0xff]  ;;  %9108 = vmatpush3.msra.mxu1 %v7759_v34  ;;  %4484 = vst.msk [vmem:[#allocation2 + $0x71] sm:$0xff] %vm368_vm0, %v11573_v11  ;;  %9127 = vmatprep.subr.mxu0 %v7763_v15  ;;  %v7773_v1 = vld [vmem:[%s11531_s3 + $0x300] sm:$0xff]  ;;  %v7862_v17 = vld [vmem:[%s11531_s3 + $0x378] sm:$0xff] }
 0x366   : > { %9077 = vmatmul.mubr.msk.f32.gmra.mxu1 %vm368_vm0, %v10844_v7  ;;  %9097 = vmatmul.mubr.msk.f32.gmra.mxu0 %vm368_vm0, %v10846_v16  ;;  %v10881_v14 = vld [vmem:[#allocation2 + $0x61] sm:$0xff]  ;;  %v10921_v5 = vld [vmem:[#allocation2 + $0x32] sm:$0xff] }
 0x367   : > { %9079 = vmatprep.mubr.msk.f32.mxu1 %vm368_vm0, %v10859_v18  ;;  %9099 = vmatprep.mubr.msk.f32.mxu0 %vm368_vm0, %v10861_v26  ;;  %v10883_v42 = vld [vmem:[#allocation2 + $0x60] sm:$0xff]  ;;  %v7783_v19 = vld [vmem:[%s11531_s3 + $0x350] sm:$0xff] }
 0x368   : > { %9109 = vmatprep.subr.mxu1 %v7758_v62  ;;  %v10870_v23 = vld [vmem:[#allocation2 + $0x51] sm:$0xff]  ;;  %9128 = vmatpush3.msra.mxu0 %v7763_v15  ;;  %v10951_v60 = vld [vmem:[#allocation2 + $0x62] sm:$0xff] }
 0x369   : > { %v10872_v24 = vld [vmem:[#allocation2 + $0x50] sm:$0xff]  ;;  %9110 = vmatpush3.msra.mxu1 %v7758_v62  ;;  %9129 = vmatprep.subr.mxu0 %v7762_v59  ;;  %v7777_v34 = vld [vmem:[%s11531_s3 + $0x320] sm:$0xff] }
 0x36a   : > { %9080 = vmatmul.mubr.msk.f32.gmra.mxu1 %vm368_vm0, %v10870_v23  ;;  %9100 = vmatmul.mubr.msk.f32.gmra.mxu0 %vm368_vm0, %v10872_v24  ;;  %v10939_v46 = vld [vmem:[#allocation2 + $0x52] sm:$0xff]  ;;  %v10962_v52 = vld [vmem:[#allocation2 + $0x80] sm:$0xff] }
 0x36b   : > { %9082 = vmatprep.mubr.msk.f32.mxu1 %vm368_vm0, %v10881_v14  ;;  %9102 = vmatprep.mubr.msk.f32.mxu0 %vm368_vm0, %v10883_v42  ;;  %v7781_v41 = vld [vmem:[%s11531_s3 + $0x340] sm:$0xff]  ;;  %v11672_v62 = vld [vmem:[#allocation21_spill] sm:$0xff] }
 0x36c   : > { %9111 = vmatprep.subr.mxu1 %v7757_v61  ;;  %v10892_v45 = vld [vmem:[#allocation2 + $0x71] sm:$0xff]  ;;  %9130 = vmatpush3.msra.mxu0 %v7762_v59  ;;  %v5891_v59 = vld [vmem:[#allocation2 + $0x1] sm:$0xff] }
 0x36d   : > { %v10894_v9 = vld [vmem:[#allocation2 + $0x70] sm:$0xff]  ;;  %9112 = vmatpush3.msra.mxu1 %v7757_v61  ;;  %9131 = vmatprep.subr.mxu0 %v7761_v13  ;;  %v7860_v61 = vld [vmem:[%s11531_s3 + $0x368] sm:$0xff] }
 0x36e   : > { %9083 = vmatmul.mubr.msk.f32.gmra.mxu1 %vm368_vm0, %v10892_v45  ;;  %9103 = vmatmul.mubr.msk.f32.gmra.mxu0 %vm368_vm0, %v10894_v9  ;;  %v10960_v36 = vld [vmem:[#allocation2 + $0x72] sm:$0xff] }
 0x36f   : > { %9133 = vmatprep.mubr.msk.f32.mxu0 %vm368_vm0, %v4526_v4  ;;  %9113 = vmatprep.mubr.msk.f32.mxu1 %vm368_vm0, %v11670_v50  ;;  %v5241_v4 = vld [vmem:[#allocation2 + $0x82] sm:$0xff]  ;;  %v7865_v15 = vld [vmem:[%s11531_s3 + $0x390] sm:$0xff] }
 0x370   : > { %9132 = vmatpush3.msra.mxu0 %v7761_v13  ;;  %9145 = vmatprep.subr.mxu1 %v7768_v22  ;;  %v11114_v13 = vld [vmem:[%s11531_s3 + $0x3d8] sm:$0xff] }
 0x371   : > { %9165 = vmatprep.subr.mxu0 %v7772_v31  ;;  %11675 = vst [vmem:[#allocation19_spill] sm:$0xff] %v11114_v13 }
 0x372   : > { %9114 = vmatmul.mubr.msk.f32.vlgmr.msra.gmra.mxu1 %vm368_vm0, %v4800_v47  ;;  %9134 = vmatmul.mubr.msk.f32.vlgmr.msra.gmra.mxu0 %vm368_vm0, %v10833_v8 }
 0x373   : > { %9146 = vmatpush3.msra.mxu1 %v7768_v22  ;;  %9116 = vmatprep.mubr.msk.f32.mxu1 %vm368_vm0, %v10915_v30 }
 0x374   : > { %9136 = vmatprep.mubr.msk.f32.mxu0 %vm368_vm0, %v10846_v16  ;;  %9147 = vmatprep.subr.mxu1 %v7767_v37 }
 0x375   : > { %9148 = vmatpush3.msra.mxu1 %v7767_v37  ;;  %9166 = vmatpush3.msra.mxu0 %v7772_v31 }
 0x376   : > { %9117 = vmatmul.mubr.msk.f32.gmra.mxu1 %vm368_vm0, %v10921_v5  ;;  %9137 = vmatmul.mubr.msk.f32.gmra.mxu0 %vm368_vm0, %v10861_v26 }
 0x377   : > { %9119 = vmatprep.mubr.msk.f32.mxu1 %vm368_vm0, %v10933_v33  ;;  %9139 = vmatprep.mubr.msk.f32.mxu0 %vm368_vm0, %v10872_v24 }
 0x378   : > { %9149 = vmatprep.subr.mxu1 %v7766_v3  ;;  %9167 = vmatprep.subr.mxu0 %v7771_v48 }
 0x379   : > { %9150 = vmatpush3.msra.mxu1 %v7766_v3  ;;  %9168 = vmatpush3.msra.mxu0 %v7771_v48 }
 0x37a   : > { %9120 = vmatmul.mubr.msk.f32.gmra.mxu1 %vm368_vm0, %v10939_v46  ;;  %9140 = vmatmul.mubr.msk.f32.gmra.mxu0 %vm368_vm0, %v10883_v42 }
 0x37b   : > { %9122 = vmatprep.mubr.msk.f32.mxu1 %vm368_vm0, %v10951_v60  ;;  %9142 = vmatprep.mubr.msk.f32.mxu0 %vm368_vm0, %v10894_v9 }
 0x37c   : > { %9151 = vmatprep.subr.mxu1 %v7765_v49  ;;  %9169 = vmatprep.subr.mxu0 %v7770_v38 }
 0x37d   : > { %9152 = vmatpush3.msra.mxu1 %v7765_v49  ;;  %9170 = vmatpush3.msra.mxu0 %v7770_v38 }
 0x37e   : > { %9123 = vmatmul.mubr.msk.f32.gmra.mxu1 %vm368_vm0, %v10960_v36  ;;  %9143 = vmatmul.mubr.msk.f32.gmra.mxu0 %vm368_vm0, %v10962_v52 }
 0x37f   : > { %9153 = vmatprep.mubr.msk.f32.mxu1 %vm368_vm0, %v10812_v35  ;;  %9173 = vmatprep.mubr.msk.f32.mxu0 %vm368_vm0, %v4800_v47  ;;  %v5096_v35 = vld [vmem:[#allocation2 + $0x81] sm:$0xff] }
 0x380   : > { %9171 = vmatprep.subr.mxu0 %v7769_v12  ;;  %9185 = vmatprep.subr.mxu1 %v7776_v57 }
 0x381   : > { %9172 = vmatpush3.msra.mxu0 %v7769_v12 }
 0x382   : > { %9154 = vmatmul.mubr.msk.f32.vlgmr.msra.gmra.mxu1 %vm368_vm0, %v10828_v51  ;;  %9174 = vmatmul.mubr.msk.f32.vlgmr.msra.gmra.mxu0 %vm368_vm0, %v10915_v30 }
 0x383   : > { %9186 = vmatpush3.msra.mxu1 %v7776_v57  ;;  %9156 = vmatprep.mubr.msk.f32.mxu1 %vm368_vm0, %v10844_v7 }
 0x384   : > { %9176 = vmatprep.mubr.msk.f32.mxu0 %vm368_vm0, %v10921_v5  ;;  %9187 = vmatprep.subr.mxu1 %v7775_v53 }
 0x385   : > { %9188 = vmatpush3.msra.mxu1 %v7775_v53  ;;  %9205 = vmatprep.subr.mxu0 %v7780_v55 }
 0x386   : > { %9157 = vmatmul.mubr.msk.f32.gmra.mxu1 %vm368_vm0, %v10859_v18  ;;  %9177 = vmatmul.mubr.msk.f32.gmra.mxu0 %vm368_vm0, %v10933_v33 }
 0x387   : > { %9159 = vmatprep.mubr.msk.f32.mxu1 %vm368_vm0, %v10870_v23  ;;  %9179 = vmatprep.mubr.msk.f32.mxu0 %vm368_vm0, %v10939_v46 }
 0x388   : > { %9189 = vmatprep.subr.mxu1 %v7774_v0  ;;  %9206 = vmatpush3.msra.mxu0 %v7780_v55 }
 0x389   : > { %9190 = vmatpush3.msra.mxu1 %v7774_v0  ;;  %9207 = vmatprep.subr.mxu0 %v7779_v10 }
 0x38a   : > { %9160 = vmatmul.mubr.msk.f32.gmra.mxu1 %vm368_vm0, %v10881_v14  ;;  %9180 = vmatmul.mubr.msk.f32.gmra.mxu0 %vm368_vm0, %v10951_v60 }
 0x38b   : > { %9162 = vmatprep.mubr.msk.f32.mxu1 %vm368_vm0, %v10892_v45  ;;  %9182 = vmatprep.mubr.msk.f32.mxu0 %vm368_vm0, %v10960_v36 }
 0x38c   : > { %9191 = vmatprep.subr.mxu1 %v7773_v1  ;;  %9208 = vmatpush3.msra.mxu0 %v7779_v10 }
 0x38d   : > { %9192 = vmatpush3.msra.mxu1 %v7773_v1  ;;  %9209 = vmatprep.subr.mxu0 %v7778_v2 }
 0x38e   : > { %9163 = vmatmul.mubr.msk.f32.gmra.mxu1 %vm368_vm0, %v5096_v35  ;;  %9183 = vmatmul.mubr.msk.f32.gmra.mxu0 %vm368_vm0, %v5241_v4 }
 0x38f   : > { %9193 = vmatprep.mubr.msk.f32.mxu1 %vm368_vm0, %v10833_v8  ;;  %9210 = vmatpush3.msra.mxu0 %v7778_v2  ;;  %v11671_v8 = vld [vmem:[#allocation10_spill] sm:$0xff] }
 0x390   : > { %9213 = vmatprep.mubr.msk.f32.mxu0 %vm368_vm0, %v10828_v51  ;;  %9211 = vmatprep.subr.mxu0 %v7777_v34  ;;  %v7782_v51 = vld [vmem:[%s11531_s3 + $0x348] sm:$0xff] }
 0x391   : > { %9212 = vmatpush3.msra.mxu0 %v7777_v34  ;;  %9225 = vmatprep.subr.mxu1 %v7784_v39 }
 0x392   : > { %9194 = vmatmul.mubr.msk.f32.vlgmr.msra.gmra.mxu1 %vm368_vm0, %v10846_v16  ;;  %9214 = vmatmul.mubr.msk.f32.vlgmr.msra.gmra.mxu0 %vm368_vm0, %v10844_v7  ;;  %v11673_v7 = vld [vmem:[#allocation7_spill] sm:$0xff]  ;;  %v7866_v16 = vld [vmem:[%s11531_s3 + $0x398] sm:$0xff] }
 0x393   : > { %9226 = vmatpush3.msra.mxu1 %v7784_v39  ;;  %9196 = vmatprep.mubr.msk.f32.mxu1 %vm368_vm0, %v10861_v26  ;;  %v7864_v26 = vld [vmem:[%s11531_s3 + $0x388] sm:$0xff] }
 0x394   : > { %9216 = vmatprep.mubr.msk.f32.mxu0 %vm368_vm0, %v10859_v18  ;;  %9227 = vmatprep.subr.mxu1 %v7783_v19  ;;  %v7861_v18 = vld [vmem:[%s11531_s3 + $0x370] sm:$0xff] }
 0x395   : > { %9228 = vmatpush3.msra.mxu1 %v7783_v19  ;;  %9245 = vmatprep.subr.mxu0 %v7866_v16 }
 0x396   : > { %9197 = vmatmul.mubr.msk.f32.gmra.mxu1 %vm368_vm0, %v10872_v24  ;;  %9217 = vmatmul.mubr.msk.f32.gmra.mxu0 %vm368_vm0, %v10870_v23  ;;  %v7863_v23 = vld [vmem:[%s11531_s3 + $0x380] sm:$0xff] }
 0x397   : > { %9199 = vmatprep.mubr.msk.f32.mxu1 %vm368_vm0, %v10883_v42  ;;  %9219 = vmatprep.mubr.msk.f32.mxu0 %vm368_vm0, %v10881_v14  ;;  %v7859_v24 = vld [vmem:[%s11531_s3 + $0x360] sm:$0xff]  ;;  %v11108_v42 = vld [vmem:[%s11531_s3 + $0x3b8] sm:$0xff] }
 0x398   : > { %9229 = vmatprep.subr.mxu1 %v7782_v51  ;;  %9246 = vmatpush3.msra.mxu0 %v7866_v16  ;;  %v5883_v14 = vld [vmem:[#allocation2] sm:$0xff]  ;;  %11674 = vst [vmem:[#allocation18_spill] sm:$0xff] %v11108_v42 }
 0x399   : > { %9230 = vmatpush3.msra.mxu1 %v7782_v51  ;;  %9247 = vmatprep.subr.mxu0 %v7865_v15 }
 0x39a   : > { %9200 = vmatmul.mubr.msk.f32.gmra.mxu1 %vm368_vm0, %v10894_v9  ;;  %9220 = vmatmul.mubr.msk.f32.gmra.mxu0 %vm368_vm0, %v10892_v45 }
 0x39b   : > { %9202 = vmatprep.mubr.msk.f32.mxu1 %vm368_vm0, %v10962_v52  ;;  %9222 = vmatprep.mubr.msk.f32.mxu0 %vm368_vm0, %v5096_v35 }
 0x39c   : > { %9231 = vmatprep.subr.mxu1 %v7781_v41  ;;  %9248 = vmatpush3.msra.mxu0 %v7865_v15 }
 0x39d   : > { %9232 = vmatpush3.msra.mxu1 %v7781_v41  ;;  %9249 = vmatprep.subr.mxu0 %v7864_v26 }
 0x39e   : > { %9203 = vmatmul.mubr.msk.f32.gmra.mxu1 %vm368_vm0, %v11671_v8  ;;  %9223 = vmatmul.mubr.msk.f32.gmra.mxu0 %vm368_vm0, %v11672_v62 }
 0x39f   : > { %9233 = vmatprep.mubr.msk.f32.mxu1 %vm368_vm0, %v10915_v30  ;;  %9265 = vmatprep.subr.mxu1 %v7862_v17 }
 0x3a0   : > { %9250 = vmatpush3.msra.mxu0 %v7864_v26  ;;  %9253 = vmatprep.mubr.msk.f32.mxu0 %vm368_vm0, %v5891_v59 }
 0x3a1   : > { %9251 = vmatprep.subr.mxu0 %v7863_v23 }
 0x3a2   : > { %9234 = vmatmul.mubr.msk.f32.vlgmr.msra.gmra.mxu1 %vm368_vm0, %v10921_v5  ;;  %9252 = vmatpush3.msra.mxu0 %v7863_v23 }
 0x3a3   : > { %9236 = vmatprep.mubr.msk.f32.mxu1 %vm368_vm0, %v10933_v33  ;;  %9266 = vmatpush3.msra.mxu1 %v7862_v17 }
 0x3a4   : > { %9267 = vmatprep.subr.mxu1 %v7861_v18  ;;  %9285 = vmatprep.subr.mxu0 %v11108_v42 }
 0x3a5   : > { %9268 = vmatpush3.msra.mxu1 %v7861_v18 }
 0x3a6   : > { %9237 = vmatmul.mubr.msk.f32.gmra.mxu1 %vm368_vm0, %v10939_v46  ;;  %9269 = vmatprep.subr.mxu1 %v7860_v61 }
 0x3a7   : > { %9239 = vmatprep.mubr.msk.f32.mxu1 %vm368_vm0, %v10951_v60  ;;  %9270 = vmatpush3.msra.mxu1 %v7860_v61 }
 0x3a8   : > { %9271 = vmatprep.subr.mxu1 %v7859_v24 }
 0x3a9   : > { %9272 = vmatpush3.msra.mxu1 %v7859_v24 }
 0x3aa   : > { %9240 = vmatmul.mubr.msk.f32.gmra.mxu1 %vm368_vm0, %v10960_v36  ;;  %9305 = vmatprep.subr.mxu1 %v11114_v13 }
 0x3ab   : > { %9242 = vmatprep.mubr.msk.f32.mxu1 %vm368_vm0, %v5241_v4 }
 0x3ae   : > { %9243 = vmatmul.mubr.msk.f32.gmra.mxu1 %vm368_vm0, %v11673_v7 }
 0x3af   : > { %9273 = vmatprep.mubr.msk.f32.mxu1 %vm368_vm0, %v5883_v14 }
 0x421   : > { %v9075_v45 = vpop.f32.mrf.mxu1 }
 0x422   : > { %v9095_v9 = vpop.f32.mrf.mxu0 }
 0x423   : > { %v4631_v22 = vpop.f32.mrf.mxu1  ;;  %v4766_v11 = vadd.f32 %v9095_v9, %v9075_v45 }
 0x424   : > { %v4760_v31 = vpop.f32.mrf.mxu0 }
 0x425   : > { %v4761_v54 = vadd.f32 %v4760_v31, %v4631_v22 }
 0x426   : > { %v9078_v50 = vpop.f32.mrf.mxu1  ;;  %v9098_v47 = vpop.f32.mrf.mxu0 }
 0x427   : > { %v4776_v27 = vadd.f32 %v9098_v47, %v9078_v50 }
 0x428   : > { %v4641_v37 = vpop.f32.mrf.mxu1  ;;  %v4770_v30 = vpop.f32.mrf.mxu0 }
 0x429   : > { %v4771_v63 = vadd.f32 %v4770_v30, %v4641_v37 }
 0x42a   : > { %v9081_v5 = vpop.f32.mrf.mxu1  ;;  %v9101_v3 = vpop.f32.mrf.mxu0 }
 0x42b   : > { %v4786_v32 = vadd.f32 %v9101_v3, %v9081_v5 }
 0x42c   : > { %v4651_v48 = vpop.f32.mrf.mxu1  ;;  %v4780_v33 = vpop.f32.mrf.mxu0 }
 0x42d   : > { %v4781_v45 = vadd.f32 %v4780_v33, %v4651_v48 }
 0x42e   : > { %v9084_v46 = vpop.f32.mrf.mxu1  ;;  %v9104_v49 = vpop.f32.mrf.mxu0 }
 0x430   : > { %v11117_v38 = vpop.f32.mrf.mxu1  ;;  %v4790_v60 = vpop.f32.mrf.mxu0 }
 0x432   : > { %v9115_v12 = vpop.f32.mrf.mxu1  ;;  %v9135_v36 = vpop.f32.mrf.mxu0 }
 0x433   : > { %v4937_v21 = vadd.f32 %v9115_v12, %v4766_v11  ;;  %v4796_v11 = vadd.f32 %v9104_v49, %v9084_v46 }
 0x434   : > { %v4897_v52 = vpop.f32.mrf.mxu1  ;;  %v5042_v57 = vpop.f32.mrf.mxu0 }
 0x435   : > { %v4936_v20 = vadd.f32 %v4897_v52, %v4761_v54  ;;  %v5082_v58 = vadd.f32 %v9135_v36, %v4937_v21 }
 0x436   : > { %v9118_v53 = vpop.f32.mrf.mxu1  ;;  %v9138_v55 = vpop.f32.mrf.mxu0 }
 0x437   : > { %v4939_v29 = vadd.f32 %v9118_v53, %v4776_v27  ;;  %v5081_v13 = vadd.f32 %v5042_v57, %v4936_v20  ;;  %v4791_v27 = vadd.f32 %v4790_v60, %v11117_v38 }
 0x438   : > { %v4907_v0 = vpop.f32.mrf.mxu1  ;;  %v5052_v10 = vpop.f32.mrf.mxu0 }
 0x439   : > { %v4938_v42 = vadd.f32 %v4907_v0, %v4771_v63 }
 0x43a   : > { %v9121_v1 = vpop.f32.mrf.mxu1  ;;  %v9141_v2 = vpop.f32.mrf.mxu0 }
 0x43b   : > { %v4941_v9 = vadd.f32 %v9121_v1, %v4786_v32  ;;  %v5083_v54 = vadd.f32 %v5052_v10, %v4938_v42 }
 0x43c   : > { %v4917_v35 = vpop.f32.mrf.mxu1  ;;  %v5062_v4 = vpop.f32.mrf.mxu0 }
 0x43d   : > { %v4940_v31 = vadd.f32 %v4917_v35, %v4781_v45  ;;  %v5086_v21 = vadd.f32 %v9141_v2, %v4941_v9 }
 0x43e   : > { %v9124_v34 = vpop.f32.mrf.mxu1  ;;  %v9144_v39 = vpop.f32.mrf.mxu0 }
 0x43f   : > { %v4943_v30 = vadd.f32 %v9124_v34, %v4796_v11  ;;  %v5085_v3 = vadd.f32 %v5062_v4, %v4940_v31 }
 0x440   : > { %v4927_v19 = vpop.f32.mrf.mxu1  ;;  %v11119_v51 = vpop.f32.mrf.mxu0 }
 0x441   : > { %v4942_v32 = vadd.f32 %v4927_v19, %v4791_v27  ;;  %v5088_v49 = vadd.f32 %v9144_v39, %v4943_v30 }
 0x442   : > { %v9155_v41 = vpop.f32.mrf.mxu1  ;;  %v9175_v8 = vpop.f32.mrf.mxu0 }
 0x443   : > { %v5087_v38 = vadd.f32 %v11119_v51, %v4942_v32 }
 0x444   : > { %v5187_v62 = vpop.f32.mrf.mxu1  ;;  %v5332_v7 = vpop.f32.mrf.mxu0 }
 0x445   : > { %v5226_v22 = vadd.f32 %v5187_v62, %v5081_v13 }
 0x446   : > { %v9158_v16 = vpop.f32.mrf.mxu1  ;;  %v9178_v17 = vpop.f32.mrf.mxu0 }
 0x447   : > { %v5371_v20 = vadd.f32 %v5332_v7, %v5226_v22 }
 0x448   : > { %v5197_v15 = vpop.f32.mrf.mxu1  ;;  %v5342_v18 = vpop.f32.mrf.mxu0 }
 0x449   : > { %v5228_v63 = vadd.f32 %v5197_v15, %v5083_v54 }
 0x44a   : > { %v9161_v26 = vpop.f32.mrf.mxu1  ;;  %v9181_v61 = vpop.f32.mrf.mxu0 }
 0x44b   : > { %v5231_v48 = vadd.f32 %v9161_v26, %v5086_v21  ;;  %v5373_v52 = vadd.f32 %v5342_v18, %v5228_v63 }
 0x44c   : > { %v5207_v23 = vpop.f32.mrf.mxu1  ;;  %v11121_v24 = vpop.f32.mrf.mxu0 }
 0x44d   : > { %11676 = vst [vmem:[#allocation20_spill] sm:$0xff] %v11121_v24  ;;  %v5230_v36 = vadd.f32 %v5207_v23, %v5085_v3  ;;  %v5376_v60 = vadd.f32 %v9181_v61, %v5231_v48 }
 0x44e   : > { %v9164_v59 = vpop.f32.mrf.mxu1  ;;  %v11123_v14 = vpop.f32.mrf.mxu0 }
 0x44f   : > { %11677 = vst [vmem:[#allocation8_spill] sm:$0xff] %v11123_v14  ;;  %v5227_v14 = vadd.f32 %v9155_v41, %v5082_v58  ;;  %v5233_v53 = vadd.f32 %v9164_v59, %v5088_v49  ;;  %v7869_v49 = vld [vmem:[%s11531_s3 + $0x3b0] sm:$0xff] }
 0x450   : > { %v5217_v43 = vpop.f32.mrf.mxu1  ;;  %v11125_v56 = vpop.f32.mrf.mxu0 }
 0x451   : > { %11678 = vst [vmem:[#allocation11_spill] sm:$0xff] %v11125_v56  ;;  %v5084_v56 = vadd.f32 %v9138_v55, %v4939_v29  ;;  %v5372_v47 = vadd.f32 %v9175_v8, %v5227_v14  ;;  %v5232_v4 = vadd.f32 %v5217_v43, %v5087_v38 }
 0x452   : > { %v9195_v44 = vpop.f32.mrf.mxu1  ;;  %v9215_v40 = vpop.f32.mrf.mxu0 }
 0x453   : > { %v5229_v37 = vadd.f32 %v9158_v16, %v5084_v56  ;;  %v5517_v58 = vadd.f32 %v9195_v44, %v5372_v47  ;;  %v7858_v44 = vld [vmem:[%s11532_s4 + $0x2] ss:$0 sm:$0xff] }
 0x454   : > { %v5477_v25 = vpop.f32.mrf.mxu1  ;;  %v5622_v28 = vpop.f32.mrf.mxu0 }
 0x455   : > { %v5374_v33 = vadd.f32 %v9178_v17, %v5229_v37  ;;  %v5516_v46 = vadd.f32 %v5477_v25, %v5371_v20  ;;  %v5662_v56 = vadd.f32 %v9215_v40, %v5517_v58  ;;  %v11679_v25 = vld [vmem:[#allocation20_spill] sm:$0xff] }
 0x456   : > { %v9198_v6 = vpop.f32.mrf.mxu1  ;;  %v9218_v12 = vpop.f32.mrf.mxu0  ;;  %v5375_v35 = vadd.f32 %v11679_v25, %v5230_v36  ;;  %v11680_v51 = vld [vmem:[#allocation8_spill] sm:$0xff] }
 0x457   : > { %v5519_v57 = vadd.f32 %v9198_v6, %v5374_v33  ;;  %v5661_v10 = vadd.f32 %v5622_v28, %v5516_v46  ;;  %v5378_v41 = vadd.f32 %v11680_v51, %v5233_v53  ;;  %v6157_v51 = vld [vmem:[#allocation2 + $0x2] sm:$0xff] }
 0x458   : > { %v5487_v24 = vpop.f32.mrf.mxu1  ;;  %v5632_v29 = vpop.f32.mrf.mxu0  ;;  %v11681_v28 = vld [vmem:[#allocation11_spill] sm:$0xff] }
 0x459   : > { %v5518_v1 = vadd.f32 %v5487_v24, %v5373_v52  ;;  %v5664_v40 = vadd.f32 %v9218_v12, %v5519_v57  ;;  %v5377_v26 = vadd.f32 %v11681_v28, %v5232_v4  ;;  %v7872_v4 = vld [vmem:[%s11531_s3 + $0x3c8] sm:$0xff] }
 0x45a   : > { %v9201_v50 = vpop.f32.mrf.mxu1  ;;  %v9221_v55 = vpop.f32.mrf.mxu0 }
 0x45b   : > { %v5521_v34 = vadd.f32 %v9201_v50, %v5376_v60  ;;  %v5663_v16 = vadd.f32 %v5632_v29, %v5518_v1  ;;  %v7868_v60 = vld [vmem:[%s11531_s3 + $0x3a8] sm:$0xff] }
 0x45c   : > { %v5497_v5 = vpop.f32.mrf.mxu1  ;;  %v5642_v62 = vpop.f32.mrf.mxu0 }
 0x45d   : > { %v5520_v8 = vadd.f32 %v5497_v5, %v5375_v35  ;;  %v5666_v61 = vadd.f32 %v9221_v55, %v5521_v34 }
 0x45e   : > { %v9204_v13 = vpop.f32.mrf.mxu1  ;;  %v9224_v23 = vpop.f32.mrf.mxu0 }
 0x45f   : > { %v5523_v43 = vadd.f32 %v9204_v13, %v5378_v41  ;;  %v5665_v9 = vadd.f32 %v5642_v62, %v5520_v8  ;;  %v7878_v41 = vld [vmem:[%s11531_s3 + $0x3f8] sm:$0xff] }
 0x460   : > { %v5507_v42 = vpop.f32.mrf.mxu1  ;;  %v5652_v54 = vpop.f32.mrf.mxu0  ;;  %v7882_v8 = vld [vmem:[%s11531_s3 + $0x418] sm:$0xff] }
 0x461   : > { %v5522_v11 = vadd.f32 %v5507_v42, %v5377_v26  ;;  %v5668_v37 = vadd.f32 %v9224_v23, %v5523_v43  ;;  %v7880_v23 = vld [vmem:[%s11531_s3 + $0x408] sm:$0xff]  ;;  %v7879_v43 = vld [vmem:[%s11531_s3 + $0x400] sm:$0xff] }
 0x462   : > { %v9235_v0 = vpop.f32.mrf.mxu1 }
 0x463   : > { %v5807_v2 = vadd.f32 %v9235_v0, %v5662_v56  ;;  %v5667_v20 = vadd.f32 %v5652_v54, %v5522_v11  ;;  %v11682_v56 = vld [vmem:[#allocation18_spill] sm:$0xff]  ;;  %v7873_v0 = vld [vmem:[%s11531_s3 + $0x3d0] sm:$0xff]  ;;  %v7884_v11 = vld [vmem:[%s11531_s3 + $0x428] sm:$0xff] }
 0x464   : > { %v5767_v39 = vpop.f32.mrf.mxu1 }
 0x465   : > { %v5821_v6 = vadd.f32 %v7858_v44, %v5807_v2  ;;  %v5806_v19 = vadd.f32 %v5767_v39, %v5661_v10  ;;  %v7867_v2 = vld [vmem:[%s11531_s3 + $0x3a0] sm:$0xff] }
 0x466   : > { %v9238_v7 = vpop.f32.mrf.mxu1 }
 0x467   : > { %v5829_v17 = vmax.f32 %v5821_v6, 0.0  ;;  %v5820_v15 = vadd.f32 %v7858_v44, %v5806_v19  ;;  %v5809_v18 = vadd.f32 %v9238_v7, %v5664_v40  ;;  %v7871_v40 = vld [vmem:[%s11531_s3 + $0x3c0] sm:$0xff]  ;;  %v7877_v7 = vld [vmem:[%s11531_s3 + $0x3f0] sm:$0xff] }
 0x468   : > { %v5777_v24 = vpop.f32.mrf.mxu1 }
 0x469   : > { %5837 = vst.msk [vmem:[#allocation2 + $0x21] sm:$0xff] %vm368_vm0, %v5829_v17  ;;  %v5828_v59 = vmax.f32 %v5820_v15, 0.0  ;;  %v5823_v14 = vadd.f32 %v7858_v44, %v5809_v18  ;;  %v5808_v45 = vadd.f32 %v5777_v24, %v5663_v16  ;;  %v7876_v15 = vld [vmem:[%s11531_s3 + $0x3e8] sm:$0xff]  ;;  %v7881_v18 = vld [vmem:[%s11531_s3 + $0x410] sm:$0xff] }
 0x46a   : > { %v9241_v22 = vpop.f32.mrf.mxu1 }
 0x46b   : > { %5836 = vst.msk [vmem:[#allocation2 + $0x11] sm:$0xff] %vm368_vm0, %v5828_v59  ;;  %v5831_v31 = vmax.f32 %v5823_v14, 0.0  ;;  %v5822_v12 = vadd.f32 %v7858_v44, %v5808_v45  ;;  %v5811_v50 = vadd.f32 %v9241_v22, %v5666_v61  ;;  %v7875_v61 = vld [vmem:[%s11531_s3 + $0x3e0] sm:$0xff]  ;;  %v7886_v45 = vld [vmem:[%s11531_s3 + $0x438] sm:$0xff] }
 0x46c   : > { %v5787_v47 = vpop.f32.mrf.mxu1  ;;  %v7890_v22 = vld [vmem:[%s11531_s3 + $0x458] sm:$0xff] }
 0x46d   : > { %5839 = vst.msk [vmem:[#allocation2 + $0x41] sm:$0xff] %vm368_vm0, %v5831_v31  ;;  %v5830_v27 = vmax.f32 %v5822_v12, 0.0  ;;  %v5825_v21 = vadd.f32 %v7858_v44, %v5811_v50  ;;  %v5810_v30 = vadd.f32 %v5787_v47, %v5665_v9  ;;  %v7885_v9 = vld [vmem:[%s11531_s3 + $0x430] sm:$0xff]  ;;  %v7883_v12 = vld [vmem:[%s11531_s3 + $0x420] sm:$0xff]  ;;  %v7888_v50 = vld [vmem:[%s11531_s3 + $0x448] sm:$0xff] }
 0x46e   : > { %v9244_v5 = vpop.f32.mrf.mxu1  ;;  %v7889_v31 = vld [vmem:[%s11531_s3 + $0x450] sm:$0xff] }
 0x46f   : > { %5838 = vst.msk [vmem:[#allocation2 + $0x31] sm:$0xff] %vm368_vm0, %v5830_v27  ;;  %v5833_v63 = vmax.f32 %v5825_v21, 0.0  ;;  %v5824_v58 = vadd.f32 %v7858_v44, %v5810_v30  ;;  %v5813_v3 = vadd.f32 %v9244_v5, %v5668_v37  ;;  %v7887_v37 = vld [vmem:[%s11531_s3 + $0x440] sm:$0xff]  ;;  %v7894_v27 = vld [vmem:[%s11531_s3 + $0x478] sm:$0xff]  ;;  %v7893_v21 = vld [vmem:[%s11531_s3 + $0x470] sm:$0xff]  ;;  %v11684_v5 = vmov 0.0  }
 0x470   : > { %v5797_v32 = vpop.f32.mrf.mxu1  ;;  %v11149_v52 = vld [vmem:[#allocation2 + $0x21] sm:$0xff] }
 0x471   : > { %5841 = vst.msk [vmem:[#allocation2 + $0x61] sm:$0xff] %vm368_vm0, %v5833_v63  ;;  %v5832_v48 = vmax.f32 %v5824_v58, 0.0  ;;  %v5827_v29 = vadd.f32 %v7858_v44, %v5813_v3  ;;  %v5812_v13 = vadd.f32 %v5797_v32, %v5667_v20  ;;  %v11154_v57 = vld [vmem:[#allocation2 + $0x20] sm:$0xff]  ;;  %v7892_v30 = vld [vmem:[%s11531_s3 + $0x468] sm:$0xff]  ;;  %v6744_v63 = vld [vmem:[#allocation2 + $0x90] sm:$0xff] }
 0x472   : > { %v11140_v33 = vld [vmem:[#allocation2 + $0x11] sm:$0xff]  ;;  %v11230_v16 = vld [vmem:[#allocation2 + $0x22] sm:$0xff] }
 0x473   : > { %v5884_v46 = vld [vmem:[#allocation2 + $0x10] sm:$0xff]  ;;  %5840 = vst.msk [vmem:[#allocation2 + $0x51] sm:$0xff] %vm368_vm0, %v5832_v48  ;;  %v5835_v36 = vmax.f32 %v5827_v29, 0.0  ;;  %v5826_v42 = vadd.f32 %v7858_v44, %v5812_v13  ;;  %9254 = vmatmul.mubr.msk.f32.vlgmr.msra.gmra.mxu0 %vm368_vm0, %v11140_v33  ;;  %v11683_v44 = vld [vmem:[#allocation19_spill] sm:$0xff]  ;;  %v7228_v32 = vld [vmem:[%s11533_s5 + $0x18] sm:$0xff] }
 0x474   : > { %9274 = vmatmul.mubr.msk.f32.vlgmr.msra.gmra.mxu1 %vm368_vm0, %v5884_v46  ;;  %9286 = vmatpush3.msra.mxu0 %v11682_v56  ;;  %v11175_v10 = vld [vmem:[#allocation2 + $0x41] sm:$0xff]  ;;  %v6158_v62 = vld [vmem:[#allocation2 + $0x12] sm:$0xff] }
 0x475   : > { %9256 = vmatprep.mubr.msk.f32.mxu0 %vm368_vm0, %v11149_v52  ;;  %5843 = vst.msk [vmem:[#allocation2 + $0x81] sm:$0xff] %vm368_vm0, %v5835_v36  ;;  %v5834_v38 = vmax.f32 %v5826_v42, 0.0  ;;  %9276 = vmatprep.mubr.msk.f32.mxu1 %vm368_vm0, %v11154_v57  ;;  %v11177_v1 = vld [vmem:[#allocation2 + $0x40] sm:$0xff]  ;;  %v6889_v58 = vld [vmem:[#allocation2 + $0x91] sm:$0xff]  ;;  %v7226_v29 = vld [vmem:[%s11533_s5 + $0x8] sm:$0xff] }
 0x476   : > { %9287 = vmatprep.subr.mxu0 %v7869_v49  ;;  %v11162_v53 = vld [vmem:[#allocation2 + $0x31] sm:$0xff]  ;;  %9306 = vmatpush3.msra.mxu1 %v11683_v44  ;;  %v11248_v28 = vld [vmem:[#allocation2 + $0x42] sm:$0xff] }
 0x477   : > { %v11164_v55 = vld [vmem:[#allocation2 + $0x30] sm:$0xff]  ;;  %9288 = vmatpush3.msra.mxu0 %v7869_v49  ;;  %5842 = vst.msk [vmem:[#allocation2 + $0x71] sm:$0xff] %vm368_vm0, %v5834_v38  ;;  %9307 = vmatprep.subr.mxu1 %v7873_v0  ;;  %v7891_v20 = vld [vmem:[%s11531_s3 + $0x460] sm:$0xff] }
 0x478   : > { %9257 = vmatmul.mubr.msk.f32.gmra.mxu0 %vm368_vm0, %v11162_v53  ;;  %9277 = vmatmul.mubr.msk.f32.gmra.mxu1 %vm368_vm0, %v11164_v55  ;;  %v11197_v34 = vld [vmem:[#allocation2 + $0x61] sm:$0xff]  ;;  %v11236_v17 = vld [vmem:[#allocation2 + $0x32] sm:$0xff] }
 0x479   : > { %9259 = vmatprep.mubr.msk.f32.mxu0 %vm368_vm0, %v11175_v10  ;;  %9279 = vmatprep.mubr.msk.f32.mxu1 %vm368_vm0, %v11177_v1  ;;  %v11199_v39 = vld [vmem:[#allocation2 + $0x60] sm:$0xff]  ;;  %v7034_v3 = vld [vmem:[#allocation2 + $0x92] sm:$0xff] }
 0x47a   : > { %9289 = vmatprep.subr.mxu0 %v7868_v60  ;;  %v11186_v25 = vld [vmem:[#allocation2 + $0x51] sm:$0xff]  ;;  %9308 = vmatpush3.msra.mxu1 %v7873_v0  ;;  %v11266_v24 = vld [vmem:[#allocation2 + $0x62] sm:$0xff] }
 0x47b   : > { %v11188_v35 = vld [vmem:[#allocation2 + $0x50] sm:$0xff]  ;;  %9290 = vmatpush3.msra.mxu0 %v7868_v60  ;;  %9309 = vmatprep.subr.mxu1 %v7872_v4  ;;  %v7225_v13 = vld [vmem:[%s11533_s5] sm:$0xff] }
 0x47c   : > { %9260 = vmatmul.mubr.msk.f32.gmra.mxu0 %vm368_vm0, %v11186_v25  ;;  %9280 = vmatmul.mubr.msk.f32.gmra.mxu1 %vm368_vm0, %v11188_v35  ;;  %v11254_v26 = vld [vmem:[#allocation2 + $0x52] sm:$0xff]  ;;  %v11277_v14 = vld [vmem:[#allocation2 + $0x80] sm:$0xff] }
 0x47d   : > { %9262 = vmatprep.mubr.msk.f32.mxu0 %vm368_vm0, %v11197_v34  ;;  %9282 = vmatprep.mubr.msk.f32.mxu1 %vm368_vm0, %v11199_v39  ;;  %v6454_v54 = vld [vmem:[#allocation2 + $0x81] sm:$0xff]  ;;  %v7227_v48 = vld [vmem:[%s11533_s5 + $0x10] sm:$0xff] }
 0x47e   : > { %9291 = vmatprep.subr.mxu0 %v7867_v2  ;;  %v11208_v6 = vld [vmem:[#allocation2 + $0x71] sm:$0xff]  ;;  %9310 = vmatpush3.msra.mxu1 %v7872_v4  ;;  %v6599_v47 = vld [vmem:[#allocation2 + $0x82] sm:$0xff] }
 0x47f   : > { %v11210_v19 = vld [vmem:[#allocation2 + $0x70] sm:$0xff]  ;;  %9292 = vmatpush3.msra.mxu0 %v7867_v2  ;;  %9311 = vmatprep.subr.mxu1 %v7871_v40 }
 0x480   : > { %9263 = vmatmul.mubr.msk.f32.gmra.mxu0 %vm368_vm0, %v11208_v6  ;;  %9283 = vmatmul.mubr.msk.f32.gmra.mxu1 %vm368_vm0, %v11210_v19  ;;  %v11275_v59 = vld [vmem:[#allocation2 + $0x72] sm:$0xff] }
 0x481   : > { %9313 = vmatprep.mubr.msk.f32.mxu1 %vm368_vm0, %v5884_v46  ;;  %9293 = vmatprep.mubr.msk.f32.mxu0 %vm368_vm0, %v6157_v51 }
 0x482   : > { %9312 = vmatpush3.msra.mxu1 %v7871_v40  ;;  %9325 = vmatprep.subr.mxu0 %v7878_v41 }
 0x483   : > { %9345 = vmatprep.subr.mxu1 %v7882_v8 }
 0x484   : > { %9294 = vmatmul.mubr.msk.f32.vlgmr.msra.gmra.mxu0 %vm368_vm0, %v6158_v62  ;;  %9314 = vmatmul.mubr.msk.f32.vlgmr.msra.gmra.mxu1 %vm368_vm0, %v11154_v57 }
 0x485   : > { %9326 = vmatpush3.msra.mxu0 %v7878_v41  ;;  %9296 = vmatprep.mubr.msk.f32.mxu0 %vm368_vm0, %v11230_v16 }
 0x486   : > { %9316 = vmatprep.mubr.msk.f32.mxu1 %vm368_vm0, %v11164_v55  ;;  %9327 = vmatprep.subr.mxu0 %v7877_v7 }
 0x487   : > { %9328 = vmatpush3.msra.mxu0 %v7877_v7  ;;  %9346 = vmatpush3.msra.mxu1 %v7882_v8 }
 0x488   : > { %9297 = vmatmul.mubr.msk.f32.gmra.mxu0 %vm368_vm0, %v11236_v17  ;;  %9317 = vmatmul.mubr.msk.f32.gmra.mxu1 %vm368_vm0, %v11177_v1 }
 0x489   : > { %9299 = vmatprep.mubr.msk.f32.mxu0 %vm368_vm0, %v11248_v28  ;;  %9319 = vmatprep.mubr.msk.f32.mxu1 %vm368_vm0, %v11188_v35 }
 0x48a   : > { %9329 = vmatprep.subr.mxu0 %v7876_v15  ;;  %9347 = vmatprep.subr.mxu1 %v7881_v18 }
 0x48b   : > { %9330 = vmatpush3.msra.mxu0 %v7876_v15  ;;  %9348 = vmatpush3.msra.mxu1 %v7881_v18 }
 0x48c   : > { %9300 = vmatmul.mubr.msk.f32.gmra.mxu0 %vm368_vm0, %v11254_v26  ;;  %9320 = vmatmul.mubr.msk.f32.gmra.mxu1 %vm368_vm0, %v11199_v39 }
 0x48d   : > { %9302 = vmatprep.mubr.msk.f32.mxu0 %vm368_vm0, %v11266_v24  ;;  %9322 = vmatprep.mubr.msk.f32.mxu1 %vm368_vm0, %v11210_v19 }
 0x48e   : > { %9331 = vmatprep.subr.mxu0 %v7875_v61  ;;  %9349 = vmatprep.subr.mxu1 %v7880_v23 }
 0x48f   : > { %9332 = vmatpush3.msra.mxu0 %v7875_v61  ;;  %9350 = vmatpush3.msra.mxu1 %v7880_v23 }
 0x490   : > { %9303 = vmatmul.mubr.msk.f32.gmra.mxu0 %vm368_vm0, %v11275_v59  ;;  %9323 = vmatmul.mubr.msk.f32.gmra.mxu1 %vm368_vm0, %v11277_v14 }
 0x491   : > { %9333 = vmatprep.mubr.msk.f32.mxu0 %vm368_vm0, %v11140_v33  ;;  %9353 = vmatprep.mubr.msk.f32.mxu1 %vm368_vm0, %v6158_v62 }
 0x492   : > { %9351 = vmatprep.subr.mxu1 %v7879_v43  ;;  %9365 = vmatprep.subr.mxu0 %v7886_v45 }
 0x493   : > { %9352 = vmatpush3.msra.mxu1 %v7879_v43 }
 0x494   : > { %9334 = vmatmul.mubr.msk.f32.vlgmr.msra.gmra.mxu0 %vm368_vm0, %v11149_v52  ;;  %9354 = vmatmul.mubr.msk.f32.vlgmr.msra.gmra.mxu1 %vm368_vm0, %v11230_v16 }
 0x495   : > { %9366 = vmatpush3.msra.mxu0 %v7886_v45  ;;  %9336 = vmatprep.mubr.msk.f32.mxu0 %vm368_vm0, %v11162_v53 }
 0x496   : > { %9356 = vmatprep.mubr.msk.f32.mxu1 %vm368_vm0, %v11236_v17  ;;  %9367 = vmatprep.subr.mxu0 %v7885_v9 }
 0x497   : > { %9368 = vmatpush3.msra.mxu0 %v7885_v9  ;;  %9385 = vmatprep.subr.mxu1 %v7890_v22 }
 0x498   : > { %9337 = vmatmul.mubr.msk.f32.gmra.mxu0 %vm368_vm0, %v11175_v10  ;;  %9357 = vmatmul.mubr.msk.f32.gmra.mxu1 %vm368_vm0, %v11248_v28 }
 0x499   : > { %9339 = vmatprep.mubr.msk.f32.mxu0 %vm368_vm0, %v11186_v25  ;;  %9359 = vmatprep.mubr.msk.f32.mxu1 %vm368_vm0, %v11254_v26 }
 0x49a   : > { %9369 = vmatprep.subr.mxu0 %v7884_v11  ;;  %9386 = vmatpush3.msra.mxu1 %v7890_v22 }
 0x49b   : > { %9370 = vmatpush3.msra.mxu0 %v7884_v11  ;;  %9387 = vmatprep.subr.mxu1 %v7889_v31 }
 0x49c   : > { %9340 = vmatmul.mubr.msk.f32.gmra.mxu0 %vm368_vm0, %v11197_v34  ;;  %9360 = vmatmul.mubr.msk.f32.gmra.mxu1 %vm368_vm0, %v11266_v24 }
 0x49d   : > { %9342 = vmatprep.mubr.msk.f32.mxu0 %vm368_vm0, %v11208_v6  ;;  %9362 = vmatprep.mubr.msk.f32.mxu1 %vm368_vm0, %v11275_v59 }
 0x49e   : > { %9371 = vmatprep.subr.mxu0 %v7883_v12  ;;  %9388 = vmatpush3.msra.mxu1 %v7889_v31 }
 0x49f   : > { %9372 = vmatpush3.msra.mxu0 %v7883_v12  ;;  %9389 = vmatprep.subr.mxu1 %v7888_v50 }
 0x4a0   : > { %9343 = vmatmul.mubr.msk.f32.gmra.mxu0 %vm368_vm0, %v6454_v54  ;;  %9363 = vmatmul.mubr.msk.f32.gmra.mxu1 %vm368_vm0, %v6599_v47 }
 0x4a1   : > { %9373 = vmatprep.mubr.msk.f32.mxu0 %vm368_vm0, %v11154_v57  ;;  %9390 = vmatpush3.msra.mxu1 %v7888_v50 }
 0x4a2   : > { %9393 = vmatprep.mubr.msk.f32.mxu1 %vm368_vm0, %v11149_v52  ;;  %9391 = vmatprep.subr.mxu1 %v7887_v37 }
 0x4a3   : > { %9392 = vmatpush3.msra.mxu1 %v7887_v37  ;;  %9405 = vmatprep.subr.mxu0 %v7894_v27 }
 0x4a4   : > { %9374 = vmatmul.mubr.msk.f32.vlgmr.msra.gmra.mxu0 %vm368_vm0, %v11164_v55  ;;  %9394 = vmatmul.mubr.msk.f32.vlgmr.msra.gmra.mxu1 %vm368_vm0, %v11162_v53 }
 0x4a5   : > { %9406 = vmatpush3.msra.mxu0 %v7894_v27  ;;  %9376 = vmatprep.mubr.msk.f32.mxu0 %vm368_vm0, %v11177_v1 }
 0x4a6   : > { %9396 = vmatprep.mubr.msk.f32.mxu1 %vm368_vm0, %v11175_v10  ;;  %9407 = vmatprep.subr.mxu0 %v7893_v21 }
 0x4a7   : > { %9408 = vmatpush3.msra.mxu0 %v7893_v21  ;;  %9425 = vmatprep.subr.mxu1 %v11684_v5 }
 0x4a8   : > { %9377 = vmatmul.mubr.msk.f32.gmra.mxu0 %vm368_vm0, %v11188_v35  ;;  %9397 = vmatmul.mubr.msk.f32.gmra.mxu1 %vm368_vm0, %v11186_v25 }
 0x4a9   : > { %9379 = vmatprep.mubr.msk.f32.mxu0 %vm368_vm0, %v11199_v39  ;;  %9399 = vmatprep.mubr.msk.f32.mxu1 %vm368_vm0, %v11197_v34 }
 0x4aa   : > { %9409 = vmatprep.subr.mxu0 %v7892_v30  ;;  %9426 = vmatpush3.msra.mxu1 %v7228_v32 }
 0x4ab   : > { %9410 = vmatpush3.msra.mxu0 %v7892_v30  ;;  %9427 = vmatprep.subr.mxu1 %v11684_v5 }
 0x4ac   : > { %9380 = vmatmul.mubr.msk.f32.gmra.mxu0 %vm368_vm0, %v11210_v19  ;;  %9400 = vmatmul.mubr.msk.f32.gmra.mxu1 %vm368_vm0, %v11208_v6 }
 0x4ad   : > { %9382 = vmatprep.mubr.msk.f32.mxu0 %vm368_vm0, %v11277_v14  ;;  %9402 = vmatprep.mubr.msk.f32.mxu1 %vm368_vm0, %v6454_v54 }
 0x4ae   : > { %9411 = vmatprep.subr.mxu0 %v7891_v20  ;;  %9428 = vmatpush3.msra.mxu1 %v7227_v48 }
 0x4af   : > { %9412 = vmatpush3.msra.mxu0 %v7891_v20  ;;  %9429 = vmatprep.subr.mxu1 %v11684_v5 }
 0x4b0   : > { %9383 = vmatmul.mubr.msk.f32.gmra.mxu0 %vm368_vm0, %v6744_v63  ;;  %9403 = vmatmul.mubr.msk.f32.gmra.mxu1 %vm368_vm0, %v6889_v58 }
 0x4b1   : > { %9413 = vmatprep.mubr.msk.f32.mxu0 %vm368_vm0, %v11230_v16  ;;  %9430 = vmatpush3.msra.mxu1 %v7226_v29 }
 0x4b2   : > { %9431 = vmatprep.subr.mxu1 %v11684_v5  ;;  %9433 = vmatprep.mubr.msk.f32.mxu1 %vm9557_vm2, %v11684_v5 }
 0x4b3   : > { %9432 = vmatpush3.msra.mxu1 %v7225_v13 }
 0x4b4   : > { %9414 = vmatmul.mubr.msk.f32.vlgmr.msra.gmra.mxu0 %vm368_vm0, %v11236_v17  ;;  %9436 = vmatprep.subr.mxu1 %v11684_v5 }
 0x4b5   : > { %9416 = vmatprep.mubr.msk.f32.mxu0 %vm368_vm0, %v11248_v28 }
 0x4b8   : > { %9417 = vmatmul.mubr.msk.f32.gmra.mxu0 %vm368_vm0, %v11254_v26 }
 0x4b9   : > { %9419 = vmatprep.mubr.msk.f32.mxu0 %vm368_vm0, %v11266_v24 }
 0x4bc   : > { %9420 = vmatmul.mubr.msk.f32.gmra.mxu0 %vm368_vm0, %v11275_v59 }
 0x4bd   : > { %9422 = vmatprep.mubr.msk.f32.mxu0 %vm368_vm0, %v6599_v47 }
 0x4c0   : > { %9423 = vmatmul.mubr.msk.f32.gmra.mxu0 %vm368_vm0, %v7034_v3 }
 0x533   : > { %v9255_v33 = vpop.f32.mrf.mxu0 }
 0x534   : > { %v9275_v46 = vpop.f32.mrf.mxu1 }
 0x535   : > { %v5989_v49 = vpop.f32.mrf.mxu0  ;;  %v6124_v31 = vadd.f32 %v9275_v46, %v9255_v33 }
 0x536   : > { %v6118_v36 = vpop.f32.mrf.mxu1 }
 0x537   : > { %v6119_v54 = vadd.f32 %v6118_v36, %v5989_v49 }
 0x538   : > { %v9258_v42 = vpop.f32.mrf.mxu0  ;;  %v9278_v52 = vpop.f32.mrf.mxu1 }
 0x539   : > { %v6134_v21 = vadd.f32 %v9278_v52, %v9258_v42 }
 0x53a   : > { %v5999_v56 = vpop.f32.mrf.mxu0  ;;  %v6128_v57 = vpop.f32.mrf.mxu1 }
 0x53b   : > { %v6129_v63 = vadd.f32 %v6128_v57, %v5999_v56 }
 0x53c   : > { %v9261_v38 = vpop.f32.mrf.mxu0  ;;  %v9281_v60 = vpop.f32.mrf.mxu1 }
 0x53e   : > { %v6009_v53 = vpop.f32.mrf.mxu0  ;;  %v6138_v55 = vpop.f32.mrf.mxu1 }
 0x53f   : > { %v6139_v33 = vadd.f32 %v6138_v55, %v6009_v53 }
 0x540   : > { %v9264_v44 = vpop.f32.mrf.mxu0  ;;  %v9284_v0 = vpop.f32.mrf.mxu1 }
 0x541   : > { %v6154_v36 = vadd.f32 %v9284_v0, %v9264_v44 }
 0x542   : > { %v11410_v10 = vpop.f32.mrf.mxu0  ;;  %v6148_v1 = vpop.f32.mrf.mxu1 }
 0x543   : > { %v6149_v57 = vadd.f32 %v6148_v1, %v11410_v10 }
 0x544   : > { %v9295_v2 = vpop.f32.mrf.mxu0  ;;  %v9315_v25 = vpop.f32.mrf.mxu1 }
 0x545   : > { %v6295_v47 = vadd.f32 %v9295_v2, %v6124_v31 }
 0x546   : > { %v6255_v35 = vpop.f32.mrf.mxu0  ;;  %v6400_v4 = vpop.f32.mrf.mxu1 }
 0x547   : > { %v6294_v30 = vadd.f32 %v6255_v35, %v6119_v54  ;;  %v6440_v58 = vadd.f32 %v9315_v25, %v6295_v47 }
 0x548   : > { %v9298_v34 = vpop.f32.mrf.mxu0  ;;  %v9318_v39 = vpop.f32.mrf.mxu1 }
 0x549   : > { %v6297_v3 = vadd.f32 %v9298_v34, %v6134_v21  ;;  %v6439_v29 = vadd.f32 %v6400_v4, %v6294_v30 }
 0x54a   : > { %v6265_v40 = vpop.f32.mrf.mxu0  ;;  %v6410_v6 = vpop.f32.mrf.mxu1 }
 0x54b   : > { %v6296_v13 = vadd.f32 %v6265_v40, %v6129_v63 }
 0x54c   : > { %v9301_v19 = vpop.f32.mrf.mxu0  ;;  %v9321_v51 = vpop.f32.mrf.mxu1 }
 0x54d   : > { %v6441_v52 = vadd.f32 %v6410_v6, %v6296_v13  ;;  %v11693_v13 = vld [vmem:[#allocation22_spill] sm:$0xff] }
 0x54e   : > { %v6275_v41 = vpop.f32.mrf.mxu0  ;;  %v6420_v8 = vpop.f32.mrf.mxu1 }
 0x54f   : > { %v6298_v31 = vadd.f32 %v6275_v41, %v6139_v33  ;;  %v11694_v33 = vmax.f32 %v11693_v13, 0.0 }
 0x550   : > { %v9304_v62 = vpop.f32.mrf.mxu0  ;;  %v9324_v7 = vpop.f32.mrf.mxu1 }
 0x551   : > { %v6301_v25 = vadd.f32 %v9304_v62, %v6154_v36  ;;  %v6443_v53 = vadd.f32 %v6420_v8, %v6298_v31 }
 0x552   : > { %v6285_v16 = vpop.f32.mrf.mxu0  ;;  %v11412_v17 = vpop.f32.mrf.mxu1 }
 0x553   : > { %v6300_v55 = vadd.f32 %v6285_v16, %v6149_v57  ;;  %v6446_v0 = vadd.f32 %v9324_v7, %v6301_v25  ;;  %v11695_v25 = vld [vmem:[#allocation15_spill] sm:$0xff] }
 0x554   : > { %v9335_v15 = vpop.f32.mrf.mxu0  ;;  %v9355_v18 = vpop.f32.mrf.mxu1 }
 0x555   : > { %v6585_v5 = vadd.f32 %v9335_v15, %v6440_v58  ;;  %v6445_v1 = vadd.f32 %v11412_v17, %v6300_v55  ;;  %v11697_v55 = vld [vmem:[#allocation23_spill] sm:$0xff] }
 0x556   : > { %v6545_v28 = vpop.f32.mrf.mxu0  ;;  %v6690_v26 = vpop.f32.mrf.mxu1 }
 0x557   : > { %v6730_v35 = vadd.f32 %v9355_v18, %v6585_v5 }
 0x558   : > { %v9338_v61 = vpop.f32.mrf.mxu0  ;;  %v9358_v23 = vpop.f32.mrf.mxu1 }
 0x55a   : > { %v6555_v24 = vpop.f32.mrf.mxu0  ;;  %v6700_v43 = vpop.f32.mrf.mxu1 }
 0x55b   : > { %v6586_v40 = vadd.f32 %v6555_v24, %v6441_v52 }
 0x55c   : > { %v9341_v59 = vpop.f32.mrf.mxu0  ;;  %v11414_v14 = vpop.f32.mrf.mxu1 }
 0x55d   : > { %v6731_v5 = vadd.f32 %v6700_v43, %v6586_v40 }
 0x55e   : > { %v6565_v45 = vpop.f32.mrf.mxu0  ;;  %v11416_v9 = vpop.f32.mrf.mxu1 }
 0x55f   : > { %11685 = vst [vmem:[#allocation9_spill] sm:$0xff] %v11416_v9  ;;  %v6442_v9 = vadd.f32 %v9318_v39, %v6297_v3  ;;  %v6588_v41 = vadd.f32 %v6565_v45, %v6443_v53 }
 0x560   : > { %v9344_v22 = vpop.f32.mrf.mxu0  ;;  %v11418_v11 = vpop.f32.mrf.mxu1 }
 0x561   : > { %11686 = vst [vmem:[#allocation10_spill] sm:$0xff] %v11418_v11  ;;  %v6144_v11 = vadd.f32 %v9281_v60, %v9261_v38  ;;  %v6587_v56 = vadd.f32 %v9338_v61, %v6442_v9  ;;  %v6591_v62 = vadd.f32 %v9344_v22, %v6446_v0 }
 0x562   : > { %v6575_v12 = vpop.f32.mrf.mxu0  ;;  %v11420_v50 = vpop.f32.mrf.mxu1 }
 0x563   : > { %11687 = vst [vmem:[#allocation21_spill] sm:$0xff] %v11420_v50  ;;  %v6584_v50 = vadd.f32 %v6545_v28, %v6439_v29  ;;  %v6299_v2 = vadd.f32 %v9301_v19, %v6144_v11  ;;  %v6732_v28 = vadd.f32 %v9358_v23, %v6587_v56  ;;  %v6590_v43 = vadd.f32 %v6575_v12, %v6445_v1 }
 0x564   : > { %v9375_v37 = vpop.f32.mrf.mxu0  ;;  %v9395_v27 = vpop.f32.mrf.mxu1 }
 0x565   : > { %v6729_v4 = vadd.f32 %v6690_v26, %v6584_v50  ;;  %v6875_v15 = vadd.f32 %v9375_v37, %v6730_v35  ;;  %v6444_v60 = vadd.f32 %v9321_v51, %v6299_v2  ;;  %v11427_v51 = vld [vmem:[%s11532_s4 + $0x3] ss:$0 sm:$0xff] }
 0x566   : > { %v6835_v20 = vpop.f32.mrf.mxu0  ;;  %v6980_v32 = vpop.f32.mrf.mxu1  ;;  %v11688_v24 = vld [vmem:[#allocation9_spill] sm:$0xff] }
 0x567   : > { %v6874_v44 = vadd.f32 %v6835_v20, %v6729_v4  ;;  %v6589_v19 = vadd.f32 %v9341_v59, %v6444_v60  ;;  %v7020_v18 = vadd.f32 %v9395_v27, %v6875_v15  ;;  %v6733_v59 = vadd.f32 %v11688_v24, %v6588_v41  ;;  %v11690_v20 = vld [vmem:[#allocation12_spill] sm:$0xff] }
 0x568   : > { %v9378_v48 = vpop.f32.mrf.mxu0  ;;  %v9398_v49 = vpop.f32.mrf.mxu1  ;;  %v11689_v50 = vld [vmem:[#allocation10_spill] sm:$0xff]  ;;  %v11691_v63 = vmax.f32 %v11690_v20, 0.0 }
 0x569   : > { %v6877_v61 = vadd.f32 %v9378_v48, %v6732_v28  ;;  %v7019_v16 = vadd.f32 %v6980_v32, %v6874_v44  ;;  %v6734_v7 = vadd.f32 %v11414_v14, %v6589_v19  ;;  %v6736_v54 = vadd.f32 %v11689_v50, %v6591_v62  ;;  %v11699_v62 = vld [vmem:[#allocation13_spill] sm:$0xff]  ;;  %v11703_v50 = vld [vmem:[#allocation16_spill] sm:$0xff] }
 0x56a   : > { %v6845_v46 = vpop.f32.mrf.mxu0  ;;  %v6990_v38 = vpop.f32.mrf.mxu1  ;;  %v11692_v12 = vld [vmem:[#allocation21_spill] sm:$0xff] }
 0x56b   : > { %v6876_v26 = vadd.f32 %v6845_v46, %v6731_v5  ;;  %v7022_v9 = vadd.f32 %v9398_v49, %v6877_v61  ;;  %v6735_v32 = vadd.f32 %v11692_v12, %v6590_v43 }
 0x56c   : > { %v9381_v42 = vpop.f32.mrf.mxu0  ;;  %v9401_v10 = vpop.f32.mrf.mxu1 }
 0x56d   : > { %v6879_v47 = vadd.f32 %v9381_v42, %v6734_v7  ;;  %v7021_v21 = vadd.f32 %v6990_v38, %v6876_v26  ;;  %v11701_v7 = vld [vmem:[#allocation14_spill] sm:$0xff] }
 0x56e   : > { %v6855_v34 = vpop.f32.mrf.mxu0  ;;  %v7000_v11 = vpop.f32.mrf.mxu1  ;;  %v11702_v24 = vmax.f32 %v11701_v7, 0.0 }
 0x56f   : > { %v6878_v37 = vadd.f32 %v6855_v34, %v6733_v59  ;;  %v7024_v2 = vadd.f32 %v9401_v10, %v6879_v47  ;;  %v11696_v34 = vmax.f32 %v11695_v25, 0.0  ;;  %v7315_v25 = vld [vmem:[%s11535_s7] sm:$0xff] }
 0x570   : > { %v9384_v39 = vpop.f32.mrf.mxu0  ;;  %v9404_v30 = vpop.f32.mrf.mxu1 }
 0x571   : > { %v6881_v29 = vadd.f32 %v9384_v39, %v6736_v54  ;;  %v7023_v31 = vadd.f32 %v7000_v11, %v6878_v37  ;;  %v11698_v39 = vmax.f32 %v11697_v55, 0.0  ;;  %v11704_v54 = vmax.f32 %v11703_v50, 0.0 }
 0x572   : > { %v6865_v6 = vpop.f32.mrf.mxu0  ;;  %v7010_v35 = vpop.f32.mrf.mxu1 }
 0x573   : > { %v6880_v42 = vadd.f32 %v6865_v6, %v6735_v32  ;;  %v7026_v60 = vadd.f32 %v9404_v30, %v6881_v29  ;;  %v11705_v30 = vld [vmem:[#allocation17_spill] sm:$0xff] }
 0x574   : > { %v9415_v8 = vpop.f32.mrf.mxu0  ;;  %v11706_v20 = vmax.f32 %v11705_v30, 0.0 }
 0x575   : > { %v7165_v23 = vadd.f32 %v9415_v8, %v7020_v18  ;;  %v7025_v0 = vadd.f32 %v7010_v35, %v6880_v42  ;;  %v11700_v8 = vmax.f32 %v11699_v62, 0.0  ;;  %v7317_v35 = vld [vmem:[%s11535_s7 + $0x10] sm:$0xff] }
 0x576   : > { %v7125_v45 = vpop.f32.mrf.mxu0 }
 0x577   : > { %v7179_v17 = vadd.f32 %v11427_v51, %v7165_v23  ;;  %v7164_v22 = vadd.f32 %v7125_v45, %v7019_v16 }
 0x578   : > { %v9418_v27 = vpop.f32.mrf.mxu0 }
 0x579   : > { %v7187_v58 = vadd.f32 %v7179_v17, %v11691_v63  ;;  %v7178_v14 = vadd.f32 %v11427_v51, %v7164_v22  ;;  %v7167_v3 = vadd.f32 %v9418_v27, %v7022_v9 }
 0x57a   : > { %v7135_v48 = vpop.f32.mrf.mxu0 }
 0x57b   : > { %v7186_v46 = vadd.f32 %v7178_v14, %v11694_v33  ;;  %v7181_v49 = vadd.f32 %v11427_v51, %v7167_v3  ;;  %v7166_v36 = vadd.f32 %v7135_v48, %v7021_v21  ;;  %v7195_v56 = vmax.f32 %v7187_v58, 0.0 }
 0x57c   : > { %v9421_v52 = vpop.f32.mrf.mxu0 }
 0x57d   : > { %v7194_v57 = vmax.f32 %v7186_v46, 0.0  ;;  %v7189_v4 = vadd.f32 %v7181_v49, %v11696_v34  ;;  %v7180_v40 = vadd.f32 %v11427_v51, %v7166_v36  ;;  %v7169_v15 = vadd.f32 %v9421_v52, %v7024_v2  ;;  %v7318_v52 = vld [vmem:[%s11535_s7 + $0x18] sm:$0xff]  ;;  %v7229_v34 = vld [vmem:[%s11534_s6] sm:$0x1] }
 0x57e   : > { %v7145_v38 = vpop.f32.mrf.mxu0  ;;  %v7203_v5 = vsel %vm368_vm0, %v7195_v56, 0.0  ;;  %v11707_v56 = vmov 0.0  }
 0x57f   : > { %v7202_v53 = vsel %vm368_vm0, %v7194_v57, 0.0  ;;  %v7188_v28 = vadd.f32 %v7180_v40, %v11698_v39  ;;  %v7168_v44 = vadd.f32 %v7145_v38, %v7023_v31  ;;  %v7197_v19 = vmax.f32 %v7189_v4, 0.0  ;;  %v7316_v57 = vld [vmem:[%s11535_s7 + $0x8] sm:$0xff] }
 0x580   : > { %v7183_v41 = vadd.f32 %v11427_v51, %v7169_v15  ;;  %v9424_v6 = vpop.f32.mrf.mxu0  ;;  %v7204_v1 = vadd.f32 %v7203_v5, %v7202_v53 }
 0x581   : > { %v7196_v18 = vmax.f32 %v7188_v28, 0.0  ;;  %v7182_v61 = vadd.f32 %v11427_v51, %v7168_v44  ;;  %v7171_v10 = vadd.f32 %v9424_v6, %v7026_v60  ;;  %v7207_v9 = vsel %vm368_vm0, %v7197_v19, 0.0  ;;  %v7319_v60 = vld [vmem:[#allocation3] sm:$0x1] }
 0x582   : > { %v7191_v16 = vadd.f32 %v7183_v41, %v11700_v8  ;;  %v7155_v26 = vpop.f32.mrf.mxu0 }
 0x583   : > { %v7205_v23 = vsel %vm368_vm0, %v7196_v18, 0.0  ;;  %v7190_v59 = vadd.f32 %v7182_v61, %v11702_v24  ;;  %v7185_v43 = vadd.f32 %v11427_v51, %v7171_v10  ;;  %v7170_v45 = vadd.f32 %v7155_v26, %v7025_v0 }
 0x584   : > { %v7206_v11 = vadd.f32 %v7205_v23, %v7204_v1  ;;  %v7199_v17 = vmax.f32 %v7191_v16, 0.0 }
 0x585   : > { %v7198_v22 = vmax.f32 %v7190_v59, 0.0  ;;  %v7193_v47 = vadd.f32 %v7185_v43, %v11704_v54  ;;  %v7184_v37 = vadd.f32 %v11427_v51, %v7170_v45 }
 0x586   : > { %v7208_v27 = vadd.f32 %v7207_v9, %v7206_v11  ;;  %v7211_v14 = vsel %vm368_vm0, %v7199_v17, 0.0 }
 0x587   : > { %v7209_v21 = vsel %vm368_vm0, %v7198_v22, 0.0  ;;  %v7192_v63 = vadd.f32 %v7184_v37, %v11706_v20  ;;  %v7201_v3 = vmax.f32 %v7193_v47, 0.0 }
 0x588   : > { %v7210_v58 = vadd.f32 %v7209_v21, %v7208_v27 }
 0x589   : > { %v7200_v12 = vmax.f32 %v7192_v63, 0.0  ;;  %v7215_v13 = vsel %vm368_vm0, %v7201_v3, 0.0 }
 0x58a   : > { %v7212_v32 = vadd.f32 %v7211_v14, %v7210_v58 }
 0x58b   : > { %v7213_v48 = vsel %vm368_vm0, %v7200_v12, 0.0 }
 0x58c   : > { %v7214_v29 = vadd.f32 %v7213_v48, %v7212_v32 }
 0x58e   : > { %v7216_v33 = vadd.f32 %v7215_v13, %v7214_v29 }
 0x590   : > { %v7217_v46 = vrot.slane %v7216_v33, 4 }
 0x592   : > { %v7218_v51 = vadd.f32 %v7217_v46, %v7216_v33 }
 0x594   : > { %v7219_v49 = vrot.slane %v7218_v51, 2 }
 0x596   : > { %v7220_v36 = vadd.f32 %v7219_v49, %v7218_v51 }
 0x598   : > { %v7221_v2 = vrot.slane %v7220_v36, 1 }
 0x59a   : > { %v7222_v31 = vadd.f32 %v7221_v2, %v7220_v36 }
 0x59c   : > { %v7224_v42 = vmul.f32 0.015625, %v7222_v31 }
 0x59e   : > { %9434 = vmatmul.mubr.msk.f32.vlgmr.msra.gmra.mxu1 %vm368_vm0, %v7224_v42 }
 0x59f   : > { %9437 = vmatpush3.msra.mxu1 %v7318_v52  ;;  %9444 = vmatprep.mubr.msk.f32.mxu1 %vm9557_vm2, %v11707_v56 }
 0x5a0   : > { %9438 = vmatprep.subr.mxu1 %v11707_v56 }
 0x5a1   : > { %9439 = vmatpush3.msra.mxu1 %v7317_v35 }
 0x5a2   : > { %9440 = vmatprep.subr.mxu1 %v11707_v56 }
 0x5a3   : > { %9441 = vmatpush3.msra.mxu1 %v7316_v57 }
 0x5a4   : > { %9442 = vmatprep.subr.mxu1 %v11707_v56 }
 0x5a5   : > { %9443 = vmatpush3.msra.mxu1 %v7315_v25 }
 0x5a6   : > { %9445 = vmatmul.mubr.msk.f32.vlgmr.msra.gmra.mxu1 %vm368_vm0, %v7224_v42 }
 0x65e   : > { %v7299_v4 = vpop.f32.mrf.mxu1 }
 0x65f   : > { %v7300_v40 = vadd.f32 %v7299_v4, %v7229_v34 }
 0x660   : > { %v9435_v15 = vpop.f32.mrf.mxu1 }
 0x661   : > { %v7304_v38 = vsel %vm7303_vm3, %v7300_v40, -inf }
 0x662   : > { %7305 = vmax.xlane.f32.xlu0 %v7304_v38 }
 0x666   : > { %v7386_v53 = vpop.f32.mrf.mxu1 }
 0x667   : > { %v7387_v55 = vadd.f32 %v7386_v53, %v7319_v60 }
 0x668   : > { %v9446_v39 = vpop.f32.mrf.mxu1 }
 0x669   : > { %9488 = vtanh.f32 %v7387_v55 }
 0x676   : > { %v9489_v28 = vpop.eup %9488 }
 0x677   : > { %7393 = vst.msk [vmem:[%s367_s19] sm:$0x1] %vm7392_vm4, %v9489_v28 }
 0x6eb   : > { %v7306_v44 = vpop.xlane.xlu0 %7305 }
 0x6ec   : > { %v7307_v0 = vsub.f32 %v7300_v40, %v7306_v44 }
 0x6ee   : > { %v7308_v19 = vmul.f32 1.442695, %v7307_v0 }
 0x6f0   : > { %9490 = vpow2.f32 %v7308_v19 }
 0x6fd   : > { %v9491_v41 = vpop.eup %9490 }
 0x6fe   : > { %v7310_v6 = vsel %vm7303_vm3, %v9491_v41, 0.0 }
 0x6ff   : > { %7311 = vadd.xlane.f32.xlu0 %v7310_v6 }
 0x788   : > { %v7312_v5 = vpop.xlane.xlu0 %7311 }
 0x789   : > { %9492 = vrcp.f32 %v7312_v5 }
 0x796   : > { %v9493_v18 = vpop.eup %9492 }
 0x797   : > { %v7314_v61 = vmul.f32 %v9493_v18, %v9491_v41 }
 0x799   : > { %7391 = vst.msk [vmem:[%s354_s27] sm:$0x1] %vm7303_vm3, %v7314_v61 }
 0x79a   : > { %9507 = shalt.err (!%p9504_p3)
}
 0x79b   : > { %s9508_s19 = scalar_lea.hbm %s7408_s30, 16  ;;  %s9512_s27 = scalar_lea.hbm %s11537_s9, 32 }
 0x79c   : > { %p9509_p4 = scmp.ne.s32.totalorder %s7408_s30, %s9508_s19  ;;  %p9513_p9 = scmp.lt.s32.totalorder %s7408_s30, %s11537_s9 }
 0x79d   : > { %p9514_p10 = scmp.lt.s32.totalorder %s9512_s27, %s9508_s19 }
 0x79e   : > { %p9510_p7 = pnand %p9509_p4, %p9655_p5 }
 0x79f   : > { %p9515_p11 = por %p9514_p10, %p9513_p9 }
 0x7a0   : > { %p9511_p8 = pneg %p9510_p7 }
 0x7a2   : > { %p9516_p12 = pnand %p9515_p11, %p9511_p8 }
 0x7a4   : > { %9519 = shalt.err (!%p9516_p12)
}
 0x7a5   : > { %9447 = dma.vmem_to_hbm [thread:$0]  (%p9655_p5), %s7411_s28, 16, %s7408_s30, %s7395_s11  }
 0x7a6 PF: > { %p9453_p13 = scmp.ge.s32.totalorder %s9554_s18, 2  ;;  %s7425_s12 = sand.u32 1, %s9542_s15  }
 0x7a7   : > { %s7426_s13 = scalar_lea.sflag [#allocation5], %s7425_s12 }
 0x7a8   : > { %p9450_p0 = pnand %p9453_p13, %p9659_p6 }
 0x7aa   : > { %p9451_p1 = pneg %p9450_p0 }
 0x7ac   : > { %9537 = dma.done.wait (%p9451_p1), %s7426_s13, 16  }
 0x7ad   : > { %9539 = vsyncadd (%p9451_p1), %s7426_s13, 4294967280  ;;  %p23_p2 = scmp.ge.s32.totalorder %s9642_s20, 4   ;;  %s11708_s15 = smov %s9546_s16 }
 0x7ae   : > { %s11709_s16 = smov %s9550_s17  ;;  %s11710_s17 = smov %s9653_s23 }
 0x7af   : > { %s11711_s18 = smov %s9642_s20  ;;  %25 = sbr.rel (!%p23_p2) target bundleno = 6 (0x6), region = 111 }
 0x7b4   :  { %7436 = vsyncpa [#allocation5], 1 }
 0x7b5   :  { %7438 = vsyncpa [#allocation5 + $0x1], 1 }

// kernel: tpu_custom_call.1
= control target key start
LH: loop header
LB: loop body
LE: loop exit
PB: predicated region body
PF: predicated region fallthrough
CT: control target
= control target key end

     0   :  { %8 = vsyncpa [#allocation3], 0  ;;  %s2443_s0 = inlined_call_operand.vmem [shape: f32[2,10,10,4], index: 0, kind: input, shape index: {}]   ;;  %s2444_s1 = inlined_call_operand.vmem [shape: f32[3,3,4,32], index: 1, kind: input, shape index: {}]   ;;  %s2445_s2 = inlined_call_operand.vmem [shape: f32[1,32], index: 2, kind: input, shape index: {}]   ;;  %s2446_s3 = inlined_call_operand.hbm [shape: f32[2,8,8,32], index: 3, kind: output, shape index: {}]  }
   0x1   :  { %10 = vsyncpa [#allocation3 + $0x1], 0  ;;  %s2100_s12 = smov 0   ;;  %s2102_s13 = smov 0  }
   0x2   :  { %s2104_s14 = smov 0   ;;  %s2106_s15 = smov 0  }
   0x3 LB: > { %s2121_s16 = sadd.s32 4294967295, %s2075_s15   ;;  %s1614_s17 = sadd.s32 4294967294, %s2075_s15   ;;  %s2075_s15 = sphi %s2106_s15, %s2452_s15   ;;  %s2071_s14 = sphi %s2104_s14, %s2451_s14   ;;  %s2067_s13 = sphi %s2102_s13, %s2450_s13   ;;  %s2063_s12 = sphi %s2100_s12, %s2449_s12  }
   0x4   : > { %s2125_s18 = sadd.s32 1, %s2075_s15   ;;  %s91_s19 = sadd.s32 1, %s2071_s14 }
   0x5   : > { %s88_s20 = ssub.s32 %s2075_s15, %s2125_s18  ;;  %p101_p0 = scmp.ne.s32.totalorder %s2071_s14, %s2067_s13 }
   0x6   : > { %p89_p1 = scmp.eq.s32.totalorder %s88_s20, 0  ;;  %p102_p2 = scmp.eq.s32.totalorder %s2121_s16, 1 }
   0x7   : > { %p107_p3 = scmp.ne.s32.totalorder %s2067_s13, %s2063_s12  ;;  %p108_p4 = scmp.eq.s32.totalorder %s1614_s17, 1 }
   0x8   : > { %s2136_s21 = scalar_select %p89_p1, %s2071_s14, %s91_s19  }
   0x9   : > { %p2138_p5 = por %p102_p2, %p101_p0  ;;  %p2142_p6 = por %p108_p4, %p107_p3 }
   0xa   : > { %p1617_p7 = scmp.ge.s32.totalorder %s2075_s15, 1  ;;  %p140_p8 = scmp.lt.s32.totalorder %s2075_s15, 3 }
   0xc   : > { %p141_p9 = pnand %p1617_p7, %p140_p8 }
   0xd   : > { %p164_p10 = scmp.lt.s32.totalorder (!%p141_p9), %s2121_s16, 1  ;;  %s161_s29 = sand.u32 (!%p141_p9), 1, %s2067_s13  }
   0xe   : > { %144 = sbr.rel (%p141_p9) target bundleno = 312 (0x138), region = 32  ;;  %s1618_s5 = sshll.u32 (!%p141_p9), %s161_s29, 6 }
   0xf   : > { %s2368_s6 = scalar_lea.vmem (!%p141_p9), [#allocation2], %s1618_s5  ;;  %s2077_s19 = smov (!%p141_p9), [#allocation2]  }
  0x10   : > { %s1552_s8 = sshll.u32 (!%p141_p9), %s2368_s6, 4  ;;  %s2019_s20 = sshll.u32 (!%p141_p9), %s2077_s19, 4  ;;  %s2395_s8 = int_to_ptr.vmem [resolvable:$true] %s1552_s8  ;;  %s2020_s20 = int_to_ptr.vmem [resolvable:$false] %s2019_s20 }
  0x11   : > { %s2015_s17 = scalar_lea.vmem (!%p141_p9), %s2395_s8, 1024  ;;  %s2021_s24 = scalar_lea.vmem (!%p141_p9), %s2020_s20, 2048 }
  0x12   : > { %p2016_p11 = scmp.ne.s32.totalorder (!%p141_p9), %s2395_s8, %s2015_s17  ;;  %p2022_p0 = scmp.lt.s32.totalorder (!%p141_p9), %s2395_s8, %s2020_s20 }
  0x13   : > { %v1620_v0 = vld [vmem:[%s2444_s1 + $0x4] sm:$0xf]  ;;  %vm213_vm0 = vcmask 1043456   ;;  %v177_v1 = vld [vmem:[%s2444_s1] sm:$0xf]  ;;  %s165_s30 = scalar_select %p164_p10, %s2121_s16, 1 }
  0x14   : > { %1971 = vmatprep.subr.msk.mxu1 %vm213_vm0, %v1620_v0  ;;  %1845 = vmatprep.subr.msk.mxu0 %vm213_vm0, %v1620_v0  ;;  %v1639_v2 = vld [vmem:[%s2444_s1 + $0x8] sm:$0xf]  ;;  %vm188_vm1 = vcmask 31744   ;;  %v1657_v9 = vld [vmem:[%s2444_s1 + $0xc] sm:$0xf]  ;;  %vm1529_vm2 = vcmask 261120   ;;  %p2017_p12 = pnand %p2016_p11, %p2138_p5  ;;  %p2023_p1 = scmp.lt.s32.totalorder %s2021_s24, %s2015_s17 }
  0x15   : > { %1972 = vmatpush3.msk.msra.mxu1 %vm213_vm0, %v1620_v0  ;;  %1846 = vmatpush3.msk.msra.mxu0 %vm213_vm0, %v1620_v0  ;;  %s1973_s4 = smul.u32 160, %s165_s30  ;;  %v1675_v10 = vld [vmem:[%s2444_s1 + $0x10] sm:$0xf]  ;;  %v1693_v19 = vld [vmem:[%s2444_s1 + $0x14] sm:$0xf] }
  0x16   : > { %1859 = vmatprep.subr.msk.mxu1 %vm213_vm0, %v177_v1  ;;  %1873 = vmatprep.subr.msk.mxu0 %vm213_vm0, %v1639_v2  ;;  %v1711_v20 = vld [vmem:[%s2444_s1 + $0x18] sm:$0xf]  ;;  %v1729_v31 = vld [vmem:[%s2444_s1 + $0x1c] sm:$0xf]  ;;  %v1747_v32 = vld [vmem:[%s2444_s1 + $0x20] sm:$0xf]  ;;  %p2018_p13 = pneg %p2017_p12  ;;  %p2024_p2 = por %p2023_p1, %p2022_p0 }
  0x17   : > { %s2168_s7 = scalar_lea.vmem %s2443_s0, %s1973_s4 }
  0x18   : > { %v178_v3 = vld [vmem:[%s2168_s7 + $0x1] sm:$0xff]  ;;  %v179_v5 = vld [vmem:[%s2168_s7 + $0x11] sm:$0xff]  ;;  %p2025_p3 = pnand %p2024_p2, %p2018_p13 }
  0x19   : > { %v2172_v4 = vld [vmem:[%s2168_s7 + $0x41] sm:$0xff]  ;;  %1847 = vmatprep.mubr.msk.f32.mxu0 %vm188_vm1, %v178_v3  ;;  %v2179_v6 = vld [vmem:[%s2168_s7 + $0x51] sm:$0xff] }
  0x1a   : > { %1853 = vmatprep.mubr.msk.f32.mxu1 %vm188_vm1, %v2172_v4  ;;  %v2182_v7 = vld [vmem:[%s2168_s7 + $0x21] sm:$0xff]  ;;  %1848 = vmatmul.mubr.msk.f32.vlgmr.msra.gmra.mxu0 %vm188_vm1, %v179_v5  ;;  %v2199_v11 = vld [vmem:[%s2168_s7 + $0x31] sm:$0xff] }
  0x1b   : > { %v2185_v8 = vld [vmem:[%s2168_s7 + $0x61] sm:$0xff]  ;;  %1854 = vmatmul.mubr.msk.f32.vlgmr.msra.gmra.mxu1 %vm188_vm1, %v2179_v6  ;;  %1874 = vmatpush3.msk.msra.mxu0 %vm213_vm0, %v1639_v2  ;;  %v2202_v12 = vld [vmem:[%s2168_s7 + $0x71] sm:$0xff] }
  0x1c   : > { %1860 = vmatpush3.msk.msra.mxu1 %vm213_vm0, %v177_v1  ;;  %1850 = vmatprep.mubr.msk.f32.mxu0 %vm188_vm1, %v2182_v7  ;;  %v169_v13 = vld [vmem:[%s2168_s7] sm:$0xff]  ;;  %v170_v15 = vld [vmem:[%s2168_s7 + $0x10] sm:$0xff] }
  0x1d   : > { %1856 = vmatprep.mubr.msk.f32.mxu1 %vm188_vm1, %v2185_v8  ;;  %v454_v14 = vld [vmem:[%s2168_s7 + $0x2] sm:$0xff]  ;;  %1887 = vmatprep.subr.msk.mxu1 %vm213_vm0, %v1657_v9  ;;  %v455_v16 = vld [vmem:[%s2168_s7 + $0x12] sm:$0xff] }
  0x1e   : > { %1901 = vmatprep.subr.msk.mxu0 %vm213_vm0, %v1675_v10  ;;  %1851 = vmatmul.mubr.msk.f32.gmra.mxu0 %vm188_vm1, %v2199_v11  ;;  %v171_v17 = vld [vmem:[%s2168_s7 + $0x20] sm:$0xff]  ;;  %v172_v21 = vld [vmem:[%s2168_s7 + $0x30] sm:$0xff] }
  0x1f   : > { %1857 = vmatmul.mubr.msk.f32.gmra.mxu1 %vm188_vm1, %v2202_v12  ;;  %1875 = vmatprep.mubr.msk.f32.mxu0 %vm188_vm1, %v454_v14  ;;  %v2222_v18 = vld [vmem:[%s2168_s7 + $0x22] sm:$0xff]  ;;  %v2236_v22 = vld [vmem:[%s2168_s7 + $0x32] sm:$0xff] }
  0x20   : > { %1861 = vmatprep.mubr.msk.f32.mxu1 %vm188_vm1, %v169_v13  ;;  %v173_v23 = vld [vmem:[%s2168_s7 + $0x40] sm:$0xff]  ;;  %v174_v25 = vld [vmem:[%s2168_s7 + $0x50] sm:$0xff] }
  0x21   : > { %v2243_v24 = vld [vmem:[%s2168_s7 + $0x42] sm:$0xff]  ;;  %v459_v26 = vld [vmem:[%s2168_s7 + $0x52] sm:$0xff] }
  0x22   : > { %1876 = vmatmul.mubr.msk.f32.vlgmr.msra.gmra.mxu0 %vm188_vm1, %v455_v16  ;;  %v175_v27 = vld [vmem:[%s2168_s7 + $0x60] sm:$0xff]  ;;  %v176_v29 = vld [vmem:[%s2168_s7 + $0x70] sm:$0xff] }
  0x23   : > { %1862 = vmatmul.mubr.msk.f32.vlgmr.msra.gmra.mxu1 %vm188_vm1, %v170_v15  ;;  %1902 = vmatpush3.msk.msra.mxu0 %vm213_vm0, %v1675_v10  ;;  %v460_v28 = vld [vmem:[%s2168_s7 + $0x62] sm:$0xff]  ;;  %v461_v30 = vld [vmem:[%s2168_s7 + $0x72] sm:$0xff] }
  0x24   : > { %1888 = vmatpush3.msk.msra.mxu1 %vm213_vm0, %v1657_v9  ;;  %1864 = vmatprep.mubr.msk.f32.mxu1 %vm188_vm1, %v171_v17  ;;  %v1656_v33 = vld [vmem:[%s2168_s7 + $0x80] sm:$0xff]  ;;  %v1710_v36 = vld [vmem:[%s2168_s7 + $0x90] sm:$0xff] }
  0x25   : > { %1878 = vmatprep.mubr.msk.f32.mxu0 %vm188_vm1, %v2222_v18  ;;  %1915 = vmatprep.subr.msk.mxu1 %vm213_vm0, %v1693_v19  ;;  %v1674_v34 = vld [vmem:[%s2168_s7 + $0x81] sm:$0xff]  ;;  %v1728_v37 = vld [vmem:[%s2168_s7 + $0x91] sm:$0xff] }
  0x26   : > { %1929 = vmatprep.subr.msk.mxu0 %vm213_vm0, %v1711_v20  ;;  %1879 = vmatmul.mubr.msk.f32.gmra.mxu0 %vm188_vm1, %v2236_v22  ;;  %v1692_v35 = vld [vmem:[%s2168_s7 + $0x82] sm:$0xff]  ;;  %v1746_v38 = vld [vmem:[%s2168_s7 + $0x92] sm:$0xff]  ;;  %s1763_s7 = sshll.u32 %s2121_s16, 10  ;;  %s2403_s16 = scalar_lea.sflag [#allocation3], %s161_s29 }
  0x27   : > { %1865 = vmatmul.mubr.msk.f32.gmra.mxu1 %vm188_vm1, %v172_v21  ;;  %1881 = vmatprep.mubr.msk.f32.mxu0 %vm188_vm1, %v2243_v24  ;;  %s2393_s11 = scalar_lea.hbm %s2446_s3, %s1763_s7 }
  0x28   : > { %1867 = vmatprep.mubr.msk.f32.mxu1 %vm188_vm1, %v173_v23 }
  0x2a   : > { %1882 = vmatmul.mubr.msk.f32.gmra.mxu0 %vm188_vm1, %v459_v26 }
  0x2b   : > { %1868 = vmatmul.mubr.msk.f32.gmra.mxu1 %vm188_vm1, %v174_v25  ;;  %1884 = vmatprep.mubr.msk.f32.mxu0 %vm188_vm1, %v460_v28 }
  0x2c   : > { %1870 = vmatprep.mubr.msk.f32.mxu1 %vm188_vm1, %v175_v27 }
  0x2e   : > { %1885 = vmatmul.mubr.msk.f32.gmra.mxu0 %vm188_vm1, %v461_v30 }
  0x2f   : > { %1871 = vmatmul.mubr.msk.f32.gmra.mxu1 %vm188_vm1, %v176_v29  ;;  %1903 = vmatprep.mubr.msk.f32.mxu0 %vm188_vm1, %v179_v5 }
  0x30   : > { %1889 = vmatprep.mubr.msk.f32.mxu1 %vm188_vm1, %v170_v15 }
  0x32   : > { %1904 = vmatmul.mubr.msk.f32.vlgmr.msra.gmra.mxu0 %vm188_vm1, %v2182_v7 }
  0x33   : > { %1890 = vmatmul.mubr.msk.f32.vlgmr.msra.gmra.mxu1 %vm188_vm1, %v171_v17  ;;  %1930 = vmatpush3.msk.msra.mxu0 %vm213_vm0, %v1711_v20 }
  0x34   : > { %1916 = vmatpush3.msk.msra.mxu1 %vm213_vm0, %v1693_v19  ;;  %1892 = vmatprep.mubr.msk.f32.mxu1 %vm188_vm1, %v172_v21 }
  0x35   : > { %1906 = vmatprep.mubr.msk.f32.mxu0 %vm188_vm1, %v2199_v11  ;;  %1943 = vmatprep.subr.msk.mxu1 %vm213_vm0, %v1729_v31 }
  0x36   : > { %1957 = vmatprep.subr.msk.mxu0 %vm213_vm0, %v1747_v32  ;;  %1907 = vmatmul.mubr.msk.f32.gmra.mxu0 %vm188_vm1, %v2172_v4 }
  0x37   : > { %1893 = vmatmul.mubr.msk.f32.gmra.mxu1 %vm188_vm1, %v173_v23  ;;  %1909 = vmatprep.mubr.msk.f32.mxu0 %vm188_vm1, %v2179_v6 }
  0x38   : > { %1895 = vmatprep.mubr.msk.f32.mxu1 %vm188_vm1, %v174_v25 }
  0x3a   : > { %1910 = vmatmul.mubr.msk.f32.gmra.mxu0 %vm188_vm1, %v2185_v8 }
  0x3b   : > { %1896 = vmatmul.mubr.msk.f32.gmra.mxu1 %vm188_vm1, %v175_v27  ;;  %1912 = vmatprep.mubr.msk.f32.mxu0 %vm188_vm1, %v2202_v12 }
  0x3c   : > { %1898 = vmatprep.mubr.msk.f32.mxu1 %vm188_vm1, %v176_v29 }
  0x3e   : > { %1913 = vmatmul.mubr.msk.f32.gmra.mxu0 %vm188_vm1, %v1674_v34 }
  0x3f   : > { %1899 = vmatmul.mubr.msk.f32.gmra.mxu1 %vm188_vm1, %v1656_v33  ;;  %1931 = vmatprep.mubr.msk.f32.mxu0 %vm188_vm1, %v171_v17 }
  0x40   : > { %1917 = vmatprep.mubr.msk.f32.mxu1 %vm188_vm1, %v455_v16 }
  0x42   : > { %1932 = vmatmul.mubr.msk.f32.vlgmr.msra.gmra.mxu0 %vm188_vm1, %v172_v21 }
  0x43   : > { %1918 = vmatmul.mubr.msk.f32.vlgmr.msra.gmra.mxu1 %vm188_vm1, %v2222_v18  ;;  %1958 = vmatpush3.msk.msra.mxu0 %vm213_vm0, %v1747_v32 }
  0x44   : > { %1944 = vmatpush3.msk.msra.mxu1 %vm213_vm0, %v1729_v31  ;;  %1920 = vmatprep.mubr.msk.f32.mxu1 %vm188_vm1, %v2236_v22 }
  0x45   : > { %1934 = vmatprep.mubr.msk.f32.mxu0 %vm188_vm1, %v173_v23 }
  0x46   : > { %1935 = vmatmul.mubr.msk.f32.gmra.mxu0 %vm188_vm1, %v174_v25 }
  0x47   : > { %1921 = vmatmul.mubr.msk.f32.gmra.mxu1 %vm188_vm1, %v2243_v24  ;;  %1937 = vmatprep.mubr.msk.f32.mxu0 %vm188_vm1, %v175_v27 }
  0x48   : > { %1923 = vmatprep.mubr.msk.f32.mxu1 %vm188_vm1, %v459_v26 }
  0x4a   : > { %1938 = vmatmul.mubr.msk.f32.gmra.mxu0 %vm188_vm1, %v176_v29 }
  0x4b   : > { %1924 = vmatmul.mubr.msk.f32.gmra.mxu1 %vm188_vm1, %v460_v28  ;;  %1940 = vmatprep.mubr.msk.f32.mxu0 %vm188_vm1, %v1656_v33 }
  0x4c   : > { %1926 = vmatprep.mubr.msk.f32.mxu1 %vm188_vm1, %v461_v30 }
  0x4e   : > { %1941 = vmatmul.mubr.msk.f32.gmra.mxu0 %vm188_vm1, %v1710_v36 }
  0x4f   : > { %1927 = vmatmul.mubr.msk.f32.gmra.mxu1 %vm188_vm1, %v1692_v35  ;;  %1959 = vmatprep.mubr.msk.f32.mxu0 %vm188_vm1, %v2222_v18 }
  0x50   : > { %1945 = vmatprep.mubr.msk.f32.mxu1 %vm188_vm1, %v2182_v7 }
  0x52   : > { %1960 = vmatmul.mubr.msk.f32.vlgmr.msra.gmra.mxu0 %vm188_vm1, %v2236_v22 }
  0x53   : > { %1946 = vmatmul.mubr.msk.f32.vlgmr.msra.gmra.mxu1 %vm188_vm1, %v2199_v11  ;;  %1962 = vmatprep.mubr.msk.f32.mxu0 %vm188_vm1, %v2243_v24 }
  0x54   : > { %1948 = vmatprep.mubr.msk.f32.mxu1 %vm188_vm1, %v2172_v4 }
  0x56   : > { %1963 = vmatmul.mubr.msk.f32.gmra.mxu0 %vm188_vm1, %v459_v26 }
  0x57   : > { %1949 = vmatmul.mubr.msk.f32.gmra.mxu1 %vm188_vm1, %v2179_v6  ;;  %1965 = vmatprep.mubr.msk.f32.mxu0 %vm188_vm1, %v460_v28 }
  0x58   : > { %1951 = vmatprep.mubr.msk.f32.mxu1 %vm188_vm1, %v2185_v8 }
  0x5a   : > { %1966 = vmatmul.mubr.msk.f32.gmra.mxu0 %vm188_vm1, %v461_v30 }
  0x5b   : > { %1952 = vmatmul.mubr.msk.f32.gmra.mxu1 %vm188_vm1, %v2202_v12  ;;  %1968 = vmatprep.mubr.msk.f32.mxu0 %vm188_vm1, %v1692_v35 }
  0x5c   : > { %1954 = vmatprep.mubr.msk.f32.mxu1 %vm188_vm1, %v1674_v34 }
  0x5e   : > { %1969 = vmatmul.mubr.msk.f32.gmra.mxu0 %vm188_vm1, %v1746_v38 }
  0x5f   : > { %1955 = vmatmul.mubr.msk.f32.gmra.mxu1 %vm188_vm1, %v1728_v37 }
  0xda   : > { %v1849_v39 = vpop.f32.mrf.mxu0 }
  0xdb   : > { %v1855_v40 = vpop.f32.mrf.mxu1 }
  0xdc   : > { %v283_v41 = vpop.f32.mrf.mxu0 }
  0xdd   : > { %v303_v42 = vpop.f32.mrf.mxu1 }
  0xde   : > { %v1852_v43 = vpop.f32.mrf.mxu0 }
  0xdf   : > { %v1858_v44 = vpop.f32.mrf.mxu1 }
  0xe0   : > { %v293_v45 = vpop.f32.mrf.mxu0 }
  0xe1   : > { %v2349_v46 = vpop.f32.mrf.mxu1 }
  0xe2   : > { %v1877_v48 = vpop.f32.mrf.mxu0 }
  0xe3   : > { %v1863_v47 = vpop.f32.mrf.mxu1 }
  0xe4   : > { %v557_v50 = vpop.f32.mrf.mxu0  ;;  %v421_v15 = vadd.f32 %v1863_v47, %v1849_v39 }
  0xe5   : > { %v415_v49 = vpop.f32.mrf.mxu1 }
  0xe6   : > { %v1880_v52 = vpop.f32.mrf.mxu0  ;;  %v416_v18 = vadd.f32 %v415_v49, %v283_v41  ;;  %v597_v21 = vadd.f32 %v1877_v48, %v421_v15 }
  0xe7   : > { %v1866_v51 = vpop.f32.mrf.mxu1 }
  0xe8   : > { %v567_v54 = vpop.f32.mrf.mxu0  ;;  %v431_v22 = vadd.f32 %v1866_v51, %v1852_v43  ;;  %v596_v25 = vadd.f32 %v557_v50, %v416_v18 }
  0xe9   : > { %v425_v53 = vpop.f32.mrf.mxu1 }
  0xea   : > { %v1883_v56 = vpop.f32.mrf.mxu0  ;;  %v426_v26 = vadd.f32 %v425_v53, %v293_v45  ;;  %v599_v31 = vadd.f32 %v1880_v52, %v431_v22 }
  0xeb   : > { %v1869_v55 = vpop.f32.mrf.mxu1 }
  0xec   : > { %v577_v58 = vpop.f32.mrf.mxu0  ;;  %v441_v28 = vadd.f32 %v1869_v55, %v1855_v40  ;;  %v598_v36 = vadd.f32 %v567_v54, %v426_v26 }
  0xed   : > { %v435_v57 = vpop.f32.mrf.mxu1 }
  0xee   : > { %v1886_v60 = vpop.f32.mrf.mxu0  ;;  %v436_v33 = vadd.f32 %v435_v57, %v303_v42  ;;  %v601_v39 = vadd.f32 %v1883_v56, %v441_v28 }
  0xef   : > { %v1872_v59 = vpop.f32.mrf.mxu1 }
  0xf0   : > { %v587_v62 = vpop.f32.mrf.mxu0  ;;  %v451_v41 = vadd.f32 %v1872_v59, %v1858_v44  ;;  %v600_v45 = vadd.f32 %v577_v58, %v436_v33 }
  0xf1   : > { %v445_v61 = vpop.f32.mrf.mxu1 }
  0xf2   : > { %v1905_v0 = vpop.f32.mrf.mxu0  ;;  %v446_v40 = vadd.f32 %v445_v61, %v2349_v46  ;;  %v603_v57 = vadd.f32 %v1886_v60, %v451_v41  ;;  %v2360_v60 = vld [vmem:[%s2445_s2] ss:$0 sm:$0xff] }
  0xf3   : > { %v1891_v63 = vpop.f32.mrf.mxu1 }
  0xf4   : > { %v858_v2 = vpop.f32.mrf.mxu0  ;;  %v748_v27 = vadd.f32 %v1891_v63, %v597_v21 }
  0xf5   : > { %v708_v1 = vpop.f32.mrf.mxu1 }
  0xf6   : > { %v1908_v4 = vpop.f32.mrf.mxu0  ;;  %v747_v32 = vadd.f32 %v708_v1, %v596_v25  ;;  %v898_v37 = vadd.f32 %v1905_v0, %v748_v27  ;;  %v602_v1 = vadd.f32 %v587_v62, %v446_v40 }
  0xf7   : > { %v1894_v3 = vpop.f32.mrf.mxu1 }
  0xf8   : > { %v868_v6 = vpop.f32.mrf.mxu0  ;;  %v750_v38 = vadd.f32 %v1894_v3, %v599_v31  ;;  %v897_v48 = vadd.f32 %v858_v2, %v747_v32 }
  0xf9   : > { %v718_v5 = vpop.f32.mrf.mxu1 }
  0xfa   : > { %v1911_v8 = vpop.f32.mrf.mxu0  ;;  %v749_v49 = vadd.f32 %v718_v5, %v598_v36  ;;  %v900_v42 = vadd.f32 %v1908_v4, %v750_v38 }
  0xfb   : > { %v1897_v7 = vpop.f32.mrf.mxu1 }
  0xfc   : > { %v878_v10 = vpop.f32.mrf.mxu0  ;;  %v752_v51 = vadd.f32 %v1897_v7, %v601_v39  ;;  %v899_v56 = vadd.f32 %v868_v6, %v749_v49 }
  0xfd   : > { %v728_v9 = vpop.f32.mrf.mxu1 }
  0xfe   : > { %v2351_v12 = vpop.f32.mrf.mxu0  ;;  %v751_v54 = vadd.f32 %v728_v9, %v600_v45  ;;  %v902_v2 = vadd.f32 %v1911_v8, %v752_v51 }
  0xff   : > { %v1900_v11 = vpop.f32.mrf.mxu1 }
 0x100   : > { %v2353_v14 = vpop.f32.mrf.mxu0  ;;  %v754_v3 = vadd.f32 %v1900_v11, %v603_v57  ;;  %v901_v15 = vadd.f32 %v878_v10, %v751_v54 }
 0x101   : > { %v738_v13 = vpop.f32.mrf.mxu1 }
 0x102   : > { %v1933_v17 = vpop.f32.mrf.mxu0  ;;  %v753_v4 = vadd.f32 %v738_v13, %v602_v1 }
 0x103   : > { %v1919_v16 = vpop.f32.mrf.mxu1 }
 0x104   : > { %v1159_v20 = vpop.f32.mrf.mxu0  ;;  %v1048_v50 = vadd.f32 %v1919_v16, %v898_v37 }
 0x105   : > { %v1008_v19 = vpop.f32.mrf.mxu1 }
 0x106   : > { %v1936_v24 = vpop.f32.mrf.mxu0  ;;  %v1047_v55 = vadd.f32 %v1008_v19, %v897_v48  ;;  %v1199_v44 = vadd.f32 %v1933_v17, %v1048_v50  ;;  %v904_v17 = vadd.f32 %v2351_v12, %v754_v3 }
 0x107   : > { %v1922_v23 = vpop.f32.mrf.mxu1 }
 0x108   : > { %v1169_v30 = vpop.f32.mrf.mxu0  ;;  %v1050_v59 = vadd.f32 %v1922_v23, %v900_v42  ;;  %v1198_v61 = vadd.f32 %v1159_v20, %v1047_v55  ;;  %v903_v23 = vadd.f32 %v2353_v14, %v753_v4 }
 0x109   : > { %v1018_v29 = vpop.f32.mrf.mxu1 }
 0x10a   : > { %v1939_v35 = vpop.f32.mrf.mxu0  ;;  %v1049_v5 = vadd.f32 %v1018_v29, %v899_v56  ;;  %v1201_v62 = vadd.f32 %v1936_v24, %v1050_v59 }
 0x10b   : > { %v1925_v34 = vpop.f32.mrf.mxu1 }
 0x10c   : > { %v1179_v43 = vpop.f32.mrf.mxu0  ;;  %v1052_v16 = vadd.f32 %v1925_v34, %v902_v2  ;;  %v1200_v10 = vadd.f32 %v1169_v30, %v1049_v5 }
 0x10d   : > { %v1028_v47 = vpop.f32.mrf.mxu1 }
 0x10e   : > { %v1942_v53 = vpop.f32.mrf.mxu0  ;;  %v1051_v18 = vadd.f32 %v1028_v47, %v901_v15  ;;  %v1203_v25 = vadd.f32 %v1939_v35, %v1052_v16 }
 0x10f   : > { %v1928_v52 = vpop.f32.mrf.mxu1 }
 0x110   : > { %v1189_v0 = vpop.f32.mrf.mxu0  ;;  %v1054_v26 = vadd.f32 %v1928_v52, %v904_v17  ;;  %v1202_v32 = vadd.f32 %v1179_v43, %v1051_v18 }
 0x111   : > { %v1038_v63 = vpop.f32.mrf.mxu1 }
 0x112   : > { %v1961_v46 = vpop.f32.mrf.mxu0  ;;  %v1053_v33 = vadd.f32 %v1038_v63, %v903_v23  ;;  %v1205_v38 = vadd.f32 %v1942_v53, %v1054_v26 }
 0x113   : > { %v1947_v58 = vpop.f32.mrf.mxu1 }
 0x114   : > { %v1349_v7 = vadd.f32 %v1947_v58, %v1199_v44  ;;  %v1459_v9 = vpop.f32.mrf.mxu0  ;;  %v1204_v50 = vadd.f32 %v1189_v0, %v1053_v33 }
 0x115   : > { %v1309_v6 = vpop.f32.mrf.mxu1 }
 0x116   : > { %v1499_v8 = vadd.f32 %v1961_v46, %v1349_v7  ;;  %v1348_v11 = vadd.f32 %v1309_v6, %v1198_v61  ;;  %v1964_v20 = vpop.f32.mrf.mxu0 }
 0x117   : > { %v1950_v19 = vpop.f32.mrf.mxu1 }
 0x118   : > { %v1514_v13 = vadd.f32 %v2360_v60, %v1499_v8  ;;  %v1498_v21 = vadd.f32 %v1459_v9, %v1348_v11  ;;  %v1351_v22 = vadd.f32 %v1950_v19, %v1201_v62  ;;  %v1469_v27 = vpop.f32.mrf.mxu0 }
 0x119   : > { %v1319_v24 = vpop.f32.mrf.mxu1 }
 0x11a   : > { %v1522_v28 = vmax.f32 %v1514_v13, 0.0  ;;  %v1513_v29 = vadd.f32 %v2360_v60, %v1498_v21  ;;  %v1501_v31 = vadd.f32 %v1964_v20, %v1351_v22  ;;  %v1350_v12 = vadd.f32 %v1319_v24, %v1200_v10  ;;  %v1967_v30 = vpop.f32.mrf.mxu0 }
 0x11b   : > { %v1953_v34 = vpop.f32.mrf.mxu1 }
 0x11c   : > { %1531 = vst.msk [vmem:[%s2368_s6 + $0x8] sm:$0xff] %vm1529_vm2, %v1522_v28  ;;  %v1521_v14 = vmax.f32 %v1513_v29, 0.0  ;;  %v1516_v35 = vadd.f32 %v2360_v60, %v1501_v31  ;;  %v1500_v36 = vadd.f32 %v1469_v27, %v1350_v12  ;;  %v1353_v37 = vadd.f32 %v1953_v34, %v1203_v25  ;;  %v1479_v41 = vpop.f32.mrf.mxu0 }
 0x11d   : > { %v1329_v39 = vpop.f32.mrf.mxu1 }
 0x11e   : > { %1530 = vst.msk [vmem:[%s2368_s6] sm:$0xff] %vm1529_vm2, %v1521_v14  ;;  %v1524_v47 = vmax.f32 %v1516_v35, 0.0  ;;  %v1515_v43 = vadd.f32 %v2360_v60, %v1500_v36  ;;  %v1503_v48 = vadd.f32 %v1967_v30, %v1353_v37  ;;  %v1352_v49 = vadd.f32 %v1329_v39, %v1202_v32  ;;  %v1970_v40 = vpop.f32.mrf.mxu0 }
 0x11f   : > { %v1956_v45 = vpop.f32.mrf.mxu1 }
 0x120   : > { %1533 = vst.msk [vmem:[%s2368_s6 + $0x18] sm:$0xff] %vm1529_vm2, %v1524_v47  ;;  %v1523_v51 = vmax.f32 %v1515_v43, 0.0  ;;  %v1518_v52 = vadd.f32 %v2360_v60, %v1503_v48  ;;  %v1502_v53 = vadd.f32 %v1479_v41, %v1352_v49  ;;  %v1355_v42 = vadd.f32 %v1956_v45, %v1205_v38  ;;  %v1489_v56 = vpop.f32.mrf.mxu0 }
 0x121   : > { %v1339_v55 = vpop.f32.mrf.mxu1 }
 0x122   : > { %1532 = vst.msk [vmem:[%s2368_s6 + $0x10] sm:$0xff] %vm1529_vm2, %v1523_v51  ;;  %v1526_v57 = vmax.f32 %v1518_v52, 0.0  ;;  %v1517_v54 = vadd.f32 %v2360_v60, %v1502_v53  ;;  %v1505_v63 = vadd.f32 %v1970_v40, %v1355_v42  ;;  %v1354_v0 = vadd.f32 %v1339_v55, %v1204_v50 }
 0x124   : > { %1535 = vst.msk [vmem:[%s2368_s6 + $0x28] sm:$0xff] %vm1529_vm2, %v1526_v57  ;;  %v1525_v44 = vmax.f32 %v1517_v54, 0.0  ;;  %v1520_v59 = vadd.f32 %v2360_v60, %v1505_v63  ;;  %v1504_v1 = vadd.f32 %v1489_v56, %v1354_v0 }
 0x126   : > { %1534 = vst.msk [vmem:[%s2368_s6 + $0x20] sm:$0xff] %vm1529_vm2, %v1525_v44  ;;  %v1528_v2 = vmax.f32 %v1520_v59, 0.0  ;;  %v1519_v3 = vadd.f32 %v2360_v60, %v1504_v1 }
 0x128   : > { %1537 = vst.msk [vmem:[%s2368_s6 + $0x38] sm:$0xff] %vm1529_vm2, %v1528_v2  ;;  %v1527_v58 = vmax.f32 %v1519_v3, 0.0 }
 0x12a   : > { %1536 = vst.msk [vmem:[%s2368_s6 + $0x30] sm:$0xff] %vm1529_vm2, %v1527_v58 }
 0x12b   : > { %2028 = shalt.err (!%p2025_p3)
}
 0x12c   : > { %s2029_s25 = scalar_lea.hbm %s2393_s11, 1024  ;;  %s2033_s28 = scalar_lea.hbm %s2446_s3, 2048 }
 0x12d   : > { %p2030_p4 = scmp.ne.s32.totalorder %s2393_s11, %s2029_s25  ;;  %p2034_p9 = scmp.lt.s32.totalorder %s2393_s11, %s2446_s3 }
 0x12e   : > { %p2035_p10 = scmp.lt.s32.totalorder %s2033_s28, %s2029_s25 }
 0x12f   : > { %p2031_p7 = pnand %p2030_p4, %p2138_p5 }
 0x130   : > { %p2036_p11 = por %p2035_p10, %p2034_p9 }
 0x131   : > { %p2032_p8 = pneg %p2031_p7 }
 0x133   : > { %p2037_p12 = pnand %p2036_p11, %p2032_p8 }
 0x135   : > { %2040 = shalt.err (!%p2037_p12)
}
 0x136   : > { %s2078_s4 = smov 128   ;;  %s2079_s5 = smov 8  }
 0x137   : > { %1974 = dma.vmem_to_hbm [thread:$0]  (%p2138_p5), %s2395_s8, 1024, %s2393_s11, %s2403_s16, %s2078_s4, %s2078_s4, %s2079_s5  }
 0x138 PF: > { %p1980_p13 = scmp.ge.s32.totalorder %s2075_s15, 2  ;;  %s1567_s6 = sand.u32 1, %s2063_s12  }
 0x139   : > { %s1568_s7 = scalar_lea.sflag [#allocation3], %s1567_s6 }
 0x13a   : > { %p1977_p0 = pnand %p1980_p13, %p2142_p6 }
 0x13c   : > { %p1978_p1 = pneg %p1977_p0 }
 0x13e   : > { %2058 = dma.done.wait (%p1978_p1), %s1568_s7, 1024  }
 0x13f   : > { %2060 = vsyncadd (%p1978_p1), %s1568_s7, 4294966272  ;;  %p13_p2 = scmp.ge.s32.totalorder %s2125_s18, 4   ;;  %s2449_s12 = smov %s2067_s13 }
 0x140   : > { %s2450_s13 = smov %s2071_s14  ;;  %s2451_s14 = smov %s2136_s21 }
 0x141   : > { %s2452_s15 = smov %s2125_s18  ;;  %15 = sbr.rel (!%p13_p2) target bundleno = 3 (0x3), region = 77 }
 0x146   :  { %1573 = vsyncpa [#allocation3], 1 }
 0x147   :  { %1575 = vsyncpa [#allocation3 + $0x1], 1 }

</bundles_post_ra>
